<compile_context>
chip_gen: v7x
topology: tpu7x:2x2x1
jax: 0.10.0
libtpu: 0.0.40
codegen_flags: <defaults>
</compile_context>

<pallas_src>
import functools

import jax
import jax.numpy as jnp
from jax.experimental import pallas as pl
from jax.experimental.pallas import tpu as pltpu

LANE = 128
LN_EPS = 1e-5
PAD_Q = 256  # N-padding quantum (lane/sublane aligned without rounding N to the row tile)


def _round_up(x, m):
    return ((x + m - 1) // m) * m


def _pad2(m, rows, cols):
    return jnp.pad(m, ((0, rows - m.shape[0]), (0, cols - m.shape[1])))


def _hw_budget():
    """Generation-aware tile targets / scoped-VMEM budget.

    v5e / v6e (128 MiB VMEM) -> tm=4096, tk=512, 64 MiB limit
    v7x       ( 64 MiB / TC) -> tm=2048, tk=512, 32 MiB limit
    """
    try:
        cap = pltpu.get_tpu_info().vmem_capacity_bytes
    except Exception:  # pragma: no cover - conservative fallback
        cap = 64 * 1024 * 1024
    if cap >= (100 << 20):
        return 4096, 512, 64 * 1024 * 1024
    return 2048, 512, 32 * 1024 * 1024


def _largest_divisor_tile(n_pad, target):
    """Largest tile <= target that divides n_pad (n_pad is a PAD_Q multiple)."""
    t = min(target, n_pad)
    while n_pad % t:
        t //= 2
    return max(t, LANE)


# ---------------------------------------------------------------------------
# Pallas kernel: one WeightedSAGEConv layer (optionally fused LayerNorm+ReLU)
# ---------------------------------------------------------------------------
def _sage_body(a_ref, xk_ref, xi_ref, wl_ref, wr_ref, o_ref, acc_ref,
               *, ln_refs, real_channels):
    k = pl.program_id(1)

    # Neighbour aggregation: acc (+)= A[i, k] @ X[k]
    # (operands pre-cast to bf16 outside the kernel; f32 MXU accumulate).
    prod = jnp.dot(a_ref[...], xk_ref[...], preferred_element_type=jnp.float32)

    @pl.when(k == 0)
    def _first():
        acc_ref[...] = prod          # direct write: no zero store + reload

    @pl.when(k != 0)
    def _rest():
        acc_ref[...] += prod

    @pl.when(k == pl.num_programs(1) - 1)
    def _epilogue():
        # out = lin_l(agg) + lin_r(x_rows)   (f32 weights, f32 accumulate)
        xi = xi_ref[...].astype(jnp.float32)
        out = (
            jnp.dot(acc_ref[...], wl_ref[...], preferred_element_type=jnp.float32)
            + jnp.dot(xi, wr_ref[...], preferred_element_type=jnp.float32)
        )
        if ln_refs is not None:
            g_ref, b_ref = ln_refs
            inv_c = 1.0 / float(real_channels)
            # Padded channels of `out` are exactly zero, so the mean over the
            # full lane width equals the mean over the real channels.
            mu = jnp.sum(out, axis=-1, keepdims=True) * inv_c
            # Two-pass variance (matches reference); mask padded lanes so they
            # do not contribute (-mu)^2 terms.
            if real_channels != out.shape[-1]:
                col = jax.lax.broadcasted_iota(jnp.int32, out.shape, 1)
                diff = jnp.where(col < real_channels, out - mu, 0.0)
            else:
                diff = out - mu
            var = jnp.sum(diff * diff, axis=-1, keepdims=True) * inv_c
            out = diff * jax.lax.rsqrt(var + LN_EPS)
            out = out * g_ref[...] + b_ref[...]   # padded gamma/beta are zero
            out = jnp.maximum(out, 0.0)
        o_ref[...] = out.astype(o_ref.dtype)


def _make_sage_kernel(fuse_ln_relu, real_channels):
    if fuse_ln_relu:
        def kernel(a_ref, xk_ref, xi_ref, wl_ref, wr_ref, g_ref, b_ref,
                   o_ref, acc_ref):
            _sage_body(a_ref, xk_ref, xi_ref, wl_ref, wr_ref, o_ref, acc_ref,
                       ln_refs=(g_ref, b_ref), real_channels=real_channels)
    else:
        def kernel(a_ref, xk_ref, xi_ref, wl_ref, wr_ref, o_ref, acc_ref):
            _sage_body(a_ref, xk_ref, xi_ref, wl_ref, wr_ref, o_ref, acc_ref,
                       ln_refs=None, real_channels=real_channels)
    return kernel


def _sage_conv_call(a, x, w_l, w_r, *, tm, tk, ln=None, real_channels=0,
                    out_dtype=jnp.float32, vmem_limit=64 * 1024 * 1024):
    """out = lin_l(mean-aggregated neighbours) [+ fused LN+ReLU] + lin_r(x).

    a:   (N_pad, N_pad)   normalized adjacency (A[dst, src]), bf16 (or f32)
    x:   (N_pad, Cin_p)   node features, same dtype as `a` (pre-cast outside)
    w_*: (Cin_p, Cout_p)  weights, f32 (both dims padded to 128)
    ln:  optional (gamma, beta), each (1, Cout_p) f32
    """
    n_pad = a.shape[0]
    c_in_p = x.shape[1]
    c_out_p = w_l.shape[1]
    grid = (n_pad // tm, n_pad // tk)

    in_specs = [
        pl.BlockSpec((tm, tk), lambda i, k: (i, k)),           # A tile (streamed)
        pl.BlockSpec((tk, c_in_p), lambda i, k: (k, 0)),       # X K-block (aggregation)
        pl.BlockSpec((tm, c_in_p), lambda i, k: (i, 0)),       # X row block (residual)
        pl.BlockSpec((c_in_p, c_out_p), lambda i, k: (0, 0)),  # W_l (resident)
        pl.BlockSpec((c_in_p, c_out_p), lambda i, k: (0, 0)),  # W_r (resident)
    ]
    args = [a, x, x, w_l, w_r]
    if ln is not None:
        gamma, beta = ln
        in_specs += [
            pl.BlockSpec((1, c_out_p), lambda i, k: (0, 0)),
            pl.BlockSpec((1, c_out_p), lambda i, k: (0, 0)),
        ]
        args += [gamma, beta]

    kernel = _make_sage_kernel(ln is not None, real_channels)

    row_blocks = n_pad // tm
    flops = 2 * n_pad * n_pad * c_in_p + 4 * n_pad * c_in_p * c_out_p
    bytes_accessed = (
        a.size * a.dtype.itemsize                                 # A streamed once
        + row_blocks * n_pad * c_in_p * x.dtype.itemsize          # X K-block re-streamed per row block
        + n_pad * c_in_p * x.dtype.itemsize                       # X row block once
        + (w_l.size + w_r.size) * 4
        + n_pad * c_out_p * jnp.dtype(out_dtype).itemsize
    )
    cost = pl.CostEstimate(
        flops=int(flops),
        transcendentals=int(n_pad if ln is not None else 0),
        bytes_accessed=int(bytes_accessed),
    )

    return pl.pallas_call(
        kernel,
        out_shape=jax.ShapeDtypeStruct((n_pad, c_out_p), out_dtype),
        grid_spec=pltpu.PrefetchScalarGridSpec(
            num_scalar_prefetch=0,
            grid=grid,
            in_specs=in_specs,
            out_specs=pl.BlockSpec((tm, c_out_p), lambda i, k: (i, 0)),
            scratch_shapes=[pltpu.VMEM((tm, c_in_p), jnp.float32)],
        ),
        compiler_params=pltpu.CompilerParams(
            dimension_semantics=("parallel", "arbitrary"),
            vmem_limit_bytes=int(vmem_limit),
        ),
        cost_estimate=cost,
    )(*args)


# ---------------------------------------------------------------------------
# Glue: (edge_index, edge_weight) -> dense normalized adjacency reproducing
# WeightedSAGEConv's normalize + message + mean aggregation exactly.
# ---------------------------------------------------------------------------
def build_normalized_adjacency(edge_index, edge_weight, num_nodes):
    src, dst = edge_index[0], edge_index[1]
    if edge_weight is None:
        edge_weight = jnp.ones((edge_index.shape[1],), dtype=jnp.float32)
    # degree(dst, N): unweighted in-degree, clamp(min=1e-12)  (normalize=True)
    deg = jnp.zeros((num_nodes,), jnp.float32).at[dst].add(1.0)
    w = edge_weight / jnp.maximum(deg, 1e-12)[dst]
    a = jnp.zeros((num_nodes, num_nodes), jnp.float32).at[dst, src].add(w)
    # aggr='mean' in MessagePassing: scatter-sum / count.clamp(min=1)
    a = a / jnp.maximum(deg, 1.0)[:, None]
    return a


@functools.partial(jax.jit, static_argnames=("a_dtype",))
def _forward_padded(params, a, x, a_dtype=jnp.bfloat16):
    n, c_in = x.shape
    hid = params["w1_l"].shape[1]
    c_out = params["w2_l"].shape[1]

    tm_target, tk_target, vmem_limit = _hw_budget()

    n_small = _round_up(n, LANE)
    if n_small <= 2 * PAD_Q:
        n_pad = n_small
        tm = tk = n_pad                      # single block per axis
    else:
        n_pad = _round_up(n, PAD_Q)          # small padding quantum, not full tile
        tm = _largest_divisor_tile(n_pad, tm_target)
        tk = _largest_divisor_tile(n_pad, tk_target)

    c_in_p = _round_up(c_in, LANE)
    hid_p = _round_up(hid, LANE)
    c_out_p = _round_up(c_out, LANE)

    # Pad everything lane-dense; padded rows/cols are zero so they neither
    # contribute to aggregation nor perturb the LayerNorm statistics.
    a_p = _pad2(a, n_pad, n_pad).astype(a_dtype)
    # Activations pre-cast to the adjacency dtype OUTSIDE the kernel: the
    # K-side operand is re-streamed N/tm times per layer, so bf16 halves that
    # HBM stream and removes a per-step in-kernel cast.
    x_b = _pad2(x, n_pad, c_in_p).astype(a_dtype)
    w1_l = _pad2(params["w1_l"], c_in_p, hid_p)
    w1_r = _pad2(params["w1_r"], c_in_p, hid_p)
    gamma = _pad2(params["ln_gamma"].reshape(1, -1), 1, hid_p)
    beta = _pad2(params["ln_beta"].reshape(1, -1), 1, hid_p)
    w2_l = _pad2(params["w2_l"], hid_p, c_out_p)
    w2_r = _pad2(params["w2_r"], hid_p, c_out_p)

    # Layer 1: conv + fused LayerNorm + ReLU; emit h directly in bf16 since
    # layer 2 consumes it in bf16 anyway (halves the h HBM round-trip).
    h_b = _sage_conv_call(a_p, x_b, w1_l, w1_r, tm=tm, tk=tk,
                          ln=(gamma, beta), real_channels=hid,
                          out_dtype=a_dtype, vmem_limit=vmem_limit)
    # TODO(synk): F.dropout is identity in eval mode; training-mode RNG dropout
    #             not implemented.
    # Layer 2: plain conv, f32 output.
    out = _sage_conv_call(a_p, h_b, w2_l, w2_r, tm=tm, tk=tk,
                          ln=None, real_channels=c_out,
                          out_dtype=jnp.float32, vmem_limit=vmem_limit)
    return out[:n, :c_out]


def graphsage_forward(params, x, edge_index, edge_weight=None,
                      a_dtype=jnp.bfloat16):
    a = build_normalized_adjacency(edge_index, edge_weight, x.shape[0])
    return _forward_padded(params, a, x, a_dtype=a_dtype)


# ---------------------------------------------------------------------------
# Pure-JAX reference (mirrors the kernel's bf16 adjacency / activation casts)
# ---------------------------------------------------------------------------
def reference_forward(params, x, edge_index, edge_weight=None,
                      a_dtype=jnp.bfloat16):
    a = build_normalized_adjacency(edge_index, edge_weight, x.shape[0])
    a = a.astype(a_dtype).astype(jnp.float32)

    def conv(xin_b, wl, wr):
        xin = xin_b.astype(jnp.float32)
        agg = a @ xin
        return agg @ wl + xin @ wr

    x_b = x.astype(a_dtype)
    h = conv(x_b, params["w1_l"], params["w1_r"])
    mu = h.mean(-1, keepdims=True)
    var = ((h - mu) ** 2).mean(-1, keepdims=True)
    h = (h - mu) / jnp.sqrt(var + LN_EPS) * params["ln_gamma"] + params["ln_beta"]
    h = jnp.maximum(h, 0.0).astype(a_dtype)      # layer-1 output stored in bf16
    return conv(h, params["w2_l"], params["w2_r"])


def init_params(key, in_channels, hidden_channels, out_channels):
    k1, k2, k3, k4 = jax.random.split(key, 4)
    s1 = 1.0 / jnp.sqrt(in_channels)
    s2 = 1.0 / jnp.sqrt(hidden_channels)
    # nn.Linear(in, out, bias=False) weight is (out, in); stored transposed (in, out)
    return {
        "w1_l": jax.random.uniform(k1, (in_channels, hidden_channels), jnp.float32, -s1, s1),
        "w1_r": jax.random.uniform(k2, (in_channels, hidden_channels), jnp.float32, -s1, s1),
        "ln_gamma": jnp.ones((hidden_channels,), jnp.float32),
        "ln_beta": jnp.zeros((hidden_channels,), jnp.float32),
        "w2_l": jax.random.uniform(k3, (hidden_channels, out_channels), jnp.float32, -s2, s2),
        "w2_r": jax.random.uniform(k4, (hidden_channels, out_channels), jnp.float32, -s2, s2),
    }


if __name__ == "__main__":
    # Small but non-trivial: N=576 pads to 768 and exercises the multi-K-block
    # accumulation path (grid (1, 3) with tk=256) as well as the fused epilogue.
    N, E = 576, 2048
    IN_C, HID_C, OUT_C = 16, 32, 8

    key = jax.random.PRNGKey(0)
    kx, ke, kw, kp = jax.random.split(key, 4)

    x = jax.random.normal(kx, (N, IN_C), jnp.float32)
    edge_index = jax.random.randint(ke, (2, E), 0, N, dtype=jnp.int32)
    edge_weight = jax.random.uniform(kw, (E,), jnp.float32, 0.1, 1.0)
    params = init_params(kp, IN_C, HID_C, OUT_C)

    out = graphsage_forward(params, x, edge_index, edge_weight)
    out = jax.block_until_ready(out)

    ref = reference_forward(params, x, edge_index, edge_weight)
    assert out.shape == (N, OUT_C)
    assert jnp.allclose(out, ref, rtol=1e-2, atol=1e-2), "mismatch vs reference"

    print("KERNEL_OK")
</pallas_src>

<mosaic_0001>
module attributes {stable_mosaic.version = 11 : i64} {
  func.func @kernel(%arg0: i32, %arg1: i32, %arg2: memref<768x256xbf16, #tpu.memory_space<vmem>>, %arg3: memref<256x128xbf16, #tpu.memory_space<vmem>>, %arg4: memref<768x128xbf16, #tpu.memory_space<vmem>>, %arg5: memref<128x128xf32, #tpu.memory_space<vmem>>, %arg6: memref<128x128xf32, #tpu.memory_space<vmem>>, %arg7: memref<1x128xf32, #tpu.memory_space<vmem>>, %arg8: memref<1x128xf32, #tpu.memory_space<vmem>>, %arg9: memref<768x128xbf16, #tpu.memory_space<vmem>>, %arg10: memref<768x128xf32, #tpu.memory_space<vmem>>) attributes {dimension_semantics = [#tpu.dimension_semantics<parallel>, #tpu.dimension_semantics<arbitrary>], iteration_bounds = array<i64: 1, 3>, scalar_prefetch = 0 : i64, scratch_operands = 1 : i64, tpu.core_type = #tpu.core_type<tc>, window_params = [{transform_indices = @transform_0, window_bounds = array<i64: 768, 256>}, {transform_indices = @transform_1, window_bounds = array<i64: 256, 128>}, {transform_indices = @transform_2, window_bounds = array<i64: 768, 128>}, {pipeline_mode = #tpu.pipeline_mode<synchronous>, transform_indices = @transform_3, window_bounds = array<i64: 128, 128>}, {pipeline_mode = #tpu.pipeline_mode<synchronous>, transform_indices = @transform_4, window_bounds = array<i64: 128, 128>}, {pipeline_mode = #tpu.pipeline_mode<synchronous>, transform_indices = @transform_5, window_bounds = array<i64: 1, 128>}, {pipeline_mode = #tpu.pipeline_mode<synchronous>, transform_indices = @transform_6, window_bounds = array<i64: 1, 128>}, {transform_indices = @transform_7, window_bounds = array<i64: 768, 128>}]} {
    %c0 = arith.constant 0 : index
    %c0_0 = arith.constant 0 : index
    %0 = vector.load %arg2[%c0, %c0_0] : memref<768x256xbf16, #tpu.memory_space<vmem>>, vector<768x256xbf16>
    %c0_1 = arith.constant 0 : index
    %c0_2 = arith.constant 0 : index
    %1 = vector.load %arg3[%c0_1, %c0_2] : memref<256x128xbf16, #tpu.memory_space<vmem>>, vector<256x128xbf16>
    %cst = arith.constant dense<0.000000e+00> : vector<768x128xf32>
    %2 = tpu.matmul %0, %1, %cst {dimension_numbers = #tpu.dot_dimension_numbers<[1], [0], [0], [1], [0, 0, 1, 1], [], []>} : vector<768x256xbf16>, vector<256x128xbf16>, vector<768x128xf32> -> vector<768x128xf32>
    %c0_i32 = arith.constant 0 : i32
    %3 = arith.cmpi eq, %arg1, %c0_i32 : i32
    %4 = arith.extui %3 : i1 to i32
    %c0_i32_3 = arith.constant 0 : i32
    %5 = arith.cmpi ne, %4, %c0_i32_3 : i32
    scf.if %5 {
      %c0_7 = arith.constant 0 : index
      %c0_8 = arith.constant 0 : index
      %12 = vector.load %arg10[%c0_7, %c0_8] : memref<768x128xf32, #tpu.memory_space<vmem>>, vector<768x128xf32>
      tpu.vector_store %arg10[%c0_7, %c0_8], %2 {strides = array<i32>} : memref<768x128xf32, #tpu.memory_space<vmem>>, vector<768x128xf32>,
    } else {
    }
    %c0_i32_4 = arith.constant 0 : i32
    %6 = arith.cmpi ne, %arg1, %c0_i32_4 : i32
    %7 = arith.extui %6 : i1 to i32
    %c0_i32_5 = arith.constant 0 : i32
    %8 = arith.cmpi ne, %7, %c0_i32_5 : i32
    scf.if %8 {
      %c0_7 = arith.constant 0 : index
      %c0_8 = arith.constant 0 : index
      %12 = vector.load %arg10[%c0_7, %c0_8] : memref<768x128xf32, #tpu.memory_space<vmem>>, vector<768x128xf32>
      %13 = arith.addf %12, %2 : vector<768x128xf32>
      %c0_9 = arith.constant 0 : index
      %c0_10 = arith.constant 0 : index
      %14 = vector.load %arg10[%c0_9, %c0_10] : memref<768x128xf32, #tpu.memory_space<vmem>>, vector<768x128xf32>
      tpu.vector_store %arg10[%c0_9, %c0_10], %13 {strides = array<i32>} : memref<768x128xf32, #tpu.memory_space<vmem>>, vector<768x128xf32>,
    } else {
    }
    %c2_i32 = arith.constant 2 : i32
    %9 = arith.cmpi eq, %arg1, %c2_i32 : i32
    %10 = arith.extui %9 : i1 to i32
    %c0_i32_6 = arith.constant 0 : i32
    %11 = arith.cmpi ne, %10, %c0_i32_6 : i32
    scf.if %11 {
      %c0_7 = arith.constant 0 : index
      %c0_8 = arith.constant 0 : index
      %12 = vector.load %arg4[%c0_7, %c0_8] : memref<768x128xbf16, #tpu.memory_space<vmem>>, vector<768x128xbf16>
      %13 = arith.extf %12 : vector<768x128xbf16> to vector<768x128xf32>
      %c0_9 = arith.constant 0 : index
      %c0_10 = arith.constant 0 : index
      %14 = vector.load %arg10[%c0_9, %c0_10] : memref<768x128xf32, #tpu.memory_space<vmem>>, vector<768x128xf32>
      %c0_11 = arith.constant 0 : index
      %c0_12 = arith.constant 0 : index
      %15 = vector.load %arg5[%c0_11, %c0_12] : memref<128x128xf32, #tpu.memory_space<vmem>>, vector<128x128xf32>
      %cst_13 = arith.constant dense<0.000000e+00> : vector<768x128xf32>
      %16 = tpu.matmul %14, %15, %cst_13 {dimension_numbers = #tpu.dot_dimension_numbers<[1], [0], [0], [1], [0, 0, 1, 1], [], []>} : vector<768x128xf32>, vector<128x128xf32>, vector<768x128xf32> -> vector<768x128xf32>
      %c0_14 = arith.constant 0 : index
      %c0_15 = arith.constant 0 : index
      %17 = vector.load %arg6[%c0_14, %c0_15] : memref<128x128xf32, #tpu.memory_space<vmem>>, vector<128x128xf32>
      %cst_16 = arith.constant dense<0.000000e+00> : vector<768x128xf32>
      %18 = tpu.matmul %13, %17, %cst_16 {dimension_numbers = #tpu.dot_dimension_numbers<[1], [0], [0], [1], [0, 0, 1, 1], [], []>} : vector<768x128xf32>, vector<128x128xf32>, vector<768x128xf32> -> vector<768x128xf32>
      %19 = arith.addf %16, %18 : vector<768x128xf32>
      %cst_17 = arith.constant dense<0.000000e+00> : vector<768xf32>
      %20 = vector.multi_reduction <add>, %19, %cst_17 [1] : vector<768x128xf32> to vector<768xf32>
      %21 = vector.shape_cast %20 : vector<768xf32> to vector<768x1xf32>
      %cst_18 = arith.constant 3.125000e-02 : f32
      %22 = vector.broadcast %cst_18 : f32 to vector<768x1xf32>
      %23 = arith.mulf %21, %22 : vector<768x1xf32>
      %24 = tpu.iota {dimensions = array<i32: 1>} : vector<768x128xi32>
      %c32_i32 = arith.constant 32 : i32
      %25 = vector.broadcast %c32_i32 : i32 to vector<768x128xi32>
      %26 = arith.cmpi slt, %24, %25 : vector<768x128xi32>
      %27 = vector.broadcast %23 : vector<768x1xf32> to vector<768x128xf32>
      %28 = arith.subf %19, %27 : vector<768x128xf32>
      %cst_19 = arith.constant 0.000000e+00 : f32
      %29 = vector.broadcast %cst_19 : f32 to vector<768x128xf32>
      %30 = arith.select %26, %28, %29 : vector<768x128xi1>, vector<768x128xf32>
      %31 = arith.mulf %30, %30 : vector<768x128xf32>
      %cst_20 = arith.constant dense<0.000000e+00> : vector<768xf32>
      %32 = vector.multi_reduction <add>, %31, %cst_20 [1] : vector<768x128xf32> to vector<768xf32>
      %33 = vector.shape_cast %32 : vector<768xf32> to vector<768x1xf32>
      %cst_21 = arith.constant 3.125000e-02 : f32
      %34 = vector.broadcast %cst_21 : f32 to vector<768x1xf32>
      %35 = arith.mulf %33, %34 : vector<768x1xf32>
      %cst_22 = arith.constant 9.99999974E-6 : f32
      %36 = vector.broadcast %cst_22 : f32 to vector<768x1xf32>
      %37 = arith.addf %35, %36 : vector<768x1xf32>
      %38 = math.rsqrt %37 : vector<768x1xf32>
      %39 = vector.broadcast %38 : vector<768x1xf32> to vector<768x128xf32>
      %40 = arith.mulf %30, %39 : vector<768x128xf32>
      %c0_23 = arith.constant 0 : index
      %c0_24 = arith.constant 0 : index
      %41 = vector.load %arg7[%c0_23, %c0_24] : memref<1x128xf32, #tpu.memory_space<vmem>>, vector<1x128xf32>
      %42 = vector.broadcast %41 : vector<1x128xf32> to vector<768x128xf32>
      %43 = arith.mulf %40, %42 : vector<768x128xf32>
      %c0_25 = arith.constant 0 : index
      %c0_26 = arith.constant 0 : index
      %44 = vector.load %arg8[%c0_25, %c0_26] : memref<1x128xf32, #tpu.memory_space<vmem>>, vector<1x128xf32>
      %45 = vector.broadcast %44 : vector<1x128xf32> to vector<768x128xf32>
      %46 = arith.addf %43, %45 : vector<768x128xf32>
      %cst_27 = arith.constant 0.000000e+00 : f32
      %47 = vector.broadcast %cst_27 : f32 to vector<768x128xf32>
      %48 = arith.maximumf %46, %47 : vector<768x128xf32>
      %49 = arith.truncf %48 : vector<768x128xf32> to vector<768x128xbf16>
      %c0_28 = arith.constant 0 : index
      %c0_29 = arith.constant 0 : index
      %50 = vector.load %arg9[%c0_28, %c0_29] : memref<768x128xbf16, #tpu.memory_space<vmem>>, vector<768x128xbf16>
      tpu.vector_store %arg9[%c0_28, %c0_29], %49 {strides = array<i32>} : memref<768x128xbf16, #tpu.memory_space<vmem>>, vector<768x128xbf16>,
    } else {
    }
    return
  }
  func.func @transform_0(%arg0: i32, %arg1: i32) -> (i32, i32) {
    %c0_i32 = arith.constant 0 : i32
    return %arg0, %arg1 : i32, i32
  }
  func.func @transform_1(%arg0: i32, %arg1: i32) -> (i32, i32) {
    %c0_i32 = arith.constant 0 : i32
    %c0_i32_0 = arith.constant 0 : i32
    return %arg1, %c0_i32 : i32, i32
  }
  func.func @transform_2(%arg0: i32, %arg1: i32) -> (i32, i32) {
    %c0_i32 = arith.constant 0 : i32
    %c0_i32_0 = arith.constant 0 : i32
    return %arg0, %c0_i32 : i32, i32
  }
  func.func @transform_3(%arg0: i32, %arg1: i32) -> (i32, i32) {
    %c0_i32 = arith.constant 0 : i32
    %c0_i32_0 = arith.constant 0 : i32
    %c0_i32_1 = arith.constant 0 : i32
    return %c0_i32, %c0_i32_0 : i32, i32
  }
  func.func @transform_4(%arg0: i32, %arg1: i32) -> (i32, i32) {
    %c0_i32 = arith.constant 0 : i32
    %c0_i32_0 = arith.constant 0 : i32
    %c0_i32_1 = arith.constant 0 : i32
    return %c0_i32, %c0_i32_0 : i32, i32
  }
  func.func @transform_5(%arg0: i32, %arg1: i32) -> (i32, i32) {
    %c0_i32 = arith.constant 0 : i32
    %c0_i32_0 = arith.constant 0 : i32
    %c0_i32_1 = arith.constant 0 : i32
    return %c0_i32, %c0_i32_0 : i32, i32
  }
  func.func @transform_6(%arg0: i32, %arg1: i32) -> (i32, i32) {
    %c0_i32 = arith.constant 0 : i32
    %c0_i32_0 = arith.constant 0 : i32
    %c0_i32_1 = arith.constant 0 : i32
    return %c0_i32, %c0_i32_0 : i32, i32
  }
  func.func @transform_7(%arg0: i32, %arg1: i32) -> (i32, i32) {
    %c0_i32 = arith.constant 0 : i32
    %c0_i32_0 = arith.constant 0 : i32
    return %arg0, %c0_i32 : i32, i32
  }
}

module attributes {stable_mosaic.version = 11 : i64} {
  func.func @kernel(%arg0: i32, %arg1: i32, %arg2: memref<768x256xbf16, #tpu.memory_space<vmem>>, %arg3: memref<256x128xbf16, #tpu.memory_space<vmem>>, %arg4: memref<768x128xbf16, #tpu.memory_space<vmem>>, %arg5: memref<128x128xf32, #tpu.memory_space<vmem>>, %arg6: memref<128x128xf32, #tpu.memory_space<vmem>>, %arg7: memref<768x128xf32, #tpu.memory_space<vmem>>, %arg8: memref<768x128xf32, #tpu.memory_space<vmem>>) attributes {dimension_semantics = [#tpu.dimension_semantics<parallel>, #tpu.dimension_semantics<arbitrary>], iteration_bounds = array<i64: 1, 3>, scalar_prefetch = 0 : i64, scratch_operands = 1 : i64, tpu.core_type = #tpu.core_type<tc>, window_params = [{transform_indices = @transform_0, window_bounds = array<i64: 768, 256>}, {transform_indices = @transform_1, window_bounds = array<i64: 256, 128>}, {transform_indices = @transform_2, window_bounds = array<i64: 768, 128>}, {pipeline_mode = #tpu.pipeline_mode<synchronous>, transform_indices = @transform_3, window_bounds = array<i64: 128, 128>}, {pipeline_mode = #tpu.pipeline_mode<synchronous>, transform_indices = @transform_4, window_bounds = array<i64: 128, 128>}, {transform_indices = @transform_5, window_bounds = array<i64: 768, 128>}]} {
    %c0 = arith.constant 0 : index
    %c0_0 = arith.constant 0 : index
    %0 = vector.load %arg2[%c0, %c0_0] : memref<768x256xbf16, #tpu.memory_space<vmem>>, vector<768x256xbf16>
    %c0_1 = arith.constant 0 : index
    %c0_2 = arith.constant 0 : index
    %1 = vector.load %arg3[%c0_1, %c0_2] : memref<256x128xbf16, #tpu.memory_space<vmem>>, vector<256x128xbf16>
    %cst = arith.constant dense<0.000000e+00> : vector<768x128xf32>
    %2 = tpu.matmul %0, %1, %cst {dimension_numbers = #tpu.dot_dimension_numbers<[1], [0], [0], [1], [0, 0, 1, 1], [], []>} : vector<768x256xbf16>, vector<256x128xbf16>, vector<768x128xf32> -> vector<768x128xf32>
    %c0_i32 = arith.constant 0 : i32
    %3 = arith.cmpi eq, %arg1, %c0_i32 : i32
    %4 = arith.extui %3 : i1 to i32
    %c0_i32_3 = arith.constant 0 : i32
    %5 = arith.cmpi ne, %4, %c0_i32_3 : i32
    scf.if %5 {
      %c0_7 = arith.constant 0 : index
      %c0_8 = arith.constant 0 : index
      %12 = vector.load %arg8[%c0_7, %c0_8] : memref<768x128xf32, #tpu.memory_space<vmem>>, vector<768x128xf32>
      tpu.vector_store %arg8[%c0_7, %c0_8], %2 {strides = array<i32>} : memref<768x128xf32, #tpu.memory_space<vmem>>, vector<768x128xf32>,
    } else {
    }
    %c0_i32_4 = arith.constant 0 : i32
    %6 = arith.cmpi ne, %arg1, %c0_i32_4 : i32
    %7 = arith.extui %6 : i1 to i32
    %c0_i32_5 = arith.constant 0 : i32
    %8 = arith.cmpi ne, %7, %c0_i32_5 : i32
    scf.if %8 {
      %c0_7 = arith.constant 0 : index
      %c0_8 = arith.constant 0 : index
      %12 = vector.load %arg8[%c0_7, %c0_8] : memref<768x128xf32, #tpu.memory_space<vmem>>, vector<768x128xf32>
      %13 = arith.addf %12, %2 : vector<768x128xf32>
      %c0_9 = arith.constant 0 : index
      %c0_10 = arith.constant 0 : index
      %14 = vector.load %arg8[%c0_9, %c0_10] : memref<768x128xf32, #tpu.memory_space<vmem>>, vector<768x128xf32>
      tpu.vector_store %arg8[%c0_9, %c0_10], %13 {strides = array<i32>} : memref<768x128xf32, #tpu.memory_space<vmem>>, vector<768x128xf32>,
    } else {
    }
    %c2_i32 = arith.constant 2 : i32
    %9 = arith.cmpi eq, %arg1, %c2_i32 : i32
    %10 = arith.extui %9 : i1 to i32
    %c0_i32_6 = arith.constant 0 : i32
    %11 = arith.cmpi ne, %10, %c0_i32_6 : i32
    scf.if %11 {
      %c0_7 = arith.constant 0 : index
      %c0_8 = arith.constant 0 : index
      %12 = vector.load %arg4[%c0_7, %c0_8] : memref<768x128xbf16, #tpu.memory_space<vmem>>, vector<768x128xbf16>
      %13 = arith.extf %12 : vector<768x128xbf16> to vector<768x128xf32>
      %c0_9 = arith.constant 0 : index
      %c0_10 = arith.constant 0 : index
      %14 = vector.load %arg8[%c0_9, %c0_10] : memref<768x128xf32, #tpu.memory_space<vmem>>, vector<768x128xf32>
      %c0_11 = arith.constant 0 : index
      %c0_12 = arith.constant 0 : index
      %15 = vector.load %arg5[%c0_11, %c0_12] : memref<128x128xf32, #tpu.memory_space<vmem>>, vector<128x128xf32>
      %cst_13 = arith.constant dense<0.000000e+00> : vector<768x128xf32>
      %16 = tpu.matmul %14, %15, %cst_13 {dimension_numbers = #tpu.dot_dimension_numbers<[1], [0], [0], [1], [0, 0, 1, 1], [], []>} : vector<768x128xf32>, vector<128x128xf32>, vector<768x128xf32> -> vector<768x128xf32>
      %c0_14 = arith.constant 0 : index
      %c0_15 = arith.constant 0 : index
      %17 = vector.load %arg6[%c0_14, %c0_15] : memref<128x128xf32, #tpu.memory_space<vmem>>, vector<128x128xf32>
      %cst_16 = arith.constant dense<0.000000e+00> : vector<768x128xf32>
      %18 = tpu.matmul %13, %17, %cst_16 {dimension_numbers = #tpu.dot_dimension_numbers<[1], [0], [0], [1], [0, 0, 1, 1], [], []>} : vector<768x128xf32>, vector<128x128xf32>, vector<768x128xf32> -> vector<768x128xf32>
      %19 = arith.addf %16, %18 : vector<768x128xf32>
      %c0_17 = arith.constant 0 : index
      %c0_18 = arith.constant 0 : index
      %20 = vector.load %arg7[%c0_17, %c0_18] : memref<768x128xf32, #tpu.memory_space<vmem>>, vector<768x128xf32>
      tpu.vector_store %arg7[%c0_17, %c0_18], %19 {strides = array<i32>} : memref<768x128xf32, #tpu.memory_space<vmem>>, vector<768x128xf32>,
    } else {
    }
    return
  }
  func.func @transform_0(%arg0: i32, %arg1: i32) -> (i32, i32) {
    %c0_i32 = arith.constant 0 : i32
    return %arg0, %arg1 : i32, i32
  }
  func.func @transform_1(%arg0: i32, %arg1: i32) -> (i32, i32) {
    %c0_i32 = arith.constant 0 : i32
    %c0_i32_0 = arith.constant 0 : i32
    return %arg1, %c0_i32 : i32, i32
  }
  func.func @transform_2(%arg0: i32, %arg1: i32) -> (i32, i32) {
    %c0_i32 = arith.constant 0 : i32
    %c0_i32_0 = arith.constant 0 : i32
    return %arg0, %c0_i32 : i32, i32
  }
  func.func @transform_3(%arg0: i32, %arg1: i32) -> (i32, i32) {
    %c0_i32 = arith.constant 0 : i32
    %c0_i32_0 = arith.constant 0 : i32
    %c0_i32_1 = arith.constant 0 : i32
    return %c0_i32, %c0_i32_0 : i32, i32
  }
  func.func @transform_4(%arg0: i32, %arg1: i32) -> (i32, i32) {
    %c0_i32 = arith.constant 0 : i32
    %c0_i32_0 = arith.constant 0 : i32
    %c0_i32_1 = arith.constant 0 : i32
    return %c0_i32, %c0_i32_0 : i32, i32
  }
  func.func @transform_5(%arg0: i32, %arg1: i32) -> (i32, i32) {
    %c0_i32 = arith.constant 0 : i32
    %c0_i32_0 = arith.constant 0 : i32
    return %arg0, %c0_i32 : i32, i32
  }
}

</mosaic_0001>

<bundles_post_ra>
// kernel: _forward_padded.3
= control target key start
LH: loop header
LB: loop body
LE: loop exit
PB: predicated region body
PF: predicated region fallthrough
CT: control target
= control target key end

     0   :  { %s5236_s18 = smov 0   ;;  %s5238_s19 = smov 0   ;;  %s6560_s0 = inlined_call_operand.vmem [shape: bf16[768,768], index: 0, kind: input, shape index: {}]   ;;  %s6561_s1 = inlined_call_operand.vmem [shape: bf16[768,128], index: 1, kind: input, shape index: {}, may-alias: {1,2}]   ;;  %s6562_s2 = inlined_call_operand.vmem [shape: bf16[768,128], index: 2, kind: input, shape index: {}, may-alias: {1,2}]   ;;  %s6563_s3 = inlined_call_operand.vmem [shape: f32[128,128], index: 3, kind: input, shape index: {}]   ;;  %s6564_s4 = inlined_call_operand.vmem [shape: f32[128,128], index: 4, kind: input, shape index: {}]   ;;  %s6565_s5 = inlined_call_operand.vmem [shape: f32[768,128], index: 5, kind: output, shape index: {}]  }
   0x1   :  { %s5240_s20 = smov 0   ;;  %s5242_s21 = smov 0  }
   0x2   :  { %s5244_s22 = smov 0  }
   0x3 LB: > { %s24_s23 = sadd.s32 1, %s5199_s21  ;;  %p43_p1 = scmp.ne.s32.totalorder %s5191_s19, %s5187_s18  ;;  %s5203_s22 = sphi %s5244_s22, %s15_s22   ;;  %s5199_s21 = sphi %s5242_s21, %s6710_s21   ;;  %s5195_s20 = sphi %s5240_s20, %s6709_s20   ;;  %s5191_s19 = sphi %s5238_s19, %s6708_s19   ;;  %s5187_s18 = sphi %s5236_s18, %s6707_s18  }
   0x4   : > { %p25_p0 = scmp.ge.s32.totalorder %s24_s23, 3  ;;  %p44_p2 = scmp.eq.s32.totalorder %s5203_s22, 0 }
   0x5   : > { %s36_s25 = sadd.s32 1, %s5191_s19  ;;  %p3829_p5 = scmp.ge.s32.totalorder %s5203_s22, 3 }
   0x6   : > { %s6712_s23 = smov (%p25_p0, %s24_s23), 0  ;;  %p45_p3 = por %p44_p2, %p43_p1 }
   0x7   : > { %s32_s24 = ssub.s32 %s5199_s21, %s6712_s23  ;;  %204 = sbr.rel (%p3829_p5) target bundleno = 67 (0x43), region = 28 }
   0x8   : > { %p34_p4 = scmp.eq.s32.totalorder %s32_s24, 0 }
   0xa   : > { %s5271_s26 = scalar_select %p34_p4, %s5191_s19, %s36_s25  }
   0xe   : > { %207 = sbr.rel (!%p45_p3) target bundleno = 67 (0x43), region = 32  ;;  %s209_s27 = sand.u32 (%p45_p3), 1, %s5191_s19  }
   0xf   : > { %s3954_s28 = sshll.u32 (%p45_p3), %s5199_s21, 3  ;;  %s4962_s29 = smul.u32 (%p45_p3), 768, %s209_s27 }
  0x10   : > { %s5279_s7 = scalar_lea.vmem (%p45_p3), %s6560_s0, %s3954_s28 }
  0x11   : > { %v435_v0 = vld [vmem:[%s5279_s7] sm:$0xff] (%p45_p3)  ;;  %v437_v1 = vld [vmem:[%s5279_s7 + $0x18] sm:$0xff] (%p45_p3)  ;;  %v439_v2 = vld [vmem:[%s5279_s7 + $0x30] sm:$0xff] (%p45_p3)  ;;  %s5287_s8 = scalar_lea.vmem (%p45_p3), [#allocation3], %s4962_s29 }
  0x12   : > { %v441_v3 = vld [vmem:[%s5279_s7 + $0x48] sm:$0xff] (%p45_p3)  ;;  %v443_v4 = vld [vmem:[%s5279_s7 + $0x60] sm:$0xff] (%p45_p3)  ;;  %v445_v5 = vld [vmem:[%s5279_s7 + $0x78] sm:$0xff] (%p45_p3)  ;;  %436 = vst [vmem:[%s5287_s8] sm:$0xff] (%p45_p3), %v435_v0 }
  0x13   : > { %438 = vst [vmem:[%s5287_s8 + $0x8] sm:$0xff] (%p45_p3), %v437_v1  ;;  %440 = vst [vmem:[%s5287_s8 + $0x10] sm:$0xff] (%p45_p3), %v439_v2  ;;  %v447_v6 = vld [vmem:[%s5279_s7 + $0x90] sm:$0xff] (%p45_p3)  ;;  %v449_v7 = vld [vmem:[%s5279_s7 + $0xa8] sm:$0xff] (%p45_p3) }
  0x14   : > { %442 = vst [vmem:[%s5287_s8 + $0x18] sm:$0xff] (%p45_p3), %v441_v3  ;;  %444 = vst [vmem:[%s5287_s8 + $0x20] sm:$0xff] (%p45_p3), %v443_v4  ;;  %v451_v8 = vld [vmem:[%s5279_s7 + $0xc0] sm:$0xff] (%p45_p3)  ;;  %v453_v9 = vld [vmem:[%s5279_s7 + $0xd8] sm:$0xff] (%p45_p3) }
  0x15   : > { %446 = vst [vmem:[%s5287_s8 + $0x28] sm:$0xff] %v445_v5  ;;  %448 = vst [vmem:[%s5287_s8 + $0x30] sm:$0xff] %v447_v6  ;;  %v455_v10 = vld [vmem:[%s5279_s7 + $0xf0] sm:$0xff]  ;;  %v457_v11 = vld [vmem:[%s5279_s7 + $0x108] sm:$0xff] }
  0x16   : > { %450 = vst [vmem:[%s5287_s8 + $0x38] sm:$0xff] %v449_v7  ;;  %452 = vst [vmem:[%s5287_s8 + $0x40] sm:$0xff] %v451_v8  ;;  %v459_v12 = vld [vmem:[%s5279_s7 + $0x120] sm:$0xff]  ;;  %v461_v13 = vld [vmem:[%s5279_s7 + $0x138] sm:$0xff] }
  0x17   : > { %454 = vst [vmem:[%s5287_s8 + $0x48] sm:$0xff] %v453_v9  ;;  %456 = vst [vmem:[%s5287_s8 + $0x50] sm:$0xff] %v455_v10  ;;  %v463_v14 = vld [vmem:[%s5279_s7 + $0x150] sm:$0xff]  ;;  %v465_v15 = vld [vmem:[%s5279_s7 + $0x168] sm:$0xff] }
  0x18   : > { %458 = vst [vmem:[%s5287_s8 + $0x58] sm:$0xff] %v457_v11  ;;  %460 = vst [vmem:[%s5287_s8 + $0x60] sm:$0xff] %v459_v12  ;;  %v467_v16 = vld [vmem:[%s5279_s7 + $0x180] sm:$0xff]  ;;  %v469_v17 = vld [vmem:[%s5279_s7 + $0x198] sm:$0xff] }
  0x19   : > { %462 = vst [vmem:[%s5287_s8 + $0x68] sm:$0xff] %v461_v13  ;;  %464 = vst [vmem:[%s5287_s8 + $0x70] sm:$0xff] %v463_v14  ;;  %v471_v18 = vld [vmem:[%s5279_s7 + $0x1b0] sm:$0xff]  ;;  %v473_v19 = vld [vmem:[%s5279_s7 + $0x1c8] sm:$0xff] }
  0x1a   : > { %466 = vst [vmem:[%s5287_s8 + $0x78] sm:$0xff] %v465_v15  ;;  %468 = vst [vmem:[%s5287_s8 + $0x80] sm:$0xff] %v467_v16  ;;  %v475_v20 = vld [vmem:[%s5279_s7 + $0x1e0] sm:$0xff]  ;;  %v477_v21 = vld [vmem:[%s5279_s7 + $0x1f8] sm:$0xff] }
  0x1b   : > { %470 = vst [vmem:[%s5287_s8 + $0x88] sm:$0xff] %v469_v17  ;;  %472 = vst [vmem:[%s5287_s8 + $0x90] sm:$0xff] %v471_v18  ;;  %v479_v22 = vld [vmem:[%s5279_s7 + $0x210] sm:$0xff]  ;;  %v481_v23 = vld [vmem:[%s5279_s7 + $0x228] sm:$0xff] }
  0x1c   : > { %474 = vst [vmem:[%s5287_s8 + $0x98] sm:$0xff] %v473_v19  ;;  %476 = vst [vmem:[%s5287_s8 + $0xa0] sm:$0xff] %v475_v20  ;;  %v483_v24 = vld [vmem:[%s5279_s7 + $0x240] sm:$0xff]  ;;  %v485_v25 = vld [vmem:[%s5279_s7 + $0x258] sm:$0xff] }
  0x1d   : > { %478 = vst [vmem:[%s5287_s8 + $0xa8] sm:$0xff] %v477_v21  ;;  %480 = vst [vmem:[%s5287_s8 + $0xb0] sm:$0xff] %v479_v22  ;;  %v487_v26 = vld [vmem:[%s5279_s7 + $0x270] sm:$0xff]  ;;  %v489_v27 = vld [vmem:[%s5279_s7 + $0x288] sm:$0xff] }
  0x1e   : > { %482 = vst [vmem:[%s5287_s8 + $0xb8] sm:$0xff] %v481_v23  ;;  %484 = vst [vmem:[%s5287_s8 + $0xc0] sm:$0xff] %v483_v24  ;;  %v491_v28 = vld [vmem:[%s5279_s7 + $0x2a0] sm:$0xff]  ;;  %v493_v29 = vld [vmem:[%s5279_s7 + $0x2b8] sm:$0xff] }
  0x1f   : > { %486 = vst [vmem:[%s5287_s8 + $0xc8] sm:$0xff] %v485_v25  ;;  %488 = vst [vmem:[%s5287_s8 + $0xd0] sm:$0xff] %v487_v26  ;;  %v495_v30 = vld [vmem:[%s5279_s7 + $0x2d0] sm:$0xff]  ;;  %v497_v31 = vld [vmem:[%s5279_s7 + $0x2e8] sm:$0xff] }
  0x20   : > { %490 = vst [vmem:[%s5287_s8 + $0xd8] sm:$0xff] %v489_v27  ;;  %492 = vst [vmem:[%s5287_s8 + $0xe0] sm:$0xff] %v491_v28  ;;  %v499_v32 = vld [vmem:[%s5279_s7 + $0x300] sm:$0xff]  ;;  %v501_v33 = vld [vmem:[%s5279_s7 + $0x318] sm:$0xff] }
  0x21   : > { %494 = vst [vmem:[%s5287_s8 + $0xe8] sm:$0xff] %v493_v29  ;;  %496 = vst [vmem:[%s5287_s8 + $0xf0] sm:$0xff] %v495_v30  ;;  %v503_v34 = vld [vmem:[%s5279_s7 + $0x330] sm:$0xff]  ;;  %v505_v35 = vld [vmem:[%s5279_s7 + $0x348] sm:$0xff] }
  0x22   : > { %498 = vst [vmem:[%s5287_s8 + $0xf8] sm:$0xff] %v497_v31  ;;  %500 = vst [vmem:[%s5287_s8 + $0x100] sm:$0xff] %v499_v32  ;;  %v507_v36 = vld [vmem:[%s5279_s7 + $0x360] sm:$0xff]  ;;  %v509_v37 = vld [vmem:[%s5279_s7 + $0x378] sm:$0xff] }
  0x23   : > { %502 = vst [vmem:[%s5287_s8 + $0x108] sm:$0xff] %v501_v33  ;;  %504 = vst [vmem:[%s5287_s8 + $0x110] sm:$0xff] %v503_v34  ;;  %v511_v38 = vld [vmem:[%s5279_s7 + $0x390] sm:$0xff]  ;;  %v513_v39 = vld [vmem:[%s5279_s7 + $0x3a8] sm:$0xff] }
  0x24   : > { %506 = vst [vmem:[%s5287_s8 + $0x118] sm:$0xff] %v505_v35  ;;  %508 = vst [vmem:[%s5287_s8 + $0x120] sm:$0xff] %v507_v36  ;;  %v515_v40 = vld [vmem:[%s5279_s7 + $0x3c0] sm:$0xff]  ;;  %v517_v41 = vld [vmem:[%s5279_s7 + $0x3d8] sm:$0xff] }
  0x25   : > { %510 = vst [vmem:[%s5287_s8 + $0x128] sm:$0xff] %v509_v37  ;;  %512 = vst [vmem:[%s5287_s8 + $0x130] sm:$0xff] %v511_v38  ;;  %v519_v42 = vld [vmem:[%s5279_s7 + $0x3f0] sm:$0xff]  ;;  %v521_v43 = vld [vmem:[%s5279_s7 + $0x408] sm:$0xff] }
  0x26   : > { %514 = vst [vmem:[%s5287_s8 + $0x138] sm:$0xff] %v513_v39  ;;  %516 = vst [vmem:[%s5287_s8 + $0x140] sm:$0xff] %v515_v40  ;;  %v523_v44 = vld [vmem:[%s5279_s7 + $0x420] sm:$0xff]  ;;  %v525_v45 = vld [vmem:[%s5279_s7 + $0x438] sm:$0xff] }
  0x27   : > { %518 = vst [vmem:[%s5287_s8 + $0x148] sm:$0xff] %v517_v41  ;;  %520 = vst [vmem:[%s5287_s8 + $0x150] sm:$0xff] %v519_v42  ;;  %v527_v46 = vld [vmem:[%s5279_s7 + $0x450] sm:$0xff]  ;;  %v529_v47 = vld [vmem:[%s5279_s7 + $0x468] sm:$0xff] }
  0x28   : > { %522 = vst [vmem:[%s5287_s8 + $0x158] sm:$0xff] %v521_v43  ;;  %524 = vst [vmem:[%s5287_s8 + $0x160] sm:$0xff] %v523_v44  ;;  %v531_v48 = vld [vmem:[%s5279_s7 + $0x480] sm:$0xff]  ;;  %v533_v49 = vld [vmem:[%s5279_s7 + $0x498] sm:$0xff] }
  0x29   : > { %526 = vst [vmem:[%s5287_s8 + $0x168] sm:$0xff] %v525_v45  ;;  %528 = vst [vmem:[%s5287_s8 + $0x170] sm:$0xff] %v527_v46  ;;  %v535_v50 = vld [vmem:[%s5279_s7 + $0x4b0] sm:$0xff]  ;;  %v537_v51 = vld [vmem:[%s5279_s7 + $0x4c8] sm:$0xff] }
  0x2a   : > { %530 = vst [vmem:[%s5287_s8 + $0x178] sm:$0xff] %v529_v47  ;;  %532 = vst [vmem:[%s5287_s8 + $0x180] sm:$0xff] %v531_v48  ;;  %v539_v52 = vld [vmem:[%s5279_s7 + $0x4e0] sm:$0xff]  ;;  %v541_v53 = vld [vmem:[%s5279_s7 + $0x4f8] sm:$0xff] }
  0x2b   : > { %534 = vst [vmem:[%s5287_s8 + $0x188] sm:$0xff] %v533_v49  ;;  %536 = vst [vmem:[%s5287_s8 + $0x190] sm:$0xff] %v535_v50  ;;  %v543_v54 = vld [vmem:[%s5279_s7 + $0x510] sm:$0xff]  ;;  %v545_v55 = vld [vmem:[%s5279_s7 + $0x528] sm:$0xff] }
  0x2c   : > { %538 = vst [vmem:[%s5287_s8 + $0x198] sm:$0xff] %v537_v51  ;;  %540 = vst [vmem:[%s5287_s8 + $0x1a0] sm:$0xff] %v539_v52  ;;  %v547_v56 = vld [vmem:[%s5279_s7 + $0x540] sm:$0xff]  ;;  %v549_v57 = vld [vmem:[%s5279_s7 + $0x558] sm:$0xff] }
  0x2d   : > { %542 = vst [vmem:[%s5287_s8 + $0x1a8] sm:$0xff] %v541_v53  ;;  %544 = vst [vmem:[%s5287_s8 + $0x1b0] sm:$0xff] %v543_v54  ;;  %v551_v58 = vld [vmem:[%s5279_s7 + $0x570] sm:$0xff]  ;;  %v553_v59 = vld [vmem:[%s5279_s7 + $0x588] sm:$0xff] }
  0x2e   : > { %546 = vst [vmem:[%s5287_s8 + $0x1b8] sm:$0xff] %v545_v55  ;;  %548 = vst [vmem:[%s5287_s8 + $0x1c0] sm:$0xff] %v547_v56  ;;  %v555_v60 = vld [vmem:[%s5279_s7 + $0x5a0] sm:$0xff]  ;;  %v557_v61 = vld [vmem:[%s5279_s7 + $0x5b8] sm:$0xff] }
  0x2f   : > { %550 = vst [vmem:[%s5287_s8 + $0x1c8] sm:$0xff] %v549_v57  ;;  %552 = vst [vmem:[%s5287_s8 + $0x1d0] sm:$0xff] %v551_v58  ;;  %v559_v62 = vld [vmem:[%s5279_s7 + $0x5d0] sm:$0xff]  ;;  %v561_v63 = vld [vmem:[%s5279_s7 + $0x5e8] sm:$0xff] }
  0x30   : > { %554 = vst [vmem:[%s5287_s8 + $0x1d8] sm:$0xff] %v553_v59  ;;  %556 = vst [vmem:[%s5287_s8 + $0x1e0] sm:$0xff] %v555_v60  ;;  %v563_v0 = vld [vmem:[%s5279_s7 + $0x600] sm:$0xff]  ;;  %v565_v1 = vld [vmem:[%s5279_s7 + $0x618] sm:$0xff] }
  0x31   : > { %558 = vst [vmem:[%s5287_s8 + $0x1e8] sm:$0xff] %v557_v61  ;;  %560 = vst [vmem:[%s5287_s8 + $0x1f0] sm:$0xff] %v559_v62  ;;  %v567_v2 = vld [vmem:[%s5279_s7 + $0x630] sm:$0xff]  ;;  %v569_v3 = vld [vmem:[%s5279_s7 + $0x648] sm:$0xff] }
  0x32   : > { %562 = vst [vmem:[%s5287_s8 + $0x1f8] sm:$0xff] %v561_v63  ;;  %564 = vst [vmem:[%s5287_s8 + $0x200] sm:$0xff] %v563_v0  ;;  %v571_v4 = vld [vmem:[%s5279_s7 + $0x660] sm:$0xff]  ;;  %v573_v5 = vld [vmem:[%s5279_s7 + $0x678] sm:$0xff] }
  0x33   : > { %566 = vst [vmem:[%s5287_s8 + $0x208] sm:$0xff] %v565_v1  ;;  %568 = vst [vmem:[%s5287_s8 + $0x210] sm:$0xff] %v567_v2  ;;  %v575_v6 = vld [vmem:[%s5279_s7 + $0x690] sm:$0xff]  ;;  %v577_v7 = vld [vmem:[%s5279_s7 + $0x6a8] sm:$0xff] }
  0x34   : > { %570 = vst [vmem:[%s5287_s8 + $0x218] sm:$0xff] %v569_v3  ;;  %572 = vst [vmem:[%s5287_s8 + $0x220] sm:$0xff] %v571_v4  ;;  %v579_v8 = vld [vmem:[%s5279_s7 + $0x6c0] sm:$0xff]  ;;  %v581_v9 = vld [vmem:[%s5279_s7 + $0x6d8] sm:$0xff] }
  0x35   : > { %574 = vst [vmem:[%s5287_s8 + $0x228] sm:$0xff] %v573_v5  ;;  %576 = vst [vmem:[%s5287_s8 + $0x230] sm:$0xff] %v575_v6  ;;  %v583_v10 = vld [vmem:[%s5279_s7 + $0x6f0] sm:$0xff]  ;;  %v585_v11 = vld [vmem:[%s5279_s7 + $0x708] sm:$0xff] }
  0x36   : > { %578 = vst [vmem:[%s5287_s8 + $0x238] sm:$0xff] %v577_v7  ;;  %580 = vst [vmem:[%s5287_s8 + $0x240] sm:$0xff] %v579_v8  ;;  %v587_v12 = vld [vmem:[%s5279_s7 + $0x720] sm:$0xff]  ;;  %v589_v13 = vld [vmem:[%s5279_s7 + $0x738] sm:$0xff] }
  0x37   : > { %582 = vst [vmem:[%s5287_s8 + $0x248] sm:$0xff] %v581_v9  ;;  %584 = vst [vmem:[%s5287_s8 + $0x250] sm:$0xff] %v583_v10  ;;  %v591_v14 = vld [vmem:[%s5279_s7 + $0x750] sm:$0xff]  ;;  %v593_v15 = vld [vmem:[%s5279_s7 + $0x768] sm:$0xff] }
  0x38   : > { %586 = vst [vmem:[%s5287_s8 + $0x258] sm:$0xff] %v585_v11  ;;  %588 = vst [vmem:[%s5287_s8 + $0x260] sm:$0xff] %v587_v12  ;;  %v595_v16 = vld [vmem:[%s5279_s7 + $0x780] sm:$0xff]  ;;  %v597_v17 = vld [vmem:[%s5279_s7 + $0x798] sm:$0xff] }
  0x39   : > { %590 = vst [vmem:[%s5287_s8 + $0x268] sm:$0xff] %v589_v13  ;;  %592 = vst [vmem:[%s5287_s8 + $0x270] sm:$0xff] %v591_v14  ;;  %v599_v18 = vld [vmem:[%s5279_s7 + $0x7b0] sm:$0xff]  ;;  %v601_v19 = vld [vmem:[%s5279_s7 + $0x7c8] sm:$0xff] }
  0x3a   : > { %594 = vst [vmem:[%s5287_s8 + $0x278] sm:$0xff] %v593_v15  ;;  %596 = vst [vmem:[%s5287_s8 + $0x280] sm:$0xff] %v595_v16  ;;  %v603_v20 = vld [vmem:[%s5279_s7 + $0x7e0] sm:$0xff]  ;;  %v605_v21 = vld [vmem:[%s5279_s7 + $0x7f8] sm:$0xff] }
  0x3b   : > { %598 = vst [vmem:[%s5287_s8 + $0x288] sm:$0xff] %v597_v17  ;;  %600 = vst [vmem:[%s5287_s8 + $0x290] sm:$0xff] %v599_v18  ;;  %v607_v22 = vld [vmem:[%s5279_s7 + $0x810] sm:$0xff]  ;;  %v609_v23 = vld [vmem:[%s5279_s7 + $0x828] sm:$0xff] }
  0x3c   : > { %602 = vst [vmem:[%s5287_s8 + $0x298] sm:$0xff] %v601_v19  ;;  %604 = vst [vmem:[%s5287_s8 + $0x2a0] sm:$0xff] %v603_v20  ;;  %v611_v24 = vld [vmem:[%s5279_s7 + $0x840] sm:$0xff]  ;;  %v613_v25 = vld [vmem:[%s5279_s7 + $0x858] sm:$0xff] }
  0x3d   : > { %606 = vst [vmem:[%s5287_s8 + $0x2a8] sm:$0xff] %v605_v21  ;;  %608 = vst [vmem:[%s5287_s8 + $0x2b0] sm:$0xff] %v607_v22  ;;  %v615_v26 = vld [vmem:[%s5279_s7 + $0x870] sm:$0xff]  ;;  %v617_v27 = vld [vmem:[%s5279_s7 + $0x888] sm:$0xff] }
  0x3e   : > { %610 = vst [vmem:[%s5287_s8 + $0x2b8] sm:$0xff] %v609_v23  ;;  %612 = vst [vmem:[%s5287_s8 + $0x2c0] sm:$0xff] %v611_v24  ;;  %v619_v28 = vld [vmem:[%s5279_s7 + $0x8a0] sm:$0xff]  ;;  %v621_v29 = vld [vmem:[%s5279_s7 + $0x8b8] sm:$0xff] }
  0x3f   : > { %614 = vst [vmem:[%s5287_s8 + $0x2c8] sm:$0xff] %v613_v25  ;;  %616 = vst [vmem:[%s5287_s8 + $0x2d0] sm:$0xff] %v615_v26  ;;  %v623_v30 = vld [vmem:[%s5279_s7 + $0x8d0] sm:$0xff]  ;;  %v625_v31 = vld [vmem:[%s5279_s7 + $0x8e8] sm:$0xff] }
  0x40   : > { %618 = vst [vmem:[%s5287_s8 + $0x2d8] sm:$0xff] %v617_v27  ;;  %620 = vst [vmem:[%s5287_s8 + $0x2e0] sm:$0xff] %v619_v28 }
  0x41   : > { %622 = vst [vmem:[%s5287_s8 + $0x2e8] sm:$0xff] %v621_v29  ;;  %624 = vst [vmem:[%s5287_s8 + $0x2f0] sm:$0xff] %v623_v30 }
  0x42   : > { %626 = vst [vmem:[%s5287_s8 + $0x2f8] sm:$0xff] %v625_v31 }
  0x43 PF: > { %p3832_p6 = scmp.ge.s32.totalorder %s5203_s22, 1  ;;  %p640_p7 = scmp.lt.s32.totalorder %s5203_s22, 4 }
  0x45   : > { %p641_p8 = pnand %p3832_p6, %p640_p7 }
  0x47   : > { %644 = sbr.rel (%p641_p8) target bundleno = 1063 (0x427), region = 74 }
  0x4e   : > { %s3833_s9 = sshll.u32 %s5195_s20, 5  ;;  %s647_s10 = sand.u32 1, %s5187_s18   ;;  %v5205_v32 = vmov 0  }
  0x4f   : > { %1409 = vmatprep.subr.bf16.mxu0 %v5205_v32  ;;  %4834 = vmatprep.subr.bf16.mxu1 %v5205_v32  ;;  %p687_p9 = scmp.lt.s32.totalorder %s3833_s9, 95  ;;  %s4963_s11 = smul.u32 768, %s647_s10 }
  0x50   : > { %p3947_p10 = scmp.ne.s32.totalorder %s5195_s20, 0 }
  0x51   : > { %s6714_s9 = smov (!%p687_p9, %s3833_s9), 95  ;;  %s5481_s13 = scalar_lea.vmem [#allocation3], %s4963_s11 }
  0x52   : > { %s3834_s12 = sshll.u32 %s6714_s9, 2  ;;  %v5023_v33 = vld [vmem:[%s5481_s13 + $0x4] ss:$8 sps:$4 sm:$0xff]   ;;  %v5021_v51 = vld [vmem:[%s5481_s13] ss:$8 sps:$4 sm:$0xff]  }
  0x53   : > { %s5486_s16 = scalar_lea.vmem %s6561_s1, %s3834_s12  ;;  %1441 = vmatprep.mubr.bf16.mxu0 %v5023_v33  ;;  %v5026_v39 = vld [vmem:[%s5481_s13 + $0x184] ss:$8 sps:$4 sm:$0xff]   ;;  %v5024_v52 = vld [vmem:[%s5481_s13 + $0x180] ss:$8 sps:$4 sm:$0xff]   ;;  %v5027_v53 = vld [vmem:[%s5481_s13 + $0x14] ss:$8 sps:$4 sm:$0xff]  }
  0x54   : > { %v5005_v34 = vld [vmem:[%s5486_s16] sm:$0xff]   ;;  %v5006_v35 = vld [vmem:[%s5486_s16 + $0x8] sm:$0xff]   ;;  %v5007_v36 = vld [vmem:[%s5486_s16 + $0x10] sm:$0xff]   ;;  %1633 = vmatprep.mubr.bf16.mxu1 %v5026_v39 }
  0x55   : > { %1410 = vmatpush1.bf16.msra.mxu0 %v5005_v34  ;;  %4850 = vmatpush1.bf16.msra.mxu1 %v5005_v34  ;;  %v5008_v37 = vld [vmem:[%s5486_s16 + $0x18] sm:$0xff]   ;;  %v5009_v38 = vld [vmem:[%s5486_s16 + $0x20] sm:$0xff]   ;;  %v5010_v40 = vld [vmem:[%s5486_s16 + $0x28] sm:$0xff]  }
  0x56   : > { %1411 = vmatprep.subr.bf16.mxu0 %v5205_v32  ;;  %4835 = vmatprep.subr.bf16.mxu1 %v5205_v32  ;;  %v5011_v41 = vld [vmem:[%s5486_s16 + $0x30] sm:$0xff]   ;;  %v5012_v42 = vld [vmem:[%s5486_s16 + $0x38] sm:$0xff]   ;;  %v5013_v43 = vld [vmem:[%s5486_s16 + $0x40] sm:$0xff]  }
  0x57   : > { %v5014_v44 = vld [vmem:[%s5486_s16 + $0x48] sm:$0xff]   ;;  %v5015_v45 = vld [vmem:[%s5486_s16 + $0x50] sm:$0xff]   ;;  %v5016_v46 = vld [vmem:[%s5486_s16 + $0x58] sm:$0xff]  }
  0x58   : > { %v5017_v47 = vld [vmem:[%s5486_s16 + $0x60] sm:$0xff]   ;;  %v5018_v48 = vld [vmem:[%s5486_s16 + $0x68] sm:$0xff]   ;;  %v5019_v49 = vld [vmem:[%s5486_s16 + $0x70] sm:$0xff]  }
  0x59   : > { %1412 = vmatpush1.bf16.msra.mxu0 %v5006_v35  ;;  %4851 = vmatpush1.bf16.msra.mxu1 %v5006_v35  ;;  %v5020_v50 = vld [vmem:[%s5486_s16 + $0x78] sm:$0xff]   ;;  %v5033_v57 = vld [vmem:[%s5481_s13 + $0x24] ss:$8 sps:$4 sm:$0xff]   ;;  %v5037_v59 = vld [vmem:[%s5481_s13 + $0x20] ss:$8 sps:$4 sm:$0xff]  }
  0x5a   : > { %1413 = vmatprep.subr.bf16.mxu0 %v5205_v32  ;;  %4836 = vmatprep.subr.bf16.mxu1 %v5205_v32  ;;  %v5029_v54 = vld [vmem:[%s5481_s13 + $0x194] ss:$8 sps:$4 sm:$0xff]   ;;  %v5031_v55 = vld [vmem:[%s5481_s13 + $0x10] ss:$8 sps:$4 sm:$0xff]   ;;  %v5035_v58 = vld [vmem:[%s5481_s13 + $0x1a4] ss:$8 sps:$4 sm:$0xff]  }
  0x5b   : > { %v5032_v56 = vld [vmem:[%s5481_s13 + $0x190] ss:$8 sps:$4 sm:$0xff]   ;;  %v5038_v60 = vld [vmem:[%s5481_s13 + $0x1a0] ss:$8 sps:$4 sm:$0xff]   ;;  %v5039_v61 = vld [vmem:[%s5481_s13 + $0x34] ss:$8 sps:$4 sm:$0xff]  }
  0x5c   : > { %v5041_v62 = vld [vmem:[%s5481_s13 + $0x1b4] ss:$8 sps:$4 sm:$0xff]   ;;  %v5043_v63 = vld [vmem:[%s5481_s13 + $0x30] ss:$8 sps:$4 sm:$0xff]   ;;  %v5045_v1 = vld [vmem:[%s5481_s13 + $0x44] ss:$8 sps:$4 sm:$0xff]  }
  0x5d   : > { %1414 = vmatpush1.bf16.msra.mxu0 %v5007_v36  ;;  %4852 = vmatpush1.bf16.msra.mxu1 %v5007_v36  ;;  %v5044_v0 = vld [vmem:[%s5481_s13 + $0x1b0] ss:$8 sps:$4 sm:$0xff]   ;;  %v5047_v2 = vld [vmem:[%s5481_s13 + $0x1c4] ss:$8 sps:$4 sm:$0xff]   ;;  %v5049_v3 = vld [vmem:[%s5481_s13 + $0x40] ss:$8 sps:$4 sm:$0xff]  }
  0x5e   : > { %1415 = vmatprep.subr.bf16.mxu0 %v5205_v32  ;;  %4837 = vmatprep.subr.bf16.mxu1 %v5205_v32  ;;  %v5050_v4 = vld [vmem:[%s5481_s13 + $0x1c0] ss:$8 sps:$4 sm:$0xff]   ;;  %v5051_v5 = vld [vmem:[%s5481_s13 + $0x54] ss:$8 sps:$4 sm:$0xff]   ;;  %v5055_v7 = vld [vmem:[%s5481_s13 + $0x50] ss:$8 sps:$4 sm:$0xff]  }
  0x5f   : > { %v5053_v6 = vld [vmem:[%s5481_s13 + $0x1d4] ss:$8 sps:$4 sm:$0xff]   ;;  %v5056_v8 = vld [vmem:[%s5481_s13 + $0x1d0] ss:$8 sps:$4 sm:$0xff]   ;;  %v5057_v9 = vld [vmem:[%s5481_s13 + $0x64] ss:$8 sps:$4 sm:$0xff]  }
  0x60   : > { %v5059_v10 = vld [vmem:[%s5481_s13 + $0x1e4] ss:$8 sps:$4 sm:$0xff]   ;;  %v5061_v11 = vld [vmem:[%s5481_s13 + $0x60] ss:$8 sps:$4 sm:$0xff]   ;;  %v5063_v13 = vld [vmem:[%s5481_s13 + $0x74] ss:$8 sps:$4 sm:$0xff]  }
  0x61   : > { %1416 = vmatpush1.bf16.msra.mxu0 %v5008_v37  ;;  %4853 = vmatpush1.bf16.msra.mxu1 %v5008_v37  ;;  %v5062_v12 = vld [vmem:[%s5481_s13 + $0x1e0] ss:$8 sps:$4 sm:$0xff]   ;;  %v5065_v14 = vld [vmem:[%s5481_s13 + $0x1f4] ss:$8 sps:$4 sm:$0xff]   ;;  %v5067_v15 = vld [vmem:[%s5481_s13 + $0x70] ss:$8 sps:$4 sm:$0xff]  }
  0x62   : > { %1417 = vmatprep.subr.bf16.mxu0 %v5205_v32  ;;  %4838 = vmatprep.subr.bf16.mxu1 %v5205_v32  ;;  %v5068_v16 = vld [vmem:[%s5481_s13 + $0x1f0] ss:$8 sps:$4 sm:$0xff]   ;;  %v5069_v17 = vld [vmem:[%s5481_s13 + $0x84] ss:$8 sps:$4 sm:$0xff]   ;;  %v5073_v19 = vld [vmem:[%s5481_s13 + $0x80] ss:$8 sps:$4 sm:$0xff]  }
  0x63   : > { %v5071_v18 = vld [vmem:[%s5481_s13 + $0x204] ss:$8 sps:$4 sm:$0xff]   ;;  %v5074_v20 = vld [vmem:[%s5481_s13 + $0x200] ss:$8 sps:$4 sm:$0xff]   ;;  %v5075_v21 = vld [vmem:[%s5481_s13 + $0x94] ss:$8 sps:$4 sm:$0xff]  }
  0x64   : > { %v5077_v22 = vld [vmem:[%s5481_s13 + $0x214] ss:$8 sps:$4 sm:$0xff]   ;;  %v5079_v23 = vld [vmem:[%s5481_s13 + $0x90] ss:$8 sps:$4 sm:$0xff]   ;;  %v5081_v25 = vld [vmem:[%s5481_s13 + $0xa4] ss:$8 sps:$4 sm:$0xff]  }
  0x65   : > { %1418 = vmatpush1.bf16.msra.mxu0 %v5009_v38  ;;  %4854 = vmatpush1.bf16.msra.mxu1 %v5009_v38  ;;  %v5080_v24 = vld [vmem:[%s5481_s13 + $0x210] ss:$8 sps:$4 sm:$0xff]   ;;  %v5083_v26 = vld [vmem:[%s5481_s13 + $0x224] ss:$8 sps:$4 sm:$0xff]   ;;  %v5085_v27 = vld [vmem:[%s5481_s13 + $0xa0] ss:$8 sps:$4 sm:$0xff]  }
  0x66   : > { %1419 = vmatprep.subr.bf16.mxu0 %v5205_v32  ;;  %4839 = vmatprep.subr.bf16.mxu1 %v5205_v32  ;;  %v5086_v28 = vld [vmem:[%s5481_s13 + $0x220] ss:$8 sps:$4 sm:$0xff]   ;;  %v5087_v29 = vld [vmem:[%s5481_s13 + $0xb4] ss:$8 sps:$4 sm:$0xff]   ;;  %v5091_v31 = vld [vmem:[%s5481_s13 + $0xb0] ss:$8 sps:$4 sm:$0xff]  }
  0x67   : > { %v5089_v30 = vld [vmem:[%s5481_s13 + $0x234] ss:$8 sps:$4 sm:$0xff]   ;;  %v5093_v33 = vld [vmem:[%s5481_s13 + $0xc4] ss:$8 sps:$4 sm:$0xff]   ;;  %v5097_v35 = vld [vmem:[%s5481_s13 + $0xc0] ss:$8 sps:$4 sm:$0xff]  }
  0x68   : > { %v5095_v34 = vld [vmem:[%s5481_s13 + $0x244] ss:$8 sps:$4 sm:$0xff]   ;;  %v5098_v36 = vld [vmem:[%s5481_s13 + $0x240] ss:$8 sps:$4 sm:$0xff]   ;;  %v5099_v37 = vld [vmem:[%s5481_s13 + $0xd4] ss:$8 sps:$4 sm:$0xff]  }
  0x69   : > { %1420 = vmatpush1.bf16.msra.mxu0 %v5010_v40  ;;  %4855 = vmatpush1.bf16.msra.mxu1 %v5010_v40  ;;  %v5101_v38 = vld [vmem:[%s5481_s13 + $0x254] ss:$8 sps:$4 sm:$0xff]   ;;  %v5103_v39 = vld [vmem:[%s5481_s13 + $0xd0] ss:$8 sps:$4 sm:$0xff]  }
  0x6a   : > { %1421 = vmatprep.subr.bf16.mxu0 %v5205_v32  ;;  %4840 = vmatprep.subr.bf16.mxu1 %v5205_v32  ;;  %v5104_v40 = vld [vmem:[%s5481_s13 + $0x250] ss:$8 sps:$4 sm:$0xff]  }
  0x6d   : > { %1422 = vmatpush1.bf16.msra.mxu0 %v5011_v41  ;;  %4856 = vmatpush1.bf16.msra.mxu1 %v5011_v41  ;;  %v5105_v41 = vld [vmem:[%s5481_s13 + $0xe4] ss:$8 sps:$4 sm:$0xff]  }
  0x6e   : > { %1423 = vmatprep.subr.bf16.mxu0 %v5205_v32  ;;  %4841 = vmatprep.subr.bf16.mxu1 %v5205_v32 }
  0x71   : > { %1424 = vmatpush1.bf16.msra.mxu0 %v5012_v42  ;;  %4857 = vmatpush1.bf16.msra.mxu1 %v5012_v42  ;;  %v5107_v42 = vld [vmem:[%s5481_s13 + $0x264] ss:$8 sps:$4 sm:$0xff]  }
  0x72   : > { %1425 = vmatprep.subr.bf16.mxu0 %v5205_v32  ;;  %4842 = vmatprep.subr.bf16.mxu1 %v5205_v32 }
  0x75   : > { %1426 = vmatpush1.bf16.msra.mxu0 %v5013_v43  ;;  %4858 = vmatpush1.bf16.msra.mxu1 %v5013_v43  ;;  %v5109_v43 = vld [vmem:[%s5481_s13 + $0xe0] ss:$8 sps:$4 sm:$0xff]  }
  0x76   : > { %1427 = vmatprep.subr.bf16.mxu0 %v5205_v32  ;;  %4843 = vmatprep.subr.bf16.mxu1 %v5205_v32 }
  0x79   : > { %1428 = vmatpush1.bf16.msra.mxu0 %v5014_v44  ;;  %4859 = vmatpush1.bf16.msra.mxu1 %v5014_v44  ;;  %v5110_v44 = vld [vmem:[%s5481_s13 + $0x260] ss:$8 sps:$4 sm:$0xff]  }
  0x7a   : > { %1429 = vmatprep.subr.bf16.mxu0 %v5205_v32  ;;  %4844 = vmatprep.subr.bf16.mxu1 %v5205_v32 }
  0x7d   : > { %1430 = vmatpush1.bf16.msra.mxu0 %v5015_v45  ;;  %4860 = vmatpush1.bf16.msra.mxu1 %v5015_v45  ;;  %v5111_v45 = vld [vmem:[%s5481_s13 + $0xf4] ss:$8 sps:$4 sm:$0xff]  }
  0x7e   : > { %1431 = vmatprep.subr.bf16.mxu0 %v5205_v32  ;;  %4845 = vmatprep.subr.bf16.mxu1 %v5205_v32 }
  0x81   : > { %1432 = vmatpush1.bf16.msra.mxu0 %v5016_v46  ;;  %4861 = vmatpush1.bf16.msra.mxu1 %v5016_v46  ;;  %v5113_v46 = vld [vmem:[%s5481_s13 + $0x274] ss:$8 sps:$4 sm:$0xff]  }
  0x82   : > { %1433 = vmatprep.subr.bf16.mxu0 %v5205_v32  ;;  %4846 = vmatprep.subr.bf16.mxu1 %v5205_v32 }
  0x85   : > { %1434 = vmatpush1.bf16.msra.mxu0 %v5017_v47  ;;  %4862 = vmatpush1.bf16.msra.mxu1 %v5017_v47  ;;  %v5115_v47 = vld [vmem:[%s5481_s13 + $0xf0] ss:$8 sps:$4 sm:$0xff]  }
  0x86   : > { %1435 = vmatprep.subr.bf16.mxu0 %v5205_v32  ;;  %4847 = vmatprep.subr.bf16.mxu1 %v5205_v32 }
  0x89   : > { %1436 = vmatpush1.bf16.msra.mxu0 %v5018_v48  ;;  %4863 = vmatpush1.bf16.msra.mxu1 %v5018_v48  ;;  %v5116_v48 = vld [vmem:[%s5481_s13 + $0x270] ss:$8 sps:$4 sm:$0xff]  }
  0x8a   : > { %1437 = vmatprep.subr.bf16.mxu0 %v5205_v32  ;;  %4848 = vmatprep.subr.bf16.mxu1 %v5205_v32 }
  0x8d   : > { %1438 = vmatpush1.bf16.msra.mxu0 %v5019_v49  ;;  %4864 = vmatpush1.bf16.msra.mxu1 %v5019_v49  ;;  %v5117_v49 = vld [vmem:[%s5481_s13 + $0x104] ss:$8 sps:$4 sm:$0xff]  }
  0x8e   : > { %1439 = vmatprep.subr.bf16.mxu0 %v5205_v32  ;;  %4849 = vmatprep.subr.bf16.mxu1 %v5205_v32  ;;  %v5092_v32 = vld [vmem:[%s5481_s13 + $0x230] ss:$8 sps:$4 sm:$0xff]  }
  0x91   : > { %1440 = vmatpush1.bf16.msra.mxu0 %v5020_v50  ;;  %4865 = vmatpush1.bf16.msra.mxu1 %v5020_v50  ;;  %v5119_v50 = vld [vmem:[%s5481_s13 + $0x284] ss:$8 sps:$4 sm:$0xff]  }
  0x94   : > { %1442 = vmatmul.mubr.bf16.vlgmr.msra.gmra.mrb[0].mxu0 %v5021_v51  ;;  %1634 = vmatmul.mubr.bf16.vlgmr.msra.gmra.mrb[0].mxu1 %v5024_v52  ;;  %v5121_v51 = vld [vmem:[%s5481_s13 + $0x100] ss:$8 sps:$4 sm:$0xff]  }
  0x95   : > { %1449 = vmatprep.mubr.bf16.mxu0 %v5027_v53  ;;  %1641 = vmatprep.mubr.bf16.mxu1 %v5029_v54  ;;  %v5122_v52 = vld [vmem:[%s5481_s13 + $0x280] ss:$8 sps:$4 sm:$0xff]   ;;  %v5123_v53 = vld [vmem:[%s5481_s13 + $0x114] ss:$8 sps:$4 sm:$0xff]  }
  0x96   : > { %v5125_v54 = vld [vmem:[%s5481_s13 + $0x294] ss:$8 sps:$4 sm:$0xff]  }
  0x9c   : > { %1450 = vmatmul.mubr.bf16.gmra.mrb[4].mxu0 %v5031_v55  ;;  %1642 = vmatmul.mubr.bf16.gmra.mrb[4].mxu1 %v5032_v56  ;;  %v5127_v55 = vld [vmem:[%s5481_s13 + $0x110] ss:$8 sps:$4 sm:$0xff]  }
  0x9d   : > { %1457 = vmatprep.mubr.bf16.mxu0 %v5033_v57  ;;  %1649 = vmatprep.mubr.bf16.mxu1 %v5035_v58  ;;  %v5128_v56 = vld [vmem:[%s5481_s13 + $0x290] ss:$8 sps:$4 sm:$0xff]   ;;  %v5129_v57 = vld [vmem:[%s5481_s13 + $0x124] ss:$8 sps:$4 sm:$0xff]  }
  0x9e   : > { %v5131_v58 = vld [vmem:[%s5481_s13 + $0x2a4] ss:$8 sps:$4 sm:$0xff]  }
  0xa4   : > { %1458 = vmatmul.mubr.bf16.gmra.mrb[8].mxu0 %v5037_v59  ;;  %1650 = vmatmul.mubr.bf16.gmra.mrb[8].mxu1 %v5038_v60  ;;  %v5133_v59 = vld [vmem:[%s5481_s13 + $0x120] ss:$8 sps:$4 sm:$0xff]  }
  0xa5   : > { %1465 = vmatprep.mubr.bf16.mxu0 %v5039_v61  ;;  %1657 = vmatprep.mubr.bf16.mxu1 %v5041_v62  ;;  %v5134_v60 = vld [vmem:[%s5481_s13 + $0x2a0] ss:$8 sps:$4 sm:$0xff]   ;;  %v5135_v61 = vld [vmem:[%s5481_s13 + $0x134] ss:$8 sps:$4 sm:$0xff]  }
  0xa6   : > { %v5137_v62 = vld [vmem:[%s5481_s13 + $0x2b4] ss:$8 sps:$4 sm:$0xff]  }
  0xac   : > { %1466 = vmatmul.mubr.bf16.gmra.mrb[12].mxu0 %v5043_v63  ;;  %1658 = vmatmul.mubr.bf16.gmra.mrb[12].mxu1 %v5044_v0  ;;  %v5139_v63 = vld [vmem:[%s5481_s13 + $0x130] ss:$8 sps:$4 sm:$0xff]  }
  0xad   : > { %1473 = vmatprep.mubr.bf16.mxu0 %v5045_v1  ;;  %1665 = vmatprep.mubr.bf16.mxu1 %v5047_v2  ;;  %v5140_v0 = vld [vmem:[%s5481_s13 + $0x2b0] ss:$8 sps:$4 sm:$0xff]   ;;  %v5141_v1 = vld [vmem:[%s5481_s13 + $0x144] ss:$8 sps:$4 sm:$0xff]  }
  0xae   : > { %v5143_v2 = vld [vmem:[%s5481_s13 + $0x2c4] ss:$8 sps:$4 sm:$0xff]  }
  0xb4   : > { %1474 = vmatmul.mubr.bf16.gmra.mrb[16].mxu0 %v5049_v3  ;;  %1666 = vmatmul.mubr.bf16.gmra.mrb[16].mxu1 %v5050_v4  ;;  %v5145_v3 = vld [vmem:[%s5481_s13 + $0x140] ss:$8 sps:$4 sm:$0xff]  }
  0xb5   : > { %1481 = vmatprep.mubr.bf16.mxu0 %v5051_v5  ;;  %1673 = vmatprep.mubr.bf16.mxu1 %v5053_v6  ;;  %v5146_v4 = vld [vmem:[%s5481_s13 + $0x2c0] ss:$8 sps:$4 sm:$0xff]   ;;  %v5147_v5 = vld [vmem:[%s5481_s13 + $0x154] ss:$8 sps:$4 sm:$0xff]  }
  0xb6   : > { %v5149_v6 = vld [vmem:[%s5481_s13 + $0x2d4] ss:$8 sps:$4 sm:$0xff]  }
  0xbc   : > { %1482 = vmatmul.mubr.bf16.gmra.mrb[20].mxu0 %v5055_v7  ;;  %1674 = vmatmul.mubr.bf16.gmra.mrb[20].mxu1 %v5056_v8  ;;  %v5151_v7 = vld [vmem:[%s5481_s13 + $0x150] ss:$8 sps:$4 sm:$0xff]  }
  0xbd   : > { %1489 = vmatprep.mubr.bf16.mxu0 %v5057_v9  ;;  %1681 = vmatprep.mubr.bf16.mxu1 %v5059_v10  ;;  %v5152_v8 = vld [vmem:[%s5481_s13 + $0x2d0] ss:$8 sps:$4 sm:$0xff]   ;;  %v5153_v9 = vld [vmem:[%s5481_s13 + $0x164] ss:$8 sps:$4 sm:$0xff]  }
  0xbe   : > { %v5155_v10 = vld [vmem:[%s5481_s13 + $0x2e4] ss:$8 sps:$4 sm:$0xff]  }
  0xc4   : > { %1490 = vmatmul.mubr.bf16.gmra.mrb[24].mxu0 %v5061_v11  ;;  %1682 = vmatmul.mubr.bf16.gmra.mrb[24].mxu1 %v5062_v12  ;;  %v5157_v11 = vld [vmem:[%s5481_s13 + $0x160] ss:$8 sps:$4 sm:$0xff]  }
  0xc5   : > { %1497 = vmatprep.mubr.bf16.mxu0 %v5063_v13  ;;  %1689 = vmatprep.mubr.bf16.mxu1 %v5065_v14  ;;  %v5158_v12 = vld [vmem:[%s5481_s13 + $0x2e0] ss:$8 sps:$4 sm:$0xff]   ;;  %v5159_v13 = vld [vmem:[%s5481_s13 + $0x174] ss:$8 sps:$4 sm:$0xff]  }
  0xc6   : > { %v5161_v14 = vld [vmem:[%s5481_s13 + $0x2f4] ss:$8 sps:$4 sm:$0xff]  }
  0xcc   : > { %1498 = vmatmul.mubr.bf16.gmra.mrb[28].mxu0 %v5067_v15  ;;  %1690 = vmatmul.mubr.bf16.gmra.mrb[28].mxu1 %v5068_v16  ;;  %v5163_v15 = vld [vmem:[%s5481_s13 + $0x170] ss:$8 sps:$4 sm:$0xff]  }
  0xcd   : > { %1505 = vmatprep.mubr.bf16.mxu0 %v5069_v17  ;;  %1697 = vmatprep.mubr.bf16.mxu1 %v5071_v18  ;;  %v5164_v16 = vld [vmem:[%s5481_s13 + $0x2f0] ss:$8 sps:$4 sm:$0xff]  }
  0xd4   : > { %1506 = vmatmul.mubr.bf16.gmra.mrb[32].mxu0 %v5073_v19  ;;  %1698 = vmatmul.mubr.bf16.gmra.mrb[32].mxu1 %v5074_v20 }
  0xd5   : > { %1513 = vmatprep.mubr.bf16.mxu0 %v5075_v21  ;;  %1705 = vmatprep.mubr.bf16.mxu1 %v5077_v22 }
  0xdc   : > { %1514 = vmatmul.mubr.bf16.gmra.mrb[36].mxu0 %v5079_v23  ;;  %1706 = vmatmul.mubr.bf16.gmra.mrb[36].mxu1 %v5080_v24 }
  0xdd   : > { %1521 = vmatprep.mubr.bf16.mxu0 %v5081_v25  ;;  %1713 = vmatprep.mubr.bf16.mxu1 %v5083_v26 }
  0xe4   : > { %1522 = vmatmul.mubr.bf16.gmra.mrb[40].mxu0 %v5085_v27  ;;  %1714 = vmatmul.mubr.bf16.gmra.mrb[40].mxu1 %v5086_v28 }
  0xe5   : > { %1529 = vmatprep.mubr.bf16.mxu0 %v5087_v29  ;;  %1721 = vmatprep.mubr.bf16.mxu1 %v5089_v30 }
  0xec   : > { %1530 = vmatmul.mubr.bf16.gmra.mrb[44].mxu0 %v5091_v31  ;;  %1722 = vmatmul.mubr.bf16.gmra.mrb[44].mxu1 %v5092_v32 }
  0xed   : > { %1537 = vmatprep.mubr.bf16.mxu0 %v5093_v33  ;;  %1729 = vmatprep.mubr.bf16.mxu1 %v5095_v34 }
  0xf4   : > { %1538 = vmatmul.mubr.bf16.gmra.mrb[48].mxu0 %v5097_v35  ;;  %1730 = vmatmul.mubr.bf16.gmra.mrb[48].mxu1 %v5098_v36 }
  0xf5   : > { %1545 = vmatprep.mubr.bf16.mxu0 %v5099_v37  ;;  %1737 = vmatprep.mubr.bf16.mxu1 %v5101_v38 }
  0xfc   : > { %1546 = vmatmul.mubr.bf16.gmra.mrb[52].mxu0 %v5103_v39  ;;  %1738 = vmatmul.mubr.bf16.gmra.mrb[52].mxu1 %v5104_v40 }
  0xfd   : > { %1553 = vmatprep.mubr.bf16.mxu0 %v5105_v41  ;;  %1745 = vmatprep.mubr.bf16.mxu1 %v5107_v42 }
 0x104   : > { %1554 = vmatmul.mubr.bf16.gmra.mrb[56].mxu0 %v5109_v43  ;;  %1746 = vmatmul.mubr.bf16.gmra.mrb[56].mxu1 %v5110_v44 }
 0x105   : > { %1561 = vmatprep.mubr.bf16.mxu0 %v5111_v45  ;;  %1753 = vmatprep.mubr.bf16.mxu1 %v5113_v46 }
 0x10c   : > { %1562 = vmatmul.mubr.bf16.gmra.mrb[60].mxu0 %v5115_v47  ;;  %1754 = vmatmul.mubr.bf16.gmra.mrb[60].mxu1 %v5116_v48 }
 0x10d   : > { %1569 = vmatprep.mubr.bf16.mxu0 %v5117_v49  ;;  %1761 = vmatprep.mubr.bf16.mxu1 %v5119_v50 }
 0x114   : > { %1570 = vmatmul.mubr.bf16.gmra.mrb[64].mxu0 %v5121_v51  ;;  %1762 = vmatmul.mubr.bf16.gmra.mrb[64].mxu1 %v5122_v52 }
 0x115   : > { %1577 = vmatprep.mubr.bf16.mxu0 %v5123_v53  ;;  %1769 = vmatprep.mubr.bf16.mxu1 %v5125_v54 }
 0x11c   : > { %1578 = vmatmul.mubr.bf16.gmra.mrb[68].mxu0 %v5127_v55  ;;  %1770 = vmatmul.mubr.bf16.gmra.mrb[68].mxu1 %v5128_v56 }
 0x11d   : > { %1585 = vmatprep.mubr.bf16.mxu0 %v5129_v57  ;;  %1777 = vmatprep.mubr.bf16.mxu1 %v5131_v58 }
 0x124   : > { %1586 = vmatmul.mubr.bf16.gmra.mrb[72].mxu0 %v5133_v59  ;;  %1778 = vmatmul.mubr.bf16.gmra.mrb[72].mxu1 %v5134_v60 }
 0x125   : > { %1593 = vmatprep.mubr.bf16.mxu0 %v5135_v61  ;;  %1785 = vmatprep.mubr.bf16.mxu1 %v5137_v62 }
 0x12c   : > { %1594 = vmatmul.mubr.bf16.gmra.mrb[76].mxu0 %v5139_v63  ;;  %1786 = vmatmul.mubr.bf16.gmra.mrb[76].mxu1 %v5140_v0 }
 0x12d   : > { %1601 = vmatprep.mubr.bf16.mxu0 %v5141_v1  ;;  %1793 = vmatprep.mubr.bf16.mxu1 %v5143_v2 }
 0x134   : > { %1602 = vmatmul.mubr.bf16.gmra.mrb[80].mxu0 %v5145_v3  ;;  %1794 = vmatmul.mubr.bf16.gmra.mrb[80].mxu1 %v5146_v4 }
 0x135   : > { %1609 = vmatprep.mubr.bf16.mxu0 %v5147_v5  ;;  %1801 = vmatprep.mubr.bf16.mxu1 %v5149_v6 }
 0x13c   : > { %1610 = vmatmul.mubr.bf16.gmra.mrb[84].mxu0 %v5151_v7  ;;  %1802 = vmatmul.mubr.bf16.gmra.mrb[84].mxu1 %v5152_v8 }
 0x13d   : > { %1617 = vmatprep.mubr.bf16.mxu0 %v5153_v9  ;;  %1809 = vmatprep.mubr.bf16.mxu1 %v5155_v10 }
 0x144   : > { %1618 = vmatmul.mubr.bf16.gmra.mrb[88].mxu0 %v5157_v11  ;;  %1810 = vmatmul.mubr.bf16.gmra.mrb[88].mxu1 %v5158_v12 }
 0x145   : > { %1625 = vmatprep.mubr.bf16.mxu0 %v5159_v13  ;;  %1817 = vmatprep.mubr.bf16.mxu1 %v5161_v14 }
 0x14c   : > { %1626 = vmatmul.mubr.bf16.gmra.mrb[92].mxu0 %v5163_v15  ;;  %1818 = vmatmul.mubr.bf16.gmra.mrb[92].mxu1 %v5164_v16 }
 0x167   : > { %v5630_v17 = vpop.f32.mrb[0].mxu0  ;;  %v5632_v18 = vpop.f32.mrb[0].mxu1 }
 0x168   : > { %v1445_v19 = vpop.f32.mrb[1].mxu0  ;;  %v1637_v20 = vpop.f32.mrb[1].mxu1  ;;  %1830 = vst [vmem:[#allocation2] sm:$0xff] (!%p3947_p10), %v5630_v17  ;;  %1878 = vst [vmem:[#allocation2 + $0x180] sm:$0xff] (!%p3947_p10), %v5632_v18 }
 0x169   : > { %v5634_v21 = vpop.f32.mrb[2].mxu0  ;;  %v5636_v22 = vpop.f32.mrb[2].mxu1 }
 0x16a   : > { %6573 = vst [vmem:[#allocation4_spill] sm:$0xff] %v5636_v22  ;;  %v1448_v23 = vpop.f32.mrb[3].mxu0  ;;  %v1640_v24 = vpop.f32.mrb[3].mxu1  ;;  %1831 = vst [vmem:[#allocation2 + $0x8] sm:$0xff] (!%p3947_p10), %v5634_v21 }
 0x16b   : > { %1879 = vst [vmem:[#allocation2 + $0x188] sm:$0xff] (!%p3947_p10), %v5636_v22 }
 0x16f   : > { %v5638_v25 = vpop.f32.mrb[4].mxu0  ;;  %v5640_v26 = vpop.f32.mrb[4].mxu1 }
 0x170   : > { %6574 = vst [vmem:[#allocation5_spill] sm:$0xff] %v5640_v26  ;;  %v1453_v27 = vpop.f32.mrb[5].mxu0  ;;  %v1645_v28 = vpop.f32.mrb[5].mxu1  ;;  %1832 = vst [vmem:[#allocation2 + $0x10] sm:$0xff] (!%p3947_p10), %v5638_v25 }
 0x171   : > { %v5642_v29 = vpop.f32.mrb[6].mxu0  ;;  %v5644_v30 = vpop.f32.mrb[6].mxu1  ;;  %1880 = vst [vmem:[#allocation2 + $0x190] sm:$0xff] (!%p3947_p10), %v5640_v26 }
 0x172   : > { %6575 = vst [vmem:[#allocation6_spill] sm:$0xff] %v5644_v30  ;;  %v1456_v31 = vpop.f32.mrb[7].mxu0  ;;  %v1648_v32 = vpop.f32.mrb[7].mxu1  ;;  %1833 = vst [vmem:[#allocation2 + $0x18] sm:$0xff] (!%p3947_p10), %v5642_v29 }
 0x173   : > { %1881 = vst [vmem:[#allocation2 + $0x198] sm:$0xff] (!%p3947_p10), %v5644_v30 }
 0x177   : > { %v5646_v33 = vpop.f32.mrb[8].mxu0  ;;  %v5648_v34 = vpop.f32.mrb[8].mxu1 }
 0x178   : > { %6576 = vst [vmem:[#allocation7_spill] sm:$0xff] %v5648_v34  ;;  %v1461_v35 = vpop.f32.mrb[9].mxu0  ;;  %v1653_v36 = vpop.f32.mrb[9].mxu1  ;;  %1834 = vst [vmem:[#allocation2 + $0x20] sm:$0xff] (!%p3947_p10), %v5646_v33 }
 0x179   : > { %v5650_v37 = vpop.f32.mrb[10].mxu0  ;;  %v5652_v38 = vpop.f32.mrb[10].mxu1  ;;  %1882 = vst [vmem:[#allocation2 + $0x1a0] sm:$0xff] (!%p3947_p10), %v5648_v34 }
 0x17a   : > { %6577 = vst [vmem:[#allocation8_spill] sm:$0xff] %v5652_v38  ;;  %v1464_v39 = vpop.f32.mrb[11].mxu0  ;;  %v1656_v40 = vpop.f32.mrb[11].mxu1  ;;  %1835 = vst [vmem:[#allocation2 + $0x28] sm:$0xff] (!%p3947_p10), %v5650_v37 }
 0x17f   : > { %v5654_v41 = vpop.f32.mrb[12].mxu0  ;;  %v5656_v42 = vpop.f32.mrb[12].mxu1 }
 0x180   : > { %6578 = vst [vmem:[#allocation9_spill] sm:$0xff] %v5656_v42  ;;  %v1469_v43 = vpop.f32.mrb[13].mxu0  ;;  %v1661_v44 = vpop.f32.mrb[13].mxu1  ;;  %1836 = vst [vmem:[#allocation2 + $0x30] sm:$0xff] (!%p3947_p10), %v5654_v41 }
 0x181   : > { %v5658_v45 = vpop.f32.mrb[14].mxu0  ;;  %v5660_v46 = vpop.f32.mrb[14].mxu1 }
 0x182   : > { %6579 = vst [vmem:[#allocation10_spill] sm:$0xff] %v5660_v46  ;;  %v1472_v47 = vpop.f32.mrb[15].mxu0  ;;  %v1664_v48 = vpop.f32.mrb[15].mxu1  ;;  %1837 = vst [vmem:[#allocation2 + $0x38] sm:$0xff] (!%p3947_p10), %v5658_v45 }
 0x187   : > { %v5662_v49 = vpop.f32.mrb[16].mxu0  ;;  %v5664_v50 = vpop.f32.mrb[16].mxu1 }
 0x188   : > { %6580 = vst [vmem:[#allocation11_spill] sm:$0xff] %v5664_v50  ;;  %v1477_v51 = vpop.f32.mrb[17].mxu0  ;;  %v1669_v52 = vpop.f32.mrb[17].mxu1  ;;  %1838 = vst [vmem:[#allocation2 + $0x40] sm:$0xff] (!%p3947_p10), %v5662_v49 }
 0x189   : > { %v5666_v53 = vpop.f32.mrb[18].mxu0  ;;  %v5668_v54 = vpop.f32.mrb[18].mxu1 }
 0x18a   : > { %6581 = vst [vmem:[#allocation12_spill] sm:$0xff] %v5668_v54  ;;  %v1480_v55 = vpop.f32.mrb[19].mxu0  ;;  %v1672_v56 = vpop.f32.mrb[19].mxu1  ;;  %1839 = vst [vmem:[#allocation2 + $0x48] sm:$0xff] (!%p3947_p10), %v5666_v53 }
 0x18f   : > { %v5670_v57 = vpop.f32.mrb[20].mxu0  ;;  %v5672_v58 = vpop.f32.mrb[20].mxu1 }
 0x190   : > { %6582 = vst [vmem:[#allocation13_spill] sm:$0xff] %v5672_v58  ;;  %v1485_v59 = vpop.f32.mrb[21].mxu0  ;;  %v1677_v60 = vpop.f32.mrb[21].mxu1  ;;  %1840 = vst [vmem:[#allocation2 + $0x50] sm:$0xff] (!%p3947_p10), %v5670_v57 }
 0x191   : > { %v5674_v61 = vpop.f32.mrb[22].mxu0  ;;  %v5676_v62 = vpop.f32.mrb[22].mxu1 }
 0x192   : > { %6583 = vst [vmem:[#allocation14_spill] sm:$0xff] %v5676_v62  ;;  %v1488_v63 = vpop.f32.mrb[23].mxu0  ;;  %v1680_v0 = vpop.f32.mrb[23].mxu1  ;;  %1841 = vst [vmem:[#allocation2 + $0x58] sm:$0xff] (!%p3947_p10), %v5674_v61 }
 0x197   : > { %v5678_v1 = vpop.f32.mrb[24].mxu0  ;;  %v5680_v2 = vpop.f32.mrb[24].mxu1 }
 0x198   : > { %6584 = vst [vmem:[#allocation15_spill] sm:$0xff] %v5680_v2  ;;  %v1493_v3 = vpop.f32.mrb[25].mxu0  ;;  %v1685_v4 = vpop.f32.mrb[25].mxu1  ;;  %1842 = vst [vmem:[#allocation2 + $0x60] sm:$0xff] (!%p3947_p10), %v5678_v1 }
 0x199   : > { %v5682_v5 = vpop.f32.mrb[26].mxu0  ;;  %v5684_v6 = vpop.f32.mrb[26].mxu1 }
 0x19a   : > { %6585 = vst [vmem:[#allocation16_spill] sm:$0xff] %v5684_v6  ;;  %v1496_v7 = vpop.f32.mrb[27].mxu0  ;;  %v1688_v8 = vpop.f32.mrb[27].mxu1  ;;  %1843 = vst [vmem:[#allocation2 + $0x68] sm:$0xff] (!%p3947_p10), %v5682_v5 }
 0x19f   : > { %v5686_v9 = vpop.f32.mrb[28].mxu0  ;;  %v5688_v10 = vpop.f32.mrb[28].mxu1 }
 0x1a0   : > { %6586 = vst [vmem:[#allocation17_spill] sm:$0xff] %v5688_v10  ;;  %v1501_v11 = vpop.f32.mrb[29].mxu0  ;;  %v1693_v12 = vpop.f32.mrb[29].mxu1  ;;  %1844 = vst [vmem:[#allocation2 + $0x70] sm:$0xff] (!%p3947_p10), %v5686_v9 }
 0x1a1   : > { %v5690_v13 = vpop.f32.mrb[30].mxu0  ;;  %v5692_v14 = vpop.f32.mrb[30].mxu1  ;;  %v6628_v26 = vld [vmem:[#allocation16_spill] sm:$0xff] (!%p3947_p10) }
 0x1a2   : > { %6587 = vst [vmem:[#allocation18_spill] sm:$0xff] %v5692_v14  ;;  %v1504_v15 = vpop.f32.mrb[31].mxu0  ;;  %v1696_v16 = vpop.f32.mrb[31].mxu1  ;;  %1845 = vst [vmem:[#allocation2 + $0x78] sm:$0xff] (!%p3947_p10), %v5690_v13 }
 0x1a3   : > { %1891 = vst [vmem:[#allocation2 + $0x1e8] sm:$0xff] (!%p3947_p10), %v6628_v26 }
 0x1a7   : > { %v5694_v19 = vpop.f32.mrb[32].mxu0  ;;  %v5696_v20 = vpop.f32.mrb[32].mxu1  ;;  %v6629_v30 = vld [vmem:[#allocation17_spill] sm:$0xff] (!%p3947_p10) }
 0x1a8   : > { %6588 = vst [vmem:[#allocation19_spill] sm:$0xff] %v5696_v20  ;;  %v1509_v23 = vpop.f32.mrb[33].mxu0  ;;  %v1701_v24 = vpop.f32.mrb[33].mxu1  ;;  %1846 = vst [vmem:[#allocation2 + $0x80] sm:$0xff] (!%p3947_p10), %v5694_v19 }
 0x1a9   : > { %v5698_v27 = vpop.f32.mrb[34].mxu0  ;;  %v5700_v28 = vpop.f32.mrb[34].mxu1  ;;  %1892 = vst [vmem:[#allocation2 + $0x1f0] sm:$0xff] (!%p3947_p10), %v6629_v30  ;;  %v6630_v34 = vld [vmem:[#allocation18_spill] sm:$0xff] (!%p3947_p10) }
 0x1aa   : > { %6589 = vst [vmem:[#allocation20_spill] sm:$0xff] %v5700_v28  ;;  %v1512_v31 = vpop.f32.mrb[35].mxu0  ;;  %v1704_v32 = vpop.f32.mrb[35].mxu1  ;;  %1847 = vst [vmem:[#allocation2 + $0x88] sm:$0xff] (!%p3947_p10), %v5698_v27 }
 0x1ab   : > { %1893 = vst [vmem:[#allocation2 + $0x1f8] sm:$0xff] (!%p3947_p10), %v6630_v34 }
 0x1af   : > { %v5702_v35 = vpop.f32.mrb[36].mxu0  ;;  %v5704_v36 = vpop.f32.mrb[36].mxu1 }
 0x1b0   : > { %6590 = vst [vmem:[#allocation21_spill] sm:$0xff] %v5704_v36  ;;  %v1517_v39 = vpop.f32.mrb[37].mxu0  ;;  %v1709_v40 = vpop.f32.mrb[37].mxu1  ;;  %1848 = vst [vmem:[#allocation2 + $0x90] sm:$0xff] (!%p3947_p10), %v5702_v35 }
 0x1b1   : > { %v5706_v43 = vpop.f32.mrb[38].mxu0  ;;  %v5708_v44 = vpop.f32.mrb[38].mxu1 }
 0x1b2   : > { %6591 = vst [vmem:[#allocation22_spill] sm:$0xff] %v5708_v44  ;;  %v1520_v47 = vpop.f32.mrb[39].mxu0  ;;  %v1712_v48 = vpop.f32.mrb[39].mxu1  ;;  %1849 = vst [vmem:[#allocation2 + $0x98] sm:$0xff] (!%p3947_p10), %v5706_v43 }
 0x1b7   : > { %v5710_v51 = vpop.f32.mrb[40].mxu0  ;;  %v5712_v52 = vpop.f32.mrb[40].mxu1 }
 0x1b8   : > { %6592 = vst [vmem:[#allocation23_spill] sm:$0xff] %v5712_v52  ;;  %v1525_v55 = vpop.f32.mrb[41].mxu0  ;;  %v1717_v56 = vpop.f32.mrb[41].mxu1  ;;  %1850 = vst [vmem:[#allocation2 + $0xa0] sm:$0xff] (!%p3947_p10), %v5710_v51 }
 0x1b9   : > { %v5714_v59 = vpop.f32.mrb[42].mxu0  ;;  %v5716_v60 = vpop.f32.mrb[42].mxu1 }
 0x1ba   : > { %6593 = vst [vmem:[#allocation24_spill] sm:$0xff] %v5716_v60  ;;  %v1528_v63 = vpop.f32.mrb[43].mxu0  ;;  %v1720_v0 = vpop.f32.mrb[43].mxu1  ;;  %1851 = vst [vmem:[#allocation2 + $0xa8] sm:$0xff] (!%p3947_p10), %v5714_v59 }
 0x1bf   : > { %v5718_v3 = vpop.f32.mrb[44].mxu0  ;;  %v5720_v4 = vpop.f32.mrb[44].mxu1 }
 0x1c0   : > { %6594 = vst [vmem:[#allocation25_spill] sm:$0xff] %v5720_v4  ;;  %v1533_v7 = vpop.f32.mrb[45].mxu0  ;;  %v1725_v8 = vpop.f32.mrb[45].mxu1  ;;  %1852 = vst [vmem:[#allocation2 + $0xb0] sm:$0xff] (!%p3947_p10), %v5718_v3 }
 0x1c1   : > { %v5722_v11 = vpop.f32.mrb[46].mxu0  ;;  %v5724_v12 = vpop.f32.mrb[46].mxu1 }
 0x1c2   : > { %6595 = vst [vmem:[#allocation26_spill] sm:$0xff] %v5724_v12  ;;  %v1536_v15 = vpop.f32.mrb[47].mxu0  ;;  %v1728_v16 = vpop.f32.mrb[47].mxu1  ;;  %1853 = vst [vmem:[#allocation2 + $0xb8] sm:$0xff] (!%p3947_p10), %v5722_v11 }
 0x1c7   : > { %v5726_v23 = vpop.f32.mrb[48].mxu0  ;;  %v5728_v24 = vpop.f32.mrb[48].mxu1 }
 0x1c8   : > { %6596 = vst [vmem:[#allocation27_spill] sm:$0xff] %v5728_v24  ;;  %v1541_v31 = vpop.f32.mrb[49].mxu0  ;;  %v1733_v32 = vpop.f32.mrb[49].mxu1  ;;  %1854 = vst [vmem:[#allocation2 + $0xc0] sm:$0xff] (!%p3947_p10), %v5726_v23 }
 0x1c9   : > { %v5730_v39 = vpop.f32.mrb[50].mxu0  ;;  %v5732_v40 = vpop.f32.mrb[50].mxu1 }
 0x1ca   : > { %6597 = vst [vmem:[#allocation28_spill] sm:$0xff] %v5732_v40  ;;  %v1544_v47 = vpop.f32.mrb[51].mxu0  ;;  %v1736_v48 = vpop.f32.mrb[51].mxu1  ;;  %1855 = vst [vmem:[#allocation2 + $0xc8] sm:$0xff] (!%p3947_p10), %v5730_v39 }
 0x1cf   : > { %v5734_v55 = vpop.f32.mrb[52].mxu0  ;;  %v5736_v56 = vpop.f32.mrb[52].mxu1  ;;  %v6639_v26 = vld [vmem:[#allocation27_spill] sm:$0xff] (!%p3947_p10) }
 0x1d0   : > { %6598 = vst [vmem:[#allocation29_spill] sm:$0xff] %v5736_v56  ;;  %v1549_v63 = vpop.f32.mrb[53].mxu0  ;;  %v1741_v0 = vpop.f32.mrb[53].mxu1  ;;  %1856 = vst [vmem:[#allocation2 + $0xd0] sm:$0xff] (!%p3947_p10), %v5734_v55 }
 0x1d1   : > { %v5738_v7 = vpop.f32.mrb[54].mxu0  ;;  %v5740_v8 = vpop.f32.mrb[54].mxu1  ;;  %1902 = vst [vmem:[#allocation2 + $0x240] sm:$0xff] (!%p3947_p10), %v6639_v26  ;;  %v6640_v30 = vld [vmem:[#allocation28_spill] sm:$0xff] (!%p3947_p10) }
 0x1d2   : > { %6599 = vst [vmem:[#allocation30_spill] sm:$0xff] %v5740_v8  ;;  %v1552_v15 = vpop.f32.mrb[55].mxu0  ;;  %v1744_v16 = vpop.f32.mrb[55].mxu1  ;;  %1857 = vst [vmem:[#allocation2 + $0xd8] sm:$0xff] (!%p3947_p10), %v5738_v7 }
 0x1d3   : > { %1903 = vst [vmem:[#allocation2 + $0x248] sm:$0xff] (!%p3947_p10), %v6640_v30 }
 0x1d7   : > { %v5742_v31 = vpop.f32.mrb[56].mxu0  ;;  %v5744_v32 = vpop.f32.mrb[56].mxu1  ;;  %v6641_v34 = vld [vmem:[#allocation29_spill] sm:$0xff] (!%p3947_p10) }
 0x1d8   : > { %6600 = vst [vmem:[#allocation31_spill] sm:$0xff] %v5744_v32  ;;  %v1557_v24 = vpop.f32.mrb[57].mxu0  ;;  %v1749_v40 = vpop.f32.mrb[57].mxu1  ;;  %1858 = vst [vmem:[#allocation2 + $0xe0] sm:$0xff] (!%p3947_p10), %v5742_v31 }
 0x1d9   : > { %v5746_v47 = vpop.f32.mrb[58].mxu0  ;;  %v5748_v48 = vpop.f32.mrb[58].mxu1  ;;  %1904 = vst [vmem:[#allocation2 + $0x250] sm:$0xff] (!%p3947_p10), %v6641_v34 }
 0x1da   : > { %6601 = vst [vmem:[#allocation32_spill] sm:$0xff] %v5748_v48  ;;  %v1560_v12 = vpop.f32.mrb[59].mxu0  ;;  %v1752_v56 = vpop.f32.mrb[59].mxu1  ;;  %1859 = vst [vmem:[#allocation2 + $0xe8] sm:$0xff] (!%p3947_p10), %v5746_v47 }
 0x1df   : > { %v5750_v63 = vpop.f32.mrb[60].mxu0  ;;  %v5752_v0 = vpop.f32.mrb[60].mxu1 }
 0x1e0   : > { %6602 = vst [vmem:[#allocation33_spill] sm:$0xff] %v5752_v0  ;;  %v1565_v4 = vpop.f32.mrb[61].mxu0  ;;  %v1757_v8 = vpop.f32.mrb[61].mxu1  ;;  %1860 = vst [vmem:[#allocation2 + $0xf0] sm:$0xff] (!%p3947_p10), %v5750_v63 }
 0x1e1   : > { %v5754_v15 = vpop.f32.mrb[62].mxu0  ;;  %v5756_v16 = vpop.f32.mrb[62].mxu1 }
 0x1e2   : > { %6603 = vst [vmem:[#allocation34_spill] sm:$0xff] %v5756_v16  ;;  %v1568_v60 = vpop.f32.mrb[63].mxu0  ;;  %v1760_v32 = vpop.f32.mrb[63].mxu1  ;;  %1861 = vst [vmem:[#allocation2 + $0xf8] sm:$0xff] (!%p3947_p10), %v5754_v15 }
 0x1e7   : > { %v5758_v24 = vpop.f32.mrb[64].mxu0  ;;  %v5760_v40 = vpop.f32.mrb[64].mxu1 }
 0x1e8   : > { %6604 = vst [vmem:[#allocation35_spill] sm:$0xff] %v5760_v40  ;;  %v1573_v52 = vpop.f32.mrb[65].mxu0  ;;  %v1765_v48 = vpop.f32.mrb[65].mxu1  ;;  %1862 = vst [vmem:[#allocation2 + $0x100] sm:$0xff] (!%p3947_p10), %v5758_v24 }
 0x1e9   : > { %v5762_v12 = vpop.f32.mrb[66].mxu0  ;;  %v5764_v56 = vpop.f32.mrb[66].mxu1 }
 0x1ea   : > { %6605 = vst [vmem:[#allocation36_spill] sm:$0xff] %v5764_v56  ;;  %v1576_v44 = vpop.f32.mrb[67].mxu0  ;;  %v1768_v0 = vpop.f32.mrb[67].mxu1  ;;  %1863 = vst [vmem:[#allocation2 + $0x108] sm:$0xff] (!%p3947_p10), %v5762_v12 }
 0x1ef   : > { %v5766_v4 = vpop.f32.mrb[68].mxu0  ;;  %v5768_v8 = vpop.f32.mrb[68].mxu1 }
 0x1f0   : > { %6606 = vst [vmem:[#allocation37_spill] sm:$0xff] %v5768_v8  ;;  %v1581_v36 = vpop.f32.mrb[69].mxu0  ;;  %v1773_v16 = vpop.f32.mrb[69].mxu1  ;;  %1864 = vst [vmem:[#allocation2 + $0x110] sm:$0xff] (!%p3947_p10), %v5766_v4 }
 0x1f1   : > { %v5770_v60 = vpop.f32.mrb[70].mxu0  ;;  %v5772_v32 = vpop.f32.mrb[70].mxu1 }
 0x1f2   : > { %6607 = vst [vmem:[#allocation38_spill] sm:$0xff] %v5772_v32  ;;  %v1584_v28 = vpop.f32.mrb[71].mxu0  ;;  %v1776_v40 = vpop.f32.mrb[71].mxu1  ;;  %1865 = vst [vmem:[#allocation2 + $0x118] sm:$0xff] (!%p3947_p10), %v5770_v60 }
 0x1f7   : > { %v5774_v52 = vpop.f32.mrb[72].mxu0  ;;  %v5776_v48 = vpop.f32.mrb[72].mxu1 }
 0x1f8   : > { %6608 = vst [vmem:[#allocation39_spill] sm:$0xff] %v5776_v48  ;;  %v1589_v20 = vpop.f32.mrb[73].mxu0  ;;  %v1781_v56 = vpop.f32.mrb[73].mxu1  ;;  %1866 = vst [vmem:[#allocation2 + $0x120] sm:$0xff] (!%p3947_p10), %v5774_v52 }
 0x1f9   : > { %v5778_v44 = vpop.f32.mrb[74].mxu0  ;;  %v5780_v0 = vpop.f32.mrb[74].mxu1  ;;  %v6650_v26 = vld [vmem:[#allocation38_spill] sm:$0xff] (!%p3947_p10) }
 0x1fa   : > { %6609 = vst [vmem:[#allocation40_spill] sm:$0xff] %v5780_v0  ;;  %v1592_v14 = vpop.f32.mrb[75].mxu0  ;;  %v1784_v8 = vpop.f32.mrb[75].mxu1  ;;  %1867 = vst [vmem:[#allocation2 + $0x128] sm:$0xff] (!%p3947_p10), %v5778_v44 }
 0x1fb   : > { %1913 = vst [vmem:[#allocation2 + $0x298] sm:$0xff] (!%p3947_p10), %v6650_v26 }
 0x1ff   : > { %v5782_v36 = vpop.f32.mrb[76].mxu0  ;;  %v5784_v16 = vpop.f32.mrb[76].mxu1  ;;  %v6651_v30 = vld [vmem:[#allocation39_spill] sm:$0xff] (!%p3947_p10) }
 0x200   : > { %6610 = vst [vmem:[#allocation41_spill] sm:$0xff] %v5784_v16  ;;  %v1597_v10 = vpop.f32.mrb[77].mxu0  ;;  %v1789_v32 = vpop.f32.mrb[77].mxu1  ;;  %1868 = vst [vmem:[#allocation2 + $0x130] sm:$0xff] (!%p3947_p10), %v5782_v36 }
 0x201   : > { %v5786_v28 = vpop.f32.mrb[78].mxu0  ;;  %v5788_v40 = vpop.f32.mrb[78].mxu1  ;;  %1914 = vst [vmem:[#allocation2 + $0x2a0] sm:$0xff] (!%p3947_p10), %v6651_v30  ;;  %v6652_v34 = vld [vmem:[#allocation40_spill] sm:$0xff] (!%p3947_p10) }
 0x202   : > { %6611 = vst [vmem:[#allocation42_spill] sm:$0xff] %v5788_v40  ;;  %v1600_v6 = vpop.f32.mrb[79].mxu0  ;;  %v1792_v48 = vpop.f32.mrb[79].mxu1  ;;  %1869 = vst [vmem:[#allocation2 + $0x138] sm:$0xff] (!%p3947_p10), %v5786_v28 }
 0x203   : > { %1915 = vst [vmem:[#allocation2 + $0x2a8] sm:$0xff] (!%p3947_p10), %v6652_v34 }
 0x207   : > { %v5790_v20 = vpop.f32.mrb[80].mxu0  ;;  %v5792_v56 = vpop.f32.mrb[80].mxu1 }
 0x208   : > { %6612 = vst [vmem:[#allocation43_spill] sm:$0xff] %v5792_v56  ;;  %v1605_v2 = vpop.f32.mrb[81].mxu0  ;;  %v1797_v0 = vpop.f32.mrb[81].mxu1  ;;  %1870 = vst [vmem:[#allocation2 + $0x140] sm:$0xff] (!%p3947_p10), %v5790_v20 }
 0x209   : > { %v5794_v14 = vpop.f32.mrb[82].mxu0  ;;  %v5796_v8 = vpop.f32.mrb[82].mxu1 }
 0x20a   : > { %6613 = vst [vmem:[#allocation44_spill] sm:$0xff] %v5796_v8  ;;  %v1608_v62 = vpop.f32.mrb[83].mxu0  ;;  %v1800_v16 = vpop.f32.mrb[83].mxu1  ;;  %1871 = vst [vmem:[#allocation2 + $0x148] sm:$0xff] (!%p3947_p10), %v5794_v14 }
 0x20f   : > { %v5798_v10 = vpop.f32.mrb[84].mxu0  ;;  %v5800_v32 = vpop.f32.mrb[84].mxu1 }
 0x210   : > { %6614 = vst [vmem:[#allocation45_spill] sm:$0xff] %v5800_v32  ;;  %v1613_v58 = vpop.f32.mrb[85].mxu0  ;;  %v1805_v40 = vpop.f32.mrb[85].mxu1  ;;  %1872 = vst [vmem:[#allocation2 + $0x150] sm:$0xff] (!%p3947_p10), %v5798_v10 }
 0x211   : > { %v5802_v6 = vpop.f32.mrb[86].mxu0  ;;  %v5804_v48 = vpop.f32.mrb[86].mxu1 }
 0x212   : > { %6615 = vst [vmem:[#allocation46_spill] sm:$0xff] %v5804_v48  ;;  %v1616_v54 = vpop.f32.mrb[87].mxu0  ;;  %v1808_v56 = vpop.f32.mrb[87].mxu1  ;;  %1873 = vst [vmem:[#allocation2 + $0x158] sm:$0xff] (!%p3947_p10), %v5802_v6 }
 0x217   : > { %v5806_v2 = vpop.f32.mrb[88].mxu0  ;;  %v5808_v0 = vpop.f32.mrb[88].mxu1 }
 0x218   : > { %6616 = vst [vmem:[#allocation47_spill] sm:$0xff] %v5808_v0  ;;  %v1621_v50 = vpop.f32.mrb[89].mxu0  ;;  %v1813_v8 = vpop.f32.mrb[89].mxu1  ;;  %1874 = vst [vmem:[#allocation2 + $0x160] sm:$0xff] (!%p3947_p10), %v5806_v2 }
 0x219   : > { %v5810_v62 = vpop.f32.mrb[90].mxu0  ;;  %v5812_v16 = vpop.f32.mrb[90].mxu1  ;;  %v6623_v50 = vld [vmem:[#allocation11_spill] sm:$0xff] (!%p3947_p10)  ;;  %v6624_v8 = vld [vmem:[#allocation12_spill] sm:$0xff] (!%p3947_p10) }
 0x21a   : > { %6617 = vst [vmem:[#allocation48_spill] sm:$0xff] %v5812_v16  ;;  %v1624_v46 = vpop.f32.mrb[91].mxu0  ;;  %v1816_v32 = vpop.f32.mrb[91].mxu1  ;;  %1875 = vst [vmem:[#allocation2 + $0x168] sm:$0xff] (!%p3947_p10), %v5810_v62 }
 0x21b   : > { %v6622_v46 = vld [vmem:[#allocation10_spill] sm:$0xff] (!%p3947_p10)  ;;  %1886 = vst [vmem:[#allocation2 + $0x1c0] sm:$0xff] (!%p3947_p10), %v6623_v50  ;;  %1887 = vst [vmem:[#allocation2 + $0x1c8] sm:$0xff] (!%p3947_p10), %v6624_v8  ;;  %v6625_v32 = vld [vmem:[#allocation13_spill] sm:$0xff] (!%p3947_p10) }
 0x21c   : > { %1829 = sbr.rel (%p3947_p10) target bundleno = 558 (0x22e), region = 82  ;;  %1885 = vst [vmem:[#allocation2 + $0x1b8] sm:$0xff] (!%p3947_p10), %v6622_v46  ;;  %1888 = vst [vmem:[#allocation2 + $0x1d0] sm:$0xff] (!%p3947_p10), %v6625_v32  ;;  %v6633_v46 = vld [vmem:[#allocation21_spill] sm:$0xff] (!%p3947_p10)  ;;  %v6634_v50 = vld [vmem:[#allocation22_spill] sm:$0xff] (!%p3947_p10) }
 0x21d   : > { %1896 = vst [vmem:[#allocation2 + $0x210] sm:$0xff] (!%p3947_p10), %v6633_v46  ;;  %1897 = vst [vmem:[#allocation2 + $0x218] sm:$0xff] (!%p3947_p10), %v6634_v50  ;;  %v6635_v8 = vld [vmem:[#allocation23_spill] sm:$0xff] (!%p3947_p10)  ;;  %v6636_v32 = vld [vmem:[#allocation24_spill] sm:$0xff] (!%p3947_p10) }
 0x21e   : > { %1898 = vst [vmem:[#allocation2 + $0x220] sm:$0xff] (!%p3947_p10), %v6635_v8  ;;  %1899 = vst [vmem:[#allocation2 + $0x228] sm:$0xff] (!%p3947_p10), %v6636_v32  ;;  %v6644_v46 = vld [vmem:[#allocation32_spill] sm:$0xff] (!%p3947_p10)  ;;  %v6645_v50 = vld [vmem:[#allocation33_spill] sm:$0xff] (!%p3947_p10) }
 0x21f   : > { %v5814_v58 = vpop.f32.mrb[92].mxu0  ;;  %v5816_v40 = vpop.f32.mrb[92].mxu1  ;;  %1907 = vst [vmem:[#allocation2 + $0x268] sm:$0xff] (!%p3947_p10), %v6644_v46  ;;  %1908 = vst [vmem:[#allocation2 + $0x270] sm:$0xff] (!%p3947_p10), %v6645_v50  ;;  %v6646_v8 = vld [vmem:[#allocation34_spill] sm:$0xff] (!%p3947_p10)  ;;  %v6647_v32 = vld [vmem:[#allocation35_spill] sm:$0xff] (!%p3947_p10) }
 0x220   : > { %6618 = vst [vmem:[#allocation49_spill] sm:$0xff] %v5816_v40  ;;  %v1629_v42 = vpop.f32.mrb[93].mxu0  ;;  %v1821_v48 = vpop.f32.mrb[93].mxu1  ;;  %1876 = vst [vmem:[#allocation2 + $0x170] sm:$0xff] (!%p3947_p10), %v5814_v58  ;;  %v6655_v46 = vld [vmem:[#allocation43_spill] sm:$0xff] (!%p3947_p10)  ;;  %v6656_v50 = vld [vmem:[#allocation44_spill] sm:$0xff] (!%p3947_p10) }
 0x221   : > { %v5818_v54 = vpop.f32.mrb[94].mxu0  ;;  %v5820_v56 = vpop.f32.mrb[94].mxu1  ;;  %v6621_v42 = vld [vmem:[#allocation9_spill] sm:$0xff] (!%p3947_p10)  ;;  %v6626_v48 = vld [vmem:[#allocation14_spill] sm:$0xff] (!%p3947_p10)  ;;  %1909 = vst [vmem:[#allocation2 + $0x278] sm:$0xff] (!%p3947_p10), %v6646_v8  ;;  %1910 = vst [vmem:[#allocation2 + $0x280] sm:$0xff] (!%p3947_p10), %v6647_v32 }
 0x222   : > { %6619 = vst [vmem:[#allocation50_spill] sm:$0xff] %v5820_v56  ;;  %v1632_v38 = vpop.f32.mrb[95].mxu0  ;;  %v1824_v0 = vpop.f32.mrb[95].mxu1  ;;  %1877 = vst [vmem:[#allocation2 + $0x178] sm:$0xff] (!%p3947_p10), %v5818_v54  ;;  %v6657_v8 = vld [vmem:[#allocation45_spill] sm:$0xff] (!%p3947_p10)  ;;  %v6658_v32 = vld [vmem:[#allocation46_spill] sm:$0xff] (!%p3947_p10) }
 0x223   : > { %v6620_v38 = vld [vmem:[#allocation8_spill] sm:$0xff]  ;;  %1884 = vst [vmem:[#allocation2 + $0x1b0] sm:$0xff] %v6621_v42  ;;  %1889 = vst [vmem:[#allocation2 + $0x1d8] sm:$0xff] %v6626_v48  ;;  %v6627_v0 = vld [vmem:[#allocation15_spill] sm:$0xff] }
 0x224   : > { %1883 = vst [vmem:[#allocation2 + $0x1a8] sm:$0xff] %v6620_v38  ;;  %1890 = vst [vmem:[#allocation2 + $0x1e0] sm:$0xff] %v6627_v0  ;;  %v6631_v38 = vld [vmem:[#allocation19_spill] sm:$0xff]  ;;  %v6632_v42 = vld [vmem:[#allocation20_spill] sm:$0xff] }
 0x225   : > { %1894 = vst [vmem:[#allocation2 + $0x200] sm:$0xff] %v6631_v38  ;;  %1895 = vst [vmem:[#allocation2 + $0x208] sm:$0xff] %v6632_v42  ;;  %v6637_v48 = vld [vmem:[#allocation25_spill] sm:$0xff]  ;;  %v6638_v0 = vld [vmem:[#allocation26_spill] sm:$0xff] }
 0x226   : > { %1900 = vst [vmem:[#allocation2 + $0x230] sm:$0xff] %v6637_v48  ;;  %1901 = vst [vmem:[#allocation2 + $0x238] sm:$0xff] %v6638_v0  ;;  %v6642_v38 = vld [vmem:[#allocation30_spill] sm:$0xff]  ;;  %v6643_v42 = vld [vmem:[#allocation31_spill] sm:$0xff] }
 0x227   : > { %1905 = vst [vmem:[#allocation2 + $0x258] sm:$0xff] %v6642_v38  ;;  %1906 = vst [vmem:[#allocation2 + $0x260] sm:$0xff] %v6643_v42  ;;  %v6648_v48 = vld [vmem:[#allocation36_spill] sm:$0xff]  ;;  %v6649_v0 = vld [vmem:[#allocation37_spill] sm:$0xff] }
 0x228   : > { %1911 = vst [vmem:[#allocation2 + $0x288] sm:$0xff] %v6648_v48  ;;  %1912 = vst [vmem:[#allocation2 + $0x290] sm:$0xff] %v6649_v0  ;;  %v6653_v38 = vld [vmem:[#allocation41_spill] sm:$0xff]  ;;  %v6654_v42 = vld [vmem:[#allocation42_spill] sm:$0xff] }
 0x229   : > { %1916 = vst [vmem:[#allocation2 + $0x2b0] sm:$0xff] %v6653_v38  ;;  %1917 = vst [vmem:[#allocation2 + $0x2b8] sm:$0xff] %v6654_v42  ;;  %v6659_v48 = vld [vmem:[#allocation47_spill] sm:$0xff] }
 0x22a   : > { %1918 = vst [vmem:[#allocation2 + $0x2c0] sm:$0xff] %v6655_v46  ;;  %1919 = vst [vmem:[#allocation2 + $0x2c8] sm:$0xff] %v6656_v50 }
 0x22b   : > { %1920 = vst [vmem:[#allocation2 + $0x2d0] sm:$0xff] %v6657_v8  ;;  %1921 = vst [vmem:[#allocation2 + $0x2d8] sm:$0xff] %v6658_v32 }
 0x22c   : > { %1922 = vst [vmem:[#allocation2 + $0x2e0] sm:$0xff] %v6659_v48  ;;  %1923 = vst [vmem:[#allocation2 + $0x2e8] sm:$0xff] %v5812_v16 }
 0x22d   : > { %1924 = vst [vmem:[#allocation2 + $0x2f0] sm:$0xff] %v5816_v40  ;;  %1925 = vst [vmem:[#allocation2 + $0x2f8] sm:$0xff] %v5820_v56 }
 0x22e PF: > { %p3948_p11 = scmp.eq.s32.totalorder %s5195_s20, 0 }
 0x22f   : > { %v1930_v0 = vld [vmem:[#allocation2] sm:$0xff] (!%p3948_p11)  ;;  %v1931_v26 = vld [vmem:[#allocation2 + $0x8] sm:$0xff] (!%p3948_p11)  ;;  %v1932_v30 = vld [vmem:[#allocation2 + $0x10] sm:$0xff] (!%p3948_p11) }
 0x230   : > { %1929 = sbr.rel (%p3948_p11) target bundleno = 622 (0x26e), region = 86  ;;  %v2026_v34 = vadd.f32 (!%p3948_p11), %v1930_v0, %v5630_v17  ;;  %v2027_v38 = vadd.f32 (!%p3948_p11), %v1931_v26, %v5634_v21  ;;  %v2028_v42 = vadd.f32 (!%p3948_p11), %v1932_v30, %v5638_v25  ;;  %v1933_v46 = vld [vmem:[#allocation2 + $0x18] sm:$0xff] (!%p3948_p11)  ;;  %v1934_v50 = vld [vmem:[#allocation2 + $0x20] sm:$0xff] (!%p3948_p11)  ;;  %v1935_v8 = vld [vmem:[#allocation2 + $0x28] sm:$0xff] (!%p3948_p11) }
 0x231   : > { %v2029_v32 = vadd.f32 (!%p3948_p11), %v1933_v46, %v5642_v29  ;;  %v2030_v48 = vadd.f32 (!%p3948_p11), %v1934_v50, %v5646_v33  ;;  %v2031_v56 = vadd.f32 (!%p3948_p11), %v1935_v8, %v5650_v37  ;;  %v1936_v40 = vld [vmem:[#allocation2 + $0x30] sm:$0xff] (!%p3948_p11)  ;;  %v1937_v16 = vld [vmem:[#allocation2 + $0x38] sm:$0xff] (!%p3948_p11)  ;;  %v1938_v22 = vld [vmem:[#allocation2 + $0x40] sm:$0xff] (!%p3948_p11) }
 0x232   : > { %2122 = vst [vmem:[#allocation2] sm:$0xff] (!%p3948_p11), %v2026_v34  ;;  %2123 = vst [vmem:[#allocation2 + $0x8] sm:$0xff] (!%p3948_p11), %v2027_v38  ;;  %v2032_v17 = vadd.f32 (!%p3948_p11), %v1936_v40, %v5654_v41  ;;  %v2033_v21 = vadd.f32 (!%p3948_p11), %v1937_v16, %v5658_v45  ;;  %v2034_v25 = vadd.f32 (!%p3948_p11), %v1938_v22, %v5662_v49  ;;  %v1939_v0 = vld [vmem:[#allocation2 + $0x48] sm:$0xff] (!%p3948_p11)  ;;  %v1940_v26 = vld [vmem:[#allocation2 + $0x50] sm:$0xff] (!%p3948_p11) }
 0x233   : > { %2124 = vst [vmem:[#allocation2 + $0x10] sm:$0xff] (!%p3948_p11), %v2028_v42  ;;  %v1941_v30 = vld [vmem:[#allocation2 + $0x58] sm:$0xff] (!%p3948_p11)  ;;  %2125 = vst [vmem:[#allocation2 + $0x18] sm:$0xff] (!%p3948_p11), %v2029_v32  ;;  %v2035_v29 = vadd.f32 (!%p3948_p11), %v1939_v0, %v5666_v53  ;;  %v2036_v33 = vadd.f32 (!%p3948_p11), %v1940_v26, %v5670_v57  ;;  %v1942_v34 = vld [vmem:[#allocation2 + $0x60] sm:$0xff] (!%p3948_p11) }
 0x234   : > { %2126 = vst [vmem:[#allocation2 + $0x20] sm:$0xff] (!%p3948_p11), %v2030_v48  ;;  %2127 = vst [vmem:[#allocation2 + $0x28] sm:$0xff] (!%p3948_p11), %v2031_v56  ;;  %v2037_v37 = vadd.f32 (!%p3948_p11), %v1941_v30, %v5674_v61  ;;  %v1943_v38 = vld [vmem:[#allocation2 + $0x68] sm:$0xff] (!%p3948_p11)  ;;  %v1944_v42 = vld [vmem:[#allocation2 + $0x70] sm:$0xff] (!%p3948_p11)  ;;  %v2038_v22 = vadd.f32 (!%p3948_p11), %v1942_v34, %v5678_v1 }
 0x235   : > { %2128 = vst [vmem:[#allocation2 + $0x30] sm:$0xff] (!%p3948_p11), %v2032_v17  ;;  %2129 = vst [vmem:[#allocation2 + $0x38] sm:$0xff] (!%p3948_p11), %v2033_v21  ;;  %v2039_v41 = vadd.f32 (!%p3948_p11), %v1943_v38, %v5682_v5  ;;  %v2040_v45 = vadd.f32 (!%p3948_p11), %v1944_v42, %v5686_v9  ;;  %v1945_v49 = vld [vmem:[#allocation2 + $0x78] sm:$0xff] (!%p3948_p11)  ;;  %v1946_v16 = vld [vmem:[#allocation2 + $0x80] sm:$0xff] (!%p3948_p11) }
 0x236   : > { %2130 = vst [vmem:[#allocation2 + $0x40] sm:$0xff] (!%p3948_p11), %v2034_v25  ;;  %v1947_v40 = vld [vmem:[#allocation2 + $0x88] sm:$0xff] (!%p3948_p11)  ;;  %2131 = vst [vmem:[#allocation2 + $0x48] sm:$0xff] (!%p3948_p11), %v2035_v29  ;;  %v2041_v53 = vadd.f32 (!%p3948_p11), %v1945_v49, %v5690_v13  ;;  %v2042_v57 = vadd.f32 (!%p3948_p11), %v1946_v16, %v5694_v19  ;;  %v1948_v56 = vld [vmem:[#allocation2 + $0x90] sm:$0xff] (!%p3948_p11) }
 0x237   : > { %2132 = vst [vmem:[#allocation2 + $0x50] sm:$0xff] %v2036_v33  ;;  %2133 = vst [vmem:[#allocation2 + $0x58] sm:$0xff] %v2037_v37  ;;  %v2043_v61 = vadd.f32 %v1947_v40, %v5698_v27  ;;  %v1949_v46 = vld [vmem:[#allocation2 + $0x98] sm:$0xff]  ;;  %v1950_v50 = vld [vmem:[#allocation2 + $0xa0] sm:$0xff]  ;;  %v2044_v1 = vadd.f32 %v1948_v56, %v5702_v35 }
 0x238   : > { %2134 = vst [vmem:[#allocation2 + $0x60] sm:$0xff] %v2038_v22  ;;  %2135 = vst [vmem:[#allocation2 + $0x68] sm:$0xff] %v2039_v41  ;;  %v2045_v5 = vadd.f32 %v1949_v46, %v5706_v43  ;;  %v2046_v9 = vadd.f32 %v1950_v50, %v5710_v51  ;;  %v1951_v8 = vld [vmem:[#allocation2 + $0xa8] sm:$0xff]  ;;  %v1952_v32 = vld [vmem:[#allocation2 + $0xb0] sm:$0xff] }
 0x239   : > { %2136 = vst [vmem:[#allocation2 + $0x70] sm:$0xff] %v2040_v45  ;;  %v1953_v48 = vld [vmem:[#allocation2 + $0xb8] sm:$0xff]  ;;  %2137 = vst [vmem:[#allocation2 + $0x78] sm:$0xff] %v2041_v53  ;;  %v2047_v13 = vadd.f32 %v1951_v8, %v5714_v59  ;;  %v2048_v19 = vadd.f32 %v1952_v32, %v5718_v3  ;;  %v1954_v17 = vld [vmem:[#allocation2 + $0xc0] sm:$0xff] }
 0x23a   : > { %2138 = vst [vmem:[#allocation2 + $0x80] sm:$0xff] %v2042_v57  ;;  %2139 = vst [vmem:[#allocation2 + $0x88] sm:$0xff] %v2043_v61  ;;  %v2049_v27 = vadd.f32 %v1953_v48, %v5722_v11  ;;  %v1955_v21 = vld [vmem:[#allocation2 + $0xc8] sm:$0xff]  ;;  %v1956_v25 = vld [vmem:[#allocation2 + $0xd0] sm:$0xff]  ;;  %v2050_v35 = vadd.f32 %v1954_v17, %v5726_v23 }
 0x23b   : > { %2140 = vst [vmem:[#allocation2 + $0x90] sm:$0xff] %v2044_v1  ;;  %2141 = vst [vmem:[#allocation2 + $0x98] sm:$0xff] %v2045_v5  ;;  %v2051_v43 = vadd.f32 %v1955_v21, %v5730_v39  ;;  %v2052_v51 = vadd.f32 %v1956_v25, %v5734_v55  ;;  %v1957_v0 = vld [vmem:[#allocation2 + $0xd8] sm:$0xff]  ;;  %v1958_v26 = vld [vmem:[#allocation2 + $0xe0] sm:$0xff] }
 0x23c   : > { %2142 = vst [vmem:[#allocation2 + $0xa0] sm:$0xff] %v2046_v9  ;;  %v1959_v30 = vld [vmem:[#allocation2 + $0xe8] sm:$0xff]  ;;  %2143 = vst [vmem:[#allocation2 + $0xa8] sm:$0xff] %v2047_v13  ;;  %v2053_v59 = vadd.f32 %v1957_v0, %v5738_v7  ;;  %v2054_v3 = vadd.f32 %v1958_v26, %v5742_v31  ;;  %v1960_v29 = vld [vmem:[#allocation2 + $0xf0] sm:$0xff] }
 0x23d   : > { %2144 = vst [vmem:[#allocation2 + $0xb0] sm:$0xff] %v2048_v19  ;;  %2145 = vst [vmem:[#allocation2 + $0xb8] sm:$0xff] %v2049_v27  ;;  %v2055_v11 = vadd.f32 %v1959_v30, %v5746_v47  ;;  %v1961_v33 = vld [vmem:[#allocation2 + $0xf8] sm:$0xff]  ;;  %v1962_v37 = vld [vmem:[#allocation2 + $0x100] sm:$0xff]  ;;  %v2056_v23 = vadd.f32 %v1960_v29, %v5750_v63 }
 0x23e   : > { %2146 = vst [vmem:[#allocation2 + $0xc0] sm:$0xff] %v2050_v35  ;;  %2147 = vst [vmem:[#allocation2 + $0xc8] sm:$0xff] %v2051_v43  ;;  %v2057_v39 = vadd.f32 %v1961_v33, %v5754_v15  ;;  %v2058_v55 = vadd.f32 %v1962_v37, %v5758_v24  ;;  %v1963_v34 = vld [vmem:[#allocation2 + $0x108] sm:$0xff]  ;;  %v1964_v38 = vld [vmem:[#allocation2 + $0x110] sm:$0xff] }
 0x23f   : > { %2148 = vst [vmem:[#allocation2 + $0xd0] sm:$0xff] %v2052_v51  ;;  %v1965_v42 = vld [vmem:[#allocation2 + $0x118] sm:$0xff]  ;;  %2149 = vst [vmem:[#allocation2 + $0xd8] sm:$0xff] %v2053_v59  ;;  %v2059_v7 = vadd.f32 %v1963_v34, %v5762_v12  ;;  %v2060_v31 = vadd.f32 %v1964_v38, %v5766_v4  ;;  %v1966_v22 = vld [vmem:[#allocation2 + $0x120] sm:$0xff] }
 0x240   : > { %2150 = vst [vmem:[#allocation2 + $0xe0] sm:$0xff] %v2054_v3  ;;  %2151 = vst [vmem:[#allocation2 + $0xe8] sm:$0xff] %v2055_v11  ;;  %v2061_v47 = vadd.f32 %v1965_v42, %v5770_v60  ;;  %v1967_v41 = vld [vmem:[#allocation2 + $0x128] sm:$0xff]  ;;  %v1968_v45 = vld [vmem:[#allocation2 + $0x130] sm:$0xff]  ;;  %v2062_v63 = vadd.f32 %v1966_v22, %v5774_v52 }
 0x241   : > { %2152 = vst [vmem:[#allocation2 + $0xf0] sm:$0xff] %v2056_v23  ;;  %2153 = vst [vmem:[#allocation2 + $0xf8] sm:$0xff] %v2057_v39  ;;  %v2063_v15 = vadd.f32 %v1967_v41, %v5778_v44  ;;  %v2064_v24 = vadd.f32 %v1968_v45, %v5782_v36  ;;  %v1969_v49 = vld [vmem:[#allocation2 + $0x138] sm:$0xff]  ;;  %v1970_v16 = vld [vmem:[#allocation2 + $0x140] sm:$0xff] }
 0x242   : > { %2154 = vst [vmem:[#allocation2 + $0x100] sm:$0xff] %v2058_v55  ;;  %v1971_v40 = vld [vmem:[#allocation2 + $0x148] sm:$0xff]  ;;  %2155 = vst [vmem:[#allocation2 + $0x108] sm:$0xff] %v2059_v7  ;;  %v2065_v12 = vadd.f32 %v1969_v49, %v5786_v28  ;;  %v2066_v4 = vadd.f32 %v1970_v16, %v5790_v20  ;;  %v1972_v53 = vld [vmem:[#allocation2 + $0x150] sm:$0xff] }
 0x243   : > { %2156 = vst [vmem:[#allocation2 + $0x110] sm:$0xff] %v2060_v31  ;;  %2157 = vst [vmem:[#allocation2 + $0x118] sm:$0xff] %v2061_v47  ;;  %v2067_v60 = vadd.f32 %v1971_v40, %v5794_v14  ;;  %v1973_v57 = vld [vmem:[#allocation2 + $0x158] sm:$0xff]  ;;  %v1974_v61 = vld [vmem:[#allocation2 + $0x160] sm:$0xff]  ;;  %v2068_v52 = vadd.f32 %v1972_v53, %v5798_v10 }
 0x244   : > { %2158 = vst [vmem:[#allocation2 + $0x120] sm:$0xff] %v2062_v63  ;;  %2159 = vst [vmem:[#allocation2 + $0x128] sm:$0xff] %v2063_v15  ;;  %v2069_v44 = vadd.f32 %v1973_v57, %v5802_v6  ;;  %v2070_v36 = vadd.f32 %v1974_v61, %v5806_v2  ;;  %v1975_v56 = vld [vmem:[#allocation2 + $0x168] sm:$0xff]  ;;  %v1976_v46 = vld [vmem:[#allocation2 + $0x170] sm:$0xff] }
 0x245   : > { %2160 = vst [vmem:[#allocation2 + $0x130] sm:$0xff] %v2064_v24  ;;  %v1977_v50 = vld [vmem:[#allocation2 + $0x178] sm:$0xff]  ;;  %2161 = vst [vmem:[#allocation2 + $0x138] sm:$0xff] %v2065_v12  ;;  %v2071_v28 = vadd.f32 %v1975_v56, %v5810_v62  ;;  %v2072_v20 = vadd.f32 %v1976_v46, %v5814_v58  ;;  %v1978_v1 = vld [vmem:[#allocation2 + $0x180] sm:$0xff] }
 0x246   : > { %2162 = vst [vmem:[#allocation2 + $0x140] sm:$0xff] %v2066_v4  ;;  %2163 = vst [vmem:[#allocation2 + $0x148] sm:$0xff] %v2067_v60  ;;  %v2073_v14 = vadd.f32 %v1977_v50, %v5818_v54  ;;  %v1979_v5 = vld [vmem:[#allocation2 + $0x188] sm:$0xff]  ;;  %v1980_v9 = vld [vmem:[#allocation2 + $0x190] sm:$0xff]  ;;  %v2074_v10 = vadd.f32 %v1978_v1, %v5632_v18 }
 0x247   : > { %2164 = vst [vmem:[#allocation2 + $0x150] sm:$0xff] %v2068_v52  ;;  %2165 = vst [vmem:[#allocation2 + $0x158] sm:$0xff] %v2069_v44  ;;  %v6660_v6 = vld [vmem:[#allocation4_spill] sm:$0xff]  ;;  %v6661_v8 = vld [vmem:[#allocation5_spill] sm:$0xff] }
 0x248   : > { %2166 = vst [vmem:[#allocation2 + $0x160] sm:$0xff] %v2070_v36  ;;  %v2075_v2 = vadd.f32 %v1979_v5, %v6660_v6  ;;  %v2076_v32 = vadd.f32 %v1980_v9, %v6661_v8  ;;  %v1981_v48 = vld [vmem:[#allocation2 + $0x198] sm:$0xff]  ;;  %v1982_v13 = vld [vmem:[#allocation2 + $0x1a0] sm:$0xff]  ;;  %v1983_v19 = vld [vmem:[#allocation2 + $0x1a8] sm:$0xff] }
 0x249   : > { %2167 = vst [vmem:[#allocation2 + $0x168] sm:$0xff] %v2071_v28  ;;  %2168 = vst [vmem:[#allocation2 + $0x170] sm:$0xff] %v2072_v20  ;;  %v6662_v62 = vld [vmem:[#allocation6_spill] sm:$0xff]  ;;  %v6663_v54 = vld [vmem:[#allocation7_spill] sm:$0xff] }
 0x24a   : > { %2169 = vst [vmem:[#allocation2 + $0x178] sm:$0xff] %v2073_v14  ;;  %v2077_v58 = vadd.f32 %v1981_v48, %v6662_v62  ;;  %v2078_v27 = vadd.f32 %v1982_v13, %v6663_v54  ;;  %v6664_v17 = vld [vmem:[#allocation8_spill] sm:$0xff]  ;;  %v1984_v25 = vld [vmem:[#allocation2 + $0x1b0] sm:$0xff]  ;;  %v1985_v35 = vld [vmem:[#allocation2 + $0x1b8] sm:$0xff] }
 0x24b   : > { %v2079_v21 = vadd.f32 %v1983_v19, %v6664_v17  ;;  %v1986_v43 = vld [vmem:[#allocation2 + $0x1c0] sm:$0xff]  ;;  %2170 = vst [vmem:[#allocation2 + $0x180] sm:$0xff] %v2074_v10  ;;  %2171 = vst [vmem:[#allocation2 + $0x188] sm:$0xff] %v2075_v2  ;;  %v6665_v18 = vld [vmem:[#allocation9_spill] sm:$0xff] }
 0x24c   : > { %2172 = vst [vmem:[#allocation2 + $0x190] sm:$0xff] %v2076_v32  ;;  %v2080_v51 = vadd.f32 %v1984_v25, %v6665_v18  ;;  %v6666_v0 = vld [vmem:[#allocation10_spill] sm:$0xff]  ;;  %v6667_v30 = vld [vmem:[#allocation11_spill] sm:$0xff]  ;;  %v1987_v3 = vld [vmem:[#allocation2 + $0x1c8] sm:$0xff] }
 0x24d   : > { %v2081_v26 = vadd.f32 %v1985_v35, %v6666_v0  ;;  %v2082_v59 = vadd.f32 %v1986_v43, %v6667_v30  ;;  %v1988_v11 = vld [vmem:[#allocation2 + $0x1d0] sm:$0xff]  ;;  %v1989_v29 = vld [vmem:[#allocation2 + $0x1d8] sm:$0xff]  ;;  %2173 = vst [vmem:[#allocation2 + $0x198] sm:$0xff] %v2077_v58  ;;  %2174 = vst [vmem:[#allocation2 + $0x1a0] sm:$0xff] %v2078_v27 }
 0x24e   : > { %2175 = vst [vmem:[#allocation2 + $0x1a8] sm:$0xff] %v2079_v21  ;;  %v6668_v33 = vld [vmem:[#allocation12_spill] sm:$0xff]  ;;  %v6669_v23 = vld [vmem:[#allocation13_spill] sm:$0xff]  ;;  %v6670_v55 = vld [vmem:[#allocation14_spill] sm:$0xff] }
 0x24f   : > { %v2083_v37 = vadd.f32 %v1987_v3, %v6668_v33  ;;  %v2084_v39 = vadd.f32 %v1988_v11, %v6669_v23  ;;  %v2085_v34 = vadd.f32 %v1989_v29, %v6670_v55  ;;  %v1990_v38 = vld [vmem:[#allocation2 + $0x1e0] sm:$0xff]  ;;  %v1991_v42 = vld [vmem:[#allocation2 + $0x1e8] sm:$0xff]  ;;  %v1992_v7 = vld [vmem:[#allocation2 + $0x1f0] sm:$0xff]  ;;  %2176 = vst [vmem:[#allocation2 + $0x1b0] sm:$0xff] %v2080_v51 }
 0x250   : > { %2177 = vst [vmem:[#allocation2 + $0x1b8] sm:$0xff] %v2081_v26  ;;  %2178 = vst [vmem:[#allocation2 + $0x1c0] sm:$0xff] %v2082_v59  ;;  %v6671_v31 = vld [vmem:[#allocation15_spill] sm:$0xff]  ;;  %v6672_v22 = vld [vmem:[#allocation16_spill] sm:$0xff] }
 0x251   : > { %v2086_v47 = vadd.f32 %v1990_v38, %v6671_v31  ;;  %v2087_v41 = vadd.f32 %v1991_v42, %v6672_v22  ;;  %v6673_v45 = vld [vmem:[#allocation17_spill] sm:$0xff]  ;;  %v1993_v15 = vld [vmem:[#allocation2 + $0x1f8] sm:$0xff]  ;;  %v1994_v24 = vld [vmem:[#allocation2 + $0x200] sm:$0xff]  ;;  %2179 = vst [vmem:[#allocation2 + $0x1c8] sm:$0xff] %v2083_v37 }
 0x252   : > { %v2088_v63 = vadd.f32 %v1992_v7, %v6673_v45  ;;  %v1995_v49 = vld [vmem:[#allocation2 + $0x208] sm:$0xff]  ;;  %2180 = vst [vmem:[#allocation2 + $0x1d0] sm:$0xff] %v2084_v39  ;;  %2181 = vst [vmem:[#allocation2 + $0x1d8] sm:$0xff] %v2085_v34  ;;  %v6674_v16 = vld [vmem:[#allocation18_spill] sm:$0xff] }
 0x253   : > { %v2089_v40 = vadd.f32 %v1993_v15, %v6674_v16  ;;  %v6675_v12 = vld [vmem:[#allocation19_spill] sm:$0xff]  ;;  %v6676_v60 = vld [vmem:[#allocation20_spill] sm:$0xff]  ;;  %v1996_v57 = vld [vmem:[#allocation2 + $0x210] sm:$0xff]  ;;  %2182 = vst [vmem:[#allocation2 + $0x1e0] sm:$0xff] %v2086_v47 }
 0x254   : > { %v2090_v4 = vadd.f32 %v1994_v24, %v6675_v12  ;;  %v2091_v53 = vadd.f32 %v1995_v49, %v6676_v60  ;;  %v1997_v61 = vld [vmem:[#allocation2 + $0x218] sm:$0xff]  ;;  %v1998_v52 = vld [vmem:[#allocation2 + $0x220] sm:$0xff]  ;;  %2183 = vst [vmem:[#allocation2 + $0x1e8] sm:$0xff] %v2087_v41  ;;  %2184 = vst [vmem:[#allocation2 + $0x1f0] sm:$0xff] %v2088_v63 }
 0x255   : > { %v6677_v44 = vld [vmem:[#allocation21_spill] sm:$0xff]  ;;  %v6678_v56 = vld [vmem:[#allocation22_spill] sm:$0xff]  ;;  %v6679_v50 = vld [vmem:[#allocation23_spill] sm:$0xff]  ;;  %2185 = vst [vmem:[#allocation2 + $0x1f8] sm:$0xff] %v2089_v40 }
 0x256   : > { %v2092_v36 = vadd.f32 %v1996_v57, %v6677_v44  ;;  %v2093_v46 = vadd.f32 %v1997_v61, %v6678_v56  ;;  %v2094_v28 = vadd.f32 %v1998_v52, %v6679_v50  ;;  %v1999_v20 = vld [vmem:[#allocation2 + $0x228] sm:$0xff]  ;;  %v2000_v14 = vld [vmem:[#allocation2 + $0x230] sm:$0xff]  ;;  %v2001_v1 = vld [vmem:[#allocation2 + $0x238] sm:$0xff]  ;;  %2186 = vst [vmem:[#allocation2 + $0x200] sm:$0xff] %v2090_v4 }
 0x257   : > { %2187 = vst [vmem:[#allocation2 + $0x208] sm:$0xff] %v2091_v53  ;;  %v6680_v5 = vld [vmem:[#allocation24_spill] sm:$0xff]  ;;  %v6681_v10 = vld [vmem:[#allocation25_spill] sm:$0xff]  ;;  %v6682_v2 = vld [vmem:[#allocation26_spill] sm:$0xff] }
 0x258   : > { %v2095_v9 = vadd.f32 %v1999_v20, %v6680_v5  ;;  %v2096_v6 = vadd.f32 %v2000_v14, %v6681_v10  ;;  %v2097_v8 = vadd.f32 %v2001_v1, %v6682_v2  ;;  %v2002_v32 = vld [vmem:[#allocation2 + $0x240] sm:$0xff]  ;;  %v2003_v48 = vld [vmem:[#allocation2 + $0x248] sm:$0xff]  ;;  %v2004_v13 = vld [vmem:[#allocation2 + $0x250] sm:$0xff]  ;;  %2188 = vst [vmem:[#allocation2 + $0x210] sm:$0xff] %v2092_v36 }
 0x259   : > { %2189 = vst [vmem:[#allocation2 + $0x218] sm:$0xff] %v2093_v46  ;;  %2190 = vst [vmem:[#allocation2 + $0x220] sm:$0xff] %v2094_v28  ;;  %v6683_v19 = vld [vmem:[#allocation27_spill] sm:$0xff]  ;;  %v6684_v58 = vld [vmem:[#allocation28_spill] sm:$0xff] }
 0x25a   : > { %v2098_v62 = vadd.f32 %v2002_v32, %v6683_v19  ;;  %v2099_v54 = vadd.f32 %v2003_v48, %v6684_v58  ;;  %v6685_v27 = vld [vmem:[#allocation29_spill] sm:$0xff]  ;;  %v2005_v21 = vld [vmem:[#allocation2 + $0x258] sm:$0xff]  ;;  %v2006_v25 = vld [vmem:[#allocation2 + $0x260] sm:$0xff]  ;;  %2191 = vst [vmem:[#allocation2 + $0x228] sm:$0xff] %v2095_v9 }
 0x25b   : > { %v2100_v17 = vadd.f32 %v2004_v13, %v6685_v27  ;;  %v2007_v35 = vld [vmem:[#allocation2 + $0x268] sm:$0xff]  ;;  %2192 = vst [vmem:[#allocation2 + $0x230] sm:$0xff] %v2096_v6  ;;  %2193 = vst [vmem:[#allocation2 + $0x238] sm:$0xff] %v2097_v8  ;;  %v6686_v43 = vld [vmem:[#allocation30_spill] sm:$0xff] }
 0x25c   : > { %v2101_v18 = vadd.f32 %v2005_v21, %v6686_v43  ;;  %v6687_v51 = vld [vmem:[#allocation31_spill] sm:$0xff]  ;;  %v6688_v26 = vld [vmem:[#allocation32_spill] sm:$0xff]  ;;  %v2008_v59 = vld [vmem:[#allocation2 + $0x270] sm:$0xff]  ;;  %2194 = vst [vmem:[#allocation2 + $0x240] sm:$0xff] %v2098_v62 }
 0x25d   : > { %v2102_v0 = vadd.f32 %v2006_v25, %v6687_v51  ;;  %v2103_v30 = vadd.f32 %v2007_v35, %v6688_v26  ;;  %v2009_v3 = vld [vmem:[#allocation2 + $0x278] sm:$0xff]  ;;  %v2010_v11 = vld [vmem:[#allocation2 + $0x280] sm:$0xff]  ;;  %2195 = vst [vmem:[#allocation2 + $0x248] sm:$0xff] %v2099_v54  ;;  %2196 = vst [vmem:[#allocation2 + $0x250] sm:$0xff] %v2100_v17 }
 0x25e   : > { %v6689_v29 = vld [vmem:[#allocation33_spill] sm:$0xff]  ;;  %v6690_v37 = vld [vmem:[#allocation34_spill] sm:$0xff]  ;;  %v6691_v39 = vld [vmem:[#allocation35_spill] sm:$0xff]  ;;  %2197 = vst [vmem:[#allocation2 + $0x258] sm:$0xff] %v2101_v18 }
 0x25f   : > { %v2104_v33 = vadd.f32 %v2008_v59, %v6689_v29  ;;  %v2105_v23 = vadd.f32 %v2009_v3, %v6690_v37  ;;  %v2106_v55 = vadd.f32 %v2010_v11, %v6691_v39  ;;  %v2011_v34 = vld [vmem:[#allocation2 + $0x288] sm:$0xff]  ;;  %v2012_v38 = vld [vmem:[#allocation2 + $0x290] sm:$0xff]  ;;  %v2013_v42 = vld [vmem:[#allocation2 + $0x298] sm:$0xff]  ;;  %2198 = vst [vmem:[#allocation2 + $0x260] sm:$0xff] %v2102_v0 }
 0x260   : > { %2199 = vst [vmem:[#allocation2 + $0x268] sm:$0xff] %v2103_v30  ;;  %v6692_v7 = vld [vmem:[#allocation36_spill] sm:$0xff]  ;;  %v6693_v47 = vld [vmem:[#allocation37_spill] sm:$0xff]  ;;  %v6694_v41 = vld [vmem:[#allocation38_spill] sm:$0xff] }
 0x261   : > { %v2107_v31 = vadd.f32 %v2011_v34, %v6692_v7  ;;  %v2108_v22 = vadd.f32 %v2012_v38, %v6693_v47  ;;  %v2109_v45 = vadd.f32 %v2013_v42, %v6694_v41  ;;  %v2014_v63 = vld [vmem:[#allocation2 + $0x2a0] sm:$0xff]  ;;  %v2015_v15 = vld [vmem:[#allocation2 + $0x2a8] sm:$0xff]  ;;  %v2016_v24 = vld [vmem:[#allocation2 + $0x2b0] sm:$0xff]  ;;  %2200 = vst [vmem:[#allocation2 + $0x270] sm:$0xff] %v2104_v33 }
 0x262   : > { %2201 = vst [vmem:[#allocation2 + $0x278] sm:$0xff] %v2105_v23  ;;  %2202 = vst [vmem:[#allocation2 + $0x280] sm:$0xff] %v2106_v55  ;;  %v6695_v49 = vld [vmem:[#allocation39_spill] sm:$0xff]  ;;  %v6696_v40 = vld [vmem:[#allocation40_spill] sm:$0xff] }
 0x263   : > { %v2110_v16 = vadd.f32 %v2014_v63, %v6695_v49  ;;  %v2111_v12 = vadd.f32 %v2015_v15, %v6696_v40  ;;  %v6697_v4 = vld [vmem:[#allocation41_spill] sm:$0xff]  ;;  %v2017_v53 = vld [vmem:[#allocation2 + $0x2b8] sm:$0xff]  ;;  %v2018_v57 = vld [vmem:[#allocation2 + $0x2c0] sm:$0xff]  ;;  %2203 = vst [vmem:[#allocation2 + $0x288] sm:$0xff] %v2107_v31 }
 0x264   : > { %v2112_v60 = vadd.f32 %v2016_v24, %v6697_v4  ;;  %v2019_v61 = vld [vmem:[#allocation2 + $0x2c8] sm:$0xff]  ;;  %2204 = vst [vmem:[#allocation2 + $0x290] sm:$0xff] %v2108_v22  ;;  %2205 = vst [vmem:[#allocation2 + $0x298] sm:$0xff] %v2109_v45  ;;  %v6698_v52 = vld [vmem:[#allocation42_spill] sm:$0xff] }
 0x265   : > { %v2113_v44 = vadd.f32 %v2017_v53, %v6698_v52  ;;  %v6699_v36 = vld [vmem:[#allocation43_spill] sm:$0xff]  ;;  %v6700_v46 = vld [vmem:[#allocation44_spill] sm:$0xff]  ;;  %v2020_v28 = vld [vmem:[#allocation2 + $0x2d0] sm:$0xff]  ;;  %2206 = vst [vmem:[#allocation2 + $0x2a0] sm:$0xff] %v2110_v16 }
 0x266   : > { %v2114_v56 = vadd.f32 %v2018_v57, %v6699_v36  ;;  %v2115_v50 = vadd.f32 %v2019_v61, %v6700_v46  ;;  %v2021_v20 = vld [vmem:[#allocation2 + $0x2d8] sm:$0xff]  ;;  %v2022_v14 = vld [vmem:[#allocation2 + $0x2e0] sm:$0xff]  ;;  %2207 = vst [vmem:[#allocation2 + $0x2a8] sm:$0xff] %v2111_v12  ;;  %2208 = vst [vmem:[#allocation2 + $0x2b0] sm:$0xff] %v2112_v60 }
 0x267   : > { %v6701_v1 = vld [vmem:[#allocation45_spill] sm:$0xff]  ;;  %v6702_v9 = vld [vmem:[#allocation46_spill] sm:$0xff]  ;;  %v6703_v6 = vld [vmem:[#allocation47_spill] sm:$0xff]  ;;  %2209 = vst [vmem:[#allocation2 + $0x2b8] sm:$0xff] %v2113_v44 }
 0x268   : > { %v2116_v5 = vadd.f32 %v2020_v28, %v6701_v1  ;;  %v2117_v10 = vadd.f32 %v2021_v20, %v6702_v9  ;;  %v2118_v2 = vadd.f32 %v2022_v14, %v6703_v6  ;;  %v2023_v8 = vld [vmem:[#allocation2 + $0x2e8] sm:$0xff]  ;;  %v2024_v32 = vld [vmem:[#allocation2 + $0x2f0] sm:$0xff]  ;;  %v2025_v48 = vld [vmem:[#allocation2 + $0x2f8] sm:$0xff]  ;;  %2210 = vst [vmem:[#allocation2 + $0x2c0] sm:$0xff] %v2114_v56 }
 0x269   : > { %2211 = vst [vmem:[#allocation2 + $0x2c8] sm:$0xff] %v2115_v50  ;;  %v6704_v13 = vld [vmem:[#allocation48_spill] sm:$0xff]  ;;  %v6705_v62 = vld [vmem:[#allocation49_spill] sm:$0xff]  ;;  %v6706_v54 = vld [vmem:[#allocation50_spill] sm:$0xff] }
 0x26a   : > { %v2119_v19 = vadd.f32 %v2023_v8, %v6704_v13  ;;  %v2120_v58 = vadd.f32 %v2024_v32, %v6705_v62  ;;  %v2121_v27 = vadd.f32 %v2025_v48, %v6706_v54  ;;  %2212 = vst [vmem:[#allocation2 + $0x2d0] sm:$0xff] %v2116_v5  ;;  %2213 = vst [vmem:[#allocation2 + $0x2d8] sm:$0xff] %v2117_v10 }
 0x26b   : > { %2214 = vst [vmem:[#allocation2 + $0x2e0] sm:$0xff] %v2118_v2 }
 0x26c   : > { %2215 = vst [vmem:[#allocation2 + $0x2e8] sm:$0xff] %v2119_v19  ;;  %2216 = vst [vmem:[#allocation2 + $0x2f0] sm:$0xff] %v2120_v58 }
 0x26d   : > { %2217 = vst [vmem:[#allocation2 + $0x2f8] sm:$0xff] %v2121_v27 }
 0x26e PF: > { %p3949_p12 = scmp.ne.s32.totalorder %s5195_s20, 2 }
 0x26f   : > { %v2526_v17 = vld [vmem:[%s6564_s4] sm:$0xff] (!%p3949_p12)  ;;  %v2527_v21 = vld [vmem:[%s6564_s4 + $0x8] sm:$0xff] (!%p3949_p12)  ;;  %v2528_v18 = vld [vmem:[%s6564_s4 + $0x10] sm:$0xff] (!%p3949_p12) }
 0x270   : > { %2221 = sbr.rel (%p3949_p12) target bundleno = 1063 (0x427), region = 90  ;;  %v2510_v25 = vld [vmem:[%s6563_s3] sm:$0xff] (!%p3949_p12)  ;;  %v4770_v35 = vpack.c.bf16 (!%p3949_p12), %v2527_v21, %v2526_v17  ;;  %v2511_v43 = vld [vmem:[%s6563_s3 + $0x8] sm:$0xff] (!%p3949_p12)  ;;  %v2529_v51 = vld [vmem:[%s6564_s4 + $0x18] sm:$0xff] (!%p3949_p12) }
 0x271   : > { %v4802_v0 = vpack.c.bf16 (!%p3949_p12), %v2511_v43, %v2510_v25  ;;  %v4774_v26 = vpack.c.bf16 (!%p3949_p12), %v2529_v51, %v2528_v18  ;;  %v2512_v30 = vld [vmem:[%s6563_s3 + $0x10] sm:$0xff] (!%p3949_p12)  ;;  %v2513_v59 = vld [vmem:[%s6563_s3 + $0x18] sm:$0xff] (!%p3949_p12)  ;;  %v2530_v3 = vld [vmem:[%s6564_s4 + $0x20] sm:$0xff] (!%p3949_p12) }
 0x272   : > { %4771 = vmatprep.subr.bf16.mxu1 (!%p3949_p12), %v4770_v35  ;;  %v4806_v11 = vpack.c.bf16 (!%p3949_p12), %v2513_v59, %v2512_v30  ;;  %v2531_v29 = vld [vmem:[%s6564_s4 + $0x28] sm:$0xff] (!%p3949_p12)  ;;  %v2514_v33 = vld [vmem:[%s6563_s3 + $0x20] sm:$0xff] (!%p3949_p12)  ;;  %v2532_v55 = vld [vmem:[%s6564_s4 + $0x30] sm:$0xff] (!%p3949_p12) }
 0x273   : > { %v2515_v37 = vld [vmem:[%s6563_s3 + $0x28] sm:$0xff] (!%p3949_p12)  ;;  %4803 = vmatprep.subr.bf16.mxu0 (!%p3949_p12), %v4802_v0  ;;  %4773 = vmatpush3.bf16.msra.mxu1 (!%p3949_p12), %v4770_v35  ;;  %v4778_v23 = vpack.c.bf16 (!%p3949_p12), %v2531_v29, %v2530_v3  ;;  %v2533_v34 = vld [vmem:[%s6564_s4 + $0x38] sm:$0xff] (!%p3949_p12)  ;;  %v2516_v38 = vld [vmem:[%s6563_s3 + $0x30] sm:$0xff] (!%p3949_p12) }
 0x274   : > { %4805 = vmatpush3.bf16.msra.mxu0 (!%p3949_p12), %v4802_v0  ;;  %4775 = vmatprep.subr.bf16.mxu1 (!%p3949_p12), %v4774_v26  ;;  %v4810_v39 = vpack.c.bf16 (!%p3949_p12), %v2515_v37, %v2514_v33  ;;  %v2517_v42 = vld [vmem:[%s6563_s3 + $0x38] sm:$0xff] (!%p3949_p12)  ;;  %v4782_v7 = vpack.c.bf16 (!%p3949_p12), %v2533_v34, %v2532_v55  ;;  %v2534_v47 = vld [vmem:[%s6564_s4 + $0x40] sm:$0xff] (!%p3949_p12)  ;;  %v2535_v22 = vld [vmem:[%s6564_s4 + $0x48] sm:$0xff] (!%p3949_p12) }
 0x275   : > { %4807 = vmatprep.subr.bf16.mxu0 (!%p3949_p12), %v4806_v11  ;;  %v4814_v31 = vpack.c.bf16 (!%p3949_p12), %v2517_v42, %v2516_v38  ;;  %v3956_v41 = vld [vmem:[%s6562_s2] sm:$0xff] (!%p3949_p12)   ;;  %v2519_v63 = vld [vmem:[%s6563_s3 + $0x48] sm:$0xff] (!%p3949_p12)  ;;  %v4786_v49 = vpack.c.bf16 (!%p3949_p12), %v2535_v22, %v2534_v47  ;;  %v2536_v40 = vld [vmem:[%s6564_s4 + $0x50] sm:$0xff] (!%p3949_p12) }
 0x276   : > { %v2518_v45 = vld [vmem:[%s6563_s3 + $0x40] sm:$0xff] (!%p3949_p12)  ;;  %v3957_v15 = vunpack.c.l.bf16 (!%p3949_p12), %v3956_v41  ;;  %v2537_v12 = vld [vmem:[%s6564_s4 + $0x58] sm:$0xff] (!%p3949_p12)  ;;  %v2520_v4 = vld [vmem:[%s6563_s3 + $0x50] sm:$0xff] (!%p3949_p12)  ;;  %v3958_v10 = vunpack.c.h.bf16 (!%p3949_p12), %v3956_v41 }
 0x277   : > { %4777 = vmatpush3.bf16.msra.mxu1 %v4774_v26  ;;  %v2414_v24 = vld [vmem:[#allocation2] sm:$0xff]  ;;  %v4818_v16 = vpack.c.bf16 %v2519_v63, %v2518_v45  ;;  %v2521_v60 = vld [vmem:[%s6563_s3 + $0x58] sm:$0xff]  ;;  %v4790_v53 = vpack.c.bf16 %v2537_v12, %v2536_v40  ;;  %v2539_v52 = vld [vmem:[%s6564_s4 + $0x68] sm:$0xff] }
 0x278   : > { %4809 = vmatpush3.bf16.msra.mxu0 %v4806_v11  ;;  %4779 = vmatprep.subr.bf16.mxu1 %v4778_v23  ;;  %v4822_v57 = vpack.c.bf16 %v2521_v60, %v2520_v4  ;;  %v2538_v61 = vld [vmem:[%s6564_s4 + $0x60] sm:$0xff]  ;;  %v2523_v36 = vld [vmem:[%s6563_s3 + $0x68] sm:$0xff]  ;;  %v2540_v50 = vld [vmem:[%s6564_s4 + $0x70] sm:$0xff] }
 0x279   : > { %4811 = vmatprep.subr.bf16.mxu0 %v4810_v39  ;;  %4626 = vmatprep.mubr.f32.mxu0 %v2414_v24  ;;  %v2522_v44 = vld [vmem:[%s6563_s3 + $0x60] sm:$0xff]  ;;  %v4794_v56 = vpack.c.bf16 %v2539_v52, %v2538_v61  ;;  %v2541_v28 = vld [vmem:[%s6564_s4 + $0x78] sm:$0xff]  ;;  %v2524_v20 = vld [vmem:[%s6563_s3 + $0x70] sm:$0xff] }
 0x27a   : > { %4450 = vmatprep.mubr.f32.mxu1 %v3957_v15  ;;  %v4826_v46 = vpack.c.bf16 %v2523_v36, %v2522_v44  ;;  %v2525_v14 = vld [vmem:[%s6563_s3 + $0x78] sm:$0xff]  ;;  %v4798_v1 = vpack.c.bf16 %v2541_v28, %v2540_v50  ;;  %v4147_v9 = vld [vmem:[%s6562_s2 + $0x8] sm:$0xff]   ;;  %v4148_v8 = vld [vmem:[%s6562_s2 + $0x10] sm:$0xff]  }
 0x27b   : > { %4781 = vmatpush3.bf16.msra.mxu1 %v4778_v23  ;;  %v4830_v5 = vpack.c.bf16 %v2525_v14, %v2524_v20  ;;  %v3961_v6 = vunpack.c.l.bf16 %v4147_v9  ;;  %v2415_v2 = vld [vmem:[#allocation2 + $0x8] sm:$0xff]  ;;  %v2416_v32 = vld [vmem:[#allocation2 + $0x10] sm:$0xff]  ;;  %v3962_v48 = vunpack.c.h.bf16 %v4147_v9  ;;  %v3965_v13 = vunpack.c.l.bf16 %v4148_v8  ;;  %v2417_v19 = vld [vmem:[#allocation2 + $0x18] sm:$0xff] }
 0x27c   : > { %4813 = vmatpush3.bf16.msra.mxu0 %v4810_v39  ;;  %4783 = vmatprep.subr.bf16.mxu1 %v4782_v7  ;;  %v4149_v62 = vld [vmem:[%s6562_s2 + $0x18] sm:$0xff]   ;;  %v2418_v58 = vld [vmem:[#allocation2 + $0x20] sm:$0xff]  ;;  %v3966_v54 = vunpack.c.h.bf16 %v4148_v8  ;;  %v2419_v17 = vld [vmem:[#allocation2 + $0x28] sm:$0xff] }
 0x27d   : > { %4815 = vmatprep.subr.bf16.mxu0 %v4814_v31  ;;  %v3969_v27 = vunpack.c.l.bf16 %v4149_v62  ;;  %v4150_v21 = vld [vmem:[%s6562_s2 + $0x20] sm:$0xff]   ;;  %v2420_v25 = vld [vmem:[#allocation2 + $0x30] sm:$0xff]  ;;  %v3970_v35 = vunpack.c.h.bf16 %v4149_v62  ;;  %v2421_v18 = vld [vmem:[#allocation2 + $0x38] sm:$0xff] }
 0x27e   : > { %v3973_v43 = vunpack.c.l.bf16 %v4150_v21  ;;  %v4151_v51 = vld [vmem:[%s6562_s2 + $0x28] sm:$0xff]   ;;  %v2422_v0 = vld [vmem:[#allocation2 + $0x40] sm:$0xff]  ;;  %v3974_v26 = vunpack.c.h.bf16 %v4150_v21  ;;  %v4152_v3 = vld [vmem:[%s6562_s2 + $0x30] sm:$0xff]  }
 0x27f   : > { %4785 = vmatpush3.bf16.msra.mxu1 %v4782_v7  ;;  %v3977_v30 = vunpack.c.l.bf16 %v4151_v51  ;;  %v2423_v59 = vld [vmem:[#allocation2 + $0x48] sm:$0xff]  ;;  %v2424_v11 = vld [vmem:[#allocation2 + $0x50] sm:$0xff]  ;;  %v3978_v29 = vunpack.c.h.bf16 %v4151_v51  ;;  %v3981_v33 = vunpack.c.l.bf16 %v4152_v3  ;;  %v2425_v37 = vld [vmem:[#allocation2 + $0x58] sm:$0xff]  ;;  %v3982_v55 = vunpack.c.h.bf16 %v4152_v3 }
 0x280   : > { %4817 = vmatpush3.bf16.msra.mxu0 %v4814_v31  ;;  %4787 = vmatprep.subr.bf16.mxu1 %v4786_v49  ;;  %v4153_v23 = vld [vmem:[%s6562_s2 + $0x38] sm:$0xff]   ;;  %v2426_v39 = vld [vmem:[#allocation2 + $0x60] sm:$0xff]  ;;  %v2427_v38 = vld [vmem:[#allocation2 + $0x68] sm:$0xff] }
 0x281   : > { %4819 = vmatprep.subr.bf16.mxu0 %v4818_v16  ;;  %v3985_v34 = vunpack.c.l.bf16 %v4153_v23  ;;  %v4154_v42 = vld [vmem:[%s6562_s2 + $0x40] sm:$0xff]   ;;  %v2428_v7 = vld [vmem:[#allocation2 + $0x70] sm:$0xff]  ;;  %v3986_v31 = vunpack.c.h.bf16 %v4153_v23  ;;  %v2429_v22 = vld [vmem:[#allocation2 + $0x78] sm:$0xff] }
 0x282   : > { %v3989_v47 = vunpack.c.l.bf16 %v4154_v42  ;;  %v4155_v41 = vld [vmem:[%s6562_s2 + $0x48] sm:$0xff]   ;;  %v2430_v45 = vld [vmem:[#allocation2 + $0x80] sm:$0xff]  ;;  %v3990_v63 = vunpack.c.h.bf16 %v4154_v42  ;;  %v2433_v4 = vld [vmem:[#allocation2 + $0x98] sm:$0xff] }
 0x283   : > { %4789 = vmatpush3.bf16.msra.mxu1 %v4786_v49  ;;  %v3993_v15 = vunpack.c.l.bf16 %v4155_v41  ;;  %v2431_v24 = vld [vmem:[#allocation2 + $0x88] sm:$0xff]  ;;  %v4156_v49 = vld [vmem:[%s6562_s2 + $0x50] sm:$0xff]   ;;  %v3994_v40 = vunpack.c.h.bf16 %v4155_v41  ;;  %v4157_v60 = vld [vmem:[%s6562_s2 + $0x58] sm:$0xff]  }
 0x284   : > { %4821 = vmatpush3.bf16.msra.mxu0 %v4818_v16  ;;  %4791 = vmatprep.subr.bf16.mxu1 %v4790_v53  ;;  %v2432_v16 = vld [vmem:[#allocation2 + $0x90] sm:$0xff]  ;;  %v3997_v12 = vunpack.c.l.bf16 %v4156_v49  ;;  %v4001_v61 = vunpack.c.l.bf16 %v4157_v60  ;;  %v2435_v52 = vld [vmem:[#allocation2 + $0xa8] sm:$0xff]  ;;  %v4158_v44 = vld [vmem:[%s6562_s2 + $0x60] sm:$0xff]  }
 0x285   : > { %4823 = vmatprep.subr.bf16.mxu0 %v4822_v57  ;;  %v2436_v36 = vld [vmem:[#allocation2 + $0xb0] sm:$0xff]  ;;  %v2437_v50 = vld [vmem:[#allocation2 + $0xb8] sm:$0xff]  ;;  %v4159_v28 = vld [vmem:[%s6562_s2 + $0x68] sm:$0xff]   ;;  %v4006_v14 = vunpack.c.h.bf16 %v4158_v44 }
 0x286   : > { %v2438_v20 = vld [vmem:[#allocation2 + $0xc0] sm:$0xff]  ;;  %v4160_v9 = vld [vmem:[%s6562_s2 + $0x70] sm:$0xff]   ;;  %v2441_v8 = vld [vmem:[#allocation2 + $0xd8] sm:$0xff] }
 0x287   : > { %4793 = vmatpush3.bf16.msra.mxu1 %v4790_v53  ;;  %v2434_v53 = vld [vmem:[#allocation2 + $0xa0] sm:$0xff]  ;;  %v2443_v62 = vld [vmem:[#allocation2 + $0xe8] sm:$0xff]  ;;  %v2445_v21 = vld [vmem:[#allocation2 + $0xf8] sm:$0xff] }
 0x288   : > { %4825 = vmatpush3.bf16.msra.mxu0 %v4822_v57  ;;  %4795 = vmatprep.subr.bf16.mxu1 %v4794_v56  ;;  %v3998_v57 = vunpack.c.h.bf16 %v4156_v49  ;;  %v2447_v51 = vld [vmem:[#allocation2 + $0x108] sm:$0xff]  ;;  %v2449_v3 = vld [vmem:[#allocation2 + $0x118] sm:$0xff] }
 0x289   : > { %4827 = vmatprep.subr.bf16.mxu0 %v4826_v46  ;;  %v2451_v23 = vld [vmem:[#allocation2 + $0x128] sm:$0xff]  ;;  %v2453_v42 = vld [vmem:[#allocation2 + $0x138] sm:$0xff] }
 0x28a   : > { %v2455_v41 = vld [vmem:[#allocation2 + $0x148] sm:$0xff]  ;;  %v2457_v49 = vld [vmem:[#allocation2 + $0x158] sm:$0xff] }
 0x28b   : > { %4797 = vmatpush3.bf16.msra.mxu1 %v4794_v56  ;;  %v4002_v56 = vunpack.c.h.bf16 %v4157_v60  ;;  %v2459_v60 = vld [vmem:[#allocation2 + $0x168] sm:$0xff] }
 0x28c   : > { %4829 = vmatpush3.bf16.msra.mxu0 %v4826_v46  ;;  %4799 = vmatprep.subr.bf16.mxu1 %v4798_v1  ;;  %v4005_v46 = vunpack.c.l.bf16 %v4158_v44  ;;  %v2461_v44 = vld [vmem:[#allocation2 + $0x178] sm:$0xff] }
 0x28d   : > { %4831 = vmatprep.subr.bf16.mxu0 %v4830_v5 }
 0x28f   : > { %4801 = vmatpush3.bf16.msra.mxu1 %v4798_v1  ;;  %v4009_v1 = vunpack.c.l.bf16 %v4159_v28 }
 0x290   : > { %4833 = vmatpush3.bf16.msra.mxu0 %v4830_v5  ;;  %v2439_v5 = vld [vmem:[#allocation2 + $0xc8] sm:$0xff] }
 0x292   : > { %4451 = vmatmul.mubr.f32.vlgmr.msra.gmra.mrb[0].mxu1 %v3958_v10  ;;  %v2440_v10 = vld [vmem:[#allocation2 + $0xd0] sm:$0xff] }
 0x293   : > { %4627 = vmatmul.mubr.f32.vlgmr.msra.gmra.mrb[0].mxu0 %v2415_v2  ;;  %4453 = vmatprep.mubr.f32.mxu1 %v3961_v6  ;;  %v4010_v6 = vunpack.c.h.bf16 %v4159_v28  ;;  %v4013_v2 = vunpack.c.l.bf16 %v4160_v9  ;;  %v2463_v28 = vld [vmem:[#allocation2 + $0x188] sm:$0xff] }
 0x294   : > { %4629 = vmatprep.mubr.f32.mxu0 %v2416_v32  ;;  %v4161_v32 = vld [vmem:[%s6562_s2 + $0x78] sm:$0xff]  }
 0x296   : > { %4454 = vmatmul.mubr.f32.gmra.mrb[2].mxu1 %v3962_v48  ;;  %v2442_v48 = vld [vmem:[#allocation2 + $0xe0] sm:$0xff] }
 0x297   : > { %4630 = vmatmul.mubr.f32.gmra.mrb[2].mxu0 %v2417_v19  ;;  %4456 = vmatprep.mubr.f32.mxu1 %v3965_v13  ;;  %v4014_v13 = vunpack.c.h.bf16 %v4160_v9  ;;  %v4017_v19 = vunpack.c.l.bf16 %v4161_v32  ;;  %v2465_v9 = vld [vmem:[#allocation2 + $0x198] sm:$0xff] }
 0x298   : > { %4632 = vmatprep.mubr.f32.mxu0 %v2418_v58  ;;  %v4162_v58 = vld [vmem:[%s6562_s2 + $0x80] sm:$0xff]  }
 0x29a   : > { %4457 = vmatmul.mubr.f32.gmra.mrb[4].mxu1 %v3966_v54  ;;  %v2444_v54 = vld [vmem:[#allocation2 + $0xf0] sm:$0xff] }
 0x29b   : > { %4633 = vmatmul.mubr.f32.gmra.mrb[4].mxu0 %v2419_v17  ;;  %4459 = vmatprep.mubr.f32.mxu1 %v3969_v27  ;;  %v4018_v27 = vunpack.c.h.bf16 %v4161_v32  ;;  %v4021_v17 = vunpack.c.l.bf16 %v4162_v58  ;;  %v2467_v32 = vld [vmem:[#allocation2 + $0x1a8] sm:$0xff] }
 0x29c   : > { %4635 = vmatprep.mubr.f32.mxu0 %v2420_v25  ;;  %v4163_v25 = vld [vmem:[%s6562_s2 + $0x88] sm:$0xff]  }
 0x29e   : > { %4460 = vmatmul.mubr.f32.gmra.mrb[6].mxu1 %v3970_v35  ;;  %v2446_v35 = vld [vmem:[#allocation2 + $0x100] sm:$0xff] }
 0x29f   : > { %4636 = vmatmul.mubr.f32.gmra.mrb[6].mxu0 %v2421_v18  ;;  %4462 = vmatprep.mubr.f32.mxu1 %v3973_v43  ;;  %v4022_v43 = vunpack.c.h.bf16 %v4162_v58  ;;  %v4025_v18 = vunpack.c.l.bf16 %v4163_v25  ;;  %v2469_v58 = vld [vmem:[#allocation2 + $0x1b8] sm:$0xff] }
 0x2a0   : > { %4638 = vmatprep.mubr.f32.mxu0 %v2422_v0  ;;  %v4164_v0 = vld [vmem:[%s6562_s2 + $0x90] sm:$0xff]  }
 0x2a2   : > { %4463 = vmatmul.mubr.f32.gmra.mrb[8].mxu1 %v3974_v26  ;;  %v2448_v26 = vld [vmem:[#allocation2 + $0x110] sm:$0xff] }
 0x2a3   : > { %4639 = vmatmul.mubr.f32.gmra.mrb[8].mxu0 %v2423_v59  ;;  %4465 = vmatprep.mubr.f32.mxu1 %v3977_v30  ;;  %v4026_v30 = vunpack.c.h.bf16 %v4163_v25  ;;  %v4029_v59 = vunpack.c.l.bf16 %v4164_v0  ;;  %v2471_v25 = vld [vmem:[#allocation2 + $0x1c8] sm:$0xff] }
 0x2a4   : > { %4641 = vmatprep.mubr.f32.mxu0 %v2424_v11  ;;  %v4165_v11 = vld [vmem:[%s6562_s2 + $0x98] sm:$0xff]  }
 0x2a6   : > { %4466 = vmatmul.mubr.f32.gmra.mrb[10].mxu1 %v3978_v29  ;;  %v2450_v29 = vld [vmem:[#allocation2 + $0x120] sm:$0xff] }
 0x2a7   : > { %4642 = vmatmul.mubr.f32.gmra.mrb[10].mxu0 %v2425_v37  ;;  %4468 = vmatprep.mubr.f32.mxu1 %v3981_v33  ;;  %v4030_v33 = vunpack.c.h.bf16 %v4164_v0  ;;  %v4033_v37 = vunpack.c.l.bf16 %v4165_v11  ;;  %v2473_v0 = vld [vmem:[#allocation2 + $0x1d8] sm:$0xff] }
 0x2a8   : > { %4644 = vmatprep.mubr.f32.mxu0 %v2426_v39  ;;  %v4166_v39 = vld [vmem:[%s6562_s2 + $0xa0] sm:$0xff]  }
 0x2aa   : > { %4469 = vmatmul.mubr.f32.gmra.mrb[12].mxu1 %v3982_v55  ;;  %v2452_v55 = vld [vmem:[#allocation2 + $0x130] sm:$0xff] }
 0x2ab   : > { %4645 = vmatmul.mubr.f32.gmra.mrb[12].mxu0 %v2427_v38  ;;  %4471 = vmatprep.mubr.f32.mxu1 %v3985_v34  ;;  %v4034_v34 = vunpack.c.h.bf16 %v4165_v11  ;;  %v4037_v38 = vunpack.c.l.bf16 %v4166_v39  ;;  %v2475_v11 = vld [vmem:[#allocation2 + $0x1e8] sm:$0xff] }
 0x2ac   : > { %4647 = vmatprep.mubr.f32.mxu0 %v2428_v7  ;;  %v4167_v7 = vld [vmem:[%s6562_s2 + $0xa8] sm:$0xff]  }
 0x2ae   : > { %4472 = vmatmul.mubr.f32.gmra.mrb[14].mxu1 %v3986_v31  ;;  %v2454_v31 = vld [vmem:[#allocation2 + $0x140] sm:$0xff] }
 0x2af   : > { %4648 = vmatmul.mubr.f32.gmra.mrb[14].mxu0 %v2429_v22  ;;  %4474 = vmatprep.mubr.f32.mxu1 %v3989_v47  ;;  %v4038_v47 = vunpack.c.h.bf16 %v4166_v39  ;;  %v4041_v22 = vunpack.c.l.bf16 %v4167_v7  ;;  %v2477_v39 = vld [vmem:[#allocation2 + $0x1f8] sm:$0xff] }
 0x2b0   : > { %4650 = vmatprep.mubr.f32.mxu0 %v2430_v45  ;;  %v4168_v45 = vld [vmem:[%s6562_s2 + $0xb0] sm:$0xff]  }
 0x2b2   : > { %4475 = vmatmul.mubr.f32.gmra.mrb[16].mxu1 %v3990_v63  ;;  %v2456_v63 = vld [vmem:[#allocation2 + $0x150] sm:$0xff] }
 0x2b3   : > { %4651 = vmatmul.mubr.f32.gmra.mrb[16].mxu0 %v2431_v24  ;;  %4477 = vmatprep.mubr.f32.mxu1 %v3993_v15  ;;  %v4042_v15 = vunpack.c.h.bf16 %v4167_v7  ;;  %v4045_v24 = vunpack.c.l.bf16 %v4168_v45  ;;  %v2479_v7 = vld [vmem:[#allocation2 + $0x208] sm:$0xff] }
 0x2b4   : > { %4653 = vmatprep.mubr.f32.mxu0 %v2432_v16  ;;  %v4169_v16 = vld [vmem:[%s6562_s2 + $0xb8] sm:$0xff]  }
 0x2b6   : > { %4478 = vmatmul.mubr.f32.gmra.mrb[18].mxu1 %v3994_v40  ;;  %v2458_v40 = vld [vmem:[#allocation2 + $0x160] sm:$0xff] }
 0x2b7   : > { %4654 = vmatmul.mubr.f32.gmra.mrb[18].mxu0 %v2433_v4  ;;  %4480 = vmatprep.mubr.f32.mxu1 %v3997_v12  ;;  %v4046_v12 = vunpack.c.h.bf16 %v4168_v45  ;;  %v4049_v4 = vunpack.c.l.bf16 %v4169_v16  ;;  %v2481_v45 = vld [vmem:[#allocation2 + $0x218] sm:$0xff] }
 0x2b8   : > { %4656 = vmatprep.mubr.f32.mxu0 %v2434_v53  ;;  %v4170_v53 = vld [vmem:[%s6562_s2 + $0xc0] sm:$0xff]  }
 0x2ba   : > { %4481 = vmatmul.mubr.f32.gmra.mrb[20].mxu1 %v3998_v57  ;;  %v2460_v57 = vld [vmem:[#allocation2 + $0x170] sm:$0xff] }
 0x2bb   : > { %4657 = vmatmul.mubr.f32.gmra.mrb[20].mxu0 %v2435_v52  ;;  %4483 = vmatprep.mubr.f32.mxu1 %v4001_v61  ;;  %v4050_v61 = vunpack.c.h.bf16 %v4169_v16  ;;  %v4053_v52 = vunpack.c.l.bf16 %v4170_v53  ;;  %v2483_v16 = vld [vmem:[#allocation2 + $0x228] sm:$0xff] }
 0x2bc   : > { %4659 = vmatprep.mubr.f32.mxu0 %v2436_v36  ;;  %v4171_v36 = vld [vmem:[%s6562_s2 + $0xc8] sm:$0xff]  }
 0x2be   : > { %4484 = vmatmul.mubr.f32.gmra.mrb[22].mxu1 %v4002_v56  ;;  %v2462_v56 = vld [vmem:[#allocation2 + $0x180] sm:$0xff] }
 0x2bf   : > { %4660 = vmatmul.mubr.f32.gmra.mrb[22].mxu0 %v2437_v50  ;;  %4486 = vmatprep.mubr.f32.mxu1 %v4005_v46  ;;  %v4054_v46 = vunpack.c.h.bf16 %v4170_v53  ;;  %v4057_v50 = vunpack.c.l.bf16 %v4171_v36  ;;  %v2485_v53 = vld [vmem:[#allocation2 + $0x238] sm:$0xff] }
 0x2c0   : > { %4662 = vmatprep.mubr.f32.mxu0 %v2438_v20  ;;  %v4172_v20 = vld [vmem:[%s6562_s2 + $0xd0] sm:$0xff]  }
 0x2c2   : > { %4487 = vmatmul.mubr.f32.gmra.mrb[24].mxu1 %v4006_v14  ;;  %v2464_v14 = vld [vmem:[#allocation2 + $0x190] sm:$0xff] }
 0x2c3   : > { %4663 = vmatmul.mubr.f32.gmra.mrb[24].mxu0 %v2439_v5  ;;  %4489 = vmatprep.mubr.f32.mxu1 %v4009_v1  ;;  %v4058_v1 = vunpack.c.h.bf16 %v4171_v36  ;;  %v4061_v5 = vunpack.c.l.bf16 %v4172_v20  ;;  %v2487_v36 = vld [vmem:[#allocation2 + $0x248] sm:$0xff] }
 0x2c4   : > { %4665 = vmatprep.mubr.f32.mxu0 %v2440_v10  ;;  %v4173_v10 = vld [vmem:[%s6562_s2 + $0xd8] sm:$0xff]  }
 0x2c6   : > { %4490 = vmatmul.mubr.f32.gmra.mrb[26].mxu1 %v4010_v6  ;;  %v2466_v6 = vld [vmem:[#allocation2 + $0x1a0] sm:$0xff] }
 0x2c7   : > { %4666 = vmatmul.mubr.f32.gmra.mrb[26].mxu0 %v2441_v8  ;;  %4492 = vmatprep.mubr.f32.mxu1 %v4013_v2  ;;  %v4062_v2 = vunpack.c.h.bf16 %v4172_v20  ;;  %v4065_v8 = vunpack.c.l.bf16 %v4173_v10  ;;  %v2489_v20 = vld [vmem:[#allocation2 + $0x258] sm:$0xff] }
 0x2c8   : > { %4668 = vmatprep.mubr.f32.mxu0 %v2442_v48  ;;  %v4174_v48 = vld [vmem:[%s6562_s2 + $0xe0] sm:$0xff]  }
 0x2ca   : > { %4493 = vmatmul.mubr.f32.gmra.mrb[28].mxu1 %v4014_v13  ;;  %v2468_v13 = vld [vmem:[#allocation2 + $0x1b0] sm:$0xff] }
 0x2cb   : > { %4669 = vmatmul.mubr.f32.gmra.mrb[28].mxu0 %v2443_v62  ;;  %4495 = vmatprep.mubr.f32.mxu1 %v4017_v19  ;;  %v4066_v19 = vunpack.c.h.bf16 %v4173_v10  ;;  %v4069_v62 = vunpack.c.l.bf16 %v4174_v48  ;;  %v2491_v10 = vld [vmem:[#allocation2 + $0x268] sm:$0xff] }
 0x2cc   : > { %4671 = vmatprep.mubr.f32.mxu0 %v2444_v54  ;;  %v4175_v54 = vld [vmem:[%s6562_s2 + $0xe8] sm:$0xff]  }
 0x2ce   : > { %4496 = vmatmul.mubr.f32.gmra.mrb[30].mxu1 %v4018_v27  ;;  %v2470_v27 = vld [vmem:[#allocation2 + $0x1c0] sm:$0xff] }
 0x2cf   : > { %4672 = vmatmul.mubr.f32.gmra.mrb[30].mxu0 %v2445_v21  ;;  %4498 = vmatprep.mubr.f32.mxu1 %v4021_v17  ;;  %v4070_v17 = vunpack.c.h.bf16 %v4174_v48  ;;  %v4073_v21 = vunpack.c.l.bf16 %v4175_v54  ;;  %v2493_v48 = vld [vmem:[#allocation2 + $0x278] sm:$0xff] }
 0x2d0   : > { %4674 = vmatprep.mubr.f32.mxu0 %v2446_v35  ;;  %v4176_v35 = vld [vmem:[%s6562_s2 + $0xf0] sm:$0xff]  }
 0x2d2   : > { %4499 = vmatmul.mubr.f32.gmra.mrb[32].mxu1 %v4022_v43  ;;  %v2472_v43 = vld [vmem:[#allocation2 + $0x1d0] sm:$0xff] }
 0x2d3   : > { %4675 = vmatmul.mubr.f32.gmra.mrb[32].mxu0 %v2447_v51  ;;  %4501 = vmatprep.mubr.f32.mxu1 %v4025_v18  ;;  %v4074_v18 = vunpack.c.h.bf16 %v4175_v54  ;;  %v4077_v51 = vunpack.c.l.bf16 %v4176_v35  ;;  %v2495_v54 = vld [vmem:[#allocation2 + $0x288] sm:$0xff] }
 0x2d4   : > { %4677 = vmatprep.mubr.f32.mxu0 %v2448_v26  ;;  %v4177_v26 = vld [vmem:[%s6562_s2 + $0xf8] sm:$0xff]  }
 0x2d6   : > { %4502 = vmatmul.mubr.f32.gmra.mrb[34].mxu1 %v4026_v30  ;;  %v2474_v30 = vld [vmem:[#allocation2 + $0x1e0] sm:$0xff] }
 0x2d7   : > { %4678 = vmatmul.mubr.f32.gmra.mrb[34].mxu0 %v2449_v3  ;;  %4504 = vmatprep.mubr.f32.mxu1 %v4029_v59  ;;  %v4078_v59 = vunpack.c.h.bf16 %v4176_v35  ;;  %v4081_v3 = vunpack.c.l.bf16 %v4177_v26  ;;  %v2497_v35 = vld [vmem:[#allocation2 + $0x298] sm:$0xff] }
 0x2d8   : > { %4680 = vmatprep.mubr.f32.mxu0 %v2450_v29  ;;  %v4178_v29 = vld [vmem:[%s6562_s2 + $0x100] sm:$0xff]  }
 0x2da   : > { %4505 = vmatmul.mubr.f32.gmra.mrb[36].mxu1 %v4030_v33  ;;  %v2476_v33 = vld [vmem:[#allocation2 + $0x1f0] sm:$0xff] }
 0x2db   : > { %4681 = vmatmul.mubr.f32.gmra.mrb[36].mxu0 %v2451_v23  ;;  %4507 = vmatprep.mubr.f32.mxu1 %v4033_v37  ;;  %v4082_v37 = vunpack.c.h.bf16 %v4177_v26  ;;  %v4085_v23 = vunpack.c.l.bf16 %v4178_v29  ;;  %v2499_v26 = vld [vmem:[#allocation2 + $0x2a8] sm:$0xff] }
 0x2dc   : > { %4683 = vmatprep.mubr.f32.mxu0 %v2452_v55  ;;  %v4179_v55 = vld [vmem:[%s6562_s2 + $0x108] sm:$0xff]  }
 0x2de   : > { %4508 = vmatmul.mubr.f32.gmra.mrb[38].mxu1 %v4034_v34  ;;  %v2478_v34 = vld [vmem:[#allocation2 + $0x200] sm:$0xff] }
 0x2df   : > { %4684 = vmatmul.mubr.f32.gmra.mrb[38].mxu0 %v2453_v42  ;;  %4510 = vmatprep.mubr.f32.mxu1 %v4037_v38  ;;  %v4086_v38 = vunpack.c.h.bf16 %v4178_v29  ;;  %v4089_v42 = vunpack.c.l.bf16 %v4179_v55  ;;  %v2501_v29 = vld [vmem:[#allocation2 + $0x2b8] sm:$0xff] }
 0x2e0   : > { %4686 = vmatprep.mubr.f32.mxu0 %v2454_v31  ;;  %v4180_v31 = vld [vmem:[%s6562_s2 + $0x110] sm:$0xff]  }
 0x2e2   : > { %4511 = vmatmul.mubr.f32.gmra.mrb[40].mxu1 %v4038_v47  ;;  %v2480_v47 = vld [vmem:[#allocation2 + $0x210] sm:$0xff] }
 0x2e3   : > { %4687 = vmatmul.mubr.f32.gmra.mrb[40].mxu0 %v2455_v41  ;;  %4513 = vmatprep.mubr.f32.mxu1 %v4041_v22  ;;  %v4090_v22 = vunpack.c.h.bf16 %v4179_v55  ;;  %v4093_v41 = vunpack.c.l.bf16 %v4180_v31  ;;  %v2503_v55 = vld [vmem:[#allocation2 + $0x2c8] sm:$0xff] }
 0x2e4   : > { %4689 = vmatprep.mubr.f32.mxu0 %v2456_v63  ;;  %v4181_v63 = vld [vmem:[%s6562_s2 + $0x118] sm:$0xff]  }
 0x2e6   : > { %4514 = vmatmul.mubr.f32.gmra.mrb[42].mxu1 %v4042_v15  ;;  %v2482_v15 = vld [vmem:[#allocation2 + $0x220] sm:$0xff] }
 0x2e7   : > { %4690 = vmatmul.mubr.f32.gmra.mrb[42].mxu0 %v2457_v49  ;;  %4516 = vmatprep.mubr.f32.mxu1 %v4045_v24  ;;  %v4094_v24 = vunpack.c.h.bf16 %v4180_v31  ;;  %v4097_v49 = vunpack.c.l.bf16 %v4181_v63  ;;  %v2505_v31 = vld [vmem:[#allocation2 + $0x2d8] sm:$0xff] }
 0x2e8   : > { %4692 = vmatprep.mubr.f32.mxu0 %v2458_v40  ;;  %v4182_v40 = vld [vmem:[%s6562_s2 + $0x120] sm:$0xff]  }
 0x2ea   : > { %4517 = vmatmul.mubr.f32.gmra.mrb[44].mxu1 %v4046_v12  ;;  %v2484_v12 = vld [vmem:[#allocation2 + $0x230] sm:$0xff] }
 0x2eb   : > { %4693 = vmatmul.mubr.f32.gmra.mrb[44].mxu0 %v2459_v60  ;;  %4519 = vmatprep.mubr.f32.mxu1 %v4049_v4  ;;  %v4098_v4 = vunpack.c.h.bf16 %v4181_v63  ;;  %v4101_v60 = vunpack.c.l.bf16 %v4182_v40  ;;  %v2507_v63 = vld [vmem:[#allocation2 + $0x2e8] sm:$0xff] }
 0x2ec   : > { %4695 = vmatprep.mubr.f32.mxu0 %v2460_v57  ;;  %v4183_v57 = vld [vmem:[%s6562_s2 + $0x128] sm:$0xff]  }
 0x2ee   : > { %4520 = vmatmul.mubr.f32.gmra.mrb[46].mxu1 %v4050_v61  ;;  %v2486_v61 = vld [vmem:[#allocation2 + $0x240] sm:$0xff] }
 0x2ef   : > { %4696 = vmatmul.mubr.f32.gmra.mrb[46].mxu0 %v2461_v44  ;;  %4522 = vmatprep.mubr.f32.mxu1 %v4053_v52  ;;  %v4102_v52 = vunpack.c.h.bf16 %v4182_v40  ;;  %v4105_v44 = vunpack.c.l.bf16 %v4183_v57 }
 0x2f0   : > { %4698 = vmatprep.mubr.f32.mxu0 %v2462_v56  ;;  %v4184_v56 = vld [vmem:[%s6562_s2 + $0x130] sm:$0xff]  }
 0x2f2   : > { %4523 = vmatmul.mubr.f32.gmra.mrb[48].mxu1 %v4054_v46  ;;  %v2488_v46 = vld [vmem:[#allocation2 + $0x250] sm:$0xff] }
 0x2f3   : > { %4699 = vmatmul.mubr.f32.gmra.mrb[48].mxu0 %v2463_v28  ;;  %4525 = vmatprep.mubr.f32.mxu1 %v4057_v50  ;;  %v4106_v50 = vunpack.c.h.bf16 %v4183_v57  ;;  %v4109_v28 = vunpack.c.l.bf16 %v4184_v56 }
 0x2f4   : > { %4701 = vmatprep.mubr.f32.mxu0 %v2464_v14  ;;  %v4185_v14 = vld [vmem:[%s6562_s2 + $0x138] sm:$0xff]  }
 0x2f6   : > { %4526 = vmatmul.mubr.f32.gmra.mrb[50].mxu1 %v4058_v1  ;;  %v2490_v1 = vld [vmem:[#allocation2 + $0x260] sm:$0xff] }
 0x2f7   : > { %4702 = vmatmul.mubr.f32.gmra.mrb[50].mxu0 %v2465_v9  ;;  %4528 = vmatprep.mubr.f32.mxu1 %v4061_v5  ;;  %v4110_v5 = vunpack.c.h.bf16 %v4184_v56  ;;  %v4113_v9 = vunpack.c.l.bf16 %v4185_v14 }
 0x2f8   : > { %4704 = vmatprep.mubr.f32.mxu0 %v2466_v6  ;;  %v4186_v6 = vld [vmem:[%s6562_s2 + $0x140] sm:$0xff]  }
 0x2fa   : > { %4529 = vmatmul.mubr.f32.gmra.mrb[52].mxu1 %v4062_v2  ;;  %v2492_v2 = vld [vmem:[#allocation2 + $0x270] sm:$0xff] }
 0x2fb   : > { %4705 = vmatmul.mubr.f32.gmra.mrb[52].mxu0 %v2467_v32  ;;  %4531 = vmatprep.mubr.f32.mxu1 %v4065_v8  ;;  %v4114_v8 = vunpack.c.h.bf16 %v4185_v14  ;;  %v4117_v32 = vunpack.c.l.bf16 %v4186_v6 }
 0x2fc   : > { %4707 = vmatprep.mubr.f32.mxu0 %v2468_v13  ;;  %v4187_v13 = vld [vmem:[%s6562_s2 + $0x148] sm:$0xff]  }
 0x2fe   : > { %4532 = vmatmul.mubr.f32.gmra.mrb[54].mxu1 %v4066_v19  ;;  %v2494_v19 = vld [vmem:[#allocation2 + $0x280] sm:$0xff] }
 0x2ff   : > { %4708 = vmatmul.mubr.f32.gmra.mrb[54].mxu0 %v2469_v58  ;;  %4534 = vmatprep.mubr.f32.mxu1 %v4069_v62  ;;  %v4118_v62 = vunpack.c.h.bf16 %v4186_v6  ;;  %v4121_v58 = vunpack.c.l.bf16 %v4187_v13 }
 0x300   : > { %4710 = vmatprep.mubr.f32.mxu0 %v2470_v27  ;;  %v4188_v27 = vld [vmem:[%s6562_s2 + $0x150] sm:$0xff]  }
 0x302   : > { %4535 = vmatmul.mubr.f32.gmra.mrb[56].mxu1 %v4070_v17  ;;  %v2496_v17 = vld [vmem:[#allocation2 + $0x290] sm:$0xff] }
 0x303   : > { %4711 = vmatmul.mubr.f32.gmra.mrb[56].mxu0 %v2471_v25  ;;  %4537 = vmatprep.mubr.f32.mxu1 %v4073_v21  ;;  %v4122_v21 = vunpack.c.h.bf16 %v4187_v13  ;;  %v4125_v25 = vunpack.c.l.bf16 %v4188_v27 }
 0x304   : > { %4713 = vmatprep.mubr.f32.mxu0 %v2472_v43  ;;  %v4189_v43 = vld [vmem:[%s6562_s2 + $0x158] sm:$0xff]  }
 0x306   : > { %4538 = vmatmul.mubr.f32.gmra.mrb[58].mxu1 %v4074_v18  ;;  %v2498_v18 = vld [vmem:[#allocation2 + $0x2a0] sm:$0xff] }
 0x307   : > { %4714 = vmatmul.mubr.f32.gmra.mrb[58].mxu0 %v2473_v0  ;;  %4540 = vmatprep.mubr.f32.mxu1 %v4077_v51  ;;  %v4126_v51 = vunpack.c.h.bf16 %v4188_v27  ;;  %v4129_v0 = vunpack.c.l.bf16 %v4189_v43 }
 0x308   : > { %4716 = vmatprep.mubr.f32.mxu0 %v2474_v30  ;;  %v4190_v30 = vld [vmem:[%s6562_s2 + $0x160] sm:$0xff]  }
 0x30a   : > { %4541 = vmatmul.mubr.f32.gmra.mrb[60].mxu1 %v4078_v59  ;;  %v2500_v59 = vld [vmem:[#allocation2 + $0x2b0] sm:$0xff] }
 0x30b   : > { %4717 = vmatmul.mubr.f32.gmra.mrb[60].mxu0 %v2475_v11  ;;  %4543 = vmatprep.mubr.f32.mxu1 %v4081_v3  ;;  %v4130_v3 = vunpack.c.h.bf16 %v4189_v43  ;;  %v4133_v11 = vunpack.c.l.bf16 %v4190_v30 }
 0x30c   : > { %4719 = vmatprep.mubr.f32.mxu0 %v2476_v33  ;;  %v4191_v33 = vld [vmem:[%s6562_s2 + $0x168] sm:$0xff]  }
 0x30e   : > { %4544 = vmatmul.mubr.f32.gmra.mrb[62].mxu1 %v4082_v37  ;;  %v2502_v37 = vld [vmem:[#allocation2 + $0x2c0] sm:$0xff] }
 0x30f   : > { %4720 = vmatmul.mubr.f32.gmra.mrb[62].mxu0 %v2477_v39  ;;  %4546 = vmatprep.mubr.f32.mxu1 %v4085_v23  ;;  %v4134_v23 = vunpack.c.h.bf16 %v4190_v30  ;;  %v4137_v39 = vunpack.c.l.bf16 %v4191_v33 }
 0x310   : > { %4722 = vmatprep.mubr.f32.mxu0 %v2478_v34  ;;  %v4192_v34 = vld [vmem:[%s6562_s2 + $0x170] sm:$0xff]  }
 0x312   : > { %4547 = vmatmul.mubr.f32.gmra.mrb[64].mxu1 %v4086_v38  ;;  %v2504_v38 = vld [vmem:[#allocation2 + $0x2d0] sm:$0xff] }
 0x313   : > { %4723 = vmatmul.mubr.f32.gmra.mrb[64].mxu0 %v2479_v7  ;;  %4549 = vmatprep.mubr.f32.mxu1 %v4089_v42  ;;  %v4138_v42 = vunpack.c.h.bf16 %v4191_v33  ;;  %v4141_v7 = vunpack.c.l.bf16 %v4192_v34 }
 0x314   : > { %4725 = vmatprep.mubr.f32.mxu0 %v2480_v47  ;;  %v4193_v47 = vld [vmem:[%s6562_s2 + $0x178] sm:$0xff]  }
 0x316   : > { %4550 = vmatmul.mubr.f32.gmra.mrb[66].mxu1 %v4090_v22  ;;  %v2506_v22 = vld [vmem:[#allocation2 + $0x2e0] sm:$0xff] }
 0x317   : > { %4726 = vmatmul.mubr.f32.gmra.mrb[66].mxu0 %v2481_v45  ;;  %4552 = vmatprep.mubr.f32.mxu1 %v4093_v41  ;;  %v4142_v41 = vunpack.c.h.bf16 %v4192_v34  ;;  %v4145_v45 = vunpack.c.l.bf16 %v4193_v47 }
 0x318   : > { %4728 = vmatprep.mubr.f32.mxu0 %v2482_v15  ;;  %v2508_v15 = vld [vmem:[#allocation2 + $0x2f0] sm:$0xff] }
 0x31a   : > { %4553 = vmatmul.mubr.f32.gmra.mrb[68].mxu1 %v4094_v24  ;;  %v4146_v24 = vunpack.c.h.bf16 %v4193_v47 }
 0x31b   : > { %4729 = vmatmul.mubr.f32.gmra.mrb[68].mxu0 %v2483_v16  ;;  %4555 = vmatprep.mubr.f32.mxu1 %v4097_v49  ;;  %v2509_v49 = vld [vmem:[#allocation2 + $0x2f8] sm:$0xff] }
 0x31c   : > { %4731 = vmatprep.mubr.f32.mxu0 %v2484_v12 }
 0x31e   : > { %4556 = vmatmul.mubr.f32.gmra.mrb[70].mxu1 %v4098_v4 }
 0x31f   : > { %4732 = vmatmul.mubr.f32.gmra.mrb[70].mxu0 %v2485_v53  ;;  %4558 = vmatprep.mubr.f32.mxu1 %v4101_v60 }
 0x320   : > { %4734 = vmatprep.mubr.f32.mxu0 %v2486_v61 }
 0x322   : > { %4559 = vmatmul.mubr.f32.gmra.mrb[72].mxu1 %v4102_v52 }
 0x323   : > { %4735 = vmatmul.mubr.f32.gmra.mrb[72].mxu0 %v2487_v36  ;;  %4561 = vmatprep.mubr.f32.mxu1 %v4105_v44 }
 0x324   : > { %4737 = vmatprep.mubr.f32.mxu0 %v2488_v46 }
 0x326   : > { %4562 = vmatmul.mubr.f32.gmra.mrb[74].mxu1 %v4106_v50 }
 0x327   : > { %4738 = vmatmul.mubr.f32.gmra.mrb[74].mxu0 %v2489_v20  ;;  %4564 = vmatprep.mubr.f32.mxu1 %v4109_v28 }
 0x328   : > { %4740 = vmatprep.mubr.f32.mxu0 %v2490_v1 }
 0x32a   : > { %4565 = vmatmul.mubr.f32.gmra.mrb[76].mxu1 %v4110_v5 }
 0x32b   : > { %4741 = vmatmul.mubr.f32.gmra.mrb[76].mxu0 %v2491_v10  ;;  %4567 = vmatprep.mubr.f32.mxu1 %v4113_v9 }
 0x32c   : > { %4743 = vmatprep.mubr.f32.mxu0 %v2492_v2 }
 0x32e   : > { %4568 = vmatmul.mubr.f32.gmra.mrb[78].mxu1 %v4114_v8 }
 0x32f   : > { %4744 = vmatmul.mubr.f32.gmra.mrb[78].mxu0 %v2493_v48  ;;  %4570 = vmatprep.mubr.f32.mxu1 %v4117_v32 }
 0x330   : > { %4746 = vmatprep.mubr.f32.mxu0 %v2494_v19 }
 0x332   : > { %4571 = vmatmul.mubr.f32.gmra.mrb[80].mxu1 %v4118_v62 }
 0x333   : > { %4747 = vmatmul.mubr.f32.gmra.mrb[80].mxu0 %v2495_v54  ;;  %4573 = vmatprep.mubr.f32.mxu1 %v4121_v58 }
 0x334   : > { %4749 = vmatprep.mubr.f32.mxu0 %v2496_v17 }
 0x336   : > { %4574 = vmatmul.mubr.f32.gmra.mrb[82].mxu1 %v4122_v21 }
 0x337   : > { %4750 = vmatmul.mubr.f32.gmra.mrb[82].mxu0 %v2497_v35  ;;  %4576 = vmatprep.mubr.f32.mxu1 %v4125_v25 }
 0x338   : > { %4752 = vmatprep.mubr.f32.mxu0 %v2498_v18 }
 0x33a   : > { %4577 = vmatmul.mubr.f32.gmra.mrb[84].mxu1 %v4126_v51 }
 0x33b   : > { %4753 = vmatmul.mubr.f32.gmra.mrb[84].mxu0 %v2499_v26  ;;  %4579 = vmatprep.mubr.f32.mxu1 %v4129_v0 }
 0x33c   : > { %4755 = vmatprep.mubr.f32.mxu0 %v2500_v59 }
 0x33e   : > { %4580 = vmatmul.mubr.f32.gmra.mrb[86].mxu1 %v4130_v3 }
 0x33f   : > { %4756 = vmatmul.mubr.f32.gmra.mrb[86].mxu0 %v2501_v29  ;;  %4582 = vmatprep.mubr.f32.mxu1 %v4133_v11 }
 0x340   : > { %4758 = vmatprep.mubr.f32.mxu0 %v2502_v37 }
 0x342   : > { %4583 = vmatmul.mubr.f32.gmra.mrb[88].mxu1 %v4134_v23 }
 0x343   : > { %4759 = vmatmul.mubr.f32.gmra.mrb[88].mxu0 %v2503_v55  ;;  %4585 = vmatprep.mubr.f32.mxu1 %v4137_v39 }
 0x344   : > { %4761 = vmatprep.mubr.f32.mxu0 %v2504_v38 }
 0x346   : > { %4586 = vmatmul.mubr.f32.gmra.mrb[90].mxu1 %v4138_v42 }
 0x347   : > { %4762 = vmatmul.mubr.f32.gmra.mrb[90].mxu0 %v2505_v31  ;;  %4588 = vmatprep.mubr.f32.mxu1 %v4141_v7 }
 0x348   : > { %4764 = vmatprep.mubr.f32.mxu0 %v2506_v22 }
 0x34a   : > { %4589 = vmatmul.mubr.f32.gmra.mrb[92].mxu1 %v4142_v41 }
 0x34b   : > { %4765 = vmatmul.mubr.f32.gmra.mrb[92].mxu0 %v2507_v63  ;;  %4591 = vmatprep.mubr.f32.mxu1 %v4145_v45 }
 0x34c   : > { %4767 = vmatprep.mubr.f32.mxu0 %v2508_v15 }
 0x34e   : > { %4592 = vmatmul.mubr.f32.gmra.mrb[94].mxu1 %v4146_v24 }
 0x34f   : > { %4768 = vmatmul.mubr.f32.gmra.mrb[94].mxu0 %v2509_v49 }
 0x365   : > { %v4452_v16 = vpop.f32.mrb[0].mxu1 }
 0x366   : > { %v4628_v40 = vpop.f32.mrb[0].mxu0  ;;  %v2608_v12 = vpop.f32.mrb[1].mxu1 }
 0x367   : > { %v3159_v4 = vadd.f32 %v4628_v40, %v4452_v16  ;;  %v3153_v60 = vpop.f32.mrb[1].mxu0 }
 0x368   : > { %v3154_v53 = vadd.f32 %v3153_v60, %v2608_v12 }
 0x369   : > { %3633 = vst [vmem:[%s6565_s5 + $0x8] sm:$0xff] %v3159_v4  ;;  %v4455_v57 = vpop.f32.mrb[2].mxu1 }
 0x36a   : > { %3632 = vst [vmem:[%s6565_s5] sm:$0xff] %v3154_v53  ;;  %v4631_v61 = vpop.f32.mrb[2].mxu0  ;;  %v2618_v52 = vpop.f32.mrb[3].mxu1 }
 0x36b   : > { %v3169_v44 = vadd.f32 %v4631_v61, %v4455_v57  ;;  %v3163_v36 = vpop.f32.mrb[3].mxu0 }
 0x36c   : > { %v3164_v56 = vadd.f32 %v3163_v36, %v2618_v52 }
 0x36d   : > { %3635 = vst [vmem:[%s6565_s5 + $0x18] sm:$0xff] %v3169_v44  ;;  %v4458_v46 = vpop.f32.mrb[4].mxu1 }
 0x36e   : > { %3634 = vst [vmem:[%s6565_s5 + $0x10] sm:$0xff] %v3164_v56  ;;  %v4634_v50 = vpop.f32.mrb[4].mxu0  ;;  %v2628_v28 = vpop.f32.mrb[5].mxu1 }
 0x36f   : > { %v3179_v20 = vadd.f32 %v4634_v50, %v4458_v46  ;;  %v3173_v14 = vpop.f32.mrb[5].mxu0 }
 0x370   : > { %v3174_v1 = vadd.f32 %v3173_v14, %v2628_v28 }
 0x371   : > { %3637 = vst [vmem:[%s6565_s5 + $0x28] sm:$0xff] %v3179_v20  ;;  %v4461_v5 = vpop.f32.mrb[6].mxu1 }
 0x372   : > { %3636 = vst [vmem:[%s6565_s5 + $0x20] sm:$0xff] %v3174_v1  ;;  %v4637_v9 = vpop.f32.mrb[6].mxu0  ;;  %v2638_v10 = vpop.f32.mrb[7].mxu1 }
 0x373   : > { %v3189_v6 = vadd.f32 %v4637_v9, %v4461_v5  ;;  %v3183_v2 = vpop.f32.mrb[7].mxu0 }
 0x374   : > { %v3184_v8 = vadd.f32 %v3183_v2, %v2638_v10 }
 0x375   : > { %3639 = vst [vmem:[%s6565_s5 + $0x38] sm:$0xff] %v3189_v6  ;;  %v4464_v32 = vpop.f32.mrb[8].mxu1 }
 0x376   : > { %3638 = vst [vmem:[%s6565_s5 + $0x30] sm:$0xff] %v3184_v8  ;;  %v4640_v48 = vpop.f32.mrb[8].mxu0  ;;  %v2648_v13 = vpop.f32.mrb[9].mxu1 }
 0x377   : > { %v3199_v19 = vadd.f32 %v4640_v48, %v4464_v32  ;;  %v3193_v62 = vpop.f32.mrb[9].mxu0 }
 0x378   : > { %v3194_v58 = vadd.f32 %v3193_v62, %v2648_v13 }
 0x379   : > { %3641 = vst [vmem:[%s6565_s5 + $0x48] sm:$0xff] %v3199_v19  ;;  %v4467_v54 = vpop.f32.mrb[10].mxu1 }
 0x37a   : > { %3640 = vst [vmem:[%s6565_s5 + $0x40] sm:$0xff] %v3194_v58  ;;  %v4643_v27 = vpop.f32.mrb[10].mxu0  ;;  %v2658_v17 = vpop.f32.mrb[11].mxu1 }
 0x37b   : > { %v3209_v21 = vadd.f32 %v4643_v27, %v4467_v54  ;;  %v3203_v25 = vpop.f32.mrb[11].mxu0 }
 0x37c   : > { %v3204_v35 = vadd.f32 %v3203_v25, %v2658_v17 }
 0x37d   : > { %3643 = vst [vmem:[%s6565_s5 + $0x58] sm:$0xff] %v3209_v21  ;;  %v4470_v43 = vpop.f32.mrb[12].mxu1 }
 0x37e   : > { %3642 = vst [vmem:[%s6565_s5 + $0x50] sm:$0xff] %v3204_v35  ;;  %v4646_v18 = vpop.f32.mrb[12].mxu0  ;;  %v2668_v51 = vpop.f32.mrb[13].mxu1 }
 0x37f   : > { %v3219_v0 = vadd.f32 %v4646_v18, %v4470_v43  ;;  %v3213_v26 = vpop.f32.mrb[13].mxu0 }
 0x380   : > { %v3214_v30 = vadd.f32 %v3213_v26, %v2668_v51 }
 0x381   : > { %3645 = vst [vmem:[%s6565_s5 + $0x68] sm:$0xff] %v3219_v0  ;;  %v4473_v59 = vpop.f32.mrb[14].mxu1 }
 0x382   : > { %3644 = vst [vmem:[%s6565_s5 + $0x60] sm:$0xff] %v3214_v30  ;;  %v4649_v3 = vpop.f32.mrb[14].mxu0  ;;  %v2678_v11 = vpop.f32.mrb[15].mxu1 }
 0x383   : > { %v3229_v29 = vadd.f32 %v4649_v3, %v4473_v59  ;;  %v3223_v33 = vpop.f32.mrb[15].mxu0 }
 0x384   : > { %v3224_v37 = vadd.f32 %v3223_v33, %v2678_v11 }
 0x385   : > { %3647 = vst [vmem:[%s6565_s5 + $0x78] sm:$0xff] %v3229_v29  ;;  %v4476_v23 = vpop.f32.mrb[16].mxu1 }
 0x386   : > { %3646 = vst [vmem:[%s6565_s5 + $0x70] sm:$0xff] %v3224_v37  ;;  %v4652_v39 = vpop.f32.mrb[16].mxu0  ;;  %v2688_v55 = vpop.f32.mrb[17].mxu1 }
 0x387   : > { %v3239_v34 = vadd.f32 %v4652_v39, %v4476_v23  ;;  %v3233_v38 = vpop.f32.mrb[17].mxu0 }
 0x388   : > { %v3234_v42 = vadd.f32 %v3233_v38, %v2688_v55 }
 0x389   : > { %3649 = vst [vmem:[%s6565_s5 + $0x88] sm:$0xff] %v3239_v34  ;;  %v4479_v7 = vpop.f32.mrb[18].mxu1 }
 0x38a   : > { %3648 = vst [vmem:[%s6565_s5 + $0x80] sm:$0xff] %v3234_v42  ;;  %v4655_v31 = vpop.f32.mrb[18].mxu0  ;;  %v2698_v47 = vpop.f32.mrb[19].mxu1 }
 0x38b   : > { %v3249_v22 = vadd.f32 %v4655_v31, %v4479_v7  ;;  %v3243_v41 = vpop.f32.mrb[19].mxu0 }
 0x38c   : > { %v3244_v45 = vadd.f32 %v3243_v41, %v2698_v47 }
 0x38d   : > { %3651 = vst [vmem:[%s6565_s5 + $0x98] sm:$0xff] %v3249_v22  ;;  %v4482_v63 = vpop.f32.mrb[20].mxu1 }
 0x38e   : > { %3650 = vst [vmem:[%s6565_s5 + $0x90] sm:$0xff] %v3244_v45  ;;  %v4658_v15 = vpop.f32.mrb[20].mxu0  ;;  %v2708_v24 = vpop.f32.mrb[21].mxu1 }
 0x38f   : > { %v3259_v49 = vadd.f32 %v4658_v15, %v4482_v63  ;;  %v3253_v16 = vpop.f32.mrb[21].mxu0 }
 0x390   : > { %v3254_v40 = vadd.f32 %v3253_v16, %v2708_v24 }
 0x391   : > { %3653 = vst [vmem:[%s6565_s5 + $0xa8] sm:$0xff] %v3259_v49  ;;  %v4485_v12 = vpop.f32.mrb[22].mxu1 }
 0x392   : > { %3652 = vst [vmem:[%s6565_s5 + $0xa0] sm:$0xff] %v3254_v40  ;;  %v4661_v4 = vpop.f32.mrb[22].mxu0  ;;  %v2718_v60 = vpop.f32.mrb[23].mxu1 }
 0x393   : > { %v3269_v53 = vadd.f32 %v4661_v4, %v4485_v12  ;;  %v3263_v57 = vpop.f32.mrb[23].mxu0 }
 0x394   : > { %v3264_v61 = vadd.f32 %v3263_v57, %v2718_v60 }
 0x395   : > { %3655 = vst [vmem:[%s6565_s5 + $0xb8] sm:$0xff] %v3269_v53  ;;  %v4488_v52 = vpop.f32.mrb[24].mxu1 }
 0x396   : > { %3654 = vst [vmem:[%s6565_s5 + $0xb0] sm:$0xff] %v3264_v61  ;;  %v4664_v44 = vpop.f32.mrb[24].mxu0  ;;  %v2728_v36 = vpop.f32.mrb[25].mxu1 }
 0x397   : > { %v3279_v56 = vadd.f32 %v4664_v44, %v4488_v52  ;;  %v3273_v46 = vpop.f32.mrb[25].mxu0 }
 0x398   : > { %v3274_v50 = vadd.f32 %v3273_v46, %v2728_v36 }
 0x399   : > { %3657 = vst [vmem:[%s6565_s5 + $0xc8] sm:$0xff] %v3279_v56  ;;  %v4491_v28 = vpop.f32.mrb[26].mxu1 }
 0x39a   : > { %3656 = vst [vmem:[%s6565_s5 + $0xc0] sm:$0xff] %v3274_v50  ;;  %v4667_v20 = vpop.f32.mrb[26].mxu0  ;;  %v2738_v14 = vpop.f32.mrb[27].mxu1 }
 0x39b   : > { %v3289_v1 = vadd.f32 %v4667_v20, %v4491_v28  ;;  %v3283_v5 = vpop.f32.mrb[27].mxu0 }
 0x39c   : > { %v3284_v9 = vadd.f32 %v3283_v5, %v2738_v14 }
 0x39d   : > { %3659 = vst [vmem:[%s6565_s5 + $0xd8] sm:$0xff] %v3289_v1  ;;  %v4494_v10 = vpop.f32.mrb[28].mxu1 }
 0x39e   : > { %3658 = vst [vmem:[%s6565_s5 + $0xd0] sm:$0xff] %v3284_v9  ;;  %v4670_v6 = vpop.f32.mrb[28].mxu0  ;;  %v2748_v2 = vpop.f32.mrb[29].mxu1 }
 0x39f   : > { %v3299_v8 = vadd.f32 %v4670_v6, %v4494_v10  ;;  %v3293_v32 = vpop.f32.mrb[29].mxu0 }
 0x3a0   : > { %v3294_v48 = vadd.f32 %v3293_v32, %v2748_v2 }
 0x3a1   : > { %3661 = vst [vmem:[%s6565_s5 + $0xe8] sm:$0xff] %v3299_v8  ;;  %v4497_v13 = vpop.f32.mrb[30].mxu1 }
 0x3a2   : > { %3660 = vst [vmem:[%s6565_s5 + $0xe0] sm:$0xff] %v3294_v48  ;;  %v4673_v19 = vpop.f32.mrb[30].mxu0  ;;  %v2758_v62 = vpop.f32.mrb[31].mxu1 }
 0x3a3   : > { %v3309_v58 = vadd.f32 %v4673_v19, %v4497_v13  ;;  %v3303_v54 = vpop.f32.mrb[31].mxu0 }
 0x3a4   : > { %v3304_v27 = vadd.f32 %v3303_v54, %v2758_v62 }
 0x3a5   : > { %3663 = vst [vmem:[%s6565_s5 + $0xf8] sm:$0xff] %v3309_v58  ;;  %v4500_v17 = vpop.f32.mrb[32].mxu1 }
 0x3a6   : > { %3662 = vst [vmem:[%s6565_s5 + $0xf0] sm:$0xff] %v3304_v27  ;;  %v4676_v21 = vpop.f32.mrb[32].mxu0  ;;  %v2768_v25 = vpop.f32.mrb[33].mxu1 }
 0x3a7   : > { %v3319_v35 = vadd.f32 %v4676_v21, %v4500_v17  ;;  %v3313_v43 = vpop.f32.mrb[33].mxu0 }
 0x3a8   : > { %v3314_v18 = vadd.f32 %v3313_v43, %v2768_v25 }
 0x3a9   : > { %3665 = vst [vmem:[%s6565_s5 + $0x108] sm:$0xff] %v3319_v35  ;;  %v4503_v51 = vpop.f32.mrb[34].mxu1 }
 0x3aa   : > { %3664 = vst [vmem:[%s6565_s5 + $0x100] sm:$0xff] %v3314_v18  ;;  %v4679_v0 = vpop.f32.mrb[34].mxu0  ;;  %v2778_v26 = vpop.f32.mrb[35].mxu1 }
 0x3ab   : > { %v3329_v30 = vadd.f32 %v4679_v0, %v4503_v51  ;;  %v3323_v59 = vpop.f32.mrb[35].mxu0 }
 0x3ac   : > { %v3324_v3 = vadd.f32 %v3323_v59, %v2778_v26 }
 0x3ad   : > { %3667 = vst [vmem:[%s6565_s5 + $0x118] sm:$0xff] %v3329_v30  ;;  %v4506_v11 = vpop.f32.mrb[36].mxu1 }
 0x3ae   : > { %3666 = vst [vmem:[%s6565_s5 + $0x110] sm:$0xff] %v3324_v3  ;;  %v4682_v29 = vpop.f32.mrb[36].mxu0  ;;  %v2788_v33 = vpop.f32.mrb[37].mxu1 }
 0x3af   : > { %v3339_v37 = vadd.f32 %v4682_v29, %v4506_v11  ;;  %v3333_v23 = vpop.f32.mrb[37].mxu0 }
 0x3b0   : > { %v3334_v39 = vadd.f32 %v3333_v23, %v2788_v33 }
 0x3b1   : > { %3669 = vst [vmem:[%s6565_s5 + $0x128] sm:$0xff] %v3339_v37  ;;  %v4509_v55 = vpop.f32.mrb[38].mxu1 }
 0x3b2   : > { %3668 = vst [vmem:[%s6565_s5 + $0x120] sm:$0xff] %v3334_v39  ;;  %v4685_v34 = vpop.f32.mrb[38].mxu0  ;;  %v2798_v38 = vpop.f32.mrb[39].mxu1 }
 0x3b3   : > { %v3349_v42 = vadd.f32 %v4685_v34, %v4509_v55  ;;  %v3343_v7 = vpop.f32.mrb[39].mxu0 }
 0x3b4   : > { %v3344_v31 = vadd.f32 %v3343_v7, %v2798_v38 }
 0x3b5   : > { %3671 = vst [vmem:[%s6565_s5 + $0x138] sm:$0xff] %v3349_v42  ;;  %v4512_v47 = vpop.f32.mrb[40].mxu1 }
 0x3b6   : > { %3670 = vst [vmem:[%s6565_s5 + $0x130] sm:$0xff] %v3344_v31  ;;  %v4688_v22 = vpop.f32.mrb[40].mxu0  ;;  %v2808_v41 = vpop.f32.mrb[41].mxu1 }
 0x3b7   : > { %v3359_v45 = vadd.f32 %v4688_v22, %v4512_v47  ;;  %v3353_v63 = vpop.f32.mrb[41].mxu0 }
 0x3b8   : > { %v3354_v15 = vadd.f32 %v3353_v63, %v2808_v41 }
 0x3b9   : > { %3673 = vst [vmem:[%s6565_s5 + $0x148] sm:$0xff] %v3359_v45  ;;  %v4515_v24 = vpop.f32.mrb[42].mxu1 }
 0x3ba   : > { %3672 = vst [vmem:[%s6565_s5 + $0x140] sm:$0xff] %v3354_v15  ;;  %v4691_v49 = vpop.f32.mrb[42].mxu0  ;;  %v2818_v16 = vpop.f32.mrb[43].mxu1 }
 0x3bb   : > { %v3369_v40 = vadd.f32 %v4691_v49, %v4515_v24  ;;  %v3363_v12 = vpop.f32.mrb[43].mxu0 }
 0x3bc   : > { %v3364_v4 = vadd.f32 %v3363_v12, %v2818_v16 }
 0x3bd   : > { %3675 = vst [vmem:[%s6565_s5 + $0x158] sm:$0xff] %v3369_v40  ;;  %v4518_v60 = vpop.f32.mrb[44].mxu1 }
 0x3be   : > { %3674 = vst [vmem:[%s6565_s5 + $0x150] sm:$0xff] %v3364_v4  ;;  %v4694_v53 = vpop.f32.mrb[44].mxu0  ;;  %v2828_v57 = vpop.f32.mrb[45].mxu1 }
 0x3bf   : > { %v3379_v61 = vadd.f32 %v4694_v53, %v4518_v60  ;;  %v3373_v52 = vpop.f32.mrb[45].mxu0 }
 0x3c0   : > { %v3374_v44 = vadd.f32 %v3373_v52, %v2828_v57 }
 0x3c1   : > { %3677 = vst [vmem:[%s6565_s5 + $0x168] sm:$0xff] %v3379_v61  ;;  %v4521_v36 = vpop.f32.mrb[46].mxu1 }
 0x3c2   : > { %3676 = vst [vmem:[%s6565_s5 + $0x160] sm:$0xff] %v3374_v44  ;;  %v4697_v56 = vpop.f32.mrb[46].mxu0  ;;  %v2838_v46 = vpop.f32.mrb[47].mxu1 }
 0x3c3   : > { %v3389_v50 = vadd.f32 %v4697_v56, %v4521_v36  ;;  %v3383_v28 = vpop.f32.mrb[47].mxu0 }
 0x3c4   : > { %v3384_v20 = vadd.f32 %v3383_v28, %v2838_v46 }
 0x3c5   : > { %3679 = vst [vmem:[%s6565_s5 + $0x178] sm:$0xff] %v3389_v50  ;;  %v4524_v14 = vpop.f32.mrb[48].mxu1 }
 0x3c6   : > { %3678 = vst [vmem:[%s6565_s5 + $0x170] sm:$0xff] %v3384_v20  ;;  %v4700_v1 = vpop.f32.mrb[48].mxu0  ;;  %v2848_v5 = vpop.f32.mrb[49].mxu1 }
 0x3c7   : > { %v3399_v9 = vadd.f32 %v4700_v1, %v4524_v14  ;;  %v3393_v10 = vpop.f32.mrb[49].mxu0 }
 0x3c8   : > { %v3394_v6 = vadd.f32 %v3393_v10, %v2848_v5 }
 0x3c9   : > { %3681 = vst [vmem:[%s6565_s5 + $0x188] sm:$0xff] %v3399_v9  ;;  %v4527_v2 = vpop.f32.mrb[50].mxu1 }
 0x3ca   : > { %3680 = vst [vmem:[%s6565_s5 + $0x180] sm:$0xff] %v3394_v6  ;;  %v4703_v8 = vpop.f32.mrb[50].mxu0  ;;  %v2858_v32 = vpop.f32.mrb[51].mxu1 }
 0x3cb   : > { %v3409_v48 = vadd.f32 %v4703_v8, %v4527_v2  ;;  %v3403_v13 = vpop.f32.mrb[51].mxu0 }
 0x3cc   : > { %v3404_v19 = vadd.f32 %v3403_v13, %v2858_v32 }
 0x3cd   : > { %3683 = vst [vmem:[%s6565_s5 + $0x198] sm:$0xff] %v3409_v48  ;;  %v4530_v62 = vpop.f32.mrb[52].mxu1 }
 0x3ce   : > { %3682 = vst [vmem:[%s6565_s5 + $0x190] sm:$0xff] %v3404_v19  ;;  %v4706_v58 = vpop.f32.mrb[52].mxu0  ;;  %v2868_v54 = vpop.f32.mrb[53].mxu1 }
 0x3cf   : > { %v3419_v27 = vadd.f32 %v4706_v58, %v4530_v62  ;;  %v3413_v17 = vpop.f32.mrb[53].mxu0 }
 0x3d0   : > { %v3414_v21 = vadd.f32 %v3413_v17, %v2868_v54 }
 0x3d1   : > { %3685 = vst [vmem:[%s6565_s5 + $0x1a8] sm:$0xff] %v3419_v27  ;;  %v4533_v25 = vpop.f32.mrb[54].mxu1 }
 0x3d2   : > { %3684 = vst [vmem:[%s6565_s5 + $0x1a0] sm:$0xff] %v3414_v21  ;;  %v4709_v35 = vpop.f32.mrb[54].mxu0  ;;  %v2878_v43 = vpop.f32.mrb[55].mxu1 }
 0x3d3   : > { %v3429_v18 = vadd.f32 %v4709_v35, %v4533_v25  ;;  %v3423_v51 = vpop.f32.mrb[55].mxu0 }
 0x3d4   : > { %v3424_v0 = vadd.f32 %v3423_v51, %v2878_v43 }
 0x3d5   : > { %3687 = vst [vmem:[%s6565_s5 + $0x1b8] sm:$0xff] %v3429_v18  ;;  %v4536_v26 = vpop.f32.mrb[56].mxu1 }
 0x3d6   : > { %3686 = vst [vmem:[%s6565_s5 + $0x1b0] sm:$0xff] %v3424_v0  ;;  %v4712_v30 = vpop.f32.mrb[56].mxu0  ;;  %v2888_v59 = vpop.f32.mrb[57].mxu1 }
 0x3d7   : > { %v3439_v3 = vadd.f32 %v4712_v30, %v4536_v26  ;;  %v3433_v11 = vpop.f32.mrb[57].mxu0 }
 0x3d8   : > { %v3434_v29 = vadd.f32 %v3433_v11, %v2888_v59 }
 0x3d9   : > { %3689 = vst [vmem:[%s6565_s5 + $0x1c8] sm:$0xff] %v3439_v3  ;;  %v4539_v33 = vpop.f32.mrb[58].mxu1 }
 0x3da   : > { %3688 = vst [vmem:[%s6565_s5 + $0x1c0] sm:$0xff] %v3434_v29  ;;  %v4715_v37 = vpop.f32.mrb[58].mxu0  ;;  %v2898_v23 = vpop.f32.mrb[59].mxu1 }
 0x3db   : > { %v3449_v39 = vadd.f32 %v4715_v37, %v4539_v33  ;;  %v3443_v55 = vpop.f32.mrb[59].mxu0 }
 0x3dc   : > { %v3444_v34 = vadd.f32 %v3443_v55, %v2898_v23 }
 0x3dd   : > { %3691 = vst [vmem:[%s6565_s5 + $0x1d8] sm:$0xff] %v3449_v39  ;;  %v4542_v38 = vpop.f32.mrb[60].mxu1 }
 0x3de   : > { %3690 = vst [vmem:[%s6565_s5 + $0x1d0] sm:$0xff] %v3444_v34  ;;  %v4718_v42 = vpop.f32.mrb[60].mxu0  ;;  %v2908_v7 = vpop.f32.mrb[61].mxu1 }
 0x3df   : > { %v3459_v31 = vadd.f32 %v4718_v42, %v4542_v38  ;;  %v3453_v47 = vpop.f32.mrb[61].mxu0 }
 0x3e0   : > { %v3454_v22 = vadd.f32 %v3453_v47, %v2908_v7 }
 0x3e1   : > { %3693 = vst [vmem:[%s6565_s5 + $0x1e8] sm:$0xff] %v3459_v31  ;;  %v4545_v41 = vpop.f32.mrb[62].mxu1 }
 0x3e2   : > { %3692 = vst [vmem:[%s6565_s5 + $0x1e0] sm:$0xff] %v3454_v22  ;;  %v4721_v45 = vpop.f32.mrb[62].mxu0  ;;  %v2918_v63 = vpop.f32.mrb[63].mxu1 }
 0x3e3   : > { %v3469_v15 = vadd.f32 %v4721_v45, %v4545_v41  ;;  %v3463_v24 = vpop.f32.mrb[63].mxu0 }
 0x3e4   : > { %v3464_v49 = vadd.f32 %v3463_v24, %v2918_v63 }
 0x3e5   : > { %3695 = vst [vmem:[%s6565_s5 + $0x1f8] sm:$0xff] %v3469_v15  ;;  %v4548_v16 = vpop.f32.mrb[64].mxu1 }
 0x3e6   : > { %3694 = vst [vmem:[%s6565_s5 + $0x1f0] sm:$0xff] %v3464_v49  ;;  %v4724_v40 = vpop.f32.mrb[64].mxu0  ;;  %v2928_v12 = vpop.f32.mrb[65].mxu1 }
 0x3e7   : > { %v3479_v4 = vadd.f32 %v4724_v40, %v4548_v16  ;;  %v3473_v60 = vpop.f32.mrb[65].mxu0 }
 0x3e8   : > { %v3474_v53 = vadd.f32 %v3473_v60, %v2928_v12 }
 0x3e9   : > { %3697 = vst [vmem:[%s6565_s5 + $0x208] sm:$0xff] %v3479_v4  ;;  %v4551_v57 = vpop.f32.mrb[66].mxu1 }
 0x3ea   : > { %3696 = vst [vmem:[%s6565_s5 + $0x200] sm:$0xff] %v3474_v53  ;;  %v4727_v61 = vpop.f32.mrb[66].mxu0  ;;  %v2938_v52 = vpop.f32.mrb[67].mxu1 }
 0x3eb   : > { %v3489_v44 = vadd.f32 %v4727_v61, %v4551_v57  ;;  %v3483_v36 = vpop.f32.mrb[67].mxu0 }
 0x3ec   : > { %v3484_v56 = vadd.f32 %v3483_v36, %v2938_v52 }
 0x3ed   : > { %3699 = vst [vmem:[%s6565_s5 + $0x218] sm:$0xff] %v3489_v44  ;;  %v4554_v46 = vpop.f32.mrb[68].mxu1 }
 0x3ee   : > { %3698 = vst [vmem:[%s6565_s5 + $0x210] sm:$0xff] %v3484_v56  ;;  %v4730_v50 = vpop.f32.mrb[68].mxu0  ;;  %v2948_v28 = vpop.f32.mrb[69].mxu1 }
 0x3ef   : > { %v3499_v20 = vadd.f32 %v4730_v50, %v4554_v46  ;;  %v3493_v14 = vpop.f32.mrb[69].mxu0 }
 0x3f0   : > { %v3494_v1 = vadd.f32 %v3493_v14, %v2948_v28 }
 0x3f1   : > { %3701 = vst [vmem:[%s6565_s5 + $0x228] sm:$0xff] %v3499_v20  ;;  %v4557_v5 = vpop.f32.mrb[70].mxu1 }
 0x3f2   : > { %3700 = vst [vmem:[%s6565_s5 + $0x220] sm:$0xff] %v3494_v1  ;;  %v4733_v9 = vpop.f32.mrb[70].mxu0  ;;  %v2958_v10 = vpop.f32.mrb[71].mxu1 }
 0x3f3   : > { %v3509_v6 = vadd.f32 %v4733_v9, %v4557_v5  ;;  %v3503_v2 = vpop.f32.mrb[71].mxu0 }
 0x3f4   : > { %v3504_v8 = vadd.f32 %v3503_v2, %v2958_v10 }
 0x3f5   : > { %3703 = vst [vmem:[%s6565_s5 + $0x238] sm:$0xff] %v3509_v6  ;;  %v4560_v32 = vpop.f32.mrb[72].mxu1 }
 0x3f6   : > { %3702 = vst [vmem:[%s6565_s5 + $0x230] sm:$0xff] %v3504_v8  ;;  %v4736_v48 = vpop.f32.mrb[72].mxu0  ;;  %v2968_v13 = vpop.f32.mrb[73].mxu1 }
 0x3f7   : > { %v3519_v19 = vadd.f32 %v4736_v48, %v4560_v32  ;;  %v3513_v62 = vpop.f32.mrb[73].mxu0 }
 0x3f8   : > { %v3514_v58 = vadd.f32 %v3513_v62, %v2968_v13 }
 0x3f9   : > { %3705 = vst [vmem:[%s6565_s5 + $0x248] sm:$0xff] %v3519_v19  ;;  %v4563_v54 = vpop.f32.mrb[74].mxu1 }
 0x3fa   : > { %3704 = vst [vmem:[%s6565_s5 + $0x240] sm:$0xff] %v3514_v58  ;;  %v4739_v27 = vpop.f32.mrb[74].mxu0  ;;  %v2978_v17 = vpop.f32.mrb[75].mxu1 }
 0x3fb   : > { %v3529_v21 = vadd.f32 %v4739_v27, %v4563_v54  ;;  %v3523_v25 = vpop.f32.mrb[75].mxu0 }
 0x3fc   : > { %v3524_v35 = vadd.f32 %v3523_v25, %v2978_v17 }
 0x3fd   : > { %3707 = vst [vmem:[%s6565_s5 + $0x258] sm:$0xff] %v3529_v21  ;;  %v4566_v43 = vpop.f32.mrb[76].mxu1 }
 0x3fe   : > { %3706 = vst [vmem:[%s6565_s5 + $0x250] sm:$0xff] %v3524_v35  ;;  %v4742_v18 = vpop.f32.mrb[76].mxu0  ;;  %v2988_v51 = vpop.f32.mrb[77].mxu1 }
 0x3ff   : > { %v3539_v0 = vadd.f32 %v4742_v18, %v4566_v43  ;;  %v3533_v26 = vpop.f32.mrb[77].mxu0 }
 0x400   : > { %v3534_v30 = vadd.f32 %v3533_v26, %v2988_v51 }
 0x401   : > { %3709 = vst [vmem:[%s6565_s5 + $0x268] sm:$0xff] %v3539_v0  ;;  %v4569_v59 = vpop.f32.mrb[78].mxu1 }
 0x402   : > { %3708 = vst [vmem:[%s6565_s5 + $0x260] sm:$0xff] %v3534_v30  ;;  %v4745_v3 = vpop.f32.mrb[78].mxu0  ;;  %v2998_v11 = vpop.f32.mrb[79].mxu1 }
 0x403   : > { %v3549_v29 = vadd.f32 %v4745_v3, %v4569_v59  ;;  %v3543_v33 = vpop.f32.mrb[79].mxu0 }
 0x404   : > { %v3544_v37 = vadd.f32 %v3543_v33, %v2998_v11 }
 0x405   : > { %3711 = vst [vmem:[%s6565_s5 + $0x278] sm:$0xff] %v3549_v29  ;;  %v4572_v23 = vpop.f32.mrb[80].mxu1 }
 0x406   : > { %3710 = vst [vmem:[%s6565_s5 + $0x270] sm:$0xff] %v3544_v37  ;;  %v4748_v39 = vpop.f32.mrb[80].mxu0  ;;  %v3008_v55 = vpop.f32.mrb[81].mxu1 }
 0x407   : > { %v3559_v34 = vadd.f32 %v4748_v39, %v4572_v23  ;;  %v3553_v38 = vpop.f32.mrb[81].mxu0 }
 0x408   : > { %v3554_v42 = vadd.f32 %v3553_v38, %v3008_v55 }
 0x409   : > { %3713 = vst [vmem:[%s6565_s5 + $0x288] sm:$0xff] %v3559_v34  ;;  %v4575_v7 = vpop.f32.mrb[82].mxu1 }
 0x40a   : > { %3712 = vst [vmem:[%s6565_s5 + $0x280] sm:$0xff] %v3554_v42  ;;  %v4751_v31 = vpop.f32.mrb[82].mxu0  ;;  %v3018_v47 = vpop.f32.mrb[83].mxu1 }
 0x40b   : > { %v3569_v22 = vadd.f32 %v4751_v31, %v4575_v7  ;;  %v3563_v41 = vpop.f32.mrb[83].mxu0 }
 0x40c   : > { %v3564_v45 = vadd.f32 %v3563_v41, %v3018_v47 }
 0x40d   : > { %3715 = vst [vmem:[%s6565_s5 + $0x298] sm:$0xff] %v3569_v22  ;;  %v4578_v63 = vpop.f32.mrb[84].mxu1 }
 0x40e   : > { %3714 = vst [vmem:[%s6565_s5 + $0x290] sm:$0xff] %v3564_v45  ;;  %v4754_v15 = vpop.f32.mrb[84].mxu0  ;;  %v3028_v24 = vpop.f32.mrb[85].mxu1 }
 0x40f   : > { %v3579_v49 = vadd.f32 %v4754_v15, %v4578_v63  ;;  %v3573_v16 = vpop.f32.mrb[85].mxu0 }
 0x410   : > { %v3574_v40 = vadd.f32 %v3573_v16, %v3028_v24 }
 0x411   : > { %3717 = vst [vmem:[%s6565_s5 + $0x2a8] sm:$0xff] %v3579_v49  ;;  %v4581_v12 = vpop.f32.mrb[86].mxu1 }
 0x412   : > { %3716 = vst [vmem:[%s6565_s5 + $0x2a0] sm:$0xff] %v3574_v40  ;;  %v4757_v4 = vpop.f32.mrb[86].mxu0  ;;  %v3038_v60 = vpop.f32.mrb[87].mxu1 }
 0x413   : > { %v3589_v53 = vadd.f32 %v4757_v4, %v4581_v12  ;;  %v3583_v57 = vpop.f32.mrb[87].mxu0 }
 0x414   : > { %v3584_v61 = vadd.f32 %v3583_v57, %v3038_v60 }
 0x415   : > { %3719 = vst [vmem:[%s6565_s5 + $0x2b8] sm:$0xff] %v3589_v53  ;;  %v4584_v52 = vpop.f32.mrb[88].mxu1 }
 0x416   : > { %3718 = vst [vmem:[%s6565_s5 + $0x2b0] sm:$0xff] %v3584_v61  ;;  %v4760_v44 = vpop.f32.mrb[88].mxu0  ;;  %v3048_v36 = vpop.f32.mrb[89].mxu1 }
 0x417   : > { %v3599_v56 = vadd.f32 %v4760_v44, %v4584_v52  ;;  %v3593_v46 = vpop.f32.mrb[89].mxu0 }
 0x418   : > { %v3594_v50 = vadd.f32 %v3593_v46, %v3048_v36 }
 0x419   : > { %3721 = vst [vmem:[%s6565_s5 + $0x2c8] sm:$0xff] %v3599_v56  ;;  %v4587_v28 = vpop.f32.mrb[90].mxu1 }
 0x41a   : > { %3720 = vst [vmem:[%s6565_s5 + $0x2c0] sm:$0xff] %v3594_v50  ;;  %v4763_v20 = vpop.f32.mrb[90].mxu0  ;;  %v3058_v14 = vpop.f32.mrb[91].mxu1 }
 0x41b   : > { %v3609_v1 = vadd.f32 %v4763_v20, %v4587_v28  ;;  %v3603_v5 = vpop.f32.mrb[91].mxu0 }
 0x41c   : > { %v3604_v9 = vadd.f32 %v3603_v5, %v3058_v14 }
 0x41d   : > { %3723 = vst [vmem:[%s6565_s5 + $0x2d8] sm:$0xff] %v3609_v1  ;;  %v4590_v10 = vpop.f32.mrb[92].mxu1 }
 0x41e   : > { %3722 = vst [vmem:[%s6565_s5 + $0x2d0] sm:$0xff] %v3604_v9  ;;  %v4766_v6 = vpop.f32.mrb[92].mxu0  ;;  %v3068_v2 = vpop.f32.mrb[93].mxu1 }
 0x41f   : > { %v3619_v8 = vadd.f32 %v4766_v6, %v4590_v10  ;;  %v3613_v32 = vpop.f32.mrb[93].mxu0 }
 0x420   : > { %v3614_v48 = vadd.f32 %v3613_v32, %v3068_v2 }
 0x421   : > { %3725 = vst [vmem:[%s6565_s5 + $0x2e8] sm:$0xff] %v3619_v8  ;;  %v4593_v13 = vpop.f32.mrb[94].mxu1 }
 0x422   : > { %3724 = vst [vmem:[%s6565_s5 + $0x2e0] sm:$0xff] %v3614_v48  ;;  %v4769_v19 = vpop.f32.mrb[94].mxu0  ;;  %v3078_v62 = vpop.f32.mrb[95].mxu1 }
 0x423   : > { %v3629_v58 = vadd.f32 %v4769_v19, %v4593_v13  ;;  %v3623_v54 = vpop.f32.mrb[95].mxu0 }
 0x424   : > { %v3624_v27 = vadd.f32 %v3623_v54, %v3078_v62 }
 0x425   : > { %3727 = vst [vmem:[%s6565_s5 + $0x2f8] sm:$0xff] %v3629_v58 }
 0x426   : > { %3726 = vst [vmem:[%s6565_s5 + $0x2f0] sm:$0xff] %v3624_v27 }
 0x427 PF: > { %s15_s22 = sadd.s32 1, %s5203_s22   ;;  %s6707_s18 = smov %s5191_s19 }
 0x428   : > { %p12_p13 = scmp.ge.s32.totalorder %s15_s22, 5   ;;  %s6708_s19 = smov %s5271_s26 }
 0x429   : > { %s6709_s20 = smov %s5199_s21  ;;  %s6710_s21 = smov %s6712_s23 }
 0x42a   :  { %14 = sbr.rel (!%p12_p13) target bundleno = 3 (0x3), region = 131 }

// kernel: _forward_padded.2
= control target key start
LH: loop header
LB: loop body
LE: loop exit
PB: predicated region body
PF: predicated region fallthrough
CT: control target
= control target key end

     0   :  { %s7818_s24 = smov 0   ;;  %s7820_s25 = smov 0   ;;  %s10504_s0 = inlined_call_operand.vmem [shape: bf16[768,768], index: 0, kind: input, shape index: {}]   ;;  %s10505_s1 = inlined_call_operand.vmem [shape: bf16[768,128], index: 1, kind: input, shape index: {}, may-alias: {1,2}]   ;;  %s10506_s2 = inlined_call_operand.vmem [shape: bf16[768,128], index: 2, kind: input, shape index: {}, may-alias: {1,2}]   ;;  %s10507_s3 = inlined_call_operand.vmem [shape: f32[128,128], index: 3, kind: input, shape index: {}]   ;;  %s10508_s4 = inlined_call_operand.vmem [shape: f32[128,128], index: 4, kind: input, shape index: {}]   ;;  %s10509_s5 = inlined_call_operand.vmem [shape: f32[1,128], index: 5, kind: input, shape index: {}]   ;;  %s10510_s6 = inlined_call_operand.vmem [shape: f32[1,128], index: 6, kind: input, shape index: {}]   ;;  %s10511_s7 = inlined_call_operand.vmem [shape: bf16[768,128], index: 7, kind: output, shape index: {}]  }
   0x1   :  { %s7822_s26 = smov 0   ;;  %s7824_s27 = smov 0  }
   0x2   :  { %s7826_s28 = smov 0  }
   0x3 LB: > { %s26_s29 = sadd.s32 1, %s7771_s27  ;;  %p45_p1 = scmp.ne.s32.totalorder %s7763_s25, %s7759_s24  ;;  %s7775_s28 = sphi %s7826_s28, %s17_s28   ;;  %s7771_s27 = sphi %s7824_s27, %s10974_s27   ;;  %s7767_s26 = sphi %s7822_s26, %s10973_s26   ;;  %s7763_s25 = sphi %s7820_s25, %s10972_s25   ;;  %s7759_s24 = sphi %s7818_s24, %s10971_s24  }
   0x4   : > { %p27_p0 = scmp.ge.s32.totalorder %s26_s29, 3  ;;  %p46_p2 = scmp.eq.s32.totalorder %s7775_s28, 0 }
   0x5   : > { %s38_s8 = sadd.s32 1, %s7763_s25  ;;  %p5724_p5 = scmp.ge.s32.totalorder %s7775_s28, 3 }
   0x6   : > { %s10976_s29 = smov (%p27_p0, %s26_s29), 0  ;;  %p47_p3 = por %p46_p2, %p45_p1 }
   0x7   : > { %s34_s30 = ssub.s32 %s7771_s27, %s10976_s29  ;;  %254 = sbr.rel (%p5724_p5) target bundleno = 67 (0x43), region = 36 }
   0x8   : > { %p36_p4 = scmp.eq.s32.totalorder %s34_s30, 0 }
   0xa   : > { %s7853_s9 = scalar_select %p36_p4, %s7763_s25, %s38_s8  }
   0xe   : > { %257 = sbr.rel (!%p47_p3) target bundleno = 67 (0x43), region = 40  ;;  %s259_s10 = sand.u32 (%p47_p3), 1, %s7763_s25  }
   0xf   : > { %s5947_s11 = sshll.u32 (%p47_p3), %s7771_s27, 3  ;;  %s7338_s12 = smul.u32 (%p47_p3), 768, %s259_s10 }
  0x10   : > { %s7861_s15 = scalar_lea.vmem (%p47_p3), %s10504_s0, %s5947_s11 }
  0x11   : > { %v485_v0 = vld [vmem:[%s7861_s15] sm:$0xff] (%p47_p3)  ;;  %v487_v1 = vld [vmem:[%s7861_s15 + $0x18] sm:$0xff] (%p47_p3)  ;;  %v489_v2 = vld [vmem:[%s7861_s15 + $0x30] sm:$0xff] (%p47_p3)  ;;  %s7869_s16 = scalar_lea.vmem (%p47_p3), [#allocation3], %s7338_s12 }
  0x12   : > { %v491_v3 = vld [vmem:[%s7861_s15 + $0x48] sm:$0xff] (%p47_p3)  ;;  %v493_v4 = vld [vmem:[%s7861_s15 + $0x60] sm:$0xff] (%p47_p3)  ;;  %v495_v5 = vld [vmem:[%s7861_s15 + $0x78] sm:$0xff] (%p47_p3)  ;;  %486 = vst [vmem:[%s7869_s16] sm:$0xff] (%p47_p3), %v485_v0 }
  0x13   : > { %488 = vst [vmem:[%s7869_s16 + $0x8] sm:$0xff] (%p47_p3), %v487_v1  ;;  %490 = vst [vmem:[%s7869_s16 + $0x10] sm:$0xff] (%p47_p3), %v489_v2  ;;  %v497_v6 = vld [vmem:[%s7861_s15 + $0x90] sm:$0xff] (%p47_p3)  ;;  %v499_v7 = vld [vmem:[%s7861_s15 + $0xa8] sm:$0xff] (%p47_p3) }
  0x14   : > { %492 = vst [vmem:[%s7869_s16 + $0x18] sm:$0xff] (%p47_p3), %v491_v3  ;;  %494 = vst [vmem:[%s7869_s16 + $0x20] sm:$0xff] (%p47_p3), %v493_v4  ;;  %v501_v8 = vld [vmem:[%s7861_s15 + $0xc0] sm:$0xff] (%p47_p3)  ;;  %v503_v9 = vld [vmem:[%s7861_s15 + $0xd8] sm:$0xff] (%p47_p3) }
  0x15   : > { %496 = vst [vmem:[%s7869_s16 + $0x28] sm:$0xff] %v495_v5  ;;  %498 = vst [vmem:[%s7869_s16 + $0x30] sm:$0xff] %v497_v6  ;;  %v505_v10 = vld [vmem:[%s7861_s15 + $0xf0] sm:$0xff]  ;;  %v507_v11 = vld [vmem:[%s7861_s15 + $0x108] sm:$0xff] }
  0x16   : > { %500 = vst [vmem:[%s7869_s16 + $0x38] sm:$0xff] %v499_v7  ;;  %502 = vst [vmem:[%s7869_s16 + $0x40] sm:$0xff] %v501_v8  ;;  %v509_v12 = vld [vmem:[%s7861_s15 + $0x120] sm:$0xff]  ;;  %v511_v13 = vld [vmem:[%s7861_s15 + $0x138] sm:$0xff] }
  0x17   : > { %504 = vst [vmem:[%s7869_s16 + $0x48] sm:$0xff] %v503_v9  ;;  %506 = vst [vmem:[%s7869_s16 + $0x50] sm:$0xff] %v505_v10  ;;  %v513_v14 = vld [vmem:[%s7861_s15 + $0x150] sm:$0xff]  ;;  %v515_v15 = vld [vmem:[%s7861_s15 + $0x168] sm:$0xff] }
  0x18   : > { %508 = vst [vmem:[%s7869_s16 + $0x58] sm:$0xff] %v507_v11  ;;  %510 = vst [vmem:[%s7869_s16 + $0x60] sm:$0xff] %v509_v12  ;;  %v517_v16 = vld [vmem:[%s7861_s15 + $0x180] sm:$0xff]  ;;  %v519_v17 = vld [vmem:[%s7861_s15 + $0x198] sm:$0xff] }
  0x19   : > { %512 = vst [vmem:[%s7869_s16 + $0x68] sm:$0xff] %v511_v13  ;;  %514 = vst [vmem:[%s7869_s16 + $0x70] sm:$0xff] %v513_v14  ;;  %v521_v18 = vld [vmem:[%s7861_s15 + $0x1b0] sm:$0xff]  ;;  %v523_v19 = vld [vmem:[%s7861_s15 + $0x1c8] sm:$0xff] }
  0x1a   : > { %516 = vst [vmem:[%s7869_s16 + $0x78] sm:$0xff] %v515_v15  ;;  %518 = vst [vmem:[%s7869_s16 + $0x80] sm:$0xff] %v517_v16  ;;  %v525_v20 = vld [vmem:[%s7861_s15 + $0x1e0] sm:$0xff]  ;;  %v527_v21 = vld [vmem:[%s7861_s15 + $0x1f8] sm:$0xff] }
  0x1b   : > { %520 = vst [vmem:[%s7869_s16 + $0x88] sm:$0xff] %v519_v17  ;;  %522 = vst [vmem:[%s7869_s16 + $0x90] sm:$0xff] %v521_v18  ;;  %v529_v22 = vld [vmem:[%s7861_s15 + $0x210] sm:$0xff]  ;;  %v531_v23 = vld [vmem:[%s7861_s15 + $0x228] sm:$0xff] }
  0x1c   : > { %524 = vst [vmem:[%s7869_s16 + $0x98] sm:$0xff] %v523_v19  ;;  %526 = vst [vmem:[%s7869_s16 + $0xa0] sm:$0xff] %v525_v20  ;;  %v533_v24 = vld [vmem:[%s7861_s15 + $0x240] sm:$0xff]  ;;  %v535_v25 = vld [vmem:[%s7861_s15 + $0x258] sm:$0xff] }
  0x1d   : > { %528 = vst [vmem:[%s7869_s16 + $0xa8] sm:$0xff] %v527_v21  ;;  %530 = vst [vmem:[%s7869_s16 + $0xb0] sm:$0xff] %v529_v22  ;;  %v537_v26 = vld [vmem:[%s7861_s15 + $0x270] sm:$0xff]  ;;  %v539_v27 = vld [vmem:[%s7861_s15 + $0x288] sm:$0xff] }
  0x1e   : > { %532 = vst [vmem:[%s7869_s16 + $0xb8] sm:$0xff] %v531_v23  ;;  %534 = vst [vmem:[%s7869_s16 + $0xc0] sm:$0xff] %v533_v24  ;;  %v541_v28 = vld [vmem:[%s7861_s15 + $0x2a0] sm:$0xff]  ;;  %v543_v29 = vld [vmem:[%s7861_s15 + $0x2b8] sm:$0xff] }
  0x1f   : > { %536 = vst [vmem:[%s7869_s16 + $0xc8] sm:$0xff] %v535_v25  ;;  %538 = vst [vmem:[%s7869_s16 + $0xd0] sm:$0xff] %v537_v26  ;;  %v545_v30 = vld [vmem:[%s7861_s15 + $0x2d0] sm:$0xff]  ;;  %v547_v31 = vld [vmem:[%s7861_s15 + $0x2e8] sm:$0xff] }
  0x20   : > { %540 = vst [vmem:[%s7869_s16 + $0xd8] sm:$0xff] %v539_v27  ;;  %542 = vst [vmem:[%s7869_s16 + $0xe0] sm:$0xff] %v541_v28  ;;  %v549_v32 = vld [vmem:[%s7861_s15 + $0x300] sm:$0xff]  ;;  %v551_v33 = vld [vmem:[%s7861_s15 + $0x318] sm:$0xff] }
  0x21   : > { %544 = vst [vmem:[%s7869_s16 + $0xe8] sm:$0xff] %v543_v29  ;;  %546 = vst [vmem:[%s7869_s16 + $0xf0] sm:$0xff] %v545_v30  ;;  %v553_v34 = vld [vmem:[%s7861_s15 + $0x330] sm:$0xff]  ;;  %v555_v35 = vld [vmem:[%s7861_s15 + $0x348] sm:$0xff] }
  0x22   : > { %548 = vst [vmem:[%s7869_s16 + $0xf8] sm:$0xff] %v547_v31  ;;  %550 = vst [vmem:[%s7869_s16 + $0x100] sm:$0xff] %v549_v32  ;;  %v557_v36 = vld [vmem:[%s7861_s15 + $0x360] sm:$0xff]  ;;  %v559_v37 = vld [vmem:[%s7861_s15 + $0x378] sm:$0xff] }
  0x23   : > { %552 = vst [vmem:[%s7869_s16 + $0x108] sm:$0xff] %v551_v33  ;;  %554 = vst [vmem:[%s7869_s16 + $0x110] sm:$0xff] %v553_v34  ;;  %v561_v38 = vld [vmem:[%s7861_s15 + $0x390] sm:$0xff]  ;;  %v563_v39 = vld [vmem:[%s7861_s15 + $0x3a8] sm:$0xff] }
  0x24   : > { %556 = vst [vmem:[%s7869_s16 + $0x118] sm:$0xff] %v555_v35  ;;  %558 = vst [vmem:[%s7869_s16 + $0x120] sm:$0xff] %v557_v36  ;;  %v565_v40 = vld [vmem:[%s7861_s15 + $0x3c0] sm:$0xff]  ;;  %v567_v41 = vld [vmem:[%s7861_s15 + $0x3d8] sm:$0xff] }
  0x25   : > { %560 = vst [vmem:[%s7869_s16 + $0x128] sm:$0xff] %v559_v37  ;;  %562 = vst [vmem:[%s7869_s16 + $0x130] sm:$0xff] %v561_v38  ;;  %v569_v42 = vld [vmem:[%s7861_s15 + $0x3f0] sm:$0xff]  ;;  %v571_v43 = vld [vmem:[%s7861_s15 + $0x408] sm:$0xff] }
  0x26   : > { %564 = vst [vmem:[%s7869_s16 + $0x138] sm:$0xff] %v563_v39  ;;  %566 = vst [vmem:[%s7869_s16 + $0x140] sm:$0xff] %v565_v40  ;;  %v573_v44 = vld [vmem:[%s7861_s15 + $0x420] sm:$0xff]  ;;  %v575_v45 = vld [vmem:[%s7861_s15 + $0x438] sm:$0xff] }
  0x27   : > { %568 = vst [vmem:[%s7869_s16 + $0x148] sm:$0xff] %v567_v41  ;;  %570 = vst [vmem:[%s7869_s16 + $0x150] sm:$0xff] %v569_v42  ;;  %v577_v46 = vld [vmem:[%s7861_s15 + $0x450] sm:$0xff]  ;;  %v579_v47 = vld [vmem:[%s7861_s15 + $0x468] sm:$0xff] }
  0x28   : > { %572 = vst [vmem:[%s7869_s16 + $0x158] sm:$0xff] %v571_v43  ;;  %574 = vst [vmem:[%s7869_s16 + $0x160] sm:$0xff] %v573_v44  ;;  %v581_v48 = vld [vmem:[%s7861_s15 + $0x480] sm:$0xff]  ;;  %v583_v49 = vld [vmem:[%s7861_s15 + $0x498] sm:$0xff] }
  0x29   : > { %576 = vst [vmem:[%s7869_s16 + $0x168] sm:$0xff] %v575_v45  ;;  %578 = vst [vmem:[%s7869_s16 + $0x170] sm:$0xff] %v577_v46  ;;  %v585_v50 = vld [vmem:[%s7861_s15 + $0x4b0] sm:$0xff]  ;;  %v587_v51 = vld [vmem:[%s7861_s15 + $0x4c8] sm:$0xff] }
  0x2a   : > { %580 = vst [vmem:[%s7869_s16 + $0x178] sm:$0xff] %v579_v47  ;;  %582 = vst [vmem:[%s7869_s16 + $0x180] sm:$0xff] %v581_v48  ;;  %v589_v52 = vld [vmem:[%s7861_s15 + $0x4e0] sm:$0xff]  ;;  %v591_v53 = vld [vmem:[%s7861_s15 + $0x4f8] sm:$0xff] }
  0x2b   : > { %584 = vst [vmem:[%s7869_s16 + $0x188] sm:$0xff] %v583_v49  ;;  %586 = vst [vmem:[%s7869_s16 + $0x190] sm:$0xff] %v585_v50  ;;  %v593_v54 = vld [vmem:[%s7861_s15 + $0x510] sm:$0xff]  ;;  %v595_v55 = vld [vmem:[%s7861_s15 + $0x528] sm:$0xff] }
  0x2c   : > { %588 = vst [vmem:[%s7869_s16 + $0x198] sm:$0xff] %v587_v51  ;;  %590 = vst [vmem:[%s7869_s16 + $0x1a0] sm:$0xff] %v589_v52  ;;  %v597_v56 = vld [vmem:[%s7861_s15 + $0x540] sm:$0xff]  ;;  %v599_v57 = vld [vmem:[%s7861_s15 + $0x558] sm:$0xff] }
  0x2d   : > { %592 = vst [vmem:[%s7869_s16 + $0x1a8] sm:$0xff] %v591_v53  ;;  %594 = vst [vmem:[%s7869_s16 + $0x1b0] sm:$0xff] %v593_v54  ;;  %v601_v58 = vld [vmem:[%s7861_s15 + $0x570] sm:$0xff]  ;;  %v603_v59 = vld [vmem:[%s7861_s15 + $0x588] sm:$0xff] }
  0x2e   : > { %596 = vst [vmem:[%s7869_s16 + $0x1b8] sm:$0xff] %v595_v55  ;;  %598 = vst [vmem:[%s7869_s16 + $0x1c0] sm:$0xff] %v597_v56  ;;  %v605_v60 = vld [vmem:[%s7861_s15 + $0x5a0] sm:$0xff]  ;;  %v607_v61 = vld [vmem:[%s7861_s15 + $0x5b8] sm:$0xff] }
  0x2f   : > { %600 = vst [vmem:[%s7869_s16 + $0x1c8] sm:$0xff] %v599_v57  ;;  %602 = vst [vmem:[%s7869_s16 + $0x1d0] sm:$0xff] %v601_v58  ;;  %v609_v62 = vld [vmem:[%s7861_s15 + $0x5d0] sm:$0xff]  ;;  %v611_v63 = vld [vmem:[%s7861_s15 + $0x5e8] sm:$0xff] }
  0x30   : > { %604 = vst [vmem:[%s7869_s16 + $0x1d8] sm:$0xff] %v603_v59  ;;  %606 = vst [vmem:[%s7869_s16 + $0x1e0] sm:$0xff] %v605_v60  ;;  %v613_v0 = vld [vmem:[%s7861_s15 + $0x600] sm:$0xff]  ;;  %v615_v1 = vld [vmem:[%s7861_s15 + $0x618] sm:$0xff] }
  0x31   : > { %608 = vst [vmem:[%s7869_s16 + $0x1e8] sm:$0xff] %v607_v61  ;;  %610 = vst [vmem:[%s7869_s16 + $0x1f0] sm:$0xff] %v609_v62  ;;  %v617_v2 = vld [vmem:[%s7861_s15 + $0x630] sm:$0xff]  ;;  %v619_v3 = vld [vmem:[%s7861_s15 + $0x648] sm:$0xff] }
  0x32   : > { %612 = vst [vmem:[%s7869_s16 + $0x1f8] sm:$0xff] %v611_v63  ;;  %614 = vst [vmem:[%s7869_s16 + $0x200] sm:$0xff] %v613_v0  ;;  %v621_v4 = vld [vmem:[%s7861_s15 + $0x660] sm:$0xff]  ;;  %v623_v5 = vld [vmem:[%s7861_s15 + $0x678] sm:$0xff] }
  0x33   : > { %616 = vst [vmem:[%s7869_s16 + $0x208] sm:$0xff] %v615_v1  ;;  %618 = vst [vmem:[%s7869_s16 + $0x210] sm:$0xff] %v617_v2  ;;  %v625_v6 = vld [vmem:[%s7861_s15 + $0x690] sm:$0xff]  ;;  %v627_v7 = vld [vmem:[%s7861_s15 + $0x6a8] sm:$0xff] }
  0x34   : > { %620 = vst [vmem:[%s7869_s16 + $0x218] sm:$0xff] %v619_v3  ;;  %622 = vst [vmem:[%s7869_s16 + $0x220] sm:$0xff] %v621_v4  ;;  %v629_v8 = vld [vmem:[%s7861_s15 + $0x6c0] sm:$0xff]  ;;  %v631_v9 = vld [vmem:[%s7861_s15 + $0x6d8] sm:$0xff] }
  0x35   : > { %624 = vst [vmem:[%s7869_s16 + $0x228] sm:$0xff] %v623_v5  ;;  %626 = vst [vmem:[%s7869_s16 + $0x230] sm:$0xff] %v625_v6  ;;  %v633_v10 = vld [vmem:[%s7861_s15 + $0x6f0] sm:$0xff]  ;;  %v635_v11 = vld [vmem:[%s7861_s15 + $0x708] sm:$0xff] }
  0x36   : > { %628 = vst [vmem:[%s7869_s16 + $0x238] sm:$0xff] %v627_v7  ;;  %630 = vst [vmem:[%s7869_s16 + $0x240] sm:$0xff] %v629_v8  ;;  %v637_v12 = vld [vmem:[%s7861_s15 + $0x720] sm:$0xff]  ;;  %v639_v13 = vld [vmem:[%s7861_s15 + $0x738] sm:$0xff] }
  0x37   : > { %632 = vst [vmem:[%s7869_s16 + $0x248] sm:$0xff] %v631_v9  ;;  %634 = vst [vmem:[%s7869_s16 + $0x250] sm:$0xff] %v633_v10  ;;  %v641_v14 = vld [vmem:[%s7861_s15 + $0x750] sm:$0xff]  ;;  %v643_v15 = vld [vmem:[%s7861_s15 + $0x768] sm:$0xff] }
  0x38   : > { %636 = vst [vmem:[%s7869_s16 + $0x258] sm:$0xff] %v635_v11  ;;  %638 = vst [vmem:[%s7869_s16 + $0x260] sm:$0xff] %v637_v12  ;;  %v645_v16 = vld [vmem:[%s7861_s15 + $0x780] sm:$0xff]  ;;  %v647_v17 = vld [vmem:[%s7861_s15 + $0x798] sm:$0xff] }
  0x39   : > { %640 = vst [vmem:[%s7869_s16 + $0x268] sm:$0xff] %v639_v13  ;;  %642 = vst [vmem:[%s7869_s16 + $0x270] sm:$0xff] %v641_v14  ;;  %v649_v18 = vld [vmem:[%s7861_s15 + $0x7b0] sm:$0xff]  ;;  %v651_v19 = vld [vmem:[%s7861_s15 + $0x7c8] sm:$0xff] }
  0x3a   : > { %644 = vst [vmem:[%s7869_s16 + $0x278] sm:$0xff] %v643_v15  ;;  %646 = vst [vmem:[%s7869_s16 + $0x280] sm:$0xff] %v645_v16  ;;  %v653_v20 = vld [vmem:[%s7861_s15 + $0x7e0] sm:$0xff]  ;;  %v655_v21 = vld [vmem:[%s7861_s15 + $0x7f8] sm:$0xff] }
  0x3b   : > { %648 = vst [vmem:[%s7869_s16 + $0x288] sm:$0xff] %v647_v17  ;;  %650 = vst [vmem:[%s7869_s16 + $0x290] sm:$0xff] %v649_v18  ;;  %v657_v22 = vld [vmem:[%s7861_s15 + $0x810] sm:$0xff]  ;;  %v659_v23 = vld [vmem:[%s7861_s15 + $0x828] sm:$0xff] }
  0x3c   : > { %652 = vst [vmem:[%s7869_s16 + $0x298] sm:$0xff] %v651_v19  ;;  %654 = vst [vmem:[%s7869_s16 + $0x2a0] sm:$0xff] %v653_v20  ;;  %v661_v24 = vld [vmem:[%s7861_s15 + $0x840] sm:$0xff]  ;;  %v663_v25 = vld [vmem:[%s7861_s15 + $0x858] sm:$0xff] }
  0x3d   : > { %656 = vst [vmem:[%s7869_s16 + $0x2a8] sm:$0xff] %v655_v21  ;;  %658 = vst [vmem:[%s7869_s16 + $0x2b0] sm:$0xff] %v657_v22  ;;  %v665_v26 = vld [vmem:[%s7861_s15 + $0x870] sm:$0xff]  ;;  %v667_v27 = vld [vmem:[%s7861_s15 + $0x888] sm:$0xff] }
  0x3e   : > { %660 = vst [vmem:[%s7869_s16 + $0x2b8] sm:$0xff] %v659_v23  ;;  %662 = vst [vmem:[%s7869_s16 + $0x2c0] sm:$0xff] %v661_v24  ;;  %v669_v28 = vld [vmem:[%s7861_s15 + $0x8a0] sm:$0xff]  ;;  %v671_v29 = vld [vmem:[%s7861_s15 + $0x8b8] sm:$0xff] }
  0x3f   : > { %664 = vst [vmem:[%s7869_s16 + $0x2c8] sm:$0xff] %v663_v25  ;;  %666 = vst [vmem:[%s7869_s16 + $0x2d0] sm:$0xff] %v665_v26  ;;  %v673_v30 = vld [vmem:[%s7861_s15 + $0x8d0] sm:$0xff]  ;;  %v675_v31 = vld [vmem:[%s7861_s15 + $0x8e8] sm:$0xff] }
  0x40   : > { %668 = vst [vmem:[%s7869_s16 + $0x2d8] sm:$0xff] %v667_v27  ;;  %670 = vst [vmem:[%s7869_s16 + $0x2e0] sm:$0xff] %v669_v28 }
  0x41   : > { %672 = vst [vmem:[%s7869_s16 + $0x2e8] sm:$0xff] %v671_v29  ;;  %674 = vst [vmem:[%s7869_s16 + $0x2f0] sm:$0xff] %v673_v30 }
  0x42   : > { %676 = vst [vmem:[%s7869_s16 + $0x2f8] sm:$0xff] %v675_v31 }
  0x43 PF: > { %p5727_p6 = scmp.ge.s32.totalorder %s7775_s28, 1  ;;  %p690_p7 = scmp.lt.s32.totalorder %s7775_s28, 4 }
  0x45   : > { %p691_p8 = pnand %p5727_p6, %p690_p7 }
  0x47   : > { %694 = sbr.rel (%p691_p8) target bundleno = 1434 (0x59a), region = 82 }
  0x4e   : > { %s5728_s17 = sshll.u32 %s7767_s26, 5  ;;  %s697_s18 = sand.u32 1, %s7759_s24   ;;  %v7777_v32 = vmov 0  }
  0x4f   : > { %1463 = vmatprep.subr.bf16.mxu0 %v7777_v32  ;;  %7210 = vmatprep.subr.bf16.mxu1 %v7777_v32  ;;  %p741_p9 = scmp.lt.s32.totalorder %s5728_s17, 95  ;;  %s7339_s19 = smul.u32 768, %s697_s18 }
  0x50   : > { %p5842_p10 = scmp.ne.s32.totalorder %s7767_s26, 0 }
  0x51   : > { %s10978_s17 = smov (!%p741_p9, %s5728_s17), 95  ;;  %s8063_s21 = scalar_lea.vmem [#allocation3], %s7339_s19 }
  0x52   : > { %s5729_s20 = sshll.u32 %s10978_s17, 2  ;;  %v7399_v33 = vld [vmem:[%s8063_s21 + $0x4] ss:$8 sps:$4 sm:$0xff]   ;;  %v7397_v51 = vld [vmem:[%s8063_s21] ss:$8 sps:$4 sm:$0xff]  }
  0x53   : > { %s8068_s30 = scalar_lea.vmem %s10505_s1, %s5729_s20  ;;  %1495 = vmatprep.mubr.bf16.mxu0 %v7399_v33  ;;  %v7402_v39 = vld [vmem:[%s8063_s21 + $0x184] ss:$8 sps:$4 sm:$0xff]   ;;  %v7400_v52 = vld [vmem:[%s8063_s21 + $0x180] ss:$8 sps:$4 sm:$0xff]   ;;  %v7403_v53 = vld [vmem:[%s8063_s21 + $0x14] ss:$8 sps:$4 sm:$0xff]  }
  0x54   : > { %v7381_v34 = vld [vmem:[%s8068_s30] sm:$0xff]   ;;  %v7382_v35 = vld [vmem:[%s8068_s30 + $0x8] sm:$0xff]   ;;  %v7383_v36 = vld [vmem:[%s8068_s30 + $0x10] sm:$0xff]   ;;  %1687 = vmatprep.mubr.bf16.mxu1 %v7402_v39 }
  0x55   : > { %1464 = vmatpush1.bf16.msra.mxu0 %v7381_v34  ;;  %7226 = vmatpush1.bf16.msra.mxu1 %v7381_v34  ;;  %v7384_v37 = vld [vmem:[%s8068_s30 + $0x18] sm:$0xff]   ;;  %v7385_v38 = vld [vmem:[%s8068_s30 + $0x20] sm:$0xff]   ;;  %v7386_v40 = vld [vmem:[%s8068_s30 + $0x28] sm:$0xff]  }
  0x56   : > { %1465 = vmatprep.subr.bf16.mxu0 %v7777_v32  ;;  %7211 = vmatprep.subr.bf16.mxu1 %v7777_v32  ;;  %v7387_v41 = vld [vmem:[%s8068_s30 + $0x30] sm:$0xff]   ;;  %v7388_v42 = vld [vmem:[%s8068_s30 + $0x38] sm:$0xff]   ;;  %v7389_v43 = vld [vmem:[%s8068_s30 + $0x40] sm:$0xff]  }
  0x57   : > { %v7390_v44 = vld [vmem:[%s8068_s30 + $0x48] sm:$0xff]   ;;  %v7391_v45 = vld [vmem:[%s8068_s30 + $0x50] sm:$0xff]   ;;  %v7392_v46 = vld [vmem:[%s8068_s30 + $0x58] sm:$0xff]  }
  0x58   : > { %v7393_v47 = vld [vmem:[%s8068_s30 + $0x60] sm:$0xff]   ;;  %v7394_v48 = vld [vmem:[%s8068_s30 + $0x68] sm:$0xff]   ;;  %v7395_v49 = vld [vmem:[%s8068_s30 + $0x70] sm:$0xff]  }
  0x59   : > { %1466 = vmatpush1.bf16.msra.mxu0 %v7382_v35  ;;  %7227 = vmatpush1.bf16.msra.mxu1 %v7382_v35  ;;  %v7396_v50 = vld [vmem:[%s8068_s30 + $0x78] sm:$0xff]   ;;  %v7409_v57 = vld [vmem:[%s8063_s21 + $0x24] ss:$8 sps:$4 sm:$0xff]   ;;  %v7413_v59 = vld [vmem:[%s8063_s21 + $0x20] ss:$8 sps:$4 sm:$0xff]  }
  0x5a   : > { %1467 = vmatprep.subr.bf16.mxu0 %v7777_v32  ;;  %7212 = vmatprep.subr.bf16.mxu1 %v7777_v32  ;;  %v7405_v54 = vld [vmem:[%s8063_s21 + $0x194] ss:$8 sps:$4 sm:$0xff]   ;;  %v7407_v55 = vld [vmem:[%s8063_s21 + $0x10] ss:$8 sps:$4 sm:$0xff]   ;;  %v7411_v58 = vld [vmem:[%s8063_s21 + $0x1a4] ss:$8 sps:$4 sm:$0xff]  }
  0x5b   : > { %v7408_v56 = vld [vmem:[%s8063_s21 + $0x190] ss:$8 sps:$4 sm:$0xff]   ;;  %v7414_v60 = vld [vmem:[%s8063_s21 + $0x1a0] ss:$8 sps:$4 sm:$0xff]   ;;  %v7415_v61 = vld [vmem:[%s8063_s21 + $0x34] ss:$8 sps:$4 sm:$0xff]  }
  0x5c   : > { %v7417_v62 = vld [vmem:[%s8063_s21 + $0x1b4] ss:$8 sps:$4 sm:$0xff]   ;;  %v7419_v63 = vld [vmem:[%s8063_s21 + $0x30] ss:$8 sps:$4 sm:$0xff]   ;;  %v7421_v1 = vld [vmem:[%s8063_s21 + $0x44] ss:$8 sps:$4 sm:$0xff]  }
  0x5d   : > { %1468 = vmatpush1.bf16.msra.mxu0 %v7383_v36  ;;  %7228 = vmatpush1.bf16.msra.mxu1 %v7383_v36  ;;  %v7420_v0 = vld [vmem:[%s8063_s21 + $0x1b0] ss:$8 sps:$4 sm:$0xff]   ;;  %v7423_v2 = vld [vmem:[%s8063_s21 + $0x1c4] ss:$8 sps:$4 sm:$0xff]   ;;  %v7425_v3 = vld [vmem:[%s8063_s21 + $0x40] ss:$8 sps:$4 sm:$0xff]  }
  0x5e   : > { %1469 = vmatprep.subr.bf16.mxu0 %v7777_v32  ;;  %7213 = vmatprep.subr.bf16.mxu1 %v7777_v32  ;;  %v7426_v4 = vld [vmem:[%s8063_s21 + $0x1c0] ss:$8 sps:$4 sm:$0xff]   ;;  %v7427_v5 = vld [vmem:[%s8063_s21 + $0x54] ss:$8 sps:$4 sm:$0xff]   ;;  %v7431_v7 = vld [vmem:[%s8063_s21 + $0x50] ss:$8 sps:$4 sm:$0xff]  }
  0x5f   : > { %v7429_v6 = vld [vmem:[%s8063_s21 + $0x1d4] ss:$8 sps:$4 sm:$0xff]   ;;  %v7432_v8 = vld [vmem:[%s8063_s21 + $0x1d0] ss:$8 sps:$4 sm:$0xff]   ;;  %v7433_v9 = vld [vmem:[%s8063_s21 + $0x64] ss:$8 sps:$4 sm:$0xff]  }
  0x60   : > { %v7435_v10 = vld [vmem:[%s8063_s21 + $0x1e4] ss:$8 sps:$4 sm:$0xff]   ;;  %v7437_v11 = vld [vmem:[%s8063_s21 + $0x60] ss:$8 sps:$4 sm:$0xff]   ;;  %v7439_v13 = vld [vmem:[%s8063_s21 + $0x74] ss:$8 sps:$4 sm:$0xff]  }
  0x61   : > { %1470 = vmatpush1.bf16.msra.mxu0 %v7384_v37  ;;  %7229 = vmatpush1.bf16.msra.mxu1 %v7384_v37  ;;  %v7438_v12 = vld [vmem:[%s8063_s21 + $0x1e0] ss:$8 sps:$4 sm:$0xff]   ;;  %v7441_v14 = vld [vmem:[%s8063_s21 + $0x1f4] ss:$8 sps:$4 sm:$0xff]   ;;  %v7443_v15 = vld [vmem:[%s8063_s21 + $0x70] ss:$8 sps:$4 sm:$0xff]  }
  0x62   : > { %1471 = vmatprep.subr.bf16.mxu0 %v7777_v32  ;;  %7214 = vmatprep.subr.bf16.mxu1 %v7777_v32  ;;  %v7444_v16 = vld [vmem:[%s8063_s21 + $0x1f0] ss:$8 sps:$4 sm:$0xff]   ;;  %v7445_v17 = vld [vmem:[%s8063_s21 + $0x84] ss:$8 sps:$4 sm:$0xff]   ;;  %v7449_v19 = vld [vmem:[%s8063_s21 + $0x80] ss:$8 sps:$4 sm:$0xff]  }
  0x63   : > { %v7447_v18 = vld [vmem:[%s8063_s21 + $0x204] ss:$8 sps:$4 sm:$0xff]   ;;  %v7450_v20 = vld [vmem:[%s8063_s21 + $0x200] ss:$8 sps:$4 sm:$0xff]   ;;  %v7451_v21 = vld [vmem:[%s8063_s21 + $0x94] ss:$8 sps:$4 sm:$0xff]  }
  0x64   : > { %v7453_v22 = vld [vmem:[%s8063_s21 + $0x214] ss:$8 sps:$4 sm:$0xff]   ;;  %v7455_v23 = vld [vmem:[%s8063_s21 + $0x90] ss:$8 sps:$4 sm:$0xff]   ;;  %v7457_v25 = vld [vmem:[%s8063_s21 + $0xa4] ss:$8 sps:$4 sm:$0xff]  }
  0x65   : > { %1472 = vmatpush1.bf16.msra.mxu0 %v7385_v38  ;;  %7230 = vmatpush1.bf16.msra.mxu1 %v7385_v38  ;;  %v7456_v24 = vld [vmem:[%s8063_s21 + $0x210] ss:$8 sps:$4 sm:$0xff]   ;;  %v7459_v26 = vld [vmem:[%s8063_s21 + $0x224] ss:$8 sps:$4 sm:$0xff]   ;;  %v7461_v27 = vld [vmem:[%s8063_s21 + $0xa0] ss:$8 sps:$4 sm:$0xff]  }
  0x66   : > { %1473 = vmatprep.subr.bf16.mxu0 %v7777_v32  ;;  %7215 = vmatprep.subr.bf16.mxu1 %v7777_v32  ;;  %v7462_v28 = vld [vmem:[%s8063_s21 + $0x220] ss:$8 sps:$4 sm:$0xff]   ;;  %v7463_v29 = vld [vmem:[%s8063_s21 + $0xb4] ss:$8 sps:$4 sm:$0xff]   ;;  %v7467_v31 = vld [vmem:[%s8063_s21 + $0xb0] ss:$8 sps:$4 sm:$0xff]  }
  0x67   : > { %v7465_v30 = vld [vmem:[%s8063_s21 + $0x234] ss:$8 sps:$4 sm:$0xff]   ;;  %v7469_v33 = vld [vmem:[%s8063_s21 + $0xc4] ss:$8 sps:$4 sm:$0xff]   ;;  %v7473_v35 = vld [vmem:[%s8063_s21 + $0xc0] ss:$8 sps:$4 sm:$0xff]  }
  0x68   : > { %v7471_v34 = vld [vmem:[%s8063_s21 + $0x244] ss:$8 sps:$4 sm:$0xff]   ;;  %v7474_v36 = vld [vmem:[%s8063_s21 + $0x240] ss:$8 sps:$4 sm:$0xff]   ;;  %v7475_v37 = vld [vmem:[%s8063_s21 + $0xd4] ss:$8 sps:$4 sm:$0xff]  }
  0x69   : > { %1474 = vmatpush1.bf16.msra.mxu0 %v7386_v40  ;;  %7231 = vmatpush1.bf16.msra.mxu1 %v7386_v40  ;;  %v7477_v38 = vld [vmem:[%s8063_s21 + $0x254] ss:$8 sps:$4 sm:$0xff]   ;;  %v7479_v39 = vld [vmem:[%s8063_s21 + $0xd0] ss:$8 sps:$4 sm:$0xff]  }
  0x6a   : > { %1475 = vmatprep.subr.bf16.mxu0 %v7777_v32  ;;  %7216 = vmatprep.subr.bf16.mxu1 %v7777_v32  ;;  %v7480_v40 = vld [vmem:[%s8063_s21 + $0x250] ss:$8 sps:$4 sm:$0xff]  }
  0x6d   : > { %1476 = vmatpush1.bf16.msra.mxu0 %v7387_v41  ;;  %7232 = vmatpush1.bf16.msra.mxu1 %v7387_v41  ;;  %v7481_v41 = vld [vmem:[%s8063_s21 + $0xe4] ss:$8 sps:$4 sm:$0xff]  }
  0x6e   : > { %1477 = vmatprep.subr.bf16.mxu0 %v7777_v32  ;;  %7217 = vmatprep.subr.bf16.mxu1 %v7777_v32 }
  0x71   : > { %1478 = vmatpush1.bf16.msra.mxu0 %v7388_v42  ;;  %7233 = vmatpush1.bf16.msra.mxu1 %v7388_v42  ;;  %v7483_v42 = vld [vmem:[%s8063_s21 + $0x264] ss:$8 sps:$4 sm:$0xff]  }
  0x72   : > { %1479 = vmatprep.subr.bf16.mxu0 %v7777_v32  ;;  %7218 = vmatprep.subr.bf16.mxu1 %v7777_v32 }
  0x75   : > { %1480 = vmatpush1.bf16.msra.mxu0 %v7389_v43  ;;  %7234 = vmatpush1.bf16.msra.mxu1 %v7389_v43  ;;  %v7485_v43 = vld [vmem:[%s8063_s21 + $0xe0] ss:$8 sps:$4 sm:$0xff]  }
  0x76   : > { %1481 = vmatprep.subr.bf16.mxu0 %v7777_v32  ;;  %7219 = vmatprep.subr.bf16.mxu1 %v7777_v32 }
  0x79   : > { %1482 = vmatpush1.bf16.msra.mxu0 %v7390_v44  ;;  %7235 = vmatpush1.bf16.msra.mxu1 %v7390_v44  ;;  %v7486_v44 = vld [vmem:[%s8063_s21 + $0x260] ss:$8 sps:$4 sm:$0xff]  }
  0x7a   : > { %1483 = vmatprep.subr.bf16.mxu0 %v7777_v32  ;;  %7220 = vmatprep.subr.bf16.mxu1 %v7777_v32 }
  0x7d   : > { %1484 = vmatpush1.bf16.msra.mxu0 %v7391_v45  ;;  %7236 = vmatpush1.bf16.msra.mxu1 %v7391_v45  ;;  %v7487_v45 = vld [vmem:[%s8063_s21 + $0xf4] ss:$8 sps:$4 sm:$0xff]  }
  0x7e   : > { %1485 = vmatprep.subr.bf16.mxu0 %v7777_v32  ;;  %7221 = vmatprep.subr.bf16.mxu1 %v7777_v32 }
  0x81   : > { %1486 = vmatpush1.bf16.msra.mxu0 %v7392_v46  ;;  %7237 = vmatpush1.bf16.msra.mxu1 %v7392_v46  ;;  %v7489_v46 = vld [vmem:[%s8063_s21 + $0x274] ss:$8 sps:$4 sm:$0xff]  }
  0x82   : > { %1487 = vmatprep.subr.bf16.mxu0 %v7777_v32  ;;  %7222 = vmatprep.subr.bf16.mxu1 %v7777_v32 }
  0x85   : > { %1488 = vmatpush1.bf16.msra.mxu0 %v7393_v47  ;;  %7238 = vmatpush1.bf16.msra.mxu1 %v7393_v47  ;;  %v7491_v47 = vld [vmem:[%s8063_s21 + $0xf0] ss:$8 sps:$4 sm:$0xff]  }
  0x86   : > { %1489 = vmatprep.subr.bf16.mxu0 %v7777_v32  ;;  %7223 = vmatprep.subr.bf16.mxu1 %v7777_v32 }
  0x89   : > { %1490 = vmatpush1.bf16.msra.mxu0 %v7394_v48  ;;  %7239 = vmatpush1.bf16.msra.mxu1 %v7394_v48  ;;  %v7492_v48 = vld [vmem:[%s8063_s21 + $0x270] ss:$8 sps:$4 sm:$0xff]  }
  0x8a   : > { %1491 = vmatprep.subr.bf16.mxu0 %v7777_v32  ;;  %7224 = vmatprep.subr.bf16.mxu1 %v7777_v32 }
  0x8d   : > { %1492 = vmatpush1.bf16.msra.mxu0 %v7395_v49  ;;  %7240 = vmatpush1.bf16.msra.mxu1 %v7395_v49  ;;  %v7493_v49 = vld [vmem:[%s8063_s21 + $0x104] ss:$8 sps:$4 sm:$0xff]  }
  0x8e   : > { %1493 = vmatprep.subr.bf16.mxu0 %v7777_v32  ;;  %7225 = vmatprep.subr.bf16.mxu1 %v7777_v32  ;;  %v7468_v32 = vld [vmem:[%s8063_s21 + $0x230] ss:$8 sps:$4 sm:$0xff]  }
  0x91   : > { %1494 = vmatpush1.bf16.msra.mxu0 %v7396_v50  ;;  %7241 = vmatpush1.bf16.msra.mxu1 %v7396_v50  ;;  %v7495_v50 = vld [vmem:[%s8063_s21 + $0x284] ss:$8 sps:$4 sm:$0xff]  }
  0x94   : > { %1496 = vmatmul.mubr.bf16.vlgmr.msra.gmra.mrb[0].mxu0 %v7397_v51  ;;  %1688 = vmatmul.mubr.bf16.vlgmr.msra.gmra.mrb[0].mxu1 %v7400_v52  ;;  %v7497_v51 = vld [vmem:[%s8063_s21 + $0x100] ss:$8 sps:$4 sm:$0xff]  }
  0x95   : > { %1503 = vmatprep.mubr.bf16.mxu0 %v7403_v53  ;;  %1695 = vmatprep.mubr.bf16.mxu1 %v7405_v54  ;;  %v7498_v52 = vld [vmem:[%s8063_s21 + $0x280] ss:$8 sps:$4 sm:$0xff]   ;;  %v7499_v53 = vld [vmem:[%s8063_s21 + $0x114] ss:$8 sps:$4 sm:$0xff]  }
  0x96   : > { %v7501_v54 = vld [vmem:[%s8063_s21 + $0x294] ss:$8 sps:$4 sm:$0xff]  }
  0x9c   : > { %1504 = vmatmul.mubr.bf16.gmra.mrb[4].mxu0 %v7407_v55  ;;  %1696 = vmatmul.mubr.bf16.gmra.mrb[4].mxu1 %v7408_v56  ;;  %v7503_v55 = vld [vmem:[%s8063_s21 + $0x110] ss:$8 sps:$4 sm:$0xff]  }
  0x9d   : > { %1511 = vmatprep.mubr.bf16.mxu0 %v7409_v57  ;;  %1703 = vmatprep.mubr.bf16.mxu1 %v7411_v58  ;;  %v7504_v56 = vld [vmem:[%s8063_s21 + $0x290] ss:$8 sps:$4 sm:$0xff]   ;;  %v7505_v57 = vld [vmem:[%s8063_s21 + $0x124] ss:$8 sps:$4 sm:$0xff]  }
  0x9e   : > { %v7507_v58 = vld [vmem:[%s8063_s21 + $0x2a4] ss:$8 sps:$4 sm:$0xff]  }
  0xa4   : > { %1512 = vmatmul.mubr.bf16.gmra.mrb[8].mxu0 %v7413_v59  ;;  %1704 = vmatmul.mubr.bf16.gmra.mrb[8].mxu1 %v7414_v60  ;;  %v7509_v59 = vld [vmem:[%s8063_s21 + $0x120] ss:$8 sps:$4 sm:$0xff]  }
  0xa5   : > { %1519 = vmatprep.mubr.bf16.mxu0 %v7415_v61  ;;  %1711 = vmatprep.mubr.bf16.mxu1 %v7417_v62  ;;  %v7510_v60 = vld [vmem:[%s8063_s21 + $0x2a0] ss:$8 sps:$4 sm:$0xff]   ;;  %v7511_v61 = vld [vmem:[%s8063_s21 + $0x134] ss:$8 sps:$4 sm:$0xff]  }
  0xa6   : > { %v7513_v62 = vld [vmem:[%s8063_s21 + $0x2b4] ss:$8 sps:$4 sm:$0xff]  }
  0xac   : > { %1520 = vmatmul.mubr.bf16.gmra.mrb[12].mxu0 %v7419_v63  ;;  %1712 = vmatmul.mubr.bf16.gmra.mrb[12].mxu1 %v7420_v0  ;;  %v7515_v63 = vld [vmem:[%s8063_s21 + $0x130] ss:$8 sps:$4 sm:$0xff]  }
  0xad   : > { %1527 = vmatprep.mubr.bf16.mxu0 %v7421_v1  ;;  %1719 = vmatprep.mubr.bf16.mxu1 %v7423_v2  ;;  %v7516_v0 = vld [vmem:[%s8063_s21 + $0x2b0] ss:$8 sps:$4 sm:$0xff]   ;;  %v7517_v1 = vld [vmem:[%s8063_s21 + $0x144] ss:$8 sps:$4 sm:$0xff]  }
  0xae   : > { %v7519_v2 = vld [vmem:[%s8063_s21 + $0x2c4] ss:$8 sps:$4 sm:$0xff]  }
  0xb4   : > { %1528 = vmatmul.mubr.bf16.gmra.mrb[16].mxu0 %v7425_v3  ;;  %1720 = vmatmul.mubr.bf16.gmra.mrb[16].mxu1 %v7426_v4  ;;  %v7521_v3 = vld [vmem:[%s8063_s21 + $0x140] ss:$8 sps:$4 sm:$0xff]  }
  0xb5   : > { %1535 = vmatprep.mubr.bf16.mxu0 %v7427_v5  ;;  %1727 = vmatprep.mubr.bf16.mxu1 %v7429_v6  ;;  %v7522_v4 = vld [vmem:[%s8063_s21 + $0x2c0] ss:$8 sps:$4 sm:$0xff]   ;;  %v7523_v5 = vld [vmem:[%s8063_s21 + $0x154] ss:$8 sps:$4 sm:$0xff]  }
  0xb6   : > { %v7525_v6 = vld [vmem:[%s8063_s21 + $0x2d4] ss:$8 sps:$4 sm:$0xff]  }
  0xbc   : > { %1536 = vmatmul.mubr.bf16.gmra.mrb[20].mxu0 %v7431_v7  ;;  %1728 = vmatmul.mubr.bf16.gmra.mrb[20].mxu1 %v7432_v8  ;;  %v7527_v7 = vld [vmem:[%s8063_s21 + $0x150] ss:$8 sps:$4 sm:$0xff]  }
  0xbd   : > { %1543 = vmatprep.mubr.bf16.mxu0 %v7433_v9  ;;  %1735 = vmatprep.mubr.bf16.mxu1 %v7435_v10  ;;  %v7528_v8 = vld [vmem:[%s8063_s21 + $0x2d0] ss:$8 sps:$4 sm:$0xff]   ;;  %v7529_v9 = vld [vmem:[%s8063_s21 + $0x164] ss:$8 sps:$4 sm:$0xff]  }
  0xbe   : > { %v7531_v10 = vld [vmem:[%s8063_s21 + $0x2e4] ss:$8 sps:$4 sm:$0xff]  }
  0xc4   : > { %1544 = vmatmul.mubr.bf16.gmra.mrb[24].mxu0 %v7437_v11  ;;  %1736 = vmatmul.mubr.bf16.gmra.mrb[24].mxu1 %v7438_v12  ;;  %v7533_v11 = vld [vmem:[%s8063_s21 + $0x160] ss:$8 sps:$4 sm:$0xff]  }
  0xc5   : > { %1551 = vmatprep.mubr.bf16.mxu0 %v7439_v13  ;;  %1743 = vmatprep.mubr.bf16.mxu1 %v7441_v14  ;;  %v7534_v12 = vld [vmem:[%s8063_s21 + $0x2e0] ss:$8 sps:$4 sm:$0xff]   ;;  %v7535_v13 = vld [vmem:[%s8063_s21 + $0x174] ss:$8 sps:$4 sm:$0xff]  }
  0xc6   : > { %v7537_v14 = vld [vmem:[%s8063_s21 + $0x2f4] ss:$8 sps:$4 sm:$0xff]  }
  0xcc   : > { %1552 = vmatmul.mubr.bf16.gmra.mrb[28].mxu0 %v7443_v15  ;;  %1744 = vmatmul.mubr.bf16.gmra.mrb[28].mxu1 %v7444_v16  ;;  %v7539_v15 = vld [vmem:[%s8063_s21 + $0x170] ss:$8 sps:$4 sm:$0xff]  }
  0xcd   : > { %1559 = vmatprep.mubr.bf16.mxu0 %v7445_v17  ;;  %1751 = vmatprep.mubr.bf16.mxu1 %v7447_v18  ;;  %v7540_v16 = vld [vmem:[%s8063_s21 + $0x2f0] ss:$8 sps:$4 sm:$0xff]  }
  0xd4   : > { %1560 = vmatmul.mubr.bf16.gmra.mrb[32].mxu0 %v7449_v19  ;;  %1752 = vmatmul.mubr.bf16.gmra.mrb[32].mxu1 %v7450_v20 }
  0xd5   : > { %1567 = vmatprep.mubr.bf16.mxu0 %v7451_v21  ;;  %1759 = vmatprep.mubr.bf16.mxu1 %v7453_v22 }
  0xdc   : > { %1568 = vmatmul.mubr.bf16.gmra.mrb[36].mxu0 %v7455_v23  ;;  %1760 = vmatmul.mubr.bf16.gmra.mrb[36].mxu1 %v7456_v24 }
  0xdd   : > { %1575 = vmatprep.mubr.bf16.mxu0 %v7457_v25  ;;  %1767 = vmatprep.mubr.bf16.mxu1 %v7459_v26 }
  0xe4   : > { %1576 = vmatmul.mubr.bf16.gmra.mrb[40].mxu0 %v7461_v27  ;;  %1768 = vmatmul.mubr.bf16.gmra.mrb[40].mxu1 %v7462_v28 }
  0xe5   : > { %1583 = vmatprep.mubr.bf16.mxu0 %v7463_v29  ;;  %1775 = vmatprep.mubr.bf16.mxu1 %v7465_v30 }
  0xec   : > { %1584 = vmatmul.mubr.bf16.gmra.mrb[44].mxu0 %v7467_v31  ;;  %1776 = vmatmul.mubr.bf16.gmra.mrb[44].mxu1 %v7468_v32 }
  0xed   : > { %1591 = vmatprep.mubr.bf16.mxu0 %v7469_v33  ;;  %1783 = vmatprep.mubr.bf16.mxu1 %v7471_v34 }
  0xf4   : > { %1592 = vmatmul.mubr.bf16.gmra.mrb[48].mxu0 %v7473_v35  ;;  %1784 = vmatmul.mubr.bf16.gmra.mrb[48].mxu1 %v7474_v36 }
  0xf5   : > { %1599 = vmatprep.mubr.bf16.mxu0 %v7475_v37  ;;  %1791 = vmatprep.mubr.bf16.mxu1 %v7477_v38 }
  0xfc   : > { %1600 = vmatmul.mubr.bf16.gmra.mrb[52].mxu0 %v7479_v39  ;;  %1792 = vmatmul.mubr.bf16.gmra.mrb[52].mxu1 %v7480_v40 }
  0xfd   : > { %1607 = vmatprep.mubr.bf16.mxu0 %v7481_v41  ;;  %1799 = vmatprep.mubr.bf16.mxu1 %v7483_v42 }
 0x104   : > { %1608 = vmatmul.mubr.bf16.gmra.mrb[56].mxu0 %v7485_v43  ;;  %1800 = vmatmul.mubr.bf16.gmra.mrb[56].mxu1 %v7486_v44 }
 0x105   : > { %1615 = vmatprep.mubr.bf16.mxu0 %v7487_v45  ;;  %1807 = vmatprep.mubr.bf16.mxu1 %v7489_v46 }
 0x10c   : > { %1616 = vmatmul.mubr.bf16.gmra.mrb[60].mxu0 %v7491_v47  ;;  %1808 = vmatmul.mubr.bf16.gmra.mrb[60].mxu1 %v7492_v48 }
 0x10d   : > { %1623 = vmatprep.mubr.bf16.mxu0 %v7493_v49  ;;  %1815 = vmatprep.mubr.bf16.mxu1 %v7495_v50 }
 0x114   : > { %1624 = vmatmul.mubr.bf16.gmra.mrb[64].mxu0 %v7497_v51  ;;  %1816 = vmatmul.mubr.bf16.gmra.mrb[64].mxu1 %v7498_v52 }
 0x115   : > { %1631 = vmatprep.mubr.bf16.mxu0 %v7499_v53  ;;  %1823 = vmatprep.mubr.bf16.mxu1 %v7501_v54 }
 0x11c   : > { %1632 = vmatmul.mubr.bf16.gmra.mrb[68].mxu0 %v7503_v55  ;;  %1824 = vmatmul.mubr.bf16.gmra.mrb[68].mxu1 %v7504_v56 }
 0x11d   : > { %1639 = vmatprep.mubr.bf16.mxu0 %v7505_v57  ;;  %1831 = vmatprep.mubr.bf16.mxu1 %v7507_v58 }
 0x124   : > { %1640 = vmatmul.mubr.bf16.gmra.mrb[72].mxu0 %v7509_v59  ;;  %1832 = vmatmul.mubr.bf16.gmra.mrb[72].mxu1 %v7510_v60 }
 0x125   : > { %1647 = vmatprep.mubr.bf16.mxu0 %v7511_v61  ;;  %1839 = vmatprep.mubr.bf16.mxu1 %v7513_v62 }
 0x12c   : > { %1648 = vmatmul.mubr.bf16.gmra.mrb[76].mxu0 %v7515_v63  ;;  %1840 = vmatmul.mubr.bf16.gmra.mrb[76].mxu1 %v7516_v0 }
 0x12d   : > { %1655 = vmatprep.mubr.bf16.mxu0 %v7517_v1  ;;  %1847 = vmatprep.mubr.bf16.mxu1 %v7519_v2 }
 0x134   : > { %1656 = vmatmul.mubr.bf16.gmra.mrb[80].mxu0 %v7521_v3  ;;  %1848 = vmatmul.mubr.bf16.gmra.mrb[80].mxu1 %v7522_v4 }
 0x135   : > { %1663 = vmatprep.mubr.bf16.mxu0 %v7523_v5  ;;  %1855 = vmatprep.mubr.bf16.mxu1 %v7525_v6 }
 0x13c   : > { %1664 = vmatmul.mubr.bf16.gmra.mrb[84].mxu0 %v7527_v7  ;;  %1856 = vmatmul.mubr.bf16.gmra.mrb[84].mxu1 %v7528_v8 }
 0x13d   : > { %1671 = vmatprep.mubr.bf16.mxu0 %v7529_v9  ;;  %1863 = vmatprep.mubr.bf16.mxu1 %v7531_v10 }
 0x144   : > { %1672 = vmatmul.mubr.bf16.gmra.mrb[88].mxu0 %v7533_v11  ;;  %1864 = vmatmul.mubr.bf16.gmra.mrb[88].mxu1 %v7534_v12 }
 0x145   : > { %1679 = vmatprep.mubr.bf16.mxu0 %v7535_v13  ;;  %1871 = vmatprep.mubr.bf16.mxu1 %v7537_v14 }
 0x14c   : > { %1680 = vmatmul.mubr.bf16.gmra.mrb[92].mxu0 %v7539_v15  ;;  %1872 = vmatmul.mubr.bf16.gmra.mrb[92].mxu1 %v7540_v16 }
 0x167   : > { %v8212_v17 = vpop.f32.mrb[0].mxu0  ;;  %v8214_v18 = vpop.f32.mrb[0].mxu1 }
 0x168   : > { %v1499_v19 = vpop.f32.mrb[1].mxu0  ;;  %v1691_v20 = vpop.f32.mrb[1].mxu1  ;;  %1884 = vst [vmem:[#allocation2] sm:$0xff] (!%p5842_p10), %v8212_v17  ;;  %1932 = vst [vmem:[#allocation2 + $0x180] sm:$0xff] (!%p5842_p10), %v8214_v18 }
 0x169   : > { %v8216_v21 = vpop.f32.mrb[2].mxu0  ;;  %v8218_v22 = vpop.f32.mrb[2].mxu1 }
 0x16a   : > { %10625 = vst [vmem:[#allocation4_spill] sm:$0xff] %v8218_v22  ;;  %v1502_v23 = vpop.f32.mrb[3].mxu0  ;;  %v1694_v24 = vpop.f32.mrb[3].mxu1  ;;  %1885 = vst [vmem:[#allocation2 + $0x8] sm:$0xff] (!%p5842_p10), %v8216_v21 }
 0x16b   : > { %1933 = vst [vmem:[#allocation2 + $0x188] sm:$0xff] (!%p5842_p10), %v8218_v22 }
 0x16f   : > { %v8220_v25 = vpop.f32.mrb[4].mxu0  ;;  %v8222_v26 = vpop.f32.mrb[4].mxu1 }
 0x170   : > { %10626 = vst [vmem:[#allocation5_spill] sm:$0xff] %v8222_v26  ;;  %v1507_v27 = vpop.f32.mrb[5].mxu0  ;;  %v1699_v28 = vpop.f32.mrb[5].mxu1  ;;  %1886 = vst [vmem:[#allocation2 + $0x10] sm:$0xff] (!%p5842_p10), %v8220_v25 }
 0x171   : > { %v8224_v29 = vpop.f32.mrb[6].mxu0  ;;  %v8226_v30 = vpop.f32.mrb[6].mxu1  ;;  %1934 = vst [vmem:[#allocation2 + $0x190] sm:$0xff] (!%p5842_p10), %v8222_v26 }
 0x172   : > { %10627 = vst [vmem:[#allocation6_spill] sm:$0xff] %v8226_v30  ;;  %v1510_v31 = vpop.f32.mrb[7].mxu0  ;;  %v1702_v32 = vpop.f32.mrb[7].mxu1  ;;  %1887 = vst [vmem:[#allocation2 + $0x18] sm:$0xff] (!%p5842_p10), %v8224_v29 }
 0x173   : > { %1935 = vst [vmem:[#allocation2 + $0x198] sm:$0xff] (!%p5842_p10), %v8226_v30 }
 0x177   : > { %v8228_v33 = vpop.f32.mrb[8].mxu0  ;;  %v8230_v34 = vpop.f32.mrb[8].mxu1 }
 0x178   : > { %10628 = vst [vmem:[#allocation7_spill] sm:$0xff] %v8230_v34  ;;  %v1515_v35 = vpop.f32.mrb[9].mxu0  ;;  %v1707_v36 = vpop.f32.mrb[9].mxu1  ;;  %1888 = vst [vmem:[#allocation2 + $0x20] sm:$0xff] (!%p5842_p10), %v8228_v33 }
 0x179   : > { %v8232_v37 = vpop.f32.mrb[10].mxu0  ;;  %v8234_v38 = vpop.f32.mrb[10].mxu1  ;;  %1936 = vst [vmem:[#allocation2 + $0x1a0] sm:$0xff] (!%p5842_p10), %v8230_v34 }
 0x17a   : > { %10629 = vst [vmem:[#allocation8_spill] sm:$0xff] %v8234_v38  ;;  %v1518_v39 = vpop.f32.mrb[11].mxu0  ;;  %v1710_v40 = vpop.f32.mrb[11].mxu1  ;;  %1889 = vst [vmem:[#allocation2 + $0x28] sm:$0xff] (!%p5842_p10), %v8232_v37 }
 0x17f   : > { %v8236_v41 = vpop.f32.mrb[12].mxu0  ;;  %v8238_v42 = vpop.f32.mrb[12].mxu1 }
 0x180   : > { %10630 = vst [vmem:[#allocation9_spill] sm:$0xff] %v8238_v42  ;;  %v1523_v43 = vpop.f32.mrb[13].mxu0  ;;  %v1715_v44 = vpop.f32.mrb[13].mxu1  ;;  %1890 = vst [vmem:[#allocation2 + $0x30] sm:$0xff] (!%p5842_p10), %v8236_v41 }
 0x181   : > { %v8240_v45 = vpop.f32.mrb[14].mxu0  ;;  %v8242_v46 = vpop.f32.mrb[14].mxu1 }
 0x182   : > { %10631 = vst [vmem:[#allocation10_spill] sm:$0xff] %v8242_v46  ;;  %v1526_v47 = vpop.f32.mrb[15].mxu0  ;;  %v1718_v48 = vpop.f32.mrb[15].mxu1  ;;  %1891 = vst [vmem:[#allocation2 + $0x38] sm:$0xff] (!%p5842_p10), %v8240_v45 }
 0x187   : > { %v8244_v49 = vpop.f32.mrb[16].mxu0  ;;  %v8246_v50 = vpop.f32.mrb[16].mxu1 }
 0x188   : > { %10632 = vst [vmem:[#allocation11_spill] sm:$0xff] %v8246_v50  ;;  %v1531_v51 = vpop.f32.mrb[17].mxu0  ;;  %v1723_v52 = vpop.f32.mrb[17].mxu1  ;;  %1892 = vst [vmem:[#allocation2 + $0x40] sm:$0xff] (!%p5842_p10), %v8244_v49 }
 0x189   : > { %v8248_v53 = vpop.f32.mrb[18].mxu0  ;;  %v8250_v54 = vpop.f32.mrb[18].mxu1 }
 0x18a   : > { %10633 = vst [vmem:[#allocation12_spill] sm:$0xff] %v8250_v54  ;;  %v1534_v55 = vpop.f32.mrb[19].mxu0  ;;  %v1726_v56 = vpop.f32.mrb[19].mxu1  ;;  %1893 = vst [vmem:[#allocation2 + $0x48] sm:$0xff] (!%p5842_p10), %v8248_v53 }
 0x18f   : > { %v8252_v57 = vpop.f32.mrb[20].mxu0  ;;  %v8254_v58 = vpop.f32.mrb[20].mxu1 }
 0x190   : > { %10634 = vst [vmem:[#allocation13_spill] sm:$0xff] %v8254_v58  ;;  %v1539_v59 = vpop.f32.mrb[21].mxu0  ;;  %v1731_v60 = vpop.f32.mrb[21].mxu1  ;;  %1894 = vst [vmem:[#allocation2 + $0x50] sm:$0xff] (!%p5842_p10), %v8252_v57 }
 0x191   : > { %v8256_v61 = vpop.f32.mrb[22].mxu0  ;;  %v8258_v62 = vpop.f32.mrb[22].mxu1 }
 0x192   : > { %10635 = vst [vmem:[#allocation14_spill] sm:$0xff] %v8258_v62  ;;  %v1542_v63 = vpop.f32.mrb[23].mxu0  ;;  %v1734_v0 = vpop.f32.mrb[23].mxu1  ;;  %1895 = vst [vmem:[#allocation2 + $0x58] sm:$0xff] (!%p5842_p10), %v8256_v61 }
 0x197   : > { %v8260_v1 = vpop.f32.mrb[24].mxu0  ;;  %v8262_v2 = vpop.f32.mrb[24].mxu1 }
 0x198   : > { %10636 = vst [vmem:[#allocation15_spill] sm:$0xff] %v8262_v2  ;;  %v1547_v3 = vpop.f32.mrb[25].mxu0  ;;  %v1739_v4 = vpop.f32.mrb[25].mxu1  ;;  %1896 = vst [vmem:[#allocation2 + $0x60] sm:$0xff] (!%p5842_p10), %v8260_v1 }
 0x199   : > { %v8264_v5 = vpop.f32.mrb[26].mxu0  ;;  %v8266_v6 = vpop.f32.mrb[26].mxu1 }
 0x19a   : > { %10637 = vst [vmem:[#allocation16_spill] sm:$0xff] %v8266_v6  ;;  %v1550_v7 = vpop.f32.mrb[27].mxu0  ;;  %v1742_v8 = vpop.f32.mrb[27].mxu1  ;;  %1897 = vst [vmem:[#allocation2 + $0x68] sm:$0xff] (!%p5842_p10), %v8264_v5 }
 0x19f   : > { %v8268_v9 = vpop.f32.mrb[28].mxu0  ;;  %v8270_v10 = vpop.f32.mrb[28].mxu1 }
 0x1a0   : > { %10638 = vst [vmem:[#allocation17_spill] sm:$0xff] %v8270_v10  ;;  %v1555_v11 = vpop.f32.mrb[29].mxu0  ;;  %v1747_v12 = vpop.f32.mrb[29].mxu1  ;;  %1898 = vst [vmem:[#allocation2 + $0x70] sm:$0xff] (!%p5842_p10), %v8268_v9 }
 0x1a1   : > { %v8272_v13 = vpop.f32.mrb[30].mxu0  ;;  %v8274_v14 = vpop.f32.mrb[30].mxu1  ;;  %v10680_v26 = vld [vmem:[#allocation16_spill] sm:$0xff] (!%p5842_p10) }
 0x1a2   : > { %10639 = vst [vmem:[#allocation18_spill] sm:$0xff] %v8274_v14  ;;  %v1558_v15 = vpop.f32.mrb[31].mxu0  ;;  %v1750_v16 = vpop.f32.mrb[31].mxu1  ;;  %1899 = vst [vmem:[#allocation2 + $0x78] sm:$0xff] (!%p5842_p10), %v8272_v13 }
 0x1a3   : > { %1945 = vst [vmem:[#allocation2 + $0x1e8] sm:$0xff] (!%p5842_p10), %v10680_v26 }
 0x1a7   : > { %v8276_v19 = vpop.f32.mrb[32].mxu0  ;;  %v8278_v20 = vpop.f32.mrb[32].mxu1  ;;  %v10681_v30 = vld [vmem:[#allocation17_spill] sm:$0xff] (!%p5842_p10) }
 0x1a8   : > { %10640 = vst [vmem:[#allocation19_spill] sm:$0xff] %v8278_v20  ;;  %v1563_v23 = vpop.f32.mrb[33].mxu0  ;;  %v1755_v24 = vpop.f32.mrb[33].mxu1  ;;  %1900 = vst [vmem:[#allocation2 + $0x80] sm:$0xff] (!%p5842_p10), %v8276_v19 }
 0x1a9   : > { %v8280_v27 = vpop.f32.mrb[34].mxu0  ;;  %v8282_v28 = vpop.f32.mrb[34].mxu1  ;;  %1946 = vst [vmem:[#allocation2 + $0x1f0] sm:$0xff] (!%p5842_p10), %v10681_v30  ;;  %v10682_v34 = vld [vmem:[#allocation18_spill] sm:$0xff] (!%p5842_p10) }
 0x1aa   : > { %10641 = vst [vmem:[#allocation20_spill] sm:$0xff] %v8282_v28  ;;  %v1566_v31 = vpop.f32.mrb[35].mxu0  ;;  %v1758_v32 = vpop.f32.mrb[35].mxu1  ;;  %1901 = vst [vmem:[#allocation2 + $0x88] sm:$0xff] (!%p5842_p10), %v8280_v27 }
 0x1ab   : > { %1947 = vst [vmem:[#allocation2 + $0x1f8] sm:$0xff] (!%p5842_p10), %v10682_v34 }
 0x1af   : > { %v8284_v35 = vpop.f32.mrb[36].mxu0  ;;  %v8286_v36 = vpop.f32.mrb[36].mxu1 }
 0x1b0   : > { %10642 = vst [vmem:[#allocation21_spill] sm:$0xff] %v8286_v36  ;;  %v1571_v39 = vpop.f32.mrb[37].mxu0  ;;  %v1763_v40 = vpop.f32.mrb[37].mxu1  ;;  %1902 = vst [vmem:[#allocation2 + $0x90] sm:$0xff] (!%p5842_p10), %v8284_v35 }
 0x1b1   : > { %v8288_v43 = vpop.f32.mrb[38].mxu0  ;;  %v8290_v44 = vpop.f32.mrb[38].mxu1 }
 0x1b2   : > { %10643 = vst [vmem:[#allocation22_spill] sm:$0xff] %v8290_v44  ;;  %v1574_v47 = vpop.f32.mrb[39].mxu0  ;;  %v1766_v48 = vpop.f32.mrb[39].mxu1  ;;  %1903 = vst [vmem:[#allocation2 + $0x98] sm:$0xff] (!%p5842_p10), %v8288_v43 }
 0x1b7   : > { %v8292_v51 = vpop.f32.mrb[40].mxu0  ;;  %v8294_v52 = vpop.f32.mrb[40].mxu1 }
 0x1b8   : > { %10644 = vst [vmem:[#allocation23_spill] sm:$0xff] %v8294_v52  ;;  %v1579_v55 = vpop.f32.mrb[41].mxu0  ;;  %v1771_v56 = vpop.f32.mrb[41].mxu1  ;;  %1904 = vst [vmem:[#allocation2 + $0xa0] sm:$0xff] (!%p5842_p10), %v8292_v51 }
 0x1b9   : > { %v8296_v59 = vpop.f32.mrb[42].mxu0  ;;  %v8298_v60 = vpop.f32.mrb[42].mxu1 }
 0x1ba   : > { %10645 = vst [vmem:[#allocation24_spill] sm:$0xff] %v8298_v60  ;;  %v1582_v63 = vpop.f32.mrb[43].mxu0  ;;  %v1774_v0 = vpop.f32.mrb[43].mxu1  ;;  %1905 = vst [vmem:[#allocation2 + $0xa8] sm:$0xff] (!%p5842_p10), %v8296_v59 }
 0x1bf   : > { %v8300_v3 = vpop.f32.mrb[44].mxu0  ;;  %v8302_v4 = vpop.f32.mrb[44].mxu1 }
 0x1c0   : > { %10646 = vst [vmem:[#allocation25_spill] sm:$0xff] %v8302_v4  ;;  %v1587_v7 = vpop.f32.mrb[45].mxu0  ;;  %v1779_v8 = vpop.f32.mrb[45].mxu1  ;;  %1906 = vst [vmem:[#allocation2 + $0xb0] sm:$0xff] (!%p5842_p10), %v8300_v3 }
 0x1c1   : > { %v8304_v11 = vpop.f32.mrb[46].mxu0  ;;  %v8306_v12 = vpop.f32.mrb[46].mxu1 }
 0x1c2   : > { %10647 = vst [vmem:[#allocation26_spill] sm:$0xff] %v8306_v12  ;;  %v1590_v15 = vpop.f32.mrb[47].mxu0  ;;  %v1782_v16 = vpop.f32.mrb[47].mxu1  ;;  %1907 = vst [vmem:[#allocation2 + $0xb8] sm:$0xff] (!%p5842_p10), %v8304_v11 }
 0x1c7   : > { %v8308_v23 = vpop.f32.mrb[48].mxu0  ;;  %v8310_v24 = vpop.f32.mrb[48].mxu1 }
 0x1c8   : > { %10648 = vst [vmem:[#allocation27_spill] sm:$0xff] %v8310_v24  ;;  %v1595_v31 = vpop.f32.mrb[49].mxu0  ;;  %v1787_v32 = vpop.f32.mrb[49].mxu1  ;;  %1908 = vst [vmem:[#allocation2 + $0xc0] sm:$0xff] (!%p5842_p10), %v8308_v23 }
 0x1c9   : > { %v8312_v39 = vpop.f32.mrb[50].mxu0  ;;  %v8314_v40 = vpop.f32.mrb[50].mxu1 }
 0x1ca   : > { %10649 = vst [vmem:[#allocation28_spill] sm:$0xff] %v8314_v40  ;;  %v1598_v47 = vpop.f32.mrb[51].mxu0  ;;  %v1790_v48 = vpop.f32.mrb[51].mxu1  ;;  %1909 = vst [vmem:[#allocation2 + $0xc8] sm:$0xff] (!%p5842_p10), %v8312_v39 }
 0x1cf   : > { %v8316_v55 = vpop.f32.mrb[52].mxu0  ;;  %v8318_v56 = vpop.f32.mrb[52].mxu1  ;;  %v10691_v26 = vld [vmem:[#allocation27_spill] sm:$0xff] (!%p5842_p10) }
 0x1d0   : > { %10650 = vst [vmem:[#allocation29_spill] sm:$0xff] %v8318_v56  ;;  %v1603_v63 = vpop.f32.mrb[53].mxu0  ;;  %v1795_v0 = vpop.f32.mrb[53].mxu1  ;;  %1910 = vst [vmem:[#allocation2 + $0xd0] sm:$0xff] (!%p5842_p10), %v8316_v55 }
 0x1d1   : > { %v8320_v7 = vpop.f32.mrb[54].mxu0  ;;  %v8322_v8 = vpop.f32.mrb[54].mxu1  ;;  %1956 = vst [vmem:[#allocation2 + $0x240] sm:$0xff] (!%p5842_p10), %v10691_v26  ;;  %v10692_v30 = vld [vmem:[#allocation28_spill] sm:$0xff] (!%p5842_p10) }
 0x1d2   : > { %10651 = vst [vmem:[#allocation30_spill] sm:$0xff] %v8322_v8  ;;  %v1606_v15 = vpop.f32.mrb[55].mxu0  ;;  %v1798_v16 = vpop.f32.mrb[55].mxu1  ;;  %1911 = vst [vmem:[#allocation2 + $0xd8] sm:$0xff] (!%p5842_p10), %v8320_v7 }
 0x1d3   : > { %1957 = vst [vmem:[#allocation2 + $0x248] sm:$0xff] (!%p5842_p10), %v10692_v30 }
 0x1d7   : > { %v8324_v31 = vpop.f32.mrb[56].mxu0  ;;  %v8326_v32 = vpop.f32.mrb[56].mxu1  ;;  %v10693_v34 = vld [vmem:[#allocation29_spill] sm:$0xff] (!%p5842_p10) }
 0x1d8   : > { %10652 = vst [vmem:[#allocation31_spill] sm:$0xff] %v8326_v32  ;;  %v1611_v24 = vpop.f32.mrb[57].mxu0  ;;  %v1803_v40 = vpop.f32.mrb[57].mxu1  ;;  %1912 = vst [vmem:[#allocation2 + $0xe0] sm:$0xff] (!%p5842_p10), %v8324_v31 }
 0x1d9   : > { %v8328_v47 = vpop.f32.mrb[58].mxu0  ;;  %v8330_v48 = vpop.f32.mrb[58].mxu1  ;;  %1958 = vst [vmem:[#allocation2 + $0x250] sm:$0xff] (!%p5842_p10), %v10693_v34 }
 0x1da   : > { %10653 = vst [vmem:[#allocation32_spill] sm:$0xff] %v8330_v48  ;;  %v1614_v12 = vpop.f32.mrb[59].mxu0  ;;  %v1806_v56 = vpop.f32.mrb[59].mxu1  ;;  %1913 = vst [vmem:[#allocation2 + $0xe8] sm:$0xff] (!%p5842_p10), %v8328_v47 }
 0x1df   : > { %v8332_v63 = vpop.f32.mrb[60].mxu0  ;;  %v8334_v0 = vpop.f32.mrb[60].mxu1 }
 0x1e0   : > { %10654 = vst [vmem:[#allocation33_spill] sm:$0xff] %v8334_v0  ;;  %v1619_v4 = vpop.f32.mrb[61].mxu0  ;;  %v1811_v8 = vpop.f32.mrb[61].mxu1  ;;  %1914 = vst [vmem:[#allocation2 + $0xf0] sm:$0xff] (!%p5842_p10), %v8332_v63 }
 0x1e1   : > { %v8336_v15 = vpop.f32.mrb[62].mxu0  ;;  %v8338_v16 = vpop.f32.mrb[62].mxu1 }
 0x1e2   : > { %10655 = vst [vmem:[#allocation34_spill] sm:$0xff] %v8338_v16  ;;  %v1622_v60 = vpop.f32.mrb[63].mxu0  ;;  %v1814_v32 = vpop.f32.mrb[63].mxu1  ;;  %1915 = vst [vmem:[#allocation2 + $0xf8] sm:$0xff] (!%p5842_p10), %v8336_v15 }
 0x1e7   : > { %v8340_v24 = vpop.f32.mrb[64].mxu0  ;;  %v8342_v40 = vpop.f32.mrb[64].mxu1 }
 0x1e8   : > { %10656 = vst [vmem:[#allocation35_spill] sm:$0xff] %v8342_v40  ;;  %v1627_v52 = vpop.f32.mrb[65].mxu0  ;;  %v1819_v48 = vpop.f32.mrb[65].mxu1  ;;  %1916 = vst [vmem:[#allocation2 + $0x100] sm:$0xff] (!%p5842_p10), %v8340_v24 }
 0x1e9   : > { %v8344_v12 = vpop.f32.mrb[66].mxu0  ;;  %v8346_v56 = vpop.f32.mrb[66].mxu1 }
 0x1ea   : > { %10657 = vst [vmem:[#allocation36_spill] sm:$0xff] %v8346_v56  ;;  %v1630_v44 = vpop.f32.mrb[67].mxu0  ;;  %v1822_v0 = vpop.f32.mrb[67].mxu1  ;;  %1917 = vst [vmem:[#allocation2 + $0x108] sm:$0xff] (!%p5842_p10), %v8344_v12 }
 0x1ef   : > { %v8348_v4 = vpop.f32.mrb[68].mxu0  ;;  %v8350_v8 = vpop.f32.mrb[68].mxu1 }
 0x1f0   : > { %10658 = vst [vmem:[#allocation37_spill] sm:$0xff] %v8350_v8  ;;  %v1635_v36 = vpop.f32.mrb[69].mxu0  ;;  %v1827_v16 = vpop.f32.mrb[69].mxu1  ;;  %1918 = vst [vmem:[#allocation2 + $0x110] sm:$0xff] (!%p5842_p10), %v8348_v4 }
 0x1f1   : > { %v8352_v60 = vpop.f32.mrb[70].mxu0  ;;  %v8354_v32 = vpop.f32.mrb[70].mxu1 }
 0x1f2   : > { %10659 = vst [vmem:[#allocation38_spill] sm:$0xff] %v8354_v32  ;;  %v1638_v28 = vpop.f32.mrb[71].mxu0  ;;  %v1830_v40 = vpop.f32.mrb[71].mxu1  ;;  %1919 = vst [vmem:[#allocation2 + $0x118] sm:$0xff] (!%p5842_p10), %v8352_v60 }
 0x1f7   : > { %v8356_v52 = vpop.f32.mrb[72].mxu0  ;;  %v8358_v48 = vpop.f32.mrb[72].mxu1 }
 0x1f8   : > { %10660 = vst [vmem:[#allocation39_spill] sm:$0xff] %v8358_v48  ;;  %v1643_v20 = vpop.f32.mrb[73].mxu0  ;;  %v1835_v56 = vpop.f32.mrb[73].mxu1  ;;  %1920 = vst [vmem:[#allocation2 + $0x120] sm:$0xff] (!%p5842_p10), %v8356_v52 }
 0x1f9   : > { %v8360_v44 = vpop.f32.mrb[74].mxu0  ;;  %v8362_v0 = vpop.f32.mrb[74].mxu1  ;;  %v10702_v26 = vld [vmem:[#allocation38_spill] sm:$0xff] (!%p5842_p10) }
 0x1fa   : > { %10661 = vst [vmem:[#allocation40_spill] sm:$0xff] %v8362_v0  ;;  %v1646_v14 = vpop.f32.mrb[75].mxu0  ;;  %v1838_v8 = vpop.f32.mrb[75].mxu1  ;;  %1921 = vst [vmem:[#allocation2 + $0x128] sm:$0xff] (!%p5842_p10), %v8360_v44 }
 0x1fb   : > { %1967 = vst [vmem:[#allocation2 + $0x298] sm:$0xff] (!%p5842_p10), %v10702_v26 }
 0x1ff   : > { %v8364_v36 = vpop.f32.mrb[76].mxu0  ;;  %v8366_v16 = vpop.f32.mrb[76].mxu1  ;;  %v10703_v30 = vld [vmem:[#allocation39_spill] sm:$0xff] (!%p5842_p10) }
 0x200   : > { %10662 = vst [vmem:[#allocation41_spill] sm:$0xff] %v8366_v16  ;;  %v1651_v10 = vpop.f32.mrb[77].mxu0  ;;  %v1843_v32 = vpop.f32.mrb[77].mxu1  ;;  %1922 = vst [vmem:[#allocation2 + $0x130] sm:$0xff] (!%p5842_p10), %v8364_v36 }
 0x201   : > { %v8368_v28 = vpop.f32.mrb[78].mxu0  ;;  %v8370_v40 = vpop.f32.mrb[78].mxu1  ;;  %1968 = vst [vmem:[#allocation2 + $0x2a0] sm:$0xff] (!%p5842_p10), %v10703_v30  ;;  %v10704_v34 = vld [vmem:[#allocation40_spill] sm:$0xff] (!%p5842_p10) }
 0x202   : > { %10663 = vst [vmem:[#allocation42_spill] sm:$0xff] %v8370_v40  ;;  %v1654_v6 = vpop.f32.mrb[79].mxu0  ;;  %v1846_v48 = vpop.f32.mrb[79].mxu1  ;;  %1923 = vst [vmem:[#allocation2 + $0x138] sm:$0xff] (!%p5842_p10), %v8368_v28 }
 0x203   : > { %1969 = vst [vmem:[#allocation2 + $0x2a8] sm:$0xff] (!%p5842_p10), %v10704_v34 }
 0x207   : > { %v8372_v20 = vpop.f32.mrb[80].mxu0  ;;  %v8374_v56 = vpop.f32.mrb[80].mxu1 }
 0x208   : > { %10664 = vst [vmem:[#allocation43_spill] sm:$0xff] %v8374_v56  ;;  %v1659_v2 = vpop.f32.mrb[81].mxu0  ;;  %v1851_v0 = vpop.f32.mrb[81].mxu1  ;;  %1924 = vst [vmem:[#allocation2 + $0x140] sm:$0xff] (!%p5842_p10), %v8372_v20 }
 0x209   : > { %v8376_v14 = vpop.f32.mrb[82].mxu0  ;;  %v8378_v8 = vpop.f32.mrb[82].mxu1 }
 0x20a   : > { %10665 = vst [vmem:[#allocation44_spill] sm:$0xff] %v8378_v8  ;;  %v1662_v62 = vpop.f32.mrb[83].mxu0  ;;  %v1854_v16 = vpop.f32.mrb[83].mxu1  ;;  %1925 = vst [vmem:[#allocation2 + $0x148] sm:$0xff] (!%p5842_p10), %v8376_v14 }
 0x20f   : > { %v8380_v10 = vpop.f32.mrb[84].mxu0  ;;  %v8382_v32 = vpop.f32.mrb[84].mxu1 }
 0x210   : > { %10666 = vst [vmem:[#allocation45_spill] sm:$0xff] %v8382_v32  ;;  %v1667_v58 = vpop.f32.mrb[85].mxu0  ;;  %v1859_v40 = vpop.f32.mrb[85].mxu1  ;;  %1926 = vst [vmem:[#allocation2 + $0x150] sm:$0xff] (!%p5842_p10), %v8380_v10 }
 0x211   : > { %v8384_v6 = vpop.f32.mrb[86].mxu0  ;;  %v8386_v48 = vpop.f32.mrb[86].mxu1 }
 0x212   : > { %10667 = vst [vmem:[#allocation46_spill] sm:$0xff] %v8386_v48  ;;  %v1670_v54 = vpop.f32.mrb[87].mxu0  ;;  %v1862_v56 = vpop.f32.mrb[87].mxu1  ;;  %1927 = vst [vmem:[#allocation2 + $0x158] sm:$0xff] (!%p5842_p10), %v8384_v6 }
 0x217   : > { %v8388_v2 = vpop.f32.mrb[88].mxu0  ;;  %v8390_v0 = vpop.f32.mrb[88].mxu1 }
 0x218   : > { %10668 = vst [vmem:[#allocation47_spill] sm:$0xff] %v8390_v0  ;;  %v1675_v50 = vpop.f32.mrb[89].mxu0  ;;  %v1867_v8 = vpop.f32.mrb[89].mxu1  ;;  %1928 = vst [vmem:[#allocation2 + $0x160] sm:$0xff] (!%p5842_p10), %v8388_v2 }
 0x219   : > { %v8392_v62 = vpop.f32.mrb[90].mxu0  ;;  %v8394_v16 = vpop.f32.mrb[90].mxu1  ;;  %v10675_v50 = vld [vmem:[#allocation11_spill] sm:$0xff] (!%p5842_p10)  ;;  %v10676_v8 = vld [vmem:[#allocation12_spill] sm:$0xff] (!%p5842_p10) }
 0x21a   : > { %10669 = vst [vmem:[#allocation48_spill] sm:$0xff] %v8394_v16  ;;  %v1678_v46 = vpop.f32.mrb[91].mxu0  ;;  %v1870_v32 = vpop.f32.mrb[91].mxu1  ;;  %1929 = vst [vmem:[#allocation2 + $0x168] sm:$0xff] (!%p5842_p10), %v8392_v62 }
 0x21b   : > { %v10674_v46 = vld [vmem:[#allocation10_spill] sm:$0xff] (!%p5842_p10)  ;;  %1940 = vst [vmem:[#allocation2 + $0x1c0] sm:$0xff] (!%p5842_p10), %v10675_v50  ;;  %1941 = vst [vmem:[#allocation2 + $0x1c8] sm:$0xff] (!%p5842_p10), %v10676_v8  ;;  %v10677_v32 = vld [vmem:[#allocation13_spill] sm:$0xff] (!%p5842_p10) }
 0x21c   : > { %1883 = sbr.rel (%p5842_p10) target bundleno = 558 (0x22e), region = 90  ;;  %1939 = vst [vmem:[#allocation2 + $0x1b8] sm:$0xff] (!%p5842_p10), %v10674_v46  ;;  %1942 = vst [vmem:[#allocation2 + $0x1d0] sm:$0xff] (!%p5842_p10), %v10677_v32  ;;  %v10685_v46 = vld [vmem:[#allocation21_spill] sm:$0xff] (!%p5842_p10)  ;;  %v10686_v50 = vld [vmem:[#allocation22_spill] sm:$0xff] (!%p5842_p10) }
 0x21d   : > { %1950 = vst [vmem:[#allocation2 + $0x210] sm:$0xff] (!%p5842_p10), %v10685_v46  ;;  %1951 = vst [vmem:[#allocation2 + $0x218] sm:$0xff] (!%p5842_p10), %v10686_v50  ;;  %v10687_v8 = vld [vmem:[#allocation23_spill] sm:$0xff] (!%p5842_p10)  ;;  %v10688_v32 = vld [vmem:[#allocation24_spill] sm:$0xff] (!%p5842_p10) }
 0x21e   : > { %1952 = vst [vmem:[#allocation2 + $0x220] sm:$0xff] (!%p5842_p10), %v10687_v8  ;;  %1953 = vst [vmem:[#allocation2 + $0x228] sm:$0xff] (!%p5842_p10), %v10688_v32  ;;  %v10696_v46 = vld [vmem:[#allocation32_spill] sm:$0xff] (!%p5842_p10)  ;;  %v10697_v50 = vld [vmem:[#allocation33_spill] sm:$0xff] (!%p5842_p10) }
 0x21f   : > { %v8396_v58 = vpop.f32.mrb[92].mxu0  ;;  %v8398_v40 = vpop.f32.mrb[92].mxu1  ;;  %1961 = vst [vmem:[#allocation2 + $0x268] sm:$0xff] (!%p5842_p10), %v10696_v46  ;;  %1962 = vst [vmem:[#allocation2 + $0x270] sm:$0xff] (!%p5842_p10), %v10697_v50  ;;  %v10698_v8 = vld [vmem:[#allocation34_spill] sm:$0xff] (!%p5842_p10)  ;;  %v10699_v32 = vld [vmem:[#allocation35_spill] sm:$0xff] (!%p5842_p10) }
 0x220   : > { %10670 = vst [vmem:[#allocation49_spill] sm:$0xff] %v8398_v40  ;;  %v1683_v42 = vpop.f32.mrb[93].mxu0  ;;  %v1875_v48 = vpop.f32.mrb[93].mxu1  ;;  %1930 = vst [vmem:[#allocation2 + $0x170] sm:$0xff] (!%p5842_p10), %v8396_v58  ;;  %v10707_v46 = vld [vmem:[#allocation43_spill] sm:$0xff] (!%p5842_p10)  ;;  %v10708_v50 = vld [vmem:[#allocation44_spill] sm:$0xff] (!%p5842_p10) }
 0x221   : > { %v8400_v54 = vpop.f32.mrb[94].mxu0  ;;  %v8402_v56 = vpop.f32.mrb[94].mxu1  ;;  %v10673_v42 = vld [vmem:[#allocation9_spill] sm:$0xff] (!%p5842_p10)  ;;  %v10678_v48 = vld [vmem:[#allocation14_spill] sm:$0xff] (!%p5842_p10)  ;;  %1963 = vst [vmem:[#allocation2 + $0x278] sm:$0xff] (!%p5842_p10), %v10698_v8  ;;  %1964 = vst [vmem:[#allocation2 + $0x280] sm:$0xff] (!%p5842_p10), %v10699_v32 }
 0x222   : > { %10671 = vst [vmem:[#allocation50_spill] sm:$0xff] %v8402_v56  ;;  %v1686_v38 = vpop.f32.mrb[95].mxu0  ;;  %v1878_v0 = vpop.f32.mrb[95].mxu1  ;;  %1931 = vst [vmem:[#allocation2 + $0x178] sm:$0xff] (!%p5842_p10), %v8400_v54  ;;  %v10709_v8 = vld [vmem:[#allocation45_spill] sm:$0xff] (!%p5842_p10)  ;;  %v10710_v32 = vld [vmem:[#allocation46_spill] sm:$0xff] (!%p5842_p10) }
 0x223   : > { %v10672_v38 = vld [vmem:[#allocation8_spill] sm:$0xff]  ;;  %1938 = vst [vmem:[#allocation2 + $0x1b0] sm:$0xff] %v10673_v42  ;;  %1943 = vst [vmem:[#allocation2 + $0x1d8] sm:$0xff] %v10678_v48  ;;  %v10679_v0 = vld [vmem:[#allocation15_spill] sm:$0xff] }
 0x224   : > { %1937 = vst [vmem:[#allocation2 + $0x1a8] sm:$0xff] %v10672_v38  ;;  %1944 = vst [vmem:[#allocation2 + $0x1e0] sm:$0xff] %v10679_v0  ;;  %v10683_v38 = vld [vmem:[#allocation19_spill] sm:$0xff]  ;;  %v10684_v42 = vld [vmem:[#allocation20_spill] sm:$0xff] }
 0x225   : > { %1948 = vst [vmem:[#allocation2 + $0x200] sm:$0xff] %v10683_v38  ;;  %1949 = vst [vmem:[#allocation2 + $0x208] sm:$0xff] %v10684_v42  ;;  %v10689_v48 = vld [vmem:[#allocation25_spill] sm:$0xff]  ;;  %v10690_v0 = vld [vmem:[#allocation26_spill] sm:$0xff] }
 0x226   : > { %1954 = vst [vmem:[#allocation2 + $0x230] sm:$0xff] %v10689_v48  ;;  %1955 = vst [vmem:[#allocation2 + $0x238] sm:$0xff] %v10690_v0  ;;  %v10694_v38 = vld [vmem:[#allocation30_spill] sm:$0xff]  ;;  %v10695_v42 = vld [vmem:[#allocation31_spill] sm:$0xff] }
 0x227   : > { %1959 = vst [vmem:[#allocation2 + $0x258] sm:$0xff] %v10694_v38  ;;  %1960 = vst [vmem:[#allocation2 + $0x260] sm:$0xff] %v10695_v42  ;;  %v10700_v48 = vld [vmem:[#allocation36_spill] sm:$0xff]  ;;  %v10701_v0 = vld [vmem:[#allocation37_spill] sm:$0xff] }
 0x228   : > { %1965 = vst [vmem:[#allocation2 + $0x288] sm:$0xff] %v10700_v48  ;;  %1966 = vst [vmem:[#allocation2 + $0x290] sm:$0xff] %v10701_v0  ;;  %v10705_v38 = vld [vmem:[#allocation41_spill] sm:$0xff]  ;;  %v10706_v42 = vld [vmem:[#allocation42_spill] sm:$0xff] }
 0x229   : > { %1970 = vst [vmem:[#allocation2 + $0x2b0] sm:$0xff] %v10705_v38  ;;  %1971 = vst [vmem:[#allocation2 + $0x2b8] sm:$0xff] %v10706_v42  ;;  %v10711_v48 = vld [vmem:[#allocation47_spill] sm:$0xff] }
 0x22a   : > { %1972 = vst [vmem:[#allocation2 + $0x2c0] sm:$0xff] %v10707_v46  ;;  %1973 = vst [vmem:[#allocation2 + $0x2c8] sm:$0xff] %v10708_v50 }
 0x22b   : > { %1974 = vst [vmem:[#allocation2 + $0x2d0] sm:$0xff] %v10709_v8  ;;  %1975 = vst [vmem:[#allocation2 + $0x2d8] sm:$0xff] %v10710_v32 }
 0x22c   : > { %1976 = vst [vmem:[#allocation2 + $0x2e0] sm:$0xff] %v10711_v48  ;;  %1977 = vst [vmem:[#allocation2 + $0x2e8] sm:$0xff] %v8394_v16 }
 0x22d   : > { %1978 = vst [vmem:[#allocation2 + $0x2f0] sm:$0xff] %v8398_v40  ;;  %1979 = vst [vmem:[#allocation2 + $0x2f8] sm:$0xff] %v8402_v56 }
 0x22e PF: > { %p5843_p11 = scmp.eq.s32.totalorder %s7767_s26, 0 }
 0x22f   : > { %v1984_v0 = vld [vmem:[#allocation2] sm:$0xff] (!%p5843_p11)  ;;  %v1985_v26 = vld [vmem:[#allocation2 + $0x8] sm:$0xff] (!%p5843_p11)  ;;  %v1986_v30 = vld [vmem:[#allocation2 + $0x10] sm:$0xff] (!%p5843_p11) }
 0x230   : > { %1983 = sbr.rel (%p5843_p11) target bundleno = 622 (0x26e), region = 94  ;;  %v2080_v34 = vadd.f32 (!%p5843_p11), %v1984_v0, %v8212_v17  ;;  %v2081_v38 = vadd.f32 (!%p5843_p11), %v1985_v26, %v8216_v21  ;;  %v2082_v42 = vadd.f32 (!%p5843_p11), %v1986_v30, %v8220_v25  ;;  %v1987_v46 = vld [vmem:[#allocation2 + $0x18] sm:$0xff] (!%p5843_p11)  ;;  %v1988_v50 = vld [vmem:[#allocation2 + $0x20] sm:$0xff] (!%p5843_p11)  ;;  %v1989_v8 = vld [vmem:[#allocation2 + $0x28] sm:$0xff] (!%p5843_p11) }
 0x231   : > { %v2083_v32 = vadd.f32 (!%p5843_p11), %v1987_v46, %v8224_v29  ;;  %v2084_v48 = vadd.f32 (!%p5843_p11), %v1988_v50, %v8228_v33  ;;  %v2085_v56 = vadd.f32 (!%p5843_p11), %v1989_v8, %v8232_v37  ;;  %v1990_v40 = vld [vmem:[#allocation2 + $0x30] sm:$0xff] (!%p5843_p11)  ;;  %v1991_v16 = vld [vmem:[#allocation2 + $0x38] sm:$0xff] (!%p5843_p11)  ;;  %v1992_v22 = vld [vmem:[#allocation2 + $0x40] sm:$0xff] (!%p5843_p11) }
 0x232   : > { %2176 = vst [vmem:[#allocation2] sm:$0xff] (!%p5843_p11), %v2080_v34  ;;  %2177 = vst [vmem:[#allocation2 + $0x8] sm:$0xff] (!%p5843_p11), %v2081_v38  ;;  %v2086_v17 = vadd.f32 (!%p5843_p11), %v1990_v40, %v8236_v41  ;;  %v2087_v21 = vadd.f32 (!%p5843_p11), %v1991_v16, %v8240_v45  ;;  %v2088_v25 = vadd.f32 (!%p5843_p11), %v1992_v22, %v8244_v49  ;;  %v1993_v0 = vld [vmem:[#allocation2 + $0x48] sm:$0xff] (!%p5843_p11)  ;;  %v1994_v26 = vld [vmem:[#allocation2 + $0x50] sm:$0xff] (!%p5843_p11) }
 0x233   : > { %2178 = vst [vmem:[#allocation2 + $0x10] sm:$0xff] (!%p5843_p11), %v2082_v42  ;;  %v1995_v30 = vld [vmem:[#allocation2 + $0x58] sm:$0xff] (!%p5843_p11)  ;;  %2179 = vst [vmem:[#allocation2 + $0x18] sm:$0xff] (!%p5843_p11), %v2083_v32  ;;  %v2089_v29 = vadd.f32 (!%p5843_p11), %v1993_v0, %v8248_v53  ;;  %v2090_v33 = vadd.f32 (!%p5843_p11), %v1994_v26, %v8252_v57  ;;  %v1996_v34 = vld [vmem:[#allocation2 + $0x60] sm:$0xff] (!%p5843_p11) }
 0x234   : > { %2180 = vst [vmem:[#allocation2 + $0x20] sm:$0xff] (!%p5843_p11), %v2084_v48  ;;  %2181 = vst [vmem:[#allocation2 + $0x28] sm:$0xff] (!%p5843_p11), %v2085_v56  ;;  %v2091_v37 = vadd.f32 (!%p5843_p11), %v1995_v30, %v8256_v61  ;;  %v1997_v38 = vld [vmem:[#allocation2 + $0x68] sm:$0xff] (!%p5843_p11)  ;;  %v1998_v42 = vld [vmem:[#allocation2 + $0x70] sm:$0xff] (!%p5843_p11)  ;;  %v2092_v22 = vadd.f32 (!%p5843_p11), %v1996_v34, %v8260_v1 }
 0x235   : > { %2182 = vst [vmem:[#allocation2 + $0x30] sm:$0xff] (!%p5843_p11), %v2086_v17  ;;  %2183 = vst [vmem:[#allocation2 + $0x38] sm:$0xff] (!%p5843_p11), %v2087_v21  ;;  %v2093_v41 = vadd.f32 (!%p5843_p11), %v1997_v38, %v8264_v5  ;;  %v2094_v45 = vadd.f32 (!%p5843_p11), %v1998_v42, %v8268_v9  ;;  %v1999_v49 = vld [vmem:[#allocation2 + $0x78] sm:$0xff] (!%p5843_p11)  ;;  %v2000_v16 = vld [vmem:[#allocation2 + $0x80] sm:$0xff] (!%p5843_p11) }
 0x236   : > { %2184 = vst [vmem:[#allocation2 + $0x40] sm:$0xff] (!%p5843_p11), %v2088_v25  ;;  %v2001_v40 = vld [vmem:[#allocation2 + $0x88] sm:$0xff] (!%p5843_p11)  ;;  %2185 = vst [vmem:[#allocation2 + $0x48] sm:$0xff] (!%p5843_p11), %v2089_v29  ;;  %v2095_v53 = vadd.f32 (!%p5843_p11), %v1999_v49, %v8272_v13  ;;  %v2096_v57 = vadd.f32 (!%p5843_p11), %v2000_v16, %v8276_v19  ;;  %v2002_v56 = vld [vmem:[#allocation2 + $0x90] sm:$0xff] (!%p5843_p11) }
 0x237   : > { %2186 = vst [vmem:[#allocation2 + $0x50] sm:$0xff] %v2090_v33  ;;  %2187 = vst [vmem:[#allocation2 + $0x58] sm:$0xff] %v2091_v37  ;;  %v2097_v61 = vadd.f32 %v2001_v40, %v8280_v27  ;;  %v2003_v46 = vld [vmem:[#allocation2 + $0x98] sm:$0xff]  ;;  %v2004_v50 = vld [vmem:[#allocation2 + $0xa0] sm:$0xff]  ;;  %v2098_v1 = vadd.f32 %v2002_v56, %v8284_v35 }
 0x238   : > { %2188 = vst [vmem:[#allocation2 + $0x60] sm:$0xff] %v2092_v22  ;;  %2189 = vst [vmem:[#allocation2 + $0x68] sm:$0xff] %v2093_v41  ;;  %v2099_v5 = vadd.f32 %v2003_v46, %v8288_v43  ;;  %v2100_v9 = vadd.f32 %v2004_v50, %v8292_v51  ;;  %v2005_v8 = vld [vmem:[#allocation2 + $0xa8] sm:$0xff]  ;;  %v2006_v32 = vld [vmem:[#allocation2 + $0xb0] sm:$0xff] }
 0x239   : > { %2190 = vst [vmem:[#allocation2 + $0x70] sm:$0xff] %v2094_v45  ;;  %v2007_v48 = vld [vmem:[#allocation2 + $0xb8] sm:$0xff]  ;;  %2191 = vst [vmem:[#allocation2 + $0x78] sm:$0xff] %v2095_v53  ;;  %v2101_v13 = vadd.f32 %v2005_v8, %v8296_v59  ;;  %v2102_v19 = vadd.f32 %v2006_v32, %v8300_v3  ;;  %v2008_v17 = vld [vmem:[#allocation2 + $0xc0] sm:$0xff] }
 0x23a   : > { %2192 = vst [vmem:[#allocation2 + $0x80] sm:$0xff] %v2096_v57  ;;  %2193 = vst [vmem:[#allocation2 + $0x88] sm:$0xff] %v2097_v61  ;;  %v2103_v27 = vadd.f32 %v2007_v48, %v8304_v11  ;;  %v2009_v21 = vld [vmem:[#allocation2 + $0xc8] sm:$0xff]  ;;  %v2010_v25 = vld [vmem:[#allocation2 + $0xd0] sm:$0xff]  ;;  %v2104_v35 = vadd.f32 %v2008_v17, %v8308_v23 }
 0x23b   : > { %2194 = vst [vmem:[#allocation2 + $0x90] sm:$0xff] %v2098_v1  ;;  %2195 = vst [vmem:[#allocation2 + $0x98] sm:$0xff] %v2099_v5  ;;  %v2105_v43 = vadd.f32 %v2009_v21, %v8312_v39  ;;  %v2106_v51 = vadd.f32 %v2010_v25, %v8316_v55  ;;  %v2011_v0 = vld [vmem:[#allocation2 + $0xd8] sm:$0xff]  ;;  %v2012_v26 = vld [vmem:[#allocation2 + $0xe0] sm:$0xff] }
 0x23c   : > { %2196 = vst [vmem:[#allocation2 + $0xa0] sm:$0xff] %v2100_v9  ;;  %v2013_v30 = vld [vmem:[#allocation2 + $0xe8] sm:$0xff]  ;;  %2197 = vst [vmem:[#allocation2 + $0xa8] sm:$0xff] %v2101_v13  ;;  %v2107_v59 = vadd.f32 %v2011_v0, %v8320_v7  ;;  %v2108_v3 = vadd.f32 %v2012_v26, %v8324_v31  ;;  %v2014_v29 = vld [vmem:[#allocation2 + $0xf0] sm:$0xff] }
 0x23d   : > { %2198 = vst [vmem:[#allocation2 + $0xb0] sm:$0xff] %v2102_v19  ;;  %2199 = vst [vmem:[#allocation2 + $0xb8] sm:$0xff] %v2103_v27  ;;  %v2109_v11 = vadd.f32 %v2013_v30, %v8328_v47  ;;  %v2015_v33 = vld [vmem:[#allocation2 + $0xf8] sm:$0xff]  ;;  %v2016_v37 = vld [vmem:[#allocation2 + $0x100] sm:$0xff]  ;;  %v2110_v23 = vadd.f32 %v2014_v29, %v8332_v63 }
 0x23e   : > { %2200 = vst [vmem:[#allocation2 + $0xc0] sm:$0xff] %v2104_v35  ;;  %2201 = vst [vmem:[#allocation2 + $0xc8] sm:$0xff] %v2105_v43  ;;  %v2111_v39 = vadd.f32 %v2015_v33, %v8336_v15  ;;  %v2112_v55 = vadd.f32 %v2016_v37, %v8340_v24  ;;  %v2017_v34 = vld [vmem:[#allocation2 + $0x108] sm:$0xff]  ;;  %v2018_v38 = vld [vmem:[#allocation2 + $0x110] sm:$0xff] }
 0x23f   : > { %2202 = vst [vmem:[#allocation2 + $0xd0] sm:$0xff] %v2106_v51  ;;  %v2019_v42 = vld [vmem:[#allocation2 + $0x118] sm:$0xff]  ;;  %2203 = vst [vmem:[#allocation2 + $0xd8] sm:$0xff] %v2107_v59  ;;  %v2113_v7 = vadd.f32 %v2017_v34, %v8344_v12  ;;  %v2114_v31 = vadd.f32 %v2018_v38, %v8348_v4  ;;  %v2020_v22 = vld [vmem:[#allocation2 + $0x120] sm:$0xff] }
 0x240   : > { %2204 = vst [vmem:[#allocation2 + $0xe0] sm:$0xff] %v2108_v3  ;;  %2205 = vst [vmem:[#allocation2 + $0xe8] sm:$0xff] %v2109_v11  ;;  %v2115_v47 = vadd.f32 %v2019_v42, %v8352_v60  ;;  %v2021_v41 = vld [vmem:[#allocation2 + $0x128] sm:$0xff]  ;;  %v2022_v45 = vld [vmem:[#allocation2 + $0x130] sm:$0xff]  ;;  %v2116_v63 = vadd.f32 %v2020_v22, %v8356_v52 }
 0x241   : > { %2206 = vst [vmem:[#allocation2 + $0xf0] sm:$0xff] %v2110_v23  ;;  %2207 = vst [vmem:[#allocation2 + $0xf8] sm:$0xff] %v2111_v39  ;;  %v2117_v15 = vadd.f32 %v2021_v41, %v8360_v44  ;;  %v2118_v24 = vadd.f32 %v2022_v45, %v8364_v36  ;;  %v2023_v49 = vld [vmem:[#allocation2 + $0x138] sm:$0xff]  ;;  %v2024_v16 = vld [vmem:[#allocation2 + $0x140] sm:$0xff] }
 0x242   : > { %2208 = vst [vmem:[#allocation2 + $0x100] sm:$0xff] %v2112_v55  ;;  %v2025_v40 = vld [vmem:[#allocation2 + $0x148] sm:$0xff]  ;;  %2209 = vst [vmem:[#allocation2 + $0x108] sm:$0xff] %v2113_v7  ;;  %v2119_v12 = vadd.f32 %v2023_v49, %v8368_v28  ;;  %v2120_v4 = vadd.f32 %v2024_v16, %v8372_v20  ;;  %v2026_v53 = vld [vmem:[#allocation2 + $0x150] sm:$0xff] }
 0x243   : > { %2210 = vst [vmem:[#allocation2 + $0x110] sm:$0xff] %v2114_v31  ;;  %2211 = vst [vmem:[#allocation2 + $0x118] sm:$0xff] %v2115_v47  ;;  %v2121_v60 = vadd.f32 %v2025_v40, %v8376_v14  ;;  %v2027_v57 = vld [vmem:[#allocation2 + $0x158] sm:$0xff]  ;;  %v2028_v61 = vld [vmem:[#allocation2 + $0x160] sm:$0xff]  ;;  %v2122_v52 = vadd.f32 %v2026_v53, %v8380_v10 }
 0x244   : > { %2212 = vst [vmem:[#allocation2 + $0x120] sm:$0xff] %v2116_v63  ;;  %2213 = vst [vmem:[#allocation2 + $0x128] sm:$0xff] %v2117_v15  ;;  %v2123_v44 = vadd.f32 %v2027_v57, %v8384_v6  ;;  %v2124_v36 = vadd.f32 %v2028_v61, %v8388_v2  ;;  %v2029_v56 = vld [vmem:[#allocation2 + $0x168] sm:$0xff]  ;;  %v2030_v46 = vld [vmem:[#allocation2 + $0x170] sm:$0xff] }
 0x245   : > { %2214 = vst [vmem:[#allocation2 + $0x130] sm:$0xff] %v2118_v24  ;;  %v2031_v50 = vld [vmem:[#allocation2 + $0x178] sm:$0xff]  ;;  %2215 = vst [vmem:[#allocation2 + $0x138] sm:$0xff] %v2119_v12  ;;  %v2125_v28 = vadd.f32 %v2029_v56, %v8392_v62  ;;  %v2126_v20 = vadd.f32 %v2030_v46, %v8396_v58  ;;  %v2032_v1 = vld [vmem:[#allocation2 + $0x180] sm:$0xff] }
 0x246   : > { %2216 = vst [vmem:[#allocation2 + $0x140] sm:$0xff] %v2120_v4  ;;  %2217 = vst [vmem:[#allocation2 + $0x148] sm:$0xff] %v2121_v60  ;;  %v2127_v14 = vadd.f32 %v2031_v50, %v8400_v54  ;;  %v2033_v5 = vld [vmem:[#allocation2 + $0x188] sm:$0xff]  ;;  %v2034_v9 = vld [vmem:[#allocation2 + $0x190] sm:$0xff]  ;;  %v2128_v10 = vadd.f32 %v2032_v1, %v8214_v18 }
 0x247   : > { %2218 = vst [vmem:[#allocation2 + $0x150] sm:$0xff] %v2122_v52  ;;  %2219 = vst [vmem:[#allocation2 + $0x158] sm:$0xff] %v2123_v44  ;;  %v10712_v6 = vld [vmem:[#allocation4_spill] sm:$0xff]  ;;  %v10713_v8 = vld [vmem:[#allocation5_spill] sm:$0xff] }
 0x248   : > { %2220 = vst [vmem:[#allocation2 + $0x160] sm:$0xff] %v2124_v36  ;;  %v2129_v2 = vadd.f32 %v2033_v5, %v10712_v6  ;;  %v2130_v32 = vadd.f32 %v2034_v9, %v10713_v8  ;;  %v2035_v48 = vld [vmem:[#allocation2 + $0x198] sm:$0xff]  ;;  %v2036_v13 = vld [vmem:[#allocation2 + $0x1a0] sm:$0xff]  ;;  %v2037_v19 = vld [vmem:[#allocation2 + $0x1a8] sm:$0xff] }
 0x249   : > { %2221 = vst [vmem:[#allocation2 + $0x168] sm:$0xff] %v2125_v28  ;;  %2222 = vst [vmem:[#allocation2 + $0x170] sm:$0xff] %v2126_v20  ;;  %v10714_v62 = vld [vmem:[#allocation6_spill] sm:$0xff]  ;;  %v10715_v54 = vld [vmem:[#allocation7_spill] sm:$0xff] }
 0x24a   : > { %2223 = vst [vmem:[#allocation2 + $0x178] sm:$0xff] %v2127_v14  ;;  %v2131_v58 = vadd.f32 %v2035_v48, %v10714_v62  ;;  %v2132_v27 = vadd.f32 %v2036_v13, %v10715_v54  ;;  %v10716_v17 = vld [vmem:[#allocation8_spill] sm:$0xff]  ;;  %v2038_v25 = vld [vmem:[#allocation2 + $0x1b0] sm:$0xff]  ;;  %v2039_v35 = vld [vmem:[#allocation2 + $0x1b8] sm:$0xff] }
 0x24b   : > { %v2133_v21 = vadd.f32 %v2037_v19, %v10716_v17  ;;  %v2040_v43 = vld [vmem:[#allocation2 + $0x1c0] sm:$0xff]  ;;  %2224 = vst [vmem:[#allocation2 + $0x180] sm:$0xff] %v2128_v10  ;;  %2225 = vst [vmem:[#allocation2 + $0x188] sm:$0xff] %v2129_v2  ;;  %v10717_v18 = vld [vmem:[#allocation9_spill] sm:$0xff] }
 0x24c   : > { %2226 = vst [vmem:[#allocation2 + $0x190] sm:$0xff] %v2130_v32  ;;  %v2134_v51 = vadd.f32 %v2038_v25, %v10717_v18  ;;  %v10718_v0 = vld [vmem:[#allocation10_spill] sm:$0xff]  ;;  %v10719_v30 = vld [vmem:[#allocation11_spill] sm:$0xff]  ;;  %v2041_v3 = vld [vmem:[#allocation2 + $0x1c8] sm:$0xff] }
 0x24d   : > { %v2135_v26 = vadd.f32 %v2039_v35, %v10718_v0  ;;  %v2136_v59 = vadd.f32 %v2040_v43, %v10719_v30  ;;  %v2042_v11 = vld [vmem:[#allocation2 + $0x1d0] sm:$0xff]  ;;  %v2043_v29 = vld [vmem:[#allocation2 + $0x1d8] sm:$0xff]  ;;  %2227 = vst [vmem:[#allocation2 + $0x198] sm:$0xff] %v2131_v58  ;;  %2228 = vst [vmem:[#allocation2 + $0x1a0] sm:$0xff] %v2132_v27 }
 0x24e   : > { %2229 = vst [vmem:[#allocation2 + $0x1a8] sm:$0xff] %v2133_v21  ;;  %v10720_v33 = vld [vmem:[#allocation12_spill] sm:$0xff]  ;;  %v10721_v23 = vld [vmem:[#allocation13_spill] sm:$0xff]  ;;  %v10722_v55 = vld [vmem:[#allocation14_spill] sm:$0xff] }
 0x24f   : > { %v2137_v37 = vadd.f32 %v2041_v3, %v10720_v33  ;;  %v2138_v39 = vadd.f32 %v2042_v11, %v10721_v23  ;;  %v2139_v34 = vadd.f32 %v2043_v29, %v10722_v55  ;;  %v2044_v38 = vld [vmem:[#allocation2 + $0x1e0] sm:$0xff]  ;;  %v2045_v42 = vld [vmem:[#allocation2 + $0x1e8] sm:$0xff]  ;;  %v2046_v7 = vld [vmem:[#allocation2 + $0x1f0] sm:$0xff]  ;;  %2230 = vst [vmem:[#allocation2 + $0x1b0] sm:$0xff] %v2134_v51 }
 0x250   : > { %2231 = vst [vmem:[#allocation2 + $0x1b8] sm:$0xff] %v2135_v26  ;;  %2232 = vst [vmem:[#allocation2 + $0x1c0] sm:$0xff] %v2136_v59  ;;  %v10723_v31 = vld [vmem:[#allocation15_spill] sm:$0xff]  ;;  %v10724_v22 = vld [vmem:[#allocation16_spill] sm:$0xff] }
 0x251   : > { %v2140_v47 = vadd.f32 %v2044_v38, %v10723_v31  ;;  %v2141_v41 = vadd.f32 %v2045_v42, %v10724_v22  ;;  %v10725_v45 = vld [vmem:[#allocation17_spill] sm:$0xff]  ;;  %v2047_v15 = vld [vmem:[#allocation2 + $0x1f8] sm:$0xff]  ;;  %v2048_v24 = vld [vmem:[#allocation2 + $0x200] sm:$0xff]  ;;  %2233 = vst [vmem:[#allocation2 + $0x1c8] sm:$0xff] %v2137_v37 }
 0x252   : > { %v2142_v63 = vadd.f32 %v2046_v7, %v10725_v45  ;;  %v2049_v49 = vld [vmem:[#allocation2 + $0x208] sm:$0xff]  ;;  %2234 = vst [vmem:[#allocation2 + $0x1d0] sm:$0xff] %v2138_v39  ;;  %2235 = vst [vmem:[#allocation2 + $0x1d8] sm:$0xff] %v2139_v34  ;;  %v10726_v16 = vld [vmem:[#allocation18_spill] sm:$0xff] }
 0x253   : > { %v2143_v40 = vadd.f32 %v2047_v15, %v10726_v16  ;;  %v10727_v12 = vld [vmem:[#allocation19_spill] sm:$0xff]  ;;  %v10728_v60 = vld [vmem:[#allocation20_spill] sm:$0xff]  ;;  %v2050_v57 = vld [vmem:[#allocation2 + $0x210] sm:$0xff]  ;;  %2236 = vst [vmem:[#allocation2 + $0x1e0] sm:$0xff] %v2140_v47 }
 0x254   : > { %v2144_v4 = vadd.f32 %v2048_v24, %v10727_v12  ;;  %v2145_v53 = vadd.f32 %v2049_v49, %v10728_v60  ;;  %v2051_v61 = vld [vmem:[#allocation2 + $0x218] sm:$0xff]  ;;  %v2052_v52 = vld [vmem:[#allocation2 + $0x220] sm:$0xff]  ;;  %2237 = vst [vmem:[#allocation2 + $0x1e8] sm:$0xff] %v2141_v41  ;;  %2238 = vst [vmem:[#allocation2 + $0x1f0] sm:$0xff] %v2142_v63 }
 0x255   : > { %v10729_v44 = vld [vmem:[#allocation21_spill] sm:$0xff]  ;;  %v10730_v56 = vld [vmem:[#allocation22_spill] sm:$0xff]  ;;  %v10731_v50 = vld [vmem:[#allocation23_spill] sm:$0xff]  ;;  %2239 = vst [vmem:[#allocation2 + $0x1f8] sm:$0xff] %v2143_v40 }
 0x256   : > { %v2146_v36 = vadd.f32 %v2050_v57, %v10729_v44  ;;  %v2147_v46 = vadd.f32 %v2051_v61, %v10730_v56  ;;  %v2148_v28 = vadd.f32 %v2052_v52, %v10731_v50  ;;  %v2053_v20 = vld [vmem:[#allocation2 + $0x228] sm:$0xff]  ;;  %v2054_v14 = vld [vmem:[#allocation2 + $0x230] sm:$0xff]  ;;  %v2055_v1 = vld [vmem:[#allocation2 + $0x238] sm:$0xff]  ;;  %2240 = vst [vmem:[#allocation2 + $0x200] sm:$0xff] %v2144_v4 }
 0x257   : > { %2241 = vst [vmem:[#allocation2 + $0x208] sm:$0xff] %v2145_v53  ;;  %v10732_v5 = vld [vmem:[#allocation24_spill] sm:$0xff]  ;;  %v10733_v10 = vld [vmem:[#allocation25_spill] sm:$0xff]  ;;  %v10734_v2 = vld [vmem:[#allocation26_spill] sm:$0xff] }
 0x258   : > { %v2149_v9 = vadd.f32 %v2053_v20, %v10732_v5  ;;  %v2150_v6 = vadd.f32 %v2054_v14, %v10733_v10  ;;  %v2151_v8 = vadd.f32 %v2055_v1, %v10734_v2  ;;  %v2056_v32 = vld [vmem:[#allocation2 + $0x240] sm:$0xff]  ;;  %v2057_v48 = vld [vmem:[#allocation2 + $0x248] sm:$0xff]  ;;  %v2058_v13 = vld [vmem:[#allocation2 + $0x250] sm:$0xff]  ;;  %2242 = vst [vmem:[#allocation2 + $0x210] sm:$0xff] %v2146_v36 }
 0x259   : > { %2243 = vst [vmem:[#allocation2 + $0x218] sm:$0xff] %v2147_v46  ;;  %2244 = vst [vmem:[#allocation2 + $0x220] sm:$0xff] %v2148_v28  ;;  %v10735_v19 = vld [vmem:[#allocation27_spill] sm:$0xff]  ;;  %v10736_v58 = vld [vmem:[#allocation28_spill] sm:$0xff] }
 0x25a   : > { %v2152_v62 = vadd.f32 %v2056_v32, %v10735_v19  ;;  %v2153_v54 = vadd.f32 %v2057_v48, %v10736_v58  ;;  %v10737_v27 = vld [vmem:[#allocation29_spill] sm:$0xff]  ;;  %v2059_v21 = vld [vmem:[#allocation2 + $0x258] sm:$0xff]  ;;  %v2060_v25 = vld [vmem:[#allocation2 + $0x260] sm:$0xff]  ;;  %2245 = vst [vmem:[#allocation2 + $0x228] sm:$0xff] %v2149_v9 }
 0x25b   : > { %v2154_v17 = vadd.f32 %v2058_v13, %v10737_v27  ;;  %v2061_v35 = vld [vmem:[#allocation2 + $0x268] sm:$0xff]  ;;  %2246 = vst [vmem:[#allocation2 + $0x230] sm:$0xff] %v2150_v6  ;;  %2247 = vst [vmem:[#allocation2 + $0x238] sm:$0xff] %v2151_v8  ;;  %v10738_v43 = vld [vmem:[#allocation30_spill] sm:$0xff] }
 0x25c   : > { %v2155_v18 = vadd.f32 %v2059_v21, %v10738_v43  ;;  %v10739_v51 = vld [vmem:[#allocation31_spill] sm:$0xff]  ;;  %v10740_v26 = vld [vmem:[#allocation32_spill] sm:$0xff]  ;;  %v2062_v59 = vld [vmem:[#allocation2 + $0x270] sm:$0xff]  ;;  %2248 = vst [vmem:[#allocation2 + $0x240] sm:$0xff] %v2152_v62 }
 0x25d   : > { %v2156_v0 = vadd.f32 %v2060_v25, %v10739_v51  ;;  %v2157_v30 = vadd.f32 %v2061_v35, %v10740_v26  ;;  %v2063_v3 = vld [vmem:[#allocation2 + $0x278] sm:$0xff]  ;;  %v2064_v11 = vld [vmem:[#allocation2 + $0x280] sm:$0xff]  ;;  %2249 = vst [vmem:[#allocation2 + $0x248] sm:$0xff] %v2153_v54  ;;  %2250 = vst [vmem:[#allocation2 + $0x250] sm:$0xff] %v2154_v17 }
 0x25e   : > { %v10741_v29 = vld [vmem:[#allocation33_spill] sm:$0xff]  ;;  %v10742_v37 = vld [vmem:[#allocation34_spill] sm:$0xff]  ;;  %v10743_v39 = vld [vmem:[#allocation35_spill] sm:$0xff]  ;;  %2251 = vst [vmem:[#allocation2 + $0x258] sm:$0xff] %v2155_v18 }
 0x25f   : > { %v2158_v33 = vadd.f32 %v2062_v59, %v10741_v29  ;;  %v2159_v23 = vadd.f32 %v2063_v3, %v10742_v37  ;;  %v2160_v55 = vadd.f32 %v2064_v11, %v10743_v39  ;;  %v2065_v34 = vld [vmem:[#allocation2 + $0x288] sm:$0xff]  ;;  %v2066_v38 = vld [vmem:[#allocation2 + $0x290] sm:$0xff]  ;;  %v2067_v42 = vld [vmem:[#allocation2 + $0x298] sm:$0xff]  ;;  %2252 = vst [vmem:[#allocation2 + $0x260] sm:$0xff] %v2156_v0 }
 0x260   : > { %2253 = vst [vmem:[#allocation2 + $0x268] sm:$0xff] %v2157_v30  ;;  %v10744_v7 = vld [vmem:[#allocation36_spill] sm:$0xff]  ;;  %v10745_v47 = vld [vmem:[#allocation37_spill] sm:$0xff]  ;;  %v10746_v41 = vld [vmem:[#allocation38_spill] sm:$0xff] }
 0x261   : > { %v2161_v31 = vadd.f32 %v2065_v34, %v10744_v7  ;;  %v2162_v22 = vadd.f32 %v2066_v38, %v10745_v47  ;;  %v2163_v45 = vadd.f32 %v2067_v42, %v10746_v41  ;;  %v2068_v63 = vld [vmem:[#allocation2 + $0x2a0] sm:$0xff]  ;;  %v2069_v15 = vld [vmem:[#allocation2 + $0x2a8] sm:$0xff]  ;;  %v2070_v24 = vld [vmem:[#allocation2 + $0x2b0] sm:$0xff]  ;;  %2254 = vst [vmem:[#allocation2 + $0x270] sm:$0xff] %v2158_v33 }
 0x262   : > { %2255 = vst [vmem:[#allocation2 + $0x278] sm:$0xff] %v2159_v23  ;;  %2256 = vst [vmem:[#allocation2 + $0x280] sm:$0xff] %v2160_v55  ;;  %v10747_v49 = vld [vmem:[#allocation39_spill] sm:$0xff]  ;;  %v10748_v40 = vld [vmem:[#allocation40_spill] sm:$0xff] }
 0x263   : > { %v2164_v16 = vadd.f32 %v2068_v63, %v10747_v49  ;;  %v2165_v12 = vadd.f32 %v2069_v15, %v10748_v40  ;;  %v10749_v4 = vld [vmem:[#allocation41_spill] sm:$0xff]  ;;  %v2071_v53 = vld [vmem:[#allocation2 + $0x2b8] sm:$0xff]  ;;  %v2072_v57 = vld [vmem:[#allocation2 + $0x2c0] sm:$0xff]  ;;  %2257 = vst [vmem:[#allocation2 + $0x288] sm:$0xff] %v2161_v31 }
 0x264   : > { %v2166_v60 = vadd.f32 %v2070_v24, %v10749_v4  ;;  %v2073_v61 = vld [vmem:[#allocation2 + $0x2c8] sm:$0xff]  ;;  %2258 = vst [vmem:[#allocation2 + $0x290] sm:$0xff] %v2162_v22  ;;  %2259 = vst [vmem:[#allocation2 + $0x298] sm:$0xff] %v2163_v45  ;;  %v10750_v52 = vld [vmem:[#allocation42_spill] sm:$0xff] }
 0x265   : > { %v2167_v44 = vadd.f32 %v2071_v53, %v10750_v52  ;;  %v10751_v36 = vld [vmem:[#allocation43_spill] sm:$0xff]  ;;  %v10752_v46 = vld [vmem:[#allocation44_spill] sm:$0xff]  ;;  %v2074_v28 = vld [vmem:[#allocation2 + $0x2d0] sm:$0xff]  ;;  %2260 = vst [vmem:[#allocation2 + $0x2a0] sm:$0xff] %v2164_v16 }
 0x266   : > { %v2168_v56 = vadd.f32 %v2072_v57, %v10751_v36  ;;  %v2169_v50 = vadd.f32 %v2073_v61, %v10752_v46  ;;  %v2075_v20 = vld [vmem:[#allocation2 + $0x2d8] sm:$0xff]  ;;  %v2076_v14 = vld [vmem:[#allocation2 + $0x2e0] sm:$0xff]  ;;  %2261 = vst [vmem:[#allocation2 + $0x2a8] sm:$0xff] %v2165_v12  ;;  %2262 = vst [vmem:[#allocation2 + $0x2b0] sm:$0xff] %v2166_v60 }
 0x267   : > { %v10753_v1 = vld [vmem:[#allocation45_spill] sm:$0xff]  ;;  %v10754_v9 = vld [vmem:[#allocation46_spill] sm:$0xff]  ;;  %v10755_v6 = vld [vmem:[#allocation47_spill] sm:$0xff]  ;;  %2263 = vst [vmem:[#allocation2 + $0x2b8] sm:$0xff] %v2167_v44 }
 0x268   : > { %v2170_v5 = vadd.f32 %v2074_v28, %v10753_v1  ;;  %v2171_v10 = vadd.f32 %v2075_v20, %v10754_v9  ;;  %v2172_v2 = vadd.f32 %v2076_v14, %v10755_v6  ;;  %v2077_v8 = vld [vmem:[#allocation2 + $0x2e8] sm:$0xff]  ;;  %v2078_v32 = vld [vmem:[#allocation2 + $0x2f0] sm:$0xff]  ;;  %v2079_v48 = vld [vmem:[#allocation2 + $0x2f8] sm:$0xff]  ;;  %2264 = vst [vmem:[#allocation2 + $0x2c0] sm:$0xff] %v2168_v56 }
 0x269   : > { %2265 = vst [vmem:[#allocation2 + $0x2c8] sm:$0xff] %v2169_v50  ;;  %v10756_v13 = vld [vmem:[#allocation48_spill] sm:$0xff]  ;;  %v10757_v62 = vld [vmem:[#allocation49_spill] sm:$0xff]  ;;  %v10758_v54 = vld [vmem:[#allocation50_spill] sm:$0xff] }
 0x26a   : > { %v2173_v19 = vadd.f32 %v2077_v8, %v10756_v13  ;;  %v2174_v58 = vadd.f32 %v2078_v32, %v10757_v62  ;;  %v2175_v27 = vadd.f32 %v2079_v48, %v10758_v54  ;;  %2266 = vst [vmem:[#allocation2 + $0x2d0] sm:$0xff] %v2170_v5  ;;  %2267 = vst [vmem:[#allocation2 + $0x2d8] sm:$0xff] %v2171_v10 }
 0x26b   : > { %2268 = vst [vmem:[#allocation2 + $0x2e0] sm:$0xff] %v2172_v2 }
 0x26c   : > { %2269 = vst [vmem:[#allocation2 + $0x2e8] sm:$0xff] %v2173_v19  ;;  %2270 = vst [vmem:[#allocation2 + $0x2f0] sm:$0xff] %v2174_v58 }
 0x26d   : > { %2271 = vst [vmem:[#allocation2 + $0x2f8] sm:$0xff] %v2175_v27 }
 0x26e PF: > { %p5844_p12 = scmp.ne.s32.totalorder %s7767_s26, 2 }
 0x270   : > { %2275 = sbr.rel (%p5844_p12) target bundleno = 1434 (0x59a), region = 98 }
 0x277   : > { %v2580_v17 = vld [vmem:[%s10508_s4] sm:$0xff]  ;;  %v2581_v21 = vld [vmem:[%s10508_s4 + $0x8] sm:$0xff]  ;;  %v2582_v18 = vld [vmem:[%s10508_s4 + $0x10] sm:$0xff] }
 0x278   : > { %v2564_v25 = vld [vmem:[%s10507_s3] sm:$0xff]  ;;  %v7146_v35 = vpack.c.bf16 %v2581_v21, %v2580_v17  ;;  %v2565_v43 = vld [vmem:[%s10507_s3 + $0x8] sm:$0xff]  ;;  %v2583_v51 = vld [vmem:[%s10508_s4 + $0x18] sm:$0xff] }
 0x279   : > { %v7178_v0 = vpack.c.bf16 %v2565_v43, %v2564_v25  ;;  %v7150_v26 = vpack.c.bf16 %v2583_v51, %v2582_v18  ;;  %v2566_v30 = vld [vmem:[%s10507_s3 + $0x10] sm:$0xff]  ;;  %v2567_v59 = vld [vmem:[%s10507_s3 + $0x18] sm:$0xff]  ;;  %v2584_v3 = vld [vmem:[%s10508_s4 + $0x20] sm:$0xff] }
 0x27a   : > { %7147 = vmatprep.subr.bf16.mxu1 %v7146_v35  ;;  %v7182_v11 = vpack.c.bf16 %v2567_v59, %v2566_v30  ;;  %v2585_v29 = vld [vmem:[%s10508_s4 + $0x28] sm:$0xff]  ;;  %v2568_v33 = vld [vmem:[%s10507_s3 + $0x20] sm:$0xff]  ;;  %v2586_v55 = vld [vmem:[%s10508_s4 + $0x30] sm:$0xff] }
 0x27b   : > { %v2569_v37 = vld [vmem:[%s10507_s3 + $0x28] sm:$0xff]  ;;  %7179 = vmatprep.subr.bf16.mxu0 %v7178_v0  ;;  %7149 = vmatpush3.bf16.msra.mxu1 %v7146_v35  ;;  %v7154_v23 = vpack.c.bf16 %v2585_v29, %v2584_v3  ;;  %v2587_v34 = vld [vmem:[%s10508_s4 + $0x38] sm:$0xff]  ;;  %v2570_v38 = vld [vmem:[%s10507_s3 + $0x30] sm:$0xff] }
 0x27c   : > { %7181 = vmatpush3.bf16.msra.mxu0 %v7178_v0  ;;  %7151 = vmatprep.subr.bf16.mxu1 %v7150_v26  ;;  %v7186_v39 = vpack.c.bf16 %v2569_v37, %v2568_v33  ;;  %v2571_v42 = vld [vmem:[%s10507_s3 + $0x38] sm:$0xff]  ;;  %v7158_v7 = vpack.c.bf16 %v2587_v34, %v2586_v55  ;;  %v2588_v47 = vld [vmem:[%s10508_s4 + $0x40] sm:$0xff]  ;;  %v2589_v22 = vld [vmem:[%s10508_s4 + $0x48] sm:$0xff] }
 0x27d   : > { %7183 = vmatprep.subr.bf16.mxu0 %v7182_v11  ;;  %v7190_v31 = vpack.c.bf16 %v2571_v42, %v2570_v38  ;;  %v6045_v41 = vld [vmem:[%s10506_s2] sm:$0xff]   ;;  %v2573_v63 = vld [vmem:[%s10507_s3 + $0x48] sm:$0xff]  ;;  %v7162_v49 = vpack.c.bf16 %v2589_v22, %v2588_v47  ;;  %v2590_v40 = vld [vmem:[%s10508_s4 + $0x50] sm:$0xff] }
 0x27e   : > { %v2572_v45 = vld [vmem:[%s10507_s3 + $0x40] sm:$0xff]  ;;  %v6046_v15 = vunpack.c.l.bf16 %v6045_v41  ;;  %v2591_v12 = vld [vmem:[%s10508_s4 + $0x58] sm:$0xff]  ;;  %v2574_v4 = vld [vmem:[%s10507_s3 + $0x50] sm:$0xff]  ;;  %v6047_v10 = vunpack.c.h.bf16 %v6045_v41 }
 0x27f   : > { %7153 = vmatpush3.bf16.msra.mxu1 %v7150_v26  ;;  %v2468_v24 = vld [vmem:[#allocation2] sm:$0xff]  ;;  %v7194_v16 = vpack.c.bf16 %v2573_v63, %v2572_v45  ;;  %v2575_v60 = vld [vmem:[%s10507_s3 + $0x58] sm:$0xff]  ;;  %v7166_v53 = vpack.c.bf16 %v2591_v12, %v2590_v40  ;;  %v2593_v52 = vld [vmem:[%s10508_s4 + $0x68] sm:$0xff] }
 0x280   : > { %7185 = vmatpush3.bf16.msra.mxu0 %v7182_v11  ;;  %7155 = vmatprep.subr.bf16.mxu1 %v7154_v23  ;;  %v7198_v57 = vpack.c.bf16 %v2575_v60, %v2574_v4  ;;  %v2592_v61 = vld [vmem:[%s10508_s4 + $0x60] sm:$0xff]  ;;  %v2577_v36 = vld [vmem:[%s10507_s3 + $0x68] sm:$0xff]  ;;  %v2594_v50 = vld [vmem:[%s10508_s4 + $0x70] sm:$0xff] }
 0x281   : > { %7187 = vmatprep.subr.bf16.mxu0 %v7186_v39  ;;  %7002 = vmatprep.mubr.f32.mxu0 %v2468_v24  ;;  %v2576_v44 = vld [vmem:[%s10507_s3 + $0x60] sm:$0xff]  ;;  %v7170_v56 = vpack.c.bf16 %v2593_v52, %v2592_v61  ;;  %v2595_v28 = vld [vmem:[%s10508_s4 + $0x78] sm:$0xff]  ;;  %v2578_v20 = vld [vmem:[%s10507_s3 + $0x70] sm:$0xff] }
 0x282   : > { %6826 = vmatprep.mubr.f32.mxu1 %v6046_v15  ;;  %v7202_v46 = vpack.c.bf16 %v2577_v36, %v2576_v44  ;;  %v2579_v14 = vld [vmem:[%s10507_s3 + $0x78] sm:$0xff]  ;;  %v7174_v1 = vpack.c.bf16 %v2595_v28, %v2594_v50  ;;  %v6476_v9 = vld [vmem:[%s10506_s2 + $0x8] sm:$0xff]   ;;  %v6477_v8 = vld [vmem:[%s10506_s2 + $0x10] sm:$0xff]  }
 0x283   : > { %7157 = vmatpush3.bf16.msra.mxu1 %v7154_v23  ;;  %v7206_v5 = vpack.c.bf16 %v2579_v14, %v2578_v20  ;;  %v6050_v6 = vunpack.c.l.bf16 %v6476_v9  ;;  %v2469_v2 = vld [vmem:[#allocation2 + $0x8] sm:$0xff]  ;;  %v2470_v32 = vld [vmem:[#allocation2 + $0x10] sm:$0xff]  ;;  %v6051_v48 = vunpack.c.h.bf16 %v6476_v9  ;;  %v6054_v13 = vunpack.c.l.bf16 %v6477_v8  ;;  %v2471_v19 = vld [vmem:[#allocation2 + $0x18] sm:$0xff] }
 0x284   : > { %7189 = vmatpush3.bf16.msra.mxu0 %v7186_v39  ;;  %7159 = vmatprep.subr.bf16.mxu1 %v7158_v7  ;;  %v6478_v62 = vld [vmem:[%s10506_s2 + $0x18] sm:$0xff]   ;;  %v2472_v58 = vld [vmem:[#allocation2 + $0x20] sm:$0xff]  ;;  %v6055_v54 = vunpack.c.h.bf16 %v6477_v8  ;;  %v2473_v17 = vld [vmem:[#allocation2 + $0x28] sm:$0xff] }
 0x285   : > { %7191 = vmatprep.subr.bf16.mxu0 %v7190_v31  ;;  %v6058_v27 = vunpack.c.l.bf16 %v6478_v62  ;;  %v6479_v21 = vld [vmem:[%s10506_s2 + $0x20] sm:$0xff]   ;;  %v2474_v25 = vld [vmem:[#allocation2 + $0x30] sm:$0xff]  ;;  %v6059_v35 = vunpack.c.h.bf16 %v6478_v62  ;;  %v2475_v18 = vld [vmem:[#allocation2 + $0x38] sm:$0xff] }
 0x286   : > { %v6062_v43 = vunpack.c.l.bf16 %v6479_v21  ;;  %v6480_v51 = vld [vmem:[%s10506_s2 + $0x28] sm:$0xff]   ;;  %v2476_v0 = vld [vmem:[#allocation2 + $0x40] sm:$0xff]  ;;  %v6063_v26 = vunpack.c.h.bf16 %v6479_v21  ;;  %v6481_v3 = vld [vmem:[%s10506_s2 + $0x30] sm:$0xff]  }
 0x287   : > { %7161 = vmatpush3.bf16.msra.mxu1 %v7158_v7  ;;  %v6066_v30 = vunpack.c.l.bf16 %v6480_v51  ;;  %v2477_v59 = vld [vmem:[#allocation2 + $0x48] sm:$0xff]  ;;  %v2478_v11 = vld [vmem:[#allocation2 + $0x50] sm:$0xff]  ;;  %v6067_v29 = vunpack.c.h.bf16 %v6480_v51  ;;  %v6070_v33 = vunpack.c.l.bf16 %v6481_v3  ;;  %v2479_v37 = vld [vmem:[#allocation2 + $0x58] sm:$0xff]  ;;  %v6071_v55 = vunpack.c.h.bf16 %v6481_v3 }
 0x288   : > { %7193 = vmatpush3.bf16.msra.mxu0 %v7190_v31  ;;  %7163 = vmatprep.subr.bf16.mxu1 %v7162_v49  ;;  %v6482_v23 = vld [vmem:[%s10506_s2 + $0x38] sm:$0xff]   ;;  %v2480_v39 = vld [vmem:[#allocation2 + $0x60] sm:$0xff]  ;;  %v2481_v38 = vld [vmem:[#allocation2 + $0x68] sm:$0xff] }
 0x289   : > { %7195 = vmatprep.subr.bf16.mxu0 %v7194_v16  ;;  %v6074_v34 = vunpack.c.l.bf16 %v6482_v23  ;;  %v6483_v42 = vld [vmem:[%s10506_s2 + $0x40] sm:$0xff]   ;;  %v2482_v7 = vld [vmem:[#allocation2 + $0x70] sm:$0xff]  ;;  %v6075_v31 = vunpack.c.h.bf16 %v6482_v23  ;;  %v2483_v22 = vld [vmem:[#allocation2 + $0x78] sm:$0xff] }
 0x28a   : > { %v6078_v47 = vunpack.c.l.bf16 %v6483_v42  ;;  %v6484_v41 = vld [vmem:[%s10506_s2 + $0x48] sm:$0xff]   ;;  %v2484_v45 = vld [vmem:[#allocation2 + $0x80] sm:$0xff]  ;;  %v6079_v63 = vunpack.c.h.bf16 %v6483_v42  ;;  %v2487_v4 = vld [vmem:[#allocation2 + $0x98] sm:$0xff] }
 0x28b   : > { %7165 = vmatpush3.bf16.msra.mxu1 %v7162_v49  ;;  %v6082_v15 = vunpack.c.l.bf16 %v6484_v41  ;;  %v2485_v24 = vld [vmem:[#allocation2 + $0x88] sm:$0xff]  ;;  %v6485_v49 = vld [vmem:[%s10506_s2 + $0x50] sm:$0xff]   ;;  %v6083_v40 = vunpack.c.h.bf16 %v6484_v41  ;;  %v6486_v60 = vld [vmem:[%s10506_s2 + $0x58] sm:$0xff]  }
 0x28c   : > { %7197 = vmatpush3.bf16.msra.mxu0 %v7194_v16  ;;  %7167 = vmatprep.subr.bf16.mxu1 %v7166_v53  ;;  %v2486_v16 = vld [vmem:[#allocation2 + $0x90] sm:$0xff]  ;;  %v6086_v12 = vunpack.c.l.bf16 %v6485_v49  ;;  %v6090_v61 = vunpack.c.l.bf16 %v6486_v60  ;;  %v2489_v52 = vld [vmem:[#allocation2 + $0xa8] sm:$0xff]  ;;  %v6487_v44 = vld [vmem:[%s10506_s2 + $0x60] sm:$0xff]  }
 0x28d   : > { %7199 = vmatprep.subr.bf16.mxu0 %v7198_v57  ;;  %v2490_v36 = vld [vmem:[#allocation2 + $0xb0] sm:$0xff]  ;;  %v2491_v50 = vld [vmem:[#allocation2 + $0xb8] sm:$0xff]  ;;  %v6488_v28 = vld [vmem:[%s10506_s2 + $0x68] sm:$0xff]   ;;  %v6095_v14 = vunpack.c.h.bf16 %v6487_v44 }
 0x28e   : > { %v2492_v20 = vld [vmem:[#allocation2 + $0xc0] sm:$0xff]  ;;  %v6489_v9 = vld [vmem:[%s10506_s2 + $0x70] sm:$0xff]   ;;  %v2495_v8 = vld [vmem:[#allocation2 + $0xd8] sm:$0xff] }
 0x28f   : > { %7169 = vmatpush3.bf16.msra.mxu1 %v7166_v53  ;;  %v2488_v53 = vld [vmem:[#allocation2 + $0xa0] sm:$0xff]  ;;  %v2497_v62 = vld [vmem:[#allocation2 + $0xe8] sm:$0xff]  ;;  %v2499_v21 = vld [vmem:[#allocation2 + $0xf8] sm:$0xff] }
 0x290   : > { %7201 = vmatpush3.bf16.msra.mxu0 %v7198_v57  ;;  %7171 = vmatprep.subr.bf16.mxu1 %v7170_v56  ;;  %v6087_v57 = vunpack.c.h.bf16 %v6485_v49  ;;  %v2501_v51 = vld [vmem:[#allocation2 + $0x108] sm:$0xff]  ;;  %v2503_v3 = vld [vmem:[#allocation2 + $0x118] sm:$0xff] }
 0x291   : > { %7203 = vmatprep.subr.bf16.mxu0 %v7202_v46  ;;  %v2505_v23 = vld [vmem:[#allocation2 + $0x128] sm:$0xff]  ;;  %v2507_v42 = vld [vmem:[#allocation2 + $0x138] sm:$0xff] }
 0x292   : > { %v2509_v41 = vld [vmem:[#allocation2 + $0x148] sm:$0xff]  ;;  %v2511_v49 = vld [vmem:[#allocation2 + $0x158] sm:$0xff] }
 0x293   : > { %7173 = vmatpush3.bf16.msra.mxu1 %v7170_v56  ;;  %v6091_v56 = vunpack.c.h.bf16 %v6486_v60  ;;  %v2513_v60 = vld [vmem:[#allocation2 + $0x168] sm:$0xff] }
 0x294   : > { %7205 = vmatpush3.bf16.msra.mxu0 %v7202_v46  ;;  %7175 = vmatprep.subr.bf16.mxu1 %v7174_v1  ;;  %v6094_v46 = vunpack.c.l.bf16 %v6487_v44  ;;  %v2515_v44 = vld [vmem:[#allocation2 + $0x178] sm:$0xff] }
 0x295   : > { %7207 = vmatprep.subr.bf16.mxu0 %v7206_v5 }
 0x297   : > { %7177 = vmatpush3.bf16.msra.mxu1 %v7174_v1  ;;  %v6098_v1 = vunpack.c.l.bf16 %v6488_v28 }
 0x298   : > { %7209 = vmatpush3.bf16.msra.mxu0 %v7206_v5  ;;  %v2493_v5 = vld [vmem:[#allocation2 + $0xc8] sm:$0xff] }
 0x29a   : > { %6827 = vmatmul.mubr.f32.vlgmr.msra.gmra.mrb[0].mxu1 %v6047_v10  ;;  %v2494_v10 = vld [vmem:[#allocation2 + $0xd0] sm:$0xff] }
 0x29b   : > { %7003 = vmatmul.mubr.f32.vlgmr.msra.gmra.mrb[0].mxu0 %v2469_v2  ;;  %6829 = vmatprep.mubr.f32.mxu1 %v6050_v6  ;;  %v6099_v6 = vunpack.c.h.bf16 %v6488_v28  ;;  %v6102_v2 = vunpack.c.l.bf16 %v6489_v9  ;;  %v2517_v28 = vld [vmem:[#allocation2 + $0x188] sm:$0xff] }
 0x29c   : > { %7005 = vmatprep.mubr.f32.mxu0 %v2470_v32  ;;  %v6490_v32 = vld [vmem:[%s10506_s2 + $0x78] sm:$0xff]  }
 0x29e   : > { %6830 = vmatmul.mubr.f32.gmra.mrb[2].mxu1 %v6051_v48  ;;  %v2496_v48 = vld [vmem:[#allocation2 + $0xe0] sm:$0xff] }
 0x29f   : > { %7006 = vmatmul.mubr.f32.gmra.mrb[2].mxu0 %v2471_v19  ;;  %6832 = vmatprep.mubr.f32.mxu1 %v6054_v13  ;;  %v6103_v13 = vunpack.c.h.bf16 %v6489_v9  ;;  %v6106_v19 = vunpack.c.l.bf16 %v6490_v32  ;;  %v2519_v9 = vld [vmem:[#allocation2 + $0x198] sm:$0xff] }
 0x2a0   : > { %7008 = vmatprep.mubr.f32.mxu0 %v2472_v58  ;;  %v6491_v58 = vld [vmem:[%s10506_s2 + $0x80] sm:$0xff]  }
 0x2a2   : > { %6833 = vmatmul.mubr.f32.gmra.mrb[4].mxu1 %v6055_v54  ;;  %v2498_v54 = vld [vmem:[#allocation2 + $0xf0] sm:$0xff] }
 0x2a3   : > { %7009 = vmatmul.mubr.f32.gmra.mrb[4].mxu0 %v2473_v17  ;;  %6835 = vmatprep.mubr.f32.mxu1 %v6058_v27  ;;  %v6107_v27 = vunpack.c.h.bf16 %v6490_v32  ;;  %v6110_v17 = vunpack.c.l.bf16 %v6491_v58  ;;  %v2521_v32 = vld [vmem:[#allocation2 + $0x1a8] sm:$0xff] }
 0x2a4   : > { %7011 = vmatprep.mubr.f32.mxu0 %v2474_v25  ;;  %v6492_v25 = vld [vmem:[%s10506_s2 + $0x88] sm:$0xff]  }
 0x2a6   : > { %6836 = vmatmul.mubr.f32.gmra.mrb[6].mxu1 %v6059_v35  ;;  %v2500_v35 = vld [vmem:[#allocation2 + $0x100] sm:$0xff] }
 0x2a7   : > { %7012 = vmatmul.mubr.f32.gmra.mrb[6].mxu0 %v2475_v18  ;;  %6838 = vmatprep.mubr.f32.mxu1 %v6062_v43  ;;  %v6111_v43 = vunpack.c.h.bf16 %v6491_v58  ;;  %v6114_v18 = vunpack.c.l.bf16 %v6492_v25  ;;  %v2523_v58 = vld [vmem:[#allocation2 + $0x1b8] sm:$0xff] }
 0x2a8   : > { %7014 = vmatprep.mubr.f32.mxu0 %v2476_v0  ;;  %v6493_v0 = vld [vmem:[%s10506_s2 + $0x90] sm:$0xff]  }
 0x2aa   : > { %6839 = vmatmul.mubr.f32.gmra.mrb[8].mxu1 %v6063_v26  ;;  %v2502_v26 = vld [vmem:[#allocation2 + $0x110] sm:$0xff] }
 0x2ab   : > { %7015 = vmatmul.mubr.f32.gmra.mrb[8].mxu0 %v2477_v59  ;;  %6841 = vmatprep.mubr.f32.mxu1 %v6066_v30  ;;  %v6115_v30 = vunpack.c.h.bf16 %v6492_v25  ;;  %v6118_v59 = vunpack.c.l.bf16 %v6493_v0  ;;  %v2525_v25 = vld [vmem:[#allocation2 + $0x1c8] sm:$0xff] }
 0x2ac   : > { %7017 = vmatprep.mubr.f32.mxu0 %v2478_v11  ;;  %v6494_v11 = vld [vmem:[%s10506_s2 + $0x98] sm:$0xff]  }
 0x2ae   : > { %6842 = vmatmul.mubr.f32.gmra.mrb[10].mxu1 %v6067_v29  ;;  %v2504_v29 = vld [vmem:[#allocation2 + $0x120] sm:$0xff] }
 0x2af   : > { %7018 = vmatmul.mubr.f32.gmra.mrb[10].mxu0 %v2479_v37  ;;  %6844 = vmatprep.mubr.f32.mxu1 %v6070_v33  ;;  %v6119_v33 = vunpack.c.h.bf16 %v6493_v0  ;;  %v6122_v37 = vunpack.c.l.bf16 %v6494_v11  ;;  %v2527_v0 = vld [vmem:[#allocation2 + $0x1d8] sm:$0xff] }
 0x2b0   : > { %7020 = vmatprep.mubr.f32.mxu0 %v2480_v39  ;;  %v6495_v39 = vld [vmem:[%s10506_s2 + $0xa0] sm:$0xff]  }
 0x2b2   : > { %6845 = vmatmul.mubr.f32.gmra.mrb[12].mxu1 %v6071_v55  ;;  %v2506_v55 = vld [vmem:[#allocation2 + $0x130] sm:$0xff] }
 0x2b3   : > { %7021 = vmatmul.mubr.f32.gmra.mrb[12].mxu0 %v2481_v38  ;;  %6847 = vmatprep.mubr.f32.mxu1 %v6074_v34  ;;  %v6123_v34 = vunpack.c.h.bf16 %v6494_v11  ;;  %v6126_v38 = vunpack.c.l.bf16 %v6495_v39  ;;  %v2529_v11 = vld [vmem:[#allocation2 + $0x1e8] sm:$0xff] }
 0x2b4   : > { %7023 = vmatprep.mubr.f32.mxu0 %v2482_v7  ;;  %v6496_v7 = vld [vmem:[%s10506_s2 + $0xa8] sm:$0xff]  }
 0x2b6   : > { %6848 = vmatmul.mubr.f32.gmra.mrb[14].mxu1 %v6075_v31  ;;  %v2508_v31 = vld [vmem:[#allocation2 + $0x140] sm:$0xff] }
 0x2b7   : > { %7024 = vmatmul.mubr.f32.gmra.mrb[14].mxu0 %v2483_v22  ;;  %6850 = vmatprep.mubr.f32.mxu1 %v6078_v47  ;;  %v6127_v47 = vunpack.c.h.bf16 %v6495_v39  ;;  %v6130_v22 = vunpack.c.l.bf16 %v6496_v7  ;;  %v2531_v39 = vld [vmem:[#allocation2 + $0x1f8] sm:$0xff] }
 0x2b8   : > { %7026 = vmatprep.mubr.f32.mxu0 %v2484_v45  ;;  %v6497_v45 = vld [vmem:[%s10506_s2 + $0xb0] sm:$0xff]  }
 0x2ba   : > { %6851 = vmatmul.mubr.f32.gmra.mrb[16].mxu1 %v6079_v63  ;;  %v2510_v63 = vld [vmem:[#allocation2 + $0x150] sm:$0xff] }
 0x2bb   : > { %7027 = vmatmul.mubr.f32.gmra.mrb[16].mxu0 %v2485_v24  ;;  %6853 = vmatprep.mubr.f32.mxu1 %v6082_v15  ;;  %v6131_v15 = vunpack.c.h.bf16 %v6496_v7  ;;  %v6134_v24 = vunpack.c.l.bf16 %v6497_v45  ;;  %v2533_v7 = vld [vmem:[#allocation2 + $0x208] sm:$0xff] }
 0x2bc   : > { %7029 = vmatprep.mubr.f32.mxu0 %v2486_v16  ;;  %v6498_v16 = vld [vmem:[%s10506_s2 + $0xb8] sm:$0xff]  }
 0x2be   : > { %6854 = vmatmul.mubr.f32.gmra.mrb[18].mxu1 %v6083_v40  ;;  %v2512_v40 = vld [vmem:[#allocation2 + $0x160] sm:$0xff] }
 0x2bf   : > { %7030 = vmatmul.mubr.f32.gmra.mrb[18].mxu0 %v2487_v4  ;;  %6856 = vmatprep.mubr.f32.mxu1 %v6086_v12  ;;  %v6135_v12 = vunpack.c.h.bf16 %v6497_v45  ;;  %v6138_v4 = vunpack.c.l.bf16 %v6498_v16  ;;  %v2535_v45 = vld [vmem:[#allocation2 + $0x218] sm:$0xff] }
 0x2c0   : > { %7032 = vmatprep.mubr.f32.mxu0 %v2488_v53  ;;  %v6499_v53 = vld [vmem:[%s10506_s2 + $0xc0] sm:$0xff]  }
 0x2c2   : > { %6857 = vmatmul.mubr.f32.gmra.mrb[20].mxu1 %v6087_v57  ;;  %v2514_v57 = vld [vmem:[#allocation2 + $0x170] sm:$0xff] }
 0x2c3   : > { %7033 = vmatmul.mubr.f32.gmra.mrb[20].mxu0 %v2489_v52  ;;  %6859 = vmatprep.mubr.f32.mxu1 %v6090_v61  ;;  %v6139_v61 = vunpack.c.h.bf16 %v6498_v16  ;;  %v6142_v52 = vunpack.c.l.bf16 %v6499_v53  ;;  %v2537_v16 = vld [vmem:[#allocation2 + $0x228] sm:$0xff] }
 0x2c4   : > { %7035 = vmatprep.mubr.f32.mxu0 %v2490_v36  ;;  %v6500_v36 = vld [vmem:[%s10506_s2 + $0xc8] sm:$0xff]  }
 0x2c6   : > { %6860 = vmatmul.mubr.f32.gmra.mrb[22].mxu1 %v6091_v56  ;;  %v2516_v56 = vld [vmem:[#allocation2 + $0x180] sm:$0xff] }
 0x2c7   : > { %7036 = vmatmul.mubr.f32.gmra.mrb[22].mxu0 %v2491_v50  ;;  %6862 = vmatprep.mubr.f32.mxu1 %v6094_v46  ;;  %v6143_v46 = vunpack.c.h.bf16 %v6499_v53  ;;  %v6146_v50 = vunpack.c.l.bf16 %v6500_v36  ;;  %v2539_v53 = vld [vmem:[#allocation2 + $0x238] sm:$0xff] }
 0x2c8   : > { %7038 = vmatprep.mubr.f32.mxu0 %v2492_v20  ;;  %v6501_v20 = vld [vmem:[%s10506_s2 + $0xd0] sm:$0xff]  }
 0x2ca   : > { %6863 = vmatmul.mubr.f32.gmra.mrb[24].mxu1 %v6095_v14  ;;  %v2518_v14 = vld [vmem:[#allocation2 + $0x190] sm:$0xff] }
 0x2cb   : > { %7039 = vmatmul.mubr.f32.gmra.mrb[24].mxu0 %v2493_v5  ;;  %6865 = vmatprep.mubr.f32.mxu1 %v6098_v1  ;;  %v6147_v1 = vunpack.c.h.bf16 %v6500_v36  ;;  %v6150_v5 = vunpack.c.l.bf16 %v6501_v20  ;;  %v2541_v36 = vld [vmem:[#allocation2 + $0x248] sm:$0xff] }
 0x2cc   : > { %7041 = vmatprep.mubr.f32.mxu0 %v2494_v10  ;;  %v6502_v10 = vld [vmem:[%s10506_s2 + $0xd8] sm:$0xff]  }
 0x2ce   : > { %6866 = vmatmul.mubr.f32.gmra.mrb[26].mxu1 %v6099_v6  ;;  %v2520_v6 = vld [vmem:[#allocation2 + $0x1a0] sm:$0xff] }
 0x2cf   : > { %7042 = vmatmul.mubr.f32.gmra.mrb[26].mxu0 %v2495_v8  ;;  %6868 = vmatprep.mubr.f32.mxu1 %v6102_v2  ;;  %v6151_v2 = vunpack.c.h.bf16 %v6501_v20  ;;  %v6154_v8 = vunpack.c.l.bf16 %v6502_v10  ;;  %v2543_v20 = vld [vmem:[#allocation2 + $0x258] sm:$0xff] }
 0x2d0   : > { %7044 = vmatprep.mubr.f32.mxu0 %v2496_v48  ;;  %v6503_v48 = vld [vmem:[%s10506_s2 + $0xe0] sm:$0xff]  }
 0x2d2   : > { %6869 = vmatmul.mubr.f32.gmra.mrb[28].mxu1 %v6103_v13  ;;  %v2522_v13 = vld [vmem:[#allocation2 + $0x1b0] sm:$0xff] }
 0x2d3   : > { %7045 = vmatmul.mubr.f32.gmra.mrb[28].mxu0 %v2497_v62  ;;  %6871 = vmatprep.mubr.f32.mxu1 %v6106_v19  ;;  %v6155_v19 = vunpack.c.h.bf16 %v6502_v10  ;;  %v6158_v62 = vunpack.c.l.bf16 %v6503_v48  ;;  %v2545_v10 = vld [vmem:[#allocation2 + $0x268] sm:$0xff] }
 0x2d4   : > { %7047 = vmatprep.mubr.f32.mxu0 %v2498_v54  ;;  %v6504_v54 = vld [vmem:[%s10506_s2 + $0xe8] sm:$0xff]  }
 0x2d6   : > { %6872 = vmatmul.mubr.f32.gmra.mrb[30].mxu1 %v6107_v27  ;;  %v2524_v27 = vld [vmem:[#allocation2 + $0x1c0] sm:$0xff] }
 0x2d7   : > { %7048 = vmatmul.mubr.f32.gmra.mrb[30].mxu0 %v2499_v21  ;;  %6874 = vmatprep.mubr.f32.mxu1 %v6110_v17  ;;  %v6159_v17 = vunpack.c.h.bf16 %v6503_v48  ;;  %v6162_v21 = vunpack.c.l.bf16 %v6504_v54  ;;  %v2547_v48 = vld [vmem:[#allocation2 + $0x278] sm:$0xff] }
 0x2d8   : > { %7050 = vmatprep.mubr.f32.mxu0 %v2500_v35  ;;  %v6505_v35 = vld [vmem:[%s10506_s2 + $0xf0] sm:$0xff]  }
 0x2da   : > { %6875 = vmatmul.mubr.f32.gmra.mrb[32].mxu1 %v6111_v43  ;;  %v2526_v43 = vld [vmem:[#allocation2 + $0x1d0] sm:$0xff] }
 0x2db   : > { %7051 = vmatmul.mubr.f32.gmra.mrb[32].mxu0 %v2501_v51  ;;  %6877 = vmatprep.mubr.f32.mxu1 %v6114_v18  ;;  %v6163_v18 = vunpack.c.h.bf16 %v6504_v54  ;;  %v6166_v51 = vunpack.c.l.bf16 %v6505_v35  ;;  %v2549_v54 = vld [vmem:[#allocation2 + $0x288] sm:$0xff] }
 0x2dc   : > { %7053 = vmatprep.mubr.f32.mxu0 %v2502_v26  ;;  %v6506_v26 = vld [vmem:[%s10506_s2 + $0xf8] sm:$0xff]  }
 0x2de   : > { %6878 = vmatmul.mubr.f32.gmra.mrb[34].mxu1 %v6115_v30  ;;  %v2528_v30 = vld [vmem:[#allocation2 + $0x1e0] sm:$0xff] }
 0x2df   : > { %7054 = vmatmul.mubr.f32.gmra.mrb[34].mxu0 %v2503_v3  ;;  %6880 = vmatprep.mubr.f32.mxu1 %v6118_v59  ;;  %v6167_v59 = vunpack.c.h.bf16 %v6505_v35  ;;  %v6170_v3 = vunpack.c.l.bf16 %v6506_v26  ;;  %v2551_v35 = vld [vmem:[#allocation2 + $0x298] sm:$0xff] }
 0x2e0   : > { %7056 = vmatprep.mubr.f32.mxu0 %v2504_v29  ;;  %v6507_v29 = vld [vmem:[%s10506_s2 + $0x100] sm:$0xff]  }
 0x2e2   : > { %6881 = vmatmul.mubr.f32.gmra.mrb[36].mxu1 %v6119_v33  ;;  %v2530_v33 = vld [vmem:[#allocation2 + $0x1f0] sm:$0xff] }
 0x2e3   : > { %7057 = vmatmul.mubr.f32.gmra.mrb[36].mxu0 %v2505_v23  ;;  %6883 = vmatprep.mubr.f32.mxu1 %v6122_v37  ;;  %v6171_v37 = vunpack.c.h.bf16 %v6506_v26  ;;  %v6174_v23 = vunpack.c.l.bf16 %v6507_v29  ;;  %v2553_v26 = vld [vmem:[#allocation2 + $0x2a8] sm:$0xff] }
 0x2e4   : > { %7059 = vmatprep.mubr.f32.mxu0 %v2506_v55  ;;  %v6508_v55 = vld [vmem:[%s10506_s2 + $0x108] sm:$0xff]  }
 0x2e6   : > { %6884 = vmatmul.mubr.f32.gmra.mrb[38].mxu1 %v6123_v34  ;;  %v2532_v34 = vld [vmem:[#allocation2 + $0x200] sm:$0xff] }
 0x2e7   : > { %7060 = vmatmul.mubr.f32.gmra.mrb[38].mxu0 %v2507_v42  ;;  %6886 = vmatprep.mubr.f32.mxu1 %v6126_v38  ;;  %v6175_v38 = vunpack.c.h.bf16 %v6507_v29  ;;  %v6178_v42 = vunpack.c.l.bf16 %v6508_v55  ;;  %v2555_v29 = vld [vmem:[#allocation2 + $0x2b8] sm:$0xff] }
 0x2e8   : > { %7062 = vmatprep.mubr.f32.mxu0 %v2508_v31  ;;  %v6509_v31 = vld [vmem:[%s10506_s2 + $0x110] sm:$0xff]  }
 0x2ea   : > { %6887 = vmatmul.mubr.f32.gmra.mrb[40].mxu1 %v6127_v47  ;;  %v2534_v47 = vld [vmem:[#allocation2 + $0x210] sm:$0xff] }
 0x2eb   : > { %7063 = vmatmul.mubr.f32.gmra.mrb[40].mxu0 %v2509_v41  ;;  %6889 = vmatprep.mubr.f32.mxu1 %v6130_v22  ;;  %v6179_v22 = vunpack.c.h.bf16 %v6508_v55  ;;  %v6182_v41 = vunpack.c.l.bf16 %v6509_v31  ;;  %v2557_v55 = vld [vmem:[#allocation2 + $0x2c8] sm:$0xff] }
 0x2ec   : > { %7065 = vmatprep.mubr.f32.mxu0 %v2510_v63  ;;  %v6510_v63 = vld [vmem:[%s10506_s2 + $0x118] sm:$0xff]  }
 0x2ee   : > { %6890 = vmatmul.mubr.f32.gmra.mrb[42].mxu1 %v6131_v15  ;;  %v2536_v15 = vld [vmem:[#allocation2 + $0x220] sm:$0xff] }
 0x2ef   : > { %7066 = vmatmul.mubr.f32.gmra.mrb[42].mxu0 %v2511_v49  ;;  %6892 = vmatprep.mubr.f32.mxu1 %v6134_v24  ;;  %v6183_v24 = vunpack.c.h.bf16 %v6509_v31  ;;  %v6186_v49 = vunpack.c.l.bf16 %v6510_v63  ;;  %v2559_v31 = vld [vmem:[#allocation2 + $0x2d8] sm:$0xff] }
 0x2f0   : > { %7068 = vmatprep.mubr.f32.mxu0 %v2512_v40  ;;  %v6511_v40 = vld [vmem:[%s10506_s2 + $0x120] sm:$0xff]  }
 0x2f2   : > { %6893 = vmatmul.mubr.f32.gmra.mrb[44].mxu1 %v6135_v12  ;;  %v2538_v12 = vld [vmem:[#allocation2 + $0x230] sm:$0xff] }
 0x2f3   : > { %7069 = vmatmul.mubr.f32.gmra.mrb[44].mxu0 %v2513_v60  ;;  %6895 = vmatprep.mubr.f32.mxu1 %v6138_v4  ;;  %v6187_v4 = vunpack.c.h.bf16 %v6510_v63  ;;  %v6190_v60 = vunpack.c.l.bf16 %v6511_v40  ;;  %v2561_v63 = vld [vmem:[#allocation2 + $0x2e8] sm:$0xff] }
 0x2f4   : > { %7071 = vmatprep.mubr.f32.mxu0 %v2514_v57  ;;  %v6512_v57 = vld [vmem:[%s10506_s2 + $0x128] sm:$0xff]  }
 0x2f6   : > { %6896 = vmatmul.mubr.f32.gmra.mrb[46].mxu1 %v6139_v61  ;;  %v2540_v61 = vld [vmem:[#allocation2 + $0x240] sm:$0xff] }
 0x2f7   : > { %7072 = vmatmul.mubr.f32.gmra.mrb[46].mxu0 %v2515_v44  ;;  %6898 = vmatprep.mubr.f32.mxu1 %v6142_v52  ;;  %v6191_v52 = vunpack.c.h.bf16 %v6511_v40  ;;  %v6194_v44 = vunpack.c.l.bf16 %v6512_v57 }
 0x2f8   : > { %7074 = vmatprep.mubr.f32.mxu0 %v2516_v56  ;;  %v6513_v56 = vld [vmem:[%s10506_s2 + $0x130] sm:$0xff]  }
 0x2fa   : > { %6899 = vmatmul.mubr.f32.gmra.mrb[48].mxu1 %v6143_v46  ;;  %v2542_v46 = vld [vmem:[#allocation2 + $0x250] sm:$0xff] }
 0x2fb   : > { %7075 = vmatmul.mubr.f32.gmra.mrb[48].mxu0 %v2517_v28  ;;  %6901 = vmatprep.mubr.f32.mxu1 %v6146_v50  ;;  %v6195_v50 = vunpack.c.h.bf16 %v6512_v57  ;;  %v6198_v28 = vunpack.c.l.bf16 %v6513_v56 }
 0x2fc   : > { %7077 = vmatprep.mubr.f32.mxu0 %v2518_v14  ;;  %v6514_v14 = vld [vmem:[%s10506_s2 + $0x138] sm:$0xff]  }
 0x2fe   : > { %6902 = vmatmul.mubr.f32.gmra.mrb[50].mxu1 %v6147_v1  ;;  %v2544_v1 = vld [vmem:[#allocation2 + $0x260] sm:$0xff] }
 0x2ff   : > { %7078 = vmatmul.mubr.f32.gmra.mrb[50].mxu0 %v2519_v9  ;;  %6904 = vmatprep.mubr.f32.mxu1 %v6150_v5  ;;  %v6199_v5 = vunpack.c.h.bf16 %v6513_v56  ;;  %v6202_v9 = vunpack.c.l.bf16 %v6514_v14 }
 0x300   : > { %7080 = vmatprep.mubr.f32.mxu0 %v2520_v6  ;;  %v6515_v6 = vld [vmem:[%s10506_s2 + $0x140] sm:$0xff]  }
 0x302   : > { %6905 = vmatmul.mubr.f32.gmra.mrb[52].mxu1 %v6151_v2  ;;  %v2546_v2 = vld [vmem:[#allocation2 + $0x270] sm:$0xff] }
 0x303   : > { %7081 = vmatmul.mubr.f32.gmra.mrb[52].mxu0 %v2521_v32  ;;  %6907 = vmatprep.mubr.f32.mxu1 %v6154_v8  ;;  %v6203_v8 = vunpack.c.h.bf16 %v6514_v14  ;;  %v6206_v32 = vunpack.c.l.bf16 %v6515_v6 }
 0x304   : > { %7083 = vmatprep.mubr.f32.mxu0 %v2522_v13  ;;  %v6516_v13 = vld [vmem:[%s10506_s2 + $0x148] sm:$0xff]  }
 0x306   : > { %6908 = vmatmul.mubr.f32.gmra.mrb[54].mxu1 %v6155_v19  ;;  %v2548_v19 = vld [vmem:[#allocation2 + $0x280] sm:$0xff] }
 0x307   : > { %7084 = vmatmul.mubr.f32.gmra.mrb[54].mxu0 %v2523_v58  ;;  %6910 = vmatprep.mubr.f32.mxu1 %v6158_v62  ;;  %v6207_v62 = vunpack.c.h.bf16 %v6515_v6  ;;  %v6210_v58 = vunpack.c.l.bf16 %v6516_v13 }
 0x308   : > { %7086 = vmatprep.mubr.f32.mxu0 %v2524_v27  ;;  %v6517_v27 = vld [vmem:[%s10506_s2 + $0x150] sm:$0xff]  }
 0x30a   : > { %6911 = vmatmul.mubr.f32.gmra.mrb[56].mxu1 %v6159_v17  ;;  %v2550_v17 = vld [vmem:[#allocation2 + $0x290] sm:$0xff] }
 0x30b   : > { %7087 = vmatmul.mubr.f32.gmra.mrb[56].mxu0 %v2525_v25  ;;  %6913 = vmatprep.mubr.f32.mxu1 %v6162_v21  ;;  %v6211_v21 = vunpack.c.h.bf16 %v6516_v13  ;;  %v6214_v25 = vunpack.c.l.bf16 %v6517_v27 }
 0x30c   : > { %7089 = vmatprep.mubr.f32.mxu0 %v2526_v43  ;;  %v6518_v43 = vld [vmem:[%s10506_s2 + $0x158] sm:$0xff]  }
 0x30e   : > { %6914 = vmatmul.mubr.f32.gmra.mrb[58].mxu1 %v6163_v18  ;;  %v2552_v18 = vld [vmem:[#allocation2 + $0x2a0] sm:$0xff] }
 0x30f   : > { %7090 = vmatmul.mubr.f32.gmra.mrb[58].mxu0 %v2527_v0  ;;  %6916 = vmatprep.mubr.f32.mxu1 %v6166_v51  ;;  %v6215_v51 = vunpack.c.h.bf16 %v6517_v27  ;;  %v6218_v0 = vunpack.c.l.bf16 %v6518_v43 }
 0x310   : > { %7092 = vmatprep.mubr.f32.mxu0 %v2528_v30  ;;  %v6519_v30 = vld [vmem:[%s10506_s2 + $0x160] sm:$0xff]  }
 0x312   : > { %6917 = vmatmul.mubr.f32.gmra.mrb[60].mxu1 %v6167_v59  ;;  %v2554_v59 = vld [vmem:[#allocation2 + $0x2b0] sm:$0xff] }
 0x313   : > { %7093 = vmatmul.mubr.f32.gmra.mrb[60].mxu0 %v2529_v11  ;;  %6919 = vmatprep.mubr.f32.mxu1 %v6170_v3  ;;  %v6219_v3 = vunpack.c.h.bf16 %v6518_v43  ;;  %v6222_v11 = vunpack.c.l.bf16 %v6519_v30 }
 0x314   : > { %7095 = vmatprep.mubr.f32.mxu0 %v2530_v33  ;;  %v6520_v33 = vld [vmem:[%s10506_s2 + $0x168] sm:$0xff]  }
 0x316   : > { %6920 = vmatmul.mubr.f32.gmra.mrb[62].mxu1 %v6171_v37  ;;  %v2556_v37 = vld [vmem:[#allocation2 + $0x2c0] sm:$0xff] }
 0x317   : > { %7096 = vmatmul.mubr.f32.gmra.mrb[62].mxu0 %v2531_v39  ;;  %6922 = vmatprep.mubr.f32.mxu1 %v6174_v23  ;;  %v6223_v23 = vunpack.c.h.bf16 %v6519_v30  ;;  %v6226_v39 = vunpack.c.l.bf16 %v6520_v33 }
 0x318   : > { %7098 = vmatprep.mubr.f32.mxu0 %v2532_v34  ;;  %v6521_v34 = vld [vmem:[%s10506_s2 + $0x170] sm:$0xff]  }
 0x31a   : > { %6923 = vmatmul.mubr.f32.gmra.mrb[64].mxu1 %v6175_v38  ;;  %v2558_v38 = vld [vmem:[#allocation2 + $0x2d0] sm:$0xff] }
 0x31b   : > { %7099 = vmatmul.mubr.f32.gmra.mrb[64].mxu0 %v2533_v7  ;;  %6925 = vmatprep.mubr.f32.mxu1 %v6178_v42  ;;  %v6227_v42 = vunpack.c.h.bf16 %v6520_v33  ;;  %v6230_v7 = vunpack.c.l.bf16 %v6521_v34 }
 0x31c   : > { %7101 = vmatprep.mubr.f32.mxu0 %v2534_v47  ;;  %v6522_v47 = vld [vmem:[%s10506_s2 + $0x178] sm:$0xff]  }
 0x31e   : > { %6926 = vmatmul.mubr.f32.gmra.mrb[66].mxu1 %v6179_v22  ;;  %v2560_v22 = vld [vmem:[#allocation2 + $0x2e0] sm:$0xff] }
 0x31f   : > { %7102 = vmatmul.mubr.f32.gmra.mrb[66].mxu0 %v2535_v45  ;;  %6928 = vmatprep.mubr.f32.mxu1 %v6182_v41  ;;  %v6231_v41 = vunpack.c.h.bf16 %v6521_v34  ;;  %v6234_v45 = vunpack.c.l.bf16 %v6522_v47 }
 0x320   : > { %7104 = vmatprep.mubr.f32.mxu0 %v2536_v15  ;;  %v2562_v15 = vld [vmem:[#allocation2 + $0x2f0] sm:$0xff] }
 0x322   : > { %6929 = vmatmul.mubr.f32.gmra.mrb[68].mxu1 %v6183_v24  ;;  %v6235_v24 = vunpack.c.h.bf16 %v6522_v47 }
 0x323   : > { %7105 = vmatmul.mubr.f32.gmra.mrb[68].mxu0 %v2537_v16  ;;  %6931 = vmatprep.mubr.f32.mxu1 %v6186_v49  ;;  %v2563_v49 = vld [vmem:[#allocation2 + $0x2f8] sm:$0xff] }
 0x324   : > { %7107 = vmatprep.mubr.f32.mxu0 %v2538_v12 }
 0x326   : > { %6932 = vmatmul.mubr.f32.gmra.mrb[70].mxu1 %v6187_v4 }
 0x327   : > { %7108 = vmatmul.mubr.f32.gmra.mrb[70].mxu0 %v2539_v53  ;;  %6934 = vmatprep.mubr.f32.mxu1 %v6190_v60 }
 0x328   : > { %7110 = vmatprep.mubr.f32.mxu0 %v2540_v61 }
 0x32a   : > { %6935 = vmatmul.mubr.f32.gmra.mrb[72].mxu1 %v6191_v52 }
 0x32b   : > { %7111 = vmatmul.mubr.f32.gmra.mrb[72].mxu0 %v2541_v36  ;;  %6937 = vmatprep.mubr.f32.mxu1 %v6194_v44 }
 0x32c   : > { %7113 = vmatprep.mubr.f32.mxu0 %v2542_v46 }
 0x32e   : > { %6938 = vmatmul.mubr.f32.gmra.mrb[74].mxu1 %v6195_v50 }
 0x32f   : > { %7114 = vmatmul.mubr.f32.gmra.mrb[74].mxu0 %v2543_v20  ;;  %6940 = vmatprep.mubr.f32.mxu1 %v6198_v28 }
 0x330   : > { %7116 = vmatprep.mubr.f32.mxu0 %v2544_v1 }
 0x332   : > { %6941 = vmatmul.mubr.f32.gmra.mrb[76].mxu1 %v6199_v5 }
 0x333   : > { %7117 = vmatmul.mubr.f32.gmra.mrb[76].mxu0 %v2545_v10  ;;  %6943 = vmatprep.mubr.f32.mxu1 %v6202_v9 }
 0x334   : > { %7119 = vmatprep.mubr.f32.mxu0 %v2546_v2 }
 0x336   : > { %6944 = vmatmul.mubr.f32.gmra.mrb[78].mxu1 %v6203_v8 }
 0x337   : > { %7120 = vmatmul.mubr.f32.gmra.mrb[78].mxu0 %v2547_v48  ;;  %6946 = vmatprep.mubr.f32.mxu1 %v6206_v32 }
 0x338   : > { %7122 = vmatprep.mubr.f32.mxu0 %v2548_v19 }
 0x33a   : > { %6947 = vmatmul.mubr.f32.gmra.mrb[80].mxu1 %v6207_v62 }
 0x33b   : > { %7123 = vmatmul.mubr.f32.gmra.mrb[80].mxu0 %v2549_v54  ;;  %6949 = vmatprep.mubr.f32.mxu1 %v6210_v58 }
 0x33c   : > { %7125 = vmatprep.mubr.f32.mxu0 %v2550_v17 }
 0x33e   : > { %6950 = vmatmul.mubr.f32.gmra.mrb[82].mxu1 %v6211_v21 }
 0x33f   : > { %7126 = vmatmul.mubr.f32.gmra.mrb[82].mxu0 %v2551_v35  ;;  %6952 = vmatprep.mubr.f32.mxu1 %v6214_v25 }
 0x340   : > { %7128 = vmatprep.mubr.f32.mxu0 %v2552_v18 }
 0x342   : > { %6953 = vmatmul.mubr.f32.gmra.mrb[84].mxu1 %v6215_v51 }
 0x343   : > { %7129 = vmatmul.mubr.f32.gmra.mrb[84].mxu0 %v2553_v26  ;;  %6955 = vmatprep.mubr.f32.mxu1 %v6218_v0 }
 0x344   : > { %7131 = vmatprep.mubr.f32.mxu0 %v2554_v59 }
 0x346   : > { %6956 = vmatmul.mubr.f32.gmra.mrb[86].mxu1 %v6219_v3 }
 0x347   : > { %7132 = vmatmul.mubr.f32.gmra.mrb[86].mxu0 %v2555_v29  ;;  %6958 = vmatprep.mubr.f32.mxu1 %v6222_v11 }
 0x348   : > { %7134 = vmatprep.mubr.f32.mxu0 %v2556_v37 }
 0x34a   : > { %6959 = vmatmul.mubr.f32.gmra.mrb[88].mxu1 %v6223_v23 }
 0x34b   : > { %7135 = vmatmul.mubr.f32.gmra.mrb[88].mxu0 %v2557_v55  ;;  %6961 = vmatprep.mubr.f32.mxu1 %v6226_v39 }
 0x34c   : > { %7137 = vmatprep.mubr.f32.mxu0 %v2558_v38 }
 0x34e   : > { %6962 = vmatmul.mubr.f32.gmra.mrb[90].mxu1 %v6227_v42 }
 0x34f   : > { %7138 = vmatmul.mubr.f32.gmra.mrb[90].mxu0 %v2559_v31  ;;  %6964 = vmatprep.mubr.f32.mxu1 %v6230_v7 }
 0x350   : > { %7140 = vmatprep.mubr.f32.mxu0 %v2560_v22 }
 0x352   : > { %6965 = vmatmul.mubr.f32.gmra.mrb[92].mxu1 %v6231_v41 }
 0x353   : > { %7141 = vmatmul.mubr.f32.gmra.mrb[92].mxu0 %v2561_v63  ;;  %6967 = vmatprep.mubr.f32.mxu1 %v6234_v45 }
 0x354   : > { %7143 = vmatprep.mubr.f32.mxu0 %v2562_v15 }
 0x356   : > { %6968 = vmatmul.mubr.f32.gmra.mrb[94].mxu1 %v6235_v24 }
 0x357   : > { %7144 = vmatmul.mubr.f32.gmra.mrb[94].mxu0 %v2563_v49 }
 0x36d   : > { %v6828_v16 = vpop.f32.mrb[0].mxu1 }
 0x36e   : > { %v7004_v40 = vpop.f32.mrb[0].mxu0  ;;  %v2662_v12 = vpop.f32.mrb[1].mxu1 }
 0x36f   : > { %v8839_v4 = vadd.f32 %v7004_v40, %v6828_v16  ;;  %v3207_v60 = vpop.f32.mrb[1].mxu0 }
 0x370   : > { %v8841_v53 = vadd.f32 %v3207_v60, %v2662_v12 }
 0x371   : > { %3688 = vadd.xlane.f32.xlu0 %v8839_v4  ;;  %v6831_v57 = vpop.f32.mrb[2].mxu1 }
 0x372   : > { %v7007_v61 = vpop.f32.mrb[2].mxu0  ;;  %v2672_v52 = vpop.f32.mrb[3].mxu1 }
 0x373   : > { %v8844_v44 = vadd.f32 %v7007_v61, %v6831_v57  ;;  %v3217_v36 = vpop.f32.mrb[3].mxu0 }
 0x374   : > { %v8846_v56 = vadd.f32 %v3217_v36, %v2672_v52 }
 0x375   : > { %3686 = vadd.xlane.f32.xlu0 %v8841_v53  ;;  %3692 = vadd.xlane.f32.xlu1 %v8844_v44  ;;  %v6834_v46 = vpop.f32.mrb[4].mxu1 }
 0x376   : > { %v7010_v50 = vpop.f32.mrb[4].mxu0  ;;  %v2682_v28 = vpop.f32.mrb[5].mxu1 }
 0x377   : > { %v8850_v20 = vadd.f32 %v7010_v50, %v6834_v46  ;;  %v3227_v14 = vpop.f32.mrb[5].mxu0 }
 0x378   : > { %v8852_v1 = vadd.f32 %v3227_v14, %v2682_v28 }
 0x379   : > { %3690 = vadd.xlane.f32.xlu1 %v8846_v56  ;;  %v6837_v5 = vpop.f32.mrb[6].mxu1 }
 0x37a   : > { %v7013_v9 = vpop.f32.mrb[6].mxu0  ;;  %3694 = vadd.xlane.f32.xlu0 %v8852_v1  ;;  %v2692_v10 = vpop.f32.mrb[7].mxu1 }
 0x37b   : > { %v8856_v6 = vadd.f32 %v7013_v9, %v6837_v5  ;;  %v3237_v2 = vpop.f32.mrb[7].mxu0 }
 0x37c   : > { %v8858_v8 = vadd.f32 %v3237_v2, %v2692_v10 }
 0x37d   : > { %3696 = vadd.xlane.f32.xlu1 %v8850_v20  ;;  %v6840_v32 = vpop.f32.mrb[8].mxu1 }
 0x37e   : > { %v7016_v48 = vpop.f32.mrb[8].mxu0  ;;  %3698 = vadd.xlane.f32.xlu0 %v8858_v8  ;;  %v2702_v13 = vpop.f32.mrb[9].mxu1 }
 0x37f   : > { %v8862_v19 = vadd.f32 %v7016_v48, %v6840_v32  ;;  %v3247_v62 = vpop.f32.mrb[9].mxu0 }
 0x380   : > { %v8864_v58 = vadd.f32 %v3247_v62, %v2702_v13 }
 0x381   : > { %3700 = vadd.xlane.f32.xlu1 %v8856_v6  ;;  %v6843_v54 = vpop.f32.mrb[10].mxu1 }
 0x382   : > { %v7019_v27 = vpop.f32.mrb[10].mxu0  ;;  %3702 = vadd.xlane.f32.xlu0 %v8864_v58  ;;  %v2712_v17 = vpop.f32.mrb[11].mxu1 }
 0x383   : > { %v8868_v21 = vadd.f32 %v7019_v27, %v6843_v54  ;;  %v3257_v25 = vpop.f32.mrb[11].mxu0 }
 0x384   : > { %v8870_v35 = vadd.f32 %v3257_v25, %v2712_v17 }
 0x385   : > { %3704 = vadd.xlane.f32.xlu1 %v8862_v19  ;;  %v6846_v43 = vpop.f32.mrb[12].mxu1 }
 0x386   : > { %v7022_v18 = vpop.f32.mrb[12].mxu0  ;;  %3706 = vadd.xlane.f32.xlu0 %v8870_v35  ;;  %v2722_v51 = vpop.f32.mrb[13].mxu1 }
 0x387   : > { %v8874_v0 = vadd.f32 %v7022_v18, %v6846_v43  ;;  %v3267_v26 = vpop.f32.mrb[13].mxu0 }
 0x388   : > { %v8876_v30 = vadd.f32 %v3267_v26, %v2722_v51 }
 0x389   : > { %3708 = vadd.xlane.f32.xlu1 %v8868_v21  ;;  %v6849_v59 = vpop.f32.mrb[14].mxu1 }
 0x38a   : > { %v7025_v3 = vpop.f32.mrb[14].mxu0  ;;  %3710 = vadd.xlane.f32.xlu0 %v8876_v30  ;;  %v2732_v11 = vpop.f32.mrb[15].mxu1 }
 0x38b   : > { %v8880_v29 = vadd.f32 %v7025_v3, %v6849_v59  ;;  %v3277_v33 = vpop.f32.mrb[15].mxu0 }
 0x38c   : > { %v8882_v37 = vadd.f32 %v3277_v33, %v2732_v11 }
 0x38d   : > { %3712 = vadd.xlane.f32.xlu1 %v8874_v0  ;;  %v6852_v23 = vpop.f32.mrb[16].mxu1 }
 0x38e   : > { %v7028_v39 = vpop.f32.mrb[16].mxu0  ;;  %3714 = vadd.xlane.f32.xlu0 %v8882_v37  ;;  %v2742_v55 = vpop.f32.mrb[17].mxu1 }
 0x38f   : > { %v8886_v34 = vadd.f32 %v7028_v39, %v6852_v23  ;;  %v3287_v38 = vpop.f32.mrb[17].mxu0 }
 0x390   : > { %v8888_v42 = vadd.f32 %v3287_v38, %v2742_v55 }
 0x391   : > { %3716 = vadd.xlane.f32.xlu1 %v8880_v29  ;;  %v6855_v7 = vpop.f32.mrb[18].mxu1 }
 0x392   : > { %v7031_v31 = vpop.f32.mrb[18].mxu0  ;;  %3718 = vadd.xlane.f32.xlu0 %v8888_v42  ;;  %v2752_v47 = vpop.f32.mrb[19].mxu1 }
 0x393   : > { %v8892_v22 = vadd.f32 %v7031_v31, %v6855_v7  ;;  %v3297_v41 = vpop.f32.mrb[19].mxu0 }
 0x394   : > { %v8894_v45 = vadd.f32 %v3297_v41, %v2752_v47 }
 0x395   : > { %3720 = vadd.xlane.f32.xlu1 %v8886_v34  ;;  %v6858_v63 = vpop.f32.mrb[20].mxu1 }
 0x396   : > { %v7034_v15 = vpop.f32.mrb[20].mxu0  ;;  %3722 = vadd.xlane.f32.xlu0 %v8894_v45  ;;  %v2762_v24 = vpop.f32.mrb[21].mxu1 }
 0x397   : > { %v8898_v49 = vadd.f32 %v7034_v15, %v6858_v63  ;;  %v3307_v16 = vpop.f32.mrb[21].mxu0 }
 0x398   : > { %v8900_v40 = vadd.f32 %v3307_v16, %v2762_v24 }
 0x399   : > { %3724 = vadd.xlane.f32.xlu1 %v8892_v22  ;;  %v6861_v12 = vpop.f32.mrb[22].mxu1 }
 0x39a   : > { %v7037_v60 = vpop.f32.mrb[22].mxu0  ;;  %3726 = vadd.xlane.f32.xlu0 %v8900_v40  ;;  %v2772_v57 = vpop.f32.mrb[23].mxu1 }
 0x39b   : > { %v8904_v61 = vadd.f32 %v7037_v60, %v6861_v12  ;;  %v3317_v52 = vpop.f32.mrb[23].mxu0 }
 0x39c   : > { %v8906_v36 = vadd.f32 %v3317_v52, %v2772_v57 }
 0x39d   : > { %3728 = vadd.xlane.f32.xlu1 %v8898_v49  ;;  %v6864_v46 = vpop.f32.mrb[24].mxu1 }
 0x39e   : > { %v7040_v50 = vpop.f32.mrb[24].mxu0  ;;  %3730 = vadd.xlane.f32.xlu0 %v8906_v36  ;;  %v2782_v28 = vpop.f32.mrb[25].mxu1 }
 0x39f   : > { %v8910_v14 = vadd.f32 %v7040_v50, %v6864_v46  ;;  %v3327_v5 = vpop.f32.mrb[25].mxu0 }
 0x3a0   : > { %v8912_v9 = vadd.f32 %v3327_v5, %v2782_v28 }
 0x3a1   : > { %3732 = vadd.xlane.f32.xlu1 %v8904_v61  ;;  %v6867_v10 = vpop.f32.mrb[26].mxu1 }
 0x3a2   : > { %v7043_v2 = vpop.f32.mrb[26].mxu0  ;;  %3734 = vadd.xlane.f32.xlu0 %v8912_v9  ;;  %v2792_v32 = vpop.f32.mrb[27].mxu1 }
 0x3a3   : > { %v8916_v48 = vadd.f32 %v7043_v2, %v6867_v10  ;;  %v3337_v13 = vpop.f32.mrb[27].mxu0 }
 0x3a4   : > { %v8918_v62 = vadd.f32 %v3337_v13, %v2792_v32 }
 0x3a5   : > { %3736 = vadd.xlane.f32.xlu1 %v8910_v14  ;;  %v6870_v54 = vpop.f32.mrb[28].mxu1 }
 0x3a6   : > { %v7046_v27 = vpop.f32.mrb[28].mxu0  ;;  %3738 = vadd.xlane.f32.xlu0 %v8918_v62  ;;  %v2802_v17 = vpop.f32.mrb[29].mxu1 }
 0x3a7   : > { %v8922_v25 = vadd.f32 %v7046_v27, %v6870_v54  ;;  %v3347_v43 = vpop.f32.mrb[29].mxu0 }
 0x3a8   : > { %v8924_v18 = vadd.f32 %v3347_v43, %v2802_v17 }
 0x3a9   : > { %3740 = vadd.xlane.f32.xlu1 %v8916_v48  ;;  %v6873_v51 = vpop.f32.mrb[30].mxu1 }
 0x3aa   : > { %v7049_v26 = vpop.f32.mrb[30].mxu0  ;;  %3742 = vadd.xlane.f32.xlu0 %v8924_v18  ;;  %v2812_v59 = vpop.f32.mrb[31].mxu1 }
 0x3ab   : > { %v8928_v3 = vadd.f32 %v7049_v26, %v6873_v51  ;;  %v3357_v11 = vpop.f32.mrb[31].mxu0 }
 0x3ac   : > { %v8930_v33 = vadd.f32 %v3357_v11, %v2812_v59 }
 0x3ad   : > { %3744 = vadd.xlane.f32.xlu1 %v8922_v25  ;;  %v6876_v23 = vpop.f32.mrb[32].mxu1 }
 0x3ae   : > { %v7052_v39 = vpop.f32.mrb[32].mxu0  ;;  %3746 = vadd.xlane.f32.xlu0 %v8930_v33  ;;  %v2822_v55 = vpop.f32.mrb[33].mxu1 }
 0x3af   : > { %v8934_v38 = vadd.f32 %v7052_v39, %v6876_v23  ;;  %v3367_v7 = vpop.f32.mrb[33].mxu0 }
 0x3b0   : > { %v8936_v31 = vadd.f32 %v3367_v7, %v2822_v55 }
 0x3b1   : > { %3748 = vadd.xlane.f32.xlu1 %v8928_v3  ;;  %v6879_v47 = vpop.f32.mrb[34].mxu1 }
 0x3b2   : > { %v7055_v41 = vpop.f32.mrb[34].mxu0  ;;  %3750 = vadd.xlane.f32.xlu0 %v8936_v31  ;;  %v2832_v63 = vpop.f32.mrb[35].mxu1 }
 0x3b3   : > { %v8940_v15 = vadd.f32 %v7055_v41, %v6879_v47  ;;  %v3377_v24 = vpop.f32.mrb[35].mxu0 }
 0x3b4   : > { %v8942_v16 = vadd.f32 %v3377_v24, %v2832_v63 }
 0x3b5   : > { %3752 = vadd.xlane.f32.xlu1 %v8934_v38  ;;  %v6882_v12 = vpop.f32.mrb[36].mxu1 }
 0x3b6   : > { %v7058_v60 = vpop.f32.mrb[36].mxu0  ;;  %3754 = vadd.xlane.f32.xlu0 %v8942_v16  ;;  %v2842_v57 = vpop.f32.mrb[37].mxu1 }
 0x3b7   : > { %v8946_v52 = vadd.f32 %v7058_v60, %v6882_v12  ;;  %v3387_v46 = vpop.f32.mrb[37].mxu0 }
 0x3b8   : > { %v8948_v50 = vadd.f32 %v3387_v46, %v2842_v57 }
 0x3b9   : > { %3756 = vadd.xlane.f32.xlu1 %v8940_v15  ;;  %v6885_v28 = vpop.f32.mrb[38].mxu1 }
 0x3ba   : > { %v7061_v5 = vpop.f32.mrb[38].mxu0  ;;  %3758 = vadd.xlane.f32.xlu0 %v8948_v50  ;;  %v2852_v10 = vpop.f32.mrb[39].mxu1 }
 0x3bb   : > { %v8952_v2 = vadd.f32 %v7061_v5, %v6885_v28  ;;  %v3397_v32 = vpop.f32.mrb[39].mxu0 }
 0x3bc   : > { %v8954_v13 = vadd.f32 %v3397_v32, %v2852_v10 }
 0x3bd   : > { %10759 = vst [vmem:[#allocation51_spill] sm:$0xff] %v8952_v2  ;;  %3760 = vadd.xlane.f32.xlu1 %v8946_v52  ;;  %v6888_v54 = vpop.f32.mrb[40].mxu1 }
 0x3be   : > { %10760 = vst [vmem:[#allocation52_spill] sm:$0xff] %v8954_v13  ;;  %v7064_v27 = vpop.f32.mrb[40].mxu0  ;;  %3762 = vadd.xlane.f32.xlu0 %v8954_v13  ;;  %v2862_v17 = vpop.f32.mrb[41].mxu1 }
 0x3bf   : > { %v8958_v43 = vadd.f32 %v7064_v27, %v6888_v54  ;;  %v3407_v51 = vpop.f32.mrb[41].mxu0 }
 0x3c0   : > { %v8960_v26 = vadd.f32 %v3407_v51, %v2862_v17 }
 0x3c1   : > { %10761 = vst [vmem:[#allocation53_spill] sm:$0xff] %v8958_v43  ;;  %3764 = vadd.xlane.f32.xlu1 %v8952_v2  ;;  %v6891_v59 = vpop.f32.mrb[42].mxu1 }
 0x3c2   : > { %10762 = vst [vmem:[#allocation54_spill] sm:$0xff] %v8960_v26  ;;  %v7067_v11 = vpop.f32.mrb[42].mxu0  ;;  %3766 = vadd.xlane.f32.xlu0 %v8960_v26  ;;  %v2872_v23 = vpop.f32.mrb[43].mxu1 }
 0x3c3   : > { %v8964_v39 = vadd.f32 %v7067_v11, %v6891_v59  ;;  %v3417_v55 = vpop.f32.mrb[43].mxu0 }
 0x3c4   : > { %v8966_v7 = vadd.f32 %v3417_v55, %v2872_v23 }
 0x3c5   : > { %10763 = vst [vmem:[#allocation55_spill] sm:$0xff] %v8964_v39  ;;  %3768 = vadd.xlane.f32.xlu1 %v8958_v43  ;;  %v6894_v47 = vpop.f32.mrb[44].mxu1 }
 0x3c6   : > { %10764 = vst [vmem:[#allocation56_spill] sm:$0xff] %v8966_v7  ;;  %v7070_v41 = vpop.f32.mrb[44].mxu0  ;;  %3770 = vadd.xlane.f32.xlu0 %v8966_v7  ;;  %v2882_v63 = vpop.f32.mrb[45].mxu1 }
 0x3c7   : > { %v8970_v24 = vadd.f32 %v7070_v41, %v6894_v47  ;;  %v3427_v12 = vpop.f32.mrb[45].mxu0 }
 0x3c8   : > { %v8972_v60 = vadd.f32 %v3427_v12, %v2882_v63 }
 0x3c9   : > { %10765 = vst [vmem:[#allocation57_spill] sm:$0xff] %v8970_v24  ;;  %3772 = vadd.xlane.f32.xlu1 %v8964_v39  ;;  %v6897_v57 = vpop.f32.mrb[46].mxu1 }
 0x3ca   : > { %10766 = vst [vmem:[#allocation58_spill] sm:$0xff] %v8972_v60  ;;  %v7073_v46 = vpop.f32.mrb[46].mxu0  ;;  %3774 = vadd.xlane.f32.xlu0 %v8972_v60  ;;  %v2892_v28 = vpop.f32.mrb[47].mxu1 }
 0x3cb   : > { %v8976_v5 = vadd.f32 %v7073_v46, %v6897_v57  ;;  %v3437_v10 = vpop.f32.mrb[47].mxu0 }
 0x3cc   : > { %v8978_v32 = vadd.f32 %v3437_v10, %v2892_v28 }
 0x3cd   : > { %10767 = vst [vmem:[#allocation59_spill] sm:$0xff] %v8976_v5  ;;  %3776 = vadd.xlane.f32.xlu1 %v8970_v24  ;;  %v6900_v54 = vpop.f32.mrb[48].mxu1 }
 0x3ce   : > { %10768 = vst [vmem:[#allocation60_spill] sm:$0xff] %v8978_v32  ;;  %v7076_v27 = vpop.f32.mrb[48].mxu0  ;;  %3778 = vadd.xlane.f32.xlu0 %v8978_v32  ;;  %v2902_v17 = vpop.f32.mrb[49].mxu1 }
 0x3cf   : > { %v8982_v51 = vadd.f32 %v7076_v27, %v6900_v54  ;;  %v3447_v59 = vpop.f32.mrb[49].mxu0 }
 0x3d0   : > { %v8984_v11 = vadd.f32 %v3447_v59, %v2902_v17 }
 0x3d1   : > { %10769 = vst [vmem:[#allocation61_spill] sm:$0xff] %v8982_v51  ;;  %3780 = vadd.xlane.f32.xlu1 %v8976_v5  ;;  %v6903_v23 = vpop.f32.mrb[50].mxu1 }
 0x3d2   : > { %10770 = vst [vmem:[#allocation62_spill] sm:$0xff] %v8984_v11  ;;  %v7079_v55 = vpop.f32.mrb[50].mxu0  ;;  %3782 = vadd.xlane.f32.xlu0 %v8984_v11  ;;  %v2912_v47 = vpop.f32.mrb[51].mxu1 }
 0x3d3   : > { %v8988_v41 = vadd.f32 %v7079_v55, %v6903_v23  ;;  %v3457_v63 = vpop.f32.mrb[51].mxu0 }
 0x3d4   : > { %v8990_v12 = vadd.f32 %v3457_v63, %v2912_v47 }
 0x3d5   : > { %10771 = vst [vmem:[#allocation63_spill] sm:$0xff] %v8988_v41  ;;  %3784 = vadd.xlane.f32.xlu1 %v8982_v51  ;;  %v6906_v57 = vpop.f32.mrb[52].mxu1 }
 0x3d6   : > { %10772 = vst [vmem:[#allocation64_spill] sm:$0xff] %v8990_v12  ;;  %v7082_v46 = vpop.f32.mrb[52].mxu0  ;;  %3786 = vadd.xlane.f32.xlu0 %v8990_v12  ;;  %v2922_v28 = vpop.f32.mrb[53].mxu1 }
 0x3d7   : > { %v8994_v10 = vadd.f32 %v7082_v46, %v6906_v57  ;;  %v3467_v54 = vpop.f32.mrb[53].mxu0 }
 0x3d8   : > { %v8996_v27 = vadd.f32 %v3467_v54, %v2922_v28 }
 0x3d9   : > { %10773 = vst [vmem:[#allocation65_spill] sm:$0xff] %v8994_v10  ;;  %3788 = vadd.xlane.f32.xlu1 %v8988_v41  ;;  %v6909_v17 = vpop.f32.mrb[54].mxu1 }
 0x3da   : > { %10774 = vst [vmem:[#allocation66_spill] sm:$0xff] %v8996_v27  ;;  %v7085_v59 = vpop.f32.mrb[54].mxu0  ;;  %3790 = vadd.xlane.f32.xlu0 %v8996_v27  ;;  %v2932_v23 = vpop.f32.mrb[55].mxu1 }
 0x3db   : > { %v9000_v55 = vadd.f32 %v7085_v59, %v6909_v17  ;;  %v3477_v47 = vpop.f32.mrb[55].mxu0 }
 0x3dc   : > { %v9002_v63 = vadd.f32 %v3477_v47, %v2932_v23 }
 0x3dd   : > { %10775 = vst [vmem:[#allocation67_spill] sm:$0xff] %v9000_v55  ;;  %3792 = vadd.xlane.f32.xlu1 %v8994_v10  ;;  %v6912_v12 = vpop.f32.mrb[56].mxu1 }
 0x3de   : > { %10776 = vst [vmem:[#allocation68_spill] sm:$0xff] %v9002_v63  ;;  %v7088_v57 = vpop.f32.mrb[56].mxu0  ;;  %3794 = vadd.xlane.f32.xlu0 %v9002_v63  ;;  %v2942_v46 = vpop.f32.mrb[57].mxu1 }
 0x3df   : > { %v9006_v28 = vadd.f32 %v7088_v57, %v6912_v12  ;;  %v3487_v54 = vpop.f32.mrb[57].mxu0 }
 0x3e0   : > { %v9008_v41 = vadd.f32 %v3487_v54, %v2942_v46 }
 0x3e1   : > { %10777 = vst [vmem:[#allocation69_spill] sm:$0xff] %v9006_v28  ;;  %3796 = vadd.xlane.f32.xlu1 %v9000_v55  ;;  %v6915_v27 = vpop.f32.mrb[58].mxu1 }
 0x3e2   : > { %10778 = vst [vmem:[#allocation70_spill] sm:$0xff] %v9008_v41  ;;  %v7091_v17 = vpop.f32.mrb[58].mxu0  ;;  %3798 = vadd.xlane.f32.xlu0 %v9008_v41  ;;  %v2952_v59 = vpop.f32.mrb[59].mxu1 }
 0x3e3   : > { %v9012_v23 = vadd.f32 %v7091_v17, %v6915_v27  ;;  %v3497_v47 = vpop.f32.mrb[59].mxu0 }
 0x3e4   : > { %v9014_v10 = vadd.f32 %v3497_v47, %v2952_v59 }
 0x3e5   : > { %10779 = vst [vmem:[#allocation71_spill] sm:$0xff] %v9012_v23  ;;  %3800 = vadd.xlane.f32.xlu1 %v9006_v28  ;;  %v6918_v63 = vpop.f32.mrb[60].mxu1 }
 0x3e6   : > { %10780 = vst [vmem:[#allocation72_spill] sm:$0xff] %v9014_v10  ;;  %v7094_v12 = vpop.f32.mrb[60].mxu0  ;;  %3802 = vadd.xlane.f32.xlu0 %v9014_v10  ;;  %v2962_v57 = vpop.f32.mrb[61].mxu1 }
 0x3e7   : > { %v9018_v46 = vadd.f32 %v7094_v12, %v6918_v63  ;;  %v3507_v54 = vpop.f32.mrb[61].mxu0 }
 0x3e8   : > { %v9020_v55 = vadd.f32 %v3507_v54, %v2962_v57 }
 0x3e9   : > { %10781 = vst [vmem:[#allocation73_spill] sm:$0xff] %v9018_v46  ;;  %3804 = vadd.xlane.f32.xlu1 %v9012_v23  ;;  %v6921_v41 = vpop.f32.mrb[62].mxu1 }
 0x3ea   : > { %10782 = vst [vmem:[#allocation74_spill] sm:$0xff] %v9020_v55  ;;  %v7097_v27 = vpop.f32.mrb[62].mxu0  ;;  %3806 = vadd.xlane.f32.xlu0 %v9020_v55  ;;  %v2972_v17 = vpop.f32.mrb[63].mxu1 }
 0x3eb   : > { %v9024_v59 = vadd.f32 %v7097_v27, %v6921_v41  ;;  %v3517_v47 = vpop.f32.mrb[63].mxu0 }
 0x3ec   : > { %v9026_v28 = vadd.f32 %v3517_v47, %v2972_v17 }
 0x3ed   : > { %10783 = vst [vmem:[#allocation75_spill] sm:$0xff] %v9024_v59  ;;  %3808 = vadd.xlane.f32.xlu1 %v9018_v46  ;;  %v6924_v10 = vpop.f32.mrb[64].mxu1 }
 0x3ee   : > { %10784 = vst [vmem:[#allocation76_spill] sm:$0xff] %v9026_v28  ;;  %v7100_v63 = vpop.f32.mrb[64].mxu0  ;;  %3810 = vadd.xlane.f32.xlu0 %v9026_v28  ;;  %v2982_v12 = vpop.f32.mrb[65].mxu1 }
 0x3ef   : > { %v9030_v57 = vadd.f32 %v7100_v63, %v6924_v10  ;;  %v3527_v54 = vpop.f32.mrb[65].mxu0 }
 0x3f0   : > { %v9032_v23 = vadd.f32 %v3527_v54, %v2982_v12 }
 0x3f1   : > { %10785 = vst [vmem:[#allocation77_spill] sm:$0xff] %v9030_v57  ;;  %3812 = vadd.xlane.f32.xlu1 %v9024_v59  ;;  %v6927_v55 = vpop.f32.mrb[66].mxu1 }
 0x3f2   : > { %10786 = vst [vmem:[#allocation78_spill] sm:$0xff] %v9032_v23  ;;  %v7103_v41 = vpop.f32.mrb[66].mxu0  ;;  %3814 = vadd.xlane.f32.xlu0 %v9032_v23  ;;  %v2992_v27 = vpop.f32.mrb[67].mxu1 }
 0x3f3   : > { %v9036_v17 = vadd.f32 %v7103_v41, %v6927_v55  ;;  %v3537_v47 = vpop.f32.mrb[67].mxu0 }
 0x3f4   : > { %v9038_v46 = vadd.f32 %v3537_v47, %v2992_v27 }
 0x3f5   : > { %10787 = vst [vmem:[#allocation79_spill] sm:$0xff] %v9036_v17  ;;  %3816 = vadd.xlane.f32.xlu1 %v9030_v57  ;;  %v6930_v28 = vpop.f32.mrb[68].mxu1 }
 0x3f6   : > { %10788 = vst [vmem:[#allocation80_spill] sm:$0xff] %v9038_v46  ;;  %v7106_v10 = vpop.f32.mrb[68].mxu0  ;;  %3818 = vadd.xlane.f32.xlu0 %v9038_v46  ;;  %v3002_v63 = vpop.f32.mrb[69].mxu1 }
 0x3f7   : > { %v9042_v12 = vadd.f32 %v7106_v10, %v6930_v28  ;;  %v3547_v54 = vpop.f32.mrb[69].mxu0  ;;  %v3974_v28 = vlaneseq }
 0x3f8   : > { %v9044_v59 = vadd.f32 %v3547_v54, %v3002_v63 }
 0x3f9   : > { %10789 = vst [vmem:[#allocation81_spill] sm:$0xff] %v9042_v12  ;;  %3820 = vadd.xlane.f32.xlu1 %v9036_v17  ;;  %v6933_v23 = vpop.f32.mrb[70].mxu1 }
 0x3fa   : > { %10790 = vst [vmem:[#allocation82_spill] sm:$0xff] %v9044_v59  ;;  %v7109_v55 = vpop.f32.mrb[70].mxu0  ;;  %3822 = vadd.xlane.f32.xlu0 %v9044_v59  ;;  %v3012_v41 = vpop.f32.mrb[71].mxu1 }
 0x3fb   : > { %v9048_v27 = vadd.f32 %v7109_v55, %v6933_v23  ;;  %v3557_v47 = vpop.f32.mrb[71].mxu0  ;;  %v9059_v55 = vand.u32 127, %v3974_v28 }
 0x3fc   : > { %v9050_v57 = vadd.f32 %v3557_v47, %v3012_v41 }
 0x3fd   : > { %10791 = vst [vmem:[#allocation83_spill] sm:$0xff] %v9048_v27  ;;  %3824 = vadd.xlane.f32.xlu1 %v9042_v12  ;;  %v6936_v46 = vpop.f32.mrb[72].mxu1  ;;  %vm3976_vm0 = vcmp.lt.s32.totalorder %v9059_v55, 32 }
 0x3fe   : > { %10792 = vst [vmem:[#allocation84_spill] sm:$0xff] %v9050_v57  ;;  %v7112_v10 = vpop.f32.mrb[72].mxu0  ;;  %v3689_v51 = vpop.xlane.xlu0 %3688  ;;  %3826 = vadd.xlane.f32.xlu0 %v9050_v57 }
 0x3ff   : > { %v9054_v63 = vadd.f32 %v7112_v10, %v6936_v46  ;;  %v3022_v54 = vpop.f32.mrb[73].mxu1  ;;  %v3567_v17 = vpop.f32.mrb[73].mxu0  ;;  %v3879_v11 = vmul.f32 0.03125, %v3689_v51 }
 0x400   : > { %v9056_v59 = vadd.f32 %v3567_v17, %v3022_v54 }
 0x401   : > { %10793 = vst [vmem:[#allocation85_spill] sm:$0xff] %v9054_v63  ;;  %3828 = vadd.xlane.f32.xlu1 %v9048_v27  ;;  %v6939_v23 = vpop.f32.mrb[74].mxu1  ;;  %v3978_v10 = vsub.f32 %v8839_v4, %v3879_v11 }
 0x402   : > { %10794 = vst [vmem:[#allocation86_spill] sm:$0xff] %v9056_v59  ;;  %v7115_v41 = vpop.f32.mrb[74].mxu0  ;;  %v3687_v47 = vpop.xlane.xlu0 %3686  ;;  %3830 = vadd.xlane.f32.xlu0 %v9056_v59 }
 0x403   : > { %v3878_v12 = vmul.f32 0.03125, %v3687_v47  ;;  %v3693_v5 = vpop.xlane.xlu1 %3692  ;;  %v9062_v32 = vadd.f32 %v7115_v41, %v6939_v23  ;;  %v3032_v46 = vpop.f32.mrb[75].mxu1  ;;  %v9081_v47 = vsel %vm3976_vm0, %v3978_v10, 0.0 }
 0x404   : > { %v3577_v57 = vpop.f32.mrb[75].mxu0  ;;  %10799 = vst [vmem:[#allocation91_spill] sm:$0xff] %v9081_v47 }
 0x405   : > { %10795 = vst [vmem:[#allocation87_spill] sm:$0xff] %v9062_v32  ;;  %v3977_v51 = vsub.f32 %v8841_v53, %v3878_v12  ;;  %v9066_v17 = vadd.f32 %v3577_v57, %v3032_v46  ;;  %3832 = vadd.xlane.f32.xlu1 %v9054_v63  ;;  %v6942_v28 = vpop.f32.mrb[76].mxu1  ;;  %v3881_v53 = vmul.f32 0.03125, %v3693_v5 }
 0x406   : > { %v7118_v54 = vpop.f32.mrb[76].mxu0  ;;  %v3042_v27 = vpop.f32.mrb[77].mxu1 }
 0x407   : > { %10796 = vst [vmem:[#allocation88_spill] sm:$0xff] %v9066_v17  ;;  %v3691_v59 = vpop.xlane.xlu1 %3690  ;;  %3834 = vadd.xlane.f32.xlu0 %v9066_v17  ;;  %v3695_v23 = vpop.xlane.xlu0 %3694  ;;  %v9073_v41 = vsel %vm3976_vm0, %v3977_v51, 0.0  ;;  %v9075_v4 = vadd.f32 %v7118_v54, %v6942_v28  ;;  %v3980_v10 = vsub.f32 %v8844_v44, %v3881_v53 }
 0x408   : > { %10797 = vst [vmem:[#allocation89_spill] sm:$0xff] %v9073_v41  ;;  %v3880_v11 = vmul.f32 0.03125, %v3691_v59  ;;  %v4169_v57 = vmul.f32 %v9073_v41, %v9073_v41  ;;  %v3587_v12 = vpop.f32.mrb[77].mxu0  ;;  %v4170_v59 = vmul.f32 %v9081_v47, %v9081_v47 }
 0x409   : > { %10798 = vst [vmem:[#allocation90_spill] sm:$0xff] %v9075_v4  ;;  %3836 = vadd.xlane.f32.xlu1 %v9062_v32  ;;  %v9084_v46 = vadd.f32 %v3587_v12, %v3042_v27  ;;  %v6945_v17 = vpop.f32.mrb[78].mxu1  ;;  %v3882_v12 = vmul.f32 0.03125, %v3695_v23  ;;  %v9103_v44 = vsel %vm3976_vm0, %v3980_v10, 0.0 }
 0x40a   : > { %v3979_v51 = vsub.f32 %v8846_v56, %v3880_v11  ;;  %v7121_v63 = vpop.f32.mrb[78].mxu0  ;;  %v3052_v28 = vpop.f32.mrb[79].mxu1  ;;  %10805 = vst [vmem:[#allocation97_spill] sm:$0xff] %v9103_v44  ;;  %v4172_v10 = vmul.f32 %v9103_v44, %v9103_v44 }
 0x40b   : > { %10800 = vst [vmem:[#allocation92_spill] sm:$0xff] %v9084_v46  ;;  %v3697_v54 = vpop.xlane.xlu1 %3696  ;;  %4265 = vadd.xlane.f32.xlu0 %v4169_v57  ;;  %v3699_v5 = vpop.xlane.xlu0 %3698  ;;  %v9089_v41 = vadd.f32 %v7121_v63, %v6945_v17 }
 0x40c   : > { %v3597_v24 = vpop.f32.mrb[79].mxu0  ;;  %v9096_v56 = vsel %vm3976_vm0, %v3979_v51, 0.0  ;;  %v3883_v17 = vmul.f32 0.03125, %v3697_v54 }
 0x40d   : > { %10801 = vst [vmem:[#allocation93_spill] sm:$0xff] %v9089_v41  ;;  %4267 = vadd.xlane.f32.xlu1 %v4170_v59  ;;  %v9092_v32 = vadd.f32 %v3597_v24, %v3052_v28  ;;  %v6948_v27 = vpop.f32.mrb[80].mxu1  ;;  %10803 = vst [vmem:[#allocation95_spill] sm:$0xff] %v9096_v56  ;;  %v4171_v23 = vmul.f32 %v9096_v56, %v9096_v56  ;;  %v3981_v28 = vsub.f32 %v8852_v1, %v3882_v12 }
 0x40e   : > { %v7124_v11 = vpop.f32.mrb[80].mxu0  ;;  %v3062_v57 = vpop.f32.mrb[81].mxu1  ;;  %v3884_v56 = vmul.f32 0.03125, %v3699_v5 }
 0x40f   : > { %10802 = vst [vmem:[#allocation94_spill] sm:$0xff] %v9092_v32  ;;  %v3701_v60 = vpop.xlane.xlu1 %3700  ;;  %3838 = vadd.xlane.f32.xlu0 %v9084_v46  ;;  %v3703_v47 = vpop.xlane.xlu0 %3702  ;;  %v9099_v63 = vadd.f32 %v7124_v11, %v6948_v27  ;;  %v9122_v1 = vsel %vm3976_vm0, %v3981_v28, 0.0 }
 0x410   : > { %v3607_v24 = vpop.f32.mrb[81].mxu0  ;;  %10809 = vst [vmem:[#allocation101_spill] sm:$0xff] %v9122_v1  ;;  %v4173_v5 = vmul.f32 %v9122_v1, %v9122_v1 }
 0x411   : > { %10804 = vst [vmem:[#allocation96_spill] sm:$0xff] %v9099_v63  ;;  %3840 = vadd.xlane.f32.xlu1 %v9075_v4  ;;  %v9108_v53 = vadd.f32 %v3607_v24, %v3062_v57  ;;  %v6951_v51 = vpop.f32.mrb[82].mxu1  ;;  %v3982_v4 = vsub.f32 %v8850_v20, %v3883_v17  ;;  %v3885_v20 = vmul.f32 0.03125, %v3701_v60 }
 0x412   : > { %v7127_v59 = vpop.f32.mrb[82].mxu0  ;;  %v3072_v46 = vpop.f32.mrb[83].mxu1 }
 0x413   : > { %10806 = vst [vmem:[#allocation98_spill] sm:$0xff] %v9108_v53  ;;  %v3705_v27 = vpop.xlane.xlu1 %3704  ;;  %4269 = vadd.xlane.f32.xlu0 %v4171_v23  ;;  %v9111_v54 = vpop.xlane.xlu0 %3706  ;;  %v9115_v11 = vadd.f32 %v7127_v59, %v6951_v51  ;;  %v3983_v59 = vsub.f32 %v8858_v8, %v3884_v56  ;;  %v3886_v8 = vmul.f32 0.03125, %v3703_v47 }
 0x414   : > { %v3617_v39 = vpop.f32.mrb[83].mxu0 }
 0x415   : > { %10807 = vst [vmem:[#allocation99_spill] sm:$0xff] %v9115_v11  ;;  %4271 = vadd.xlane.f32.xlu1 %v4172_v10  ;;  %v9118_v57 = vadd.f32 %v3617_v39, %v3072_v46  ;;  %v6954_v24 = vpop.f32.mrb[84].mxu1  ;;  %v9131_v39 = vsel %vm3976_vm0, %v3982_v4, 0.0  ;;  %v9152_v56 = vsel %vm3976_vm0, %v3983_v59, 0.0 }
 0x416   : > { %v7130_v12 = vpop.f32.mrb[84].mxu0  ;;  %v3082_v23 = vpop.f32.mrb[85].mxu1  ;;  %10810 = vst [vmem:[#allocation102_spill] sm:$0xff] %v9131_v39  ;;  %v4174_v4 = vmul.f32 %v9131_v39, %v9131_v39  ;;  %10812 = vst [vmem:[#allocation104_spill] sm:$0xff] %v9152_v56 }
 0x417   : > { %10808 = vst [vmem:[#allocation100_spill] sm:$0xff] %v9118_v57  ;;  %v3709_v7 = vpop.xlane.xlu1 %3708  ;;  %3842 = vadd.xlane.f32.xlu0 %v9092_v32  ;;  %v9125_v44 = vpop.xlane.xlu0 %3710  ;;  %v9127_v51 = vadd.f32 %v7130_v12, %v6954_v24 }
 0x418   : > { %v3627_v46 = vpop.f32.mrb[85].mxu0 }
 0x419   : > { %3844 = vadd.xlane.f32.xlu1 %v9089_v41  ;;  %v9136_v17 = vadd.f32 %v3627_v46, %v3082_v23  ;;  %v6957_v28 = vpop.f32.mrb[86].mxu1  ;;  %v3984_v41 = vsub.f32 %v8856_v6, %v3885_v20  ;;  %v3887_v6 = vmul.f32 0.03125, %v3705_v27 }
 0x41a   : > { %v7133_v10 = vpop.f32.mrb[86].mxu0  ;;  %v3092_v32 = vpop.f32.mrb[87].mxu1 }
 0x41b   : > { %v9139_v24 = vpop.xlane.xlu1 %3712  ;;  %4273 = vadd.xlane.f32.xlu0 %v4173_v5  ;;  %v9141_v60 = vpop.xlane.xlu0 %3714  ;;  %v9145_v12 = vadd.f32 %v7133_v10, %v6957_v28 }
 0x41c   : > { %v3637_v1 = vpop.f32.mrb[87].mxu0 }
 0x41d   : > { %10811 = vst [vmem:[#allocation103_spill] sm:$0xff] %v9145_v12  ;;  %4275 = vadd.xlane.f32.xlu1 %v4174_v4  ;;  %v9148_v23 = vadd.f32 %v3637_v1, %v3092_v32  ;;  %v6960_v46 = vpop.f32.mrb[88].mxu1  ;;  %v9163_v32 = vsel %vm3976_vm0, %v3984_v41, 0.0  ;;  %v4175_v1 = vmul.f32 %v9152_v56, %v9152_v56  ;;  %v3985_v4 = vsub.f32 %v8864_v58, %v3886_v8 }
 0x41e   : > { %v7136_v5 = vpop.f32.mrb[88].mxu0  ;;  %v3102_v43 = vpop.f32.mrb[89].mxu1  ;;  %10813 = vst [vmem:[#allocation105_spill] sm:$0xff] %v9163_v32  ;;  %v4176_v41 = vmul.f32 %v9163_v32, %v9163_v32  ;;  %v3888_v58 = vmul.f32 0.03125, %v9111_v54 }
 0x41f   : > { %v9154_v26 = vpop.xlane.xlu1 %3716  ;;  %3846 = vadd.xlane.f32.xlu0 %v9108_v53  ;;  %v9157_v28 = vpop.xlane.xlu0 %3718  ;;  %v9159_v10 = vadd.f32 %v7136_v5, %v6960_v46  ;;  %v9185_v8 = vsel %vm3976_vm0, %v3985_v4, 0.0 }
 0x420   : > { %v3647_v47 = vpop.f32.mrb[89].mxu0  ;;  %10814 = vst [vmem:[#allocation106_spill] sm:$0xff] %v9185_v8 }
 0x421   : > { %3848 = vadd.xlane.f32.xlu1 %v9099_v63  ;;  %v9168_v20 = vadd.f32 %v3647_v47, %v3102_v43  ;;  %v6963_v59 = vpop.f32.mrb[90].mxu1  ;;  %v3986_v63 = vsub.f32 %v8862_v19, %v3887_v6  ;;  %v3889_v6 = vmul.f32 0.03125, %v3709_v7 }
 0x422   : > { %v7139_v53 = vpop.f32.mrb[90].mxu0  ;;  %v3112_v39 = vpop.f32.mrb[91].mxu1 }
 0x423   : > { %v9171_v46 = vpop.xlane.xlu1 %3720  ;;  %4277 = vadd.xlane.f32.xlu0 %v4175_v1  ;;  %v9173_v27 = vpop.xlane.xlu0 %3722  ;;  %v9177_v5 = vadd.f32 %v7139_v53, %v6963_v59 }
 0x424   : > { %v3657_v56 = vpop.f32.mrb[91].mxu0 }
 0x425   : > { %4279 = vadd.xlane.f32.xlu1 %v4176_v41  ;;  %v9180_v43 = vadd.f32 %v3657_v56, %v3112_v39  ;;  %v6966_v47 = vpop.f32.mrb[92].mxu1  ;;  %v9196_v39 = vsel %vm3976_vm0, %v3986_v63, 0.0  ;;  %v4177_v56 = vmul.f32 %v9185_v8, %v9185_v8  ;;  %v3987_v41 = vsub.f32 %v8870_v35, %v3888_v58 }
 0x426   : > { %v7142_v1 = vpop.f32.mrb[92].mxu0  ;;  %v3122_v2 = vpop.f32.mrb[93].mxu1  ;;  %v4178_v63 = vmul.f32 %v9196_v39, %v9196_v39  ;;  %v3890_v35 = vmul.f32 0.03125, %v9125_v44 }
 0x427   : > { %v9187_v13 = vpop.xlane.xlu1 %3724  ;;  %3850 = vadd.xlane.f32.xlu0 %v9118_v57  ;;  %v9190_v53 = vpop.xlane.xlu0 %3726  ;;  %v9192_v19 = vadd.f32 %v7142_v1, %v6966_v47  ;;  %v9218_v58 = vsel %vm3976_vm0, %v3987_v41, 0.0 }
 0x428   : > { %v3667_v54 = vpop.f32.mrb[93].mxu0  ;;  %v4179_v44 = vmul.f32 %v9218_v58, %v9218_v58 }
 0x429   : > { %10815 = vst [vmem:[#allocation107_spill] sm:$0xff] %v9192_v19  ;;  %3852 = vadd.xlane.f32.xlu1 %v9115_v11  ;;  %v9201_v59 = vadd.f32 %v3667_v54, %v3122_v2  ;;  %v6969_v4 = vpop.f32.mrb[94].mxu1  ;;  %v3988_v11 = vsub.f32 %v8868_v21, %v3889_v6 }
 0x42a   : > { %v7145_v57 = vpop.f32.mrb[94].mxu0  ;;  %v3132_v32 = vpop.f32.mrb[95].mxu1 }
 0x42b   : > { %v9204_v47 = vpop.xlane.xlu1 %3728  ;;  %4281 = vadd.xlane.f32.xlu0 %v4177_v56  ;;  %v9206_v7 = vpop.xlane.xlu0 %3730  ;;  %v9210_v1 = vadd.f32 %v7145_v57, %v6969_v4  ;;  %v3891_v57 = vmul.f32 0.03125, %v9139_v24  ;;  %v9228_v21 = vsel %vm3976_vm0, %v3988_v11, 0.0  ;;  %v3892_v11 = vmul.f32 0.03125, %v9141_v60 }
 0x42c   : > { %v3677_v8 = vpop.f32.mrb[95].mxu0  ;;  %v4180_v4 = vmul.f32 %v9228_v21, %v9228_v21 }
 0x42d   : > { %4283 = vadd.xlane.f32.xlu1 %v4178_v63  ;;  %v9213_v2 = vadd.f32 %v3677_v8, %v3132_v32  ;;  %v3989_v32 = vsub.f32 %v8876_v30, %v3890_v35  ;;  %v3990_v24 = vsub.f32 %v8874_v0, %v3891_v57  ;;  %v3893_v35 = vmul.f32 0.03125, %v9154_v26 }
 0x42e   : > { %v3991_v60 = vsub.f32 %v8882_v37, %v3892_v11  ;;  %v3895_v11 = vmul.f32 0.03125, %v9171_v46 }
 0x42f   : > { %v9220_v54 = vpop.xlane.xlu1 %3732  ;;  %3854 = vadd.xlane.f32.xlu0 %v9136_v17  ;;  %v9223_v56 = vpop.xlane.xlu0 %3734  ;;  %v9244_v41 = vsel %vm3976_vm0, %v3989_v32, 0.0  ;;  %v3992_v26 = vsub.f32 %v8880_v29, %v3893_v35 }
 0x430   : > { %10816 = vst [vmem:[#allocation108_spill] sm:$0xff] %v9244_v41  ;;  %v4181_v0 = vmul.f32 %v9244_v41, %v9244_v41  ;;  %v3994_v46 = vsub.f32 %v8886_v34, %v3895_v11 }
 0x431   : > { %3856 = vadd.xlane.f32.xlu1 %v9127_v51 }
 0x433   : > { %v9234_v8 = vpop.xlane.xlu1 %3736  ;;  %4285 = vadd.xlane.f32.xlu0 %v4179_v44  ;;  %v9236_v6 = vpop.xlane.xlu0 %3738  ;;  %v9254_v44 = vsel %vm3976_vm0, %v3990_v24, 0.0  ;;  %v3894_v24 = vmul.f32 0.03125, %v9157_v28 }
 0x434   : > { %10817 = vst [vmem:[#allocation109_spill] sm:$0xff] %v9254_v44 }
 0x435   : > { %4287 = vadd.xlane.f32.xlu1 %v4180_v4  ;;  %v4182_v4 = vmul.f32 %v9254_v44, %v9254_v44  ;;  %v3993_v28 = vsub.f32 %v8888_v42, %v3894_v24  ;;  %v3897_v24 = vmul.f32 0.03125, %v9187_v13 }
 0x437   : > { %v9246_v63 = vpop.xlane.xlu1 %3740  ;;  %3858 = vadd.xlane.f32.xlu0 %v9148_v23  ;;  %v9249_v30 = vpop.xlane.xlu0 %3742  ;;  %v9296_v44 = vsel %vm3976_vm0, %v3993_v28, 0.0  ;;  %v3996_v13 = vsub.f32 %v8892_v22, %v3897_v24  ;;  %v3900_v24 = vmul.f32 0.03125, %v9206_v7 }
 0x438   : > { %10820 = vst [vmem:[#allocation112_spill] sm:$0xff] %v9296_v44  ;;  %v4185_v34 = vmul.f32 %v9296_v44, %v9296_v44 }
 0x439   : > { %3860 = vadd.xlane.f32.xlu1 %v9145_v12  ;;  %v9270_v12 = vsel %vm3976_vm0, %v3991_v60, 0.0 }
 0x43a   : > { %10818 = vst [vmem:[#allocation110_spill] sm:$0xff] %v9270_v12  ;;  %v4183_v29 = vmul.f32 %v9270_v12, %v9270_v12 }
 0x43b   : > { %v9260_v57 = vpop.xlane.xlu1 %3744  ;;  %4289 = vadd.xlane.f32.xlu0 %v4181_v0  ;;  %v9262_v32 = vpop.xlane.xlu0 %3746  ;;  %v9280_v0 = vsel %vm3976_vm0, %v3992_v26, 0.0  ;;  %v3896_v26 = vmul.f32 0.03125, %v9173_v27 }
 0x43c   : > { %10819 = vst [vmem:[#allocation111_spill] sm:$0xff] %v9280_v0 }
 0x43d   : > { %4291 = vadd.xlane.f32.xlu1 %v4182_v4  ;;  %v4184_v4 = vmul.f32 %v9280_v0, %v9280_v0  ;;  %v3995_v27 = vsub.f32 %v8894_v45, %v3896_v26  ;;  %v3899_v26 = vmul.f32 0.03125, %v9204_v47 }
 0x43f   : > { %v9272_v41 = vpop.xlane.xlu1 %3748  ;;  %3862 = vadd.xlane.f32.xlu0 %v9168_v20  ;;  %v9275_v37 = vpop.xlane.xlu0 %3750  ;;  %v9322_v0 = vsel %vm3976_vm0, %v3995_v27, 0.0 }
 0x440   : > { %10822 = vst [vmem:[#allocation114_spill] sm:$0xff] %v9322_v0  ;;  %v4187_v22 = vmul.f32 %v9322_v0, %v9322_v0  ;;  %v3902_v0 = vmul.f32 0.03125, %v9223_v56 }
 0x441   : > { %3864 = vadd.xlane.f32.xlu1 %v9159_v10 }
 0x442   : > { %v4001_v56 = vsub.f32 %v8912_v9, %v3902_v0  ;;  %v3906_v0 = vmul.f32 0.03125, %v9249_v30 }
 0x443   : > { %v9286_v35 = vpop.xlane.xlu1 %3752  ;;  %4293 = vadd.xlane.f32.xlu0 %v4183_v29  ;;  %v9288_v60 = vpop.xlane.xlu0 %3754  ;;  %v9306_v29 = vsel %vm3976_vm0, %v3994_v46, 0.0  ;;  %v3898_v46 = vmul.f32 0.03125, %v9190_v53 }
 0x444   : > { %10821 = vst [vmem:[#allocation113_spill] sm:$0xff] %v9306_v29 }
 0x445   : > { %4295 = vadd.xlane.f32.xlu1 %v4184_v4  ;;  %v4186_v4 = vmul.f32 %v9306_v29, %v9306_v29  ;;  %v3997_v53 = vsub.f32 %v8900_v40, %v3898_v46  ;;  %v3901_v29 = vmul.f32 0.03125, %v9220_v54 }
 0x447   : > { %v9298_v12 = vpop.xlane.xlu1 %3756  ;;  %3866 = vadd.xlane.f32.xlu0 %v9180_v43  ;;  %v9301_v42 = vpop.xlane.xlu0 %3758  ;;  %v9351_v40 = vsel %vm3976_vm0, %v3997_v53, 0.0 }
 0x449   : > { %3868 = vadd.xlane.f32.xlu1 %v9177_v5 }
 0x44b   : > { %v9312_v11 = vpop.xlane.xlu1 %3760  ;;  %4297 = vadd.xlane.f32.xlu0 %v4185_v34  ;;  %v9314_v28 = vpop.xlane.xlu0 %3762  ;;  %v9332_v34 = vsel %vm3976_vm0, %v3996_v13, 0.0  ;;  %v3998_v13 = vsub.f32 %v8898_v49, %v3899_v26  ;;  %v3903_v49 = vmul.f32 0.03125, %v9234_v8  ;;  %v3904_v26 = vmul.f32 0.03125, %v9236_v6 }
 0x44c   : > { %v4188_v47 = vmul.f32 %v9332_v34, %v9332_v34 }
 0x44d   : > { %4299 = vadd.xlane.f32.xlu1 %v4186_v4  ;;  %v9362_v54 = vsel %vm3976_vm0, %v3998_v13, 0.0  ;;  %v4003_v6 = vsub.f32 %v8918_v62, %v3904_v26  ;;  %v9391_v13 = vsel %vm3976_vm0, %v4001_v56, 0.0  ;;  %v4005_v56 = vsub.f32 %v8924_v18, %v3906_v0 }
 0x44e   : > { %v4193_v30 = vmul.f32 %v9391_v13, %v9391_v13  ;;  %v3908_v26 = vmul.f32 0.03125, %v9262_v32  ;;  %v3910_v0 = vmul.f32 0.03125, %v9275_v37 }
 0x44f   : > { %v9324_v44 = vpop.xlane.xlu1 %3764  ;;  %3870 = vadd.xlane.f32.xlu0 %v9201_v59  ;;  %v9327_v45 = vpop.xlane.xlu0 %3766 }
 0x451   : > { %3872 = vadd.xlane.f32.xlu1 %v9192_v19  ;;  %v3999_v19 = vsub.f32 %v8906_v36, %v3900_v24  ;;  %v4189_v36 = vmul.f32 %v9351_v40, %v9351_v40  ;;  %v4002_v24 = vsub.f32 %v8910_v14, %v3903_v49  ;;  %v3907_v49 = vmul.f32 0.03125, %v9260_v57 }
 0x453   : > { %v9339_v27 = vpop.xlane.xlu1 %3768  ;;  %4301 = vadd.xlane.f32.xlu0 %v4187_v22  ;;  %v9341_v4 = vpop.xlane.xlu0 %3770  ;;  %v4000_v22 = vsub.f32 %v8904_v61, %v3901_v29  ;;  %v9371_v53 = vsel %vm3976_vm0, %v3999_v19, 0.0  ;;  %v4190_v29 = vmul.f32 %v9362_v54, %v9362_v54  ;;  %v9403_v62 = vsel %vm3976_vm0, %v4002_v24, 0.0 }
 0x454   : > { %v4191_v19 = vmul.f32 %v9371_v53, %v9371_v53  ;;  %v4194_v57 = vmul.f32 %v9403_v62, %v9403_v62  ;;  %v4006_v24 = vsub.f32 %v8922_v25, %v3907_v49  ;;  %v3911_v49 = vmul.f32 0.03125, %v9286_v35 }
 0x455   : > { %4303 = vadd.xlane.f32.xlu1 %v4188_v47  ;;  %v3905_v47 = vmul.f32 0.03125, %v9246_v63  ;;  %v9383_v9 = vsel %vm3976_vm0, %v4000_v22, 0.0 }
 0x456   : > { %v4192_v63 = vmul.f32 %v9383_v9, %v9383_v9 }
 0x457   : > { %v9353_v7 = vpop.xlane.xlu1 %3772  ;;  %3874 = vadd.xlane.f32.xlu0 %v9213_v2  ;;  %v9356_v46 = vpop.xlane.xlu0 %3774  ;;  %v4004_v22 = vsub.f32 %v8916_v48, %v3905_v47  ;;  %v3909_v47 = vmul.f32 0.03125, %v9272_v41 }
 0x459   : > { %3876 = vadd.xlane.f32.xlu1 %v9210_v1  ;;  %v9423_v18 = vsel %vm3976_vm0, %v4004_v22, 0.0  ;;  %v4008_v22 = vsub.f32 %v8928_v3, %v3909_v47  ;;  %v3913_v47 = vmul.f32 0.03125, %v9298_v12 }
 0x45a   : > { %v4196_v41 = vmul.f32 %v9423_v18, %v9423_v18 }
 0x45b   : > { %v9373_v61 = vpop.xlane.xlu1 %3776  ;;  %4305 = vadd.xlane.f32.xlu0 %v4189_v36  ;;  %v9375_v8 = vpop.xlane.xlu0 %3778 }
 0x45d   : > { %4307 = vadd.xlane.f32.xlu1 %v4190_v29  ;;  %v9411_v29 = vsel %vm3976_vm0, %v4003_v6, 0.0  ;;  %v4007_v6 = vsub.f32 %v8930_v33, %v3908_v26  ;;  %v9443_v33 = vsel %vm3976_vm0, %v4006_v24, 0.0  ;;  %v3912_v26 = vmul.f32 0.03125, %v9288_v60 }
 0x45e   : > { %v4195_v32 = vmul.f32 %v9411_v29, %v9411_v29  ;;  %10823 = vst [vmem:[#allocation115_spill] sm:$0xff] %v9443_v33  ;;  %v4198_v35 = vmul.f32 %v9443_v33, %v9443_v33  ;;  %v4010_v24 = vsub.f32 %v8934_v38, %v3911_v49  ;;  %v3915_v49 = vmul.f32 0.03125, %v9312_v11 }
 0x45f   : > { %v9393_v36 = vpop.xlane.xlu1 %3780  ;;  %4309 = vadd.xlane.f32.xlu0 %v4191_v19  ;;  %v9395_v14 = vpop.xlane.xlu0 %3782 }
 0x461   : > { %4311 = vadd.xlane.f32.xlu1 %v4192_v63  ;;  %v9431_v63 = vsel %vm3976_vm0, %v4005_v56, 0.0  ;;  %v4009_v56 = vsub.f32 %v8936_v31, %v3910_v0  ;;  %v9463_v31 = vsel %vm3976_vm0, %v4008_v22, 0.0  ;;  %v3914_v0 = vmul.f32 0.03125, %v9301_v42 }
 0x462   : > { %v4197_v37 = vmul.f32 %v9431_v63, %v9431_v63  ;;  %10825 = vst [vmem:[#allocation117_spill] sm:$0xff] %v9463_v31  ;;  %v4200_v12 = vmul.f32 %v9463_v31, %v9463_v31  ;;  %v4012_v22 = vsub.f32 %v8940_v15, %v3913_v47  ;;  %v3917_v47 = vmul.f32 0.03125, %v9324_v44 }
 0x463   : > { %v9413_v19 = vpop.xlane.xlu1 %3784  ;;  %4313 = vadd.xlane.f32.xlu0 %v4193_v30  ;;  %v9415_v48 = vpop.xlane.xlu0 %3786 }
 0x465   : > { %4315 = vadd.xlane.f32.xlu1 %v4194_v57  ;;  %v9451_v57 = vsel %vm3976_vm0, %v4007_v6, 0.0  ;;  %v4011_v6 = vsub.f32 %v8942_v16, %v3912_v26  ;;  %v9483_v16 = vsel %vm3976_vm0, %v4010_v24, 0.0  ;;  %v3916_v26 = vmul.f32 0.03125, %v9314_v28 }
 0x466   : > { %10824 = vst [vmem:[#allocation116_spill] sm:$0xff] %v9451_v57  ;;  %v4199_v60 = vmul.f32 %v9451_v57, %v9451_v57  ;;  %10827 = vst [vmem:[#allocation119_spill] sm:$0xff] %v9483_v16  ;;  %v4202_v11 = vmul.f32 %v9483_v16, %v9483_v16  ;;  %v4014_v24 = vsub.f32 %v8946_v52, %v3915_v49 }
 0x467   : > { %v9433_v30 = vpop.xlane.xlu1 %3788  ;;  %4317 = vadd.xlane.f32.xlu0 %v4195_v32  ;;  %v9435_v25 = vpop.xlane.xlu0 %3790 }
 0x469   : > { %4319 = vadd.xlane.f32.xlu1 %v4196_v41  ;;  %v9471_v41 = vsel %vm3976_vm0, %v4009_v56, 0.0  ;;  %v4013_v56 = vsub.f32 %v8948_v50, %v3914_v0  ;;  %v9503_v50 = vsel %vm3976_vm0, %v4012_v22, 0.0  ;;  %v10832_v22 = vld [vmem:[#allocation51_spill] sm:$0xff] }
 0x46a   : > { %10826 = vst [vmem:[#allocation118_spill] sm:$0xff] %v9471_v41  ;;  %v4201_v42 = vmul.f32 %v9471_v41, %v9471_v41  ;;  %10829 = vst [vmem:[#allocation121_spill] sm:$0xff] %v9503_v50  ;;  %v4204_v44 = vmul.f32 %v9503_v50, %v9503_v50  ;;  %v4016_v49 = vsub.f32 %v10832_v22, %v3917_v47  ;;  %v10836_v47 = vld [vmem:[#allocation53_spill] sm:$0xff]  ;;  %v3921_v22 = vmul.f32 0.03125, %v9353_v7 }
 0x46b   : > { %v9453_v32 = vpop.xlane.xlu1 %3792  ;;  %4321 = vadd.xlane.f32.xlu0 %v4197_v37  ;;  %v9455_v3 = vpop.xlane.xlu0 %3794 }
 0x46d   : > { %4323 = vadd.xlane.f32.xlu1 %v4198_v35  ;;  %v9491_v35 = vsel %vm3976_vm0, %v4011_v6, 0.0  ;;  %v10830_v6 = vld [vmem:[#allocation52_spill] sm:$0xff] }
 0x46e   : > { %10828 = vst [vmem:[#allocation120_spill] sm:$0xff] %v9491_v35  ;;  %v4203_v28 = vmul.f32 %v9491_v35, %v9491_v35  ;;  %v4015_v0 = vsub.f32 %v10830_v6, %v3916_v26  ;;  %v9523_v26 = vsel %vm3976_vm0, %v4014_v24, 0.0 }
 0x46f   : > { %v9473_v37 = vpop.xlane.xlu1 %3796  ;;  %4325 = vadd.xlane.f32.xlu0 %v4199_v60  ;;  %v9475_v38 = vpop.xlane.xlu0 %3798  ;;  %10833 = vst [vmem:[#allocation51_spill] sm:$0xff] %v9523_v26  ;;  %v4206_v24 = vmul.f32 %v9523_v26, %v9523_v26 }
 0x470   : > { %v9531_v35 = vsel %vm3976_vm0, %v4015_v0, 0.0  ;;  %v10838_v0 = vld [vmem:[#allocation56_spill] sm:$0xff] }
 0x471   : > { %4327 = vadd.xlane.f32.xlu1 %v4200_v12  ;;  %v3918_v12 = vmul.f32 0.03125, %v9327_v45 }
 0x473   : > { %v9493_v60 = vpop.xlane.xlu1 %3800  ;;  %4329 = vadd.xlane.f32.xlu0 %v4201_v42  ;;  %v9495_v15 = vpop.xlane.xlu0 %3802  ;;  %v9511_v42 = vsel %vm3976_vm0, %v4013_v56, 0.0  ;;  %v10834_v56 = vld [vmem:[#allocation54_spill] sm:$0xff] }
 0x474   : > { %10831 = vst [vmem:[#allocation52_spill] sm:$0xff] %v9511_v42  ;;  %v4205_v45 = vmul.f32 %v9511_v42, %v9511_v42  ;;  %v4017_v6 = vsub.f32 %v10834_v56, %v3918_v12  ;;  %10835 = vst [vmem:[#allocation54_spill] sm:$0xff] %v9531_v35  ;;  %v9543_v12 = vsel %vm3976_vm0, %v4016_v49, 0.0 }
 0x475   : > { %4331 = vadd.xlane.f32.xlu1 %v4202_v11  ;;  %v3919_v11 = vmul.f32 0.03125, %v9339_v27  ;;  %10837 = vst [vmem:[#allocation53_spill] sm:$0xff] %v9543_v12  ;;  %v4208_v49 = vmul.f32 %v9543_v12, %v9543_v12 }
 0x476   : > { %v9551_v42 = vsel %vm3976_vm0, %v4017_v6, 0.0  ;;  %v10842_v6 = vld [vmem:[#allocation58_spill] sm:$0xff] }
 0x477   : > { %v9513_v16 = vpop.xlane.xlu1 %3804  ;;  %4333 = vadd.xlane.f32.xlu0 %v4203_v28  ;;  %v9515_v52 = vpop.xlane.xlu0 %3806  ;;  %v3920_v28 = vmul.f32 0.03125, %v9341_v4  ;;  %v4207_v4 = vmul.f32 %v9531_v35, %v9531_v35  ;;  %10839 = vst [vmem:[#allocation56_spill] sm:$0xff] %v9551_v42 }
 0x479   : > { %4335 = vadd.xlane.f32.xlu1 %v4204_v44  ;;  %v4018_v44 = vsub.f32 %v10836_v47, %v3919_v11  ;;  %v4019_v56 = vsub.f32 %v10838_v0, %v3920_v28  ;;  %v10840_v11 = vld [vmem:[#allocation55_spill] sm:$0xff]  ;;  %v3923_v47 = vmul.f32 0.03125, %v9373_v61 }
 0x47b   : > { %v9533_v50 = vpop.xlane.xlu1 %3808  ;;  %4337 = vadd.xlane.f32.xlu0 %v4205_v45  ;;  %v9535_v27 = vpop.xlane.xlu0 %3810  ;;  %v3922_v45 = vmul.f32 0.03125, %v9356_v46  ;;  %v9563_v28 = vsel %vm3976_vm0, %v4018_v44, 0.0  ;;  %v4209_v46 = vmul.f32 %v9551_v42, %v9551_v42  ;;  %v9571_v35 = vsel %vm3976_vm0, %v4019_v56, 0.0  ;;  %v10846_v56 = vld [vmem:[#allocation60_spill] sm:$0xff] }
 0x47c   : > { %10841 = vst [vmem:[#allocation55_spill] sm:$0xff] %v9563_v28  ;;  %10843 = vst [vmem:[#allocation58_spill] sm:$0xff] %v9571_v35  ;;  %v4210_v44 = vmul.f32 %v9563_v28, %v9563_v28 }
 0x47d   : > { %4339 = vadd.xlane.f32.xlu1 %v4206_v24  ;;  %v4020_v24 = vsub.f32 %v10840_v11, %v3921_v22  ;;  %v4021_v0 = vsub.f32 %v10842_v6, %v3922_v45  ;;  %v10844_v22 = vld [vmem:[#allocation57_spill] sm:$0xff]  ;;  %v3925_v11 = vmul.f32 0.03125, %v9393_v36 }
 0x47f   : > { %v9553_v26 = vpop.xlane.xlu1 %3812  ;;  %4341 = vadd.xlane.f32.xlu0 %v4207_v4  ;;  %v9555_v7 = vpop.xlane.xlu0 %3814  ;;  %v3924_v4 = vmul.f32 0.03125, %v9375_v8  ;;  %v9583_v45 = vsel %vm3976_vm0, %v4020_v24, 0.0  ;;  %v4211_v8 = vmul.f32 %v9571_v35, %v9571_v35  ;;  %v9591_v42 = vsel %vm3976_vm0, %v4021_v0, 0.0  ;;  %v10850_v0 = vld [vmem:[#allocation62_spill] sm:$0xff] }
 0x480   : > { %10845 = vst [vmem:[#allocation57_spill] sm:$0xff] %v9583_v45  ;;  %10847 = vst [vmem:[#allocation60_spill] sm:$0xff] %v9591_v42  ;;  %v4212_v24 = vmul.f32 %v9583_v45, %v9583_v45 }
 0x481   : > { %4343 = vadd.xlane.f32.xlu1 %v4208_v49  ;;  %v4022_v49 = vsub.f32 %v10844_v22, %v3923_v47  ;;  %v4023_v6 = vsub.f32 %v10846_v56, %v3924_v4  ;;  %v10848_v47 = vld [vmem:[#allocation59_spill] sm:$0xff]  ;;  %v3927_v22 = vmul.f32 0.03125, %v9413_v19 }
 0x483   : > { %v9573_v12 = vpop.xlane.xlu1 %3816  ;;  %4345 = vadd.xlane.f32.xlu0 %v4209_v46  ;;  %v9575_v61 = vpop.xlane.xlu0 %3818  ;;  %v3926_v46 = vmul.f32 0.03125, %v9395_v14  ;;  %v9603_v4 = vsel %vm3976_vm0, %v4022_v49, 0.0  ;;  %v4213_v14 = vmul.f32 %v9591_v42, %v9591_v42  ;;  %v9611_v35 = vsel %vm3976_vm0, %v4023_v6, 0.0  ;;  %v10854_v6 = vld [vmem:[#allocation64_spill] sm:$0xff] }
 0x484   : > { %10849 = vst [vmem:[#allocation59_spill] sm:$0xff] %v9603_v4  ;;  %10851 = vst [vmem:[#allocation62_spill] sm:$0xff] %v9611_v35  ;;  %v4214_v49 = vmul.f32 %v9603_v4, %v9603_v4 }
 0x485   : > { %4347 = vadd.xlane.f32.xlu1 %v4210_v44  ;;  %v4024_v44 = vsub.f32 %v10848_v47, %v3925_v11  ;;  %v4025_v56 = vsub.f32 %v10850_v0, %v3926_v46  ;;  %v10852_v11 = vld [vmem:[#allocation61_spill] sm:$0xff]  ;;  %v3929_v47 = vmul.f32 0.03125, %v9433_v30 }
 0x487   : > { %v9593_v28 = vpop.xlane.xlu1 %3820  ;;  %4349 = vadd.xlane.f32.xlu0 %v4211_v8  ;;  %v9595_v36 = vpop.xlane.xlu0 %3822  ;;  %v3928_v8 = vmul.f32 0.03125, %v9415_v48  ;;  %v9623_v46 = vsel %vm3976_vm0, %v4024_v44, 0.0  ;;  %v4215_v48 = vmul.f32 %v9611_v35, %v9611_v35  ;;  %v9631_v42 = vsel %vm3976_vm0, %v4025_v56, 0.0  ;;  %v10858_v56 = vld [vmem:[#allocation66_spill] sm:$0xff] }
 0x488   : > { %10853 = vst [vmem:[#allocation61_spill] sm:$0xff] %v9623_v46  ;;  %10855 = vst [vmem:[#allocation64_spill] sm:$0xff] %v9631_v42  ;;  %v4216_v44 = vmul.f32 %v9623_v46, %v9623_v46 }
 0x489   : > { %4351 = vadd.xlane.f32.xlu1 %v4212_v24  ;;  %v4026_v24 = vsub.f32 %v10852_v11, %v3927_v22  ;;  %v4027_v0 = vsub.f32 %v10854_v6, %v3928_v8  ;;  %v10856_v22 = vld [vmem:[#allocation63_spill] sm:$0xff]  ;;  %v3931_v11 = vmul.f32 0.03125, %v9453_v32 }
 0x48b   : > { %v9613_v45 = vpop.xlane.xlu1 %3824  ;;  %4353 = vadd.xlane.f32.xlu0 %v4213_v14  ;;  %v9615_v19 = vpop.xlane.xlu0 %3826  ;;  %v3930_v14 = vmul.f32 0.03125, %v9435_v25  ;;  %v9643_v8 = vsel %vm3976_vm0, %v4026_v24, 0.0  ;;  %v4217_v25 = vmul.f32 %v9631_v42, %v9631_v42  ;;  %v9651_v35 = vsel %vm3976_vm0, %v4027_v0, 0.0  ;;  %v10860_v24 = vld [vmem:[#allocation65_spill] sm:$0xff]  ;;  %v10862_v0 = vld [vmem:[#allocation68_spill] sm:$0xff] }
 0x48c   : > { %10857 = vst [vmem:[#allocation63_spill] sm:$0xff] %v9643_v8  ;;  %10859 = vst [vmem:[#allocation66_spill] sm:$0xff] %v9651_v35  ;;  %v4218_v32 = vmul.f32 %v9643_v8, %v9643_v8  ;;  %v3934_v42 = vmul.f32 0.03125, %v9475_v38  ;;  %v3935_v38 = vmul.f32 0.03125, %v9493_v60 }
 0x48d   : > { %4355 = vadd.xlane.f32.xlu1 %v4214_v49  ;;  %v4028_v49 = vsub.f32 %v10856_v22, %v3929_v47  ;;  %v4029_v6 = vsub.f32 %v10858_v56, %v3930_v14  ;;  %v3933_v47 = vmul.f32 0.03125, %v9473_v37  ;;  %v4219_v37 = vmul.f32 %v9651_v35, %v9651_v35  ;;  %v10864_v56 = vld [vmem:[#allocation67_spill] sm:$0xff] }
 0x48e   : > { %v3936_v35 = vmul.f32 0.03125, %v9495_v15 }
 0x48f   : > { %v9633_v4 = vpop.xlane.xlu1 %3828  ;;  %4357 = vadd.xlane.f32.xlu0 %v4215_v48  ;;  %v9635_v30 = vpop.xlane.xlu0 %3830  ;;  %v3932_v48 = vmul.f32 0.03125, %v9455_v3  ;;  %v9664_v3 = vsel %vm3976_vm0, %v4028_v49, 0.0 }
 0x490   : > { %10861 = vst [vmem:[#allocation65_spill] sm:$0xff] %v9664_v3  ;;  %v4220_v49 = vmul.f32 %v9664_v3, %v9664_v3 }
 0x491   : > { %4359 = vadd.xlane.f32.xlu1 %v4216_v44  ;;  %v4030_v44 = vsub.f32 %v10860_v24, %v3931_v11  ;;  %v4031_v14 = vsub.f32 %v10862_v0, %v3932_v48  ;;  %v4032_v11 = vsub.f32 %v10864_v56, %v3933_v47 }
 0x493   : > { %v9654_v22 = vpop.xlane.xlu1 %3832  ;;  %4361 = vadd.xlane.f32.xlu0 %v4217_v25  ;;  %v9671_v25 = vsel %vm3976_vm0, %v4029_v6, 0.0  ;;  %v9683_v48 = vsel %vm3976_vm0, %v4030_v44, 0.0  ;;  %v9689_v47 = vsel %vm3976_vm0, %v4031_v14, 0.0  ;;  %v9696_v44 = vsel %vm3976_vm0, %v4032_v11, 0.0 }
 0x494   : > { %v9660_v46 = vpop.xlane.xlu0 %3834  ;;  %10863 = vst [vmem:[#allocation68_spill] sm:$0xff] %v9671_v25  ;;  %10866 = vst [vmem:[#allocation67_spill] sm:$0xff] %v9683_v48  ;;  %v4221_v60 = vmul.f32 %v9671_v25, %v9671_v25  ;;  %v4222_v15 = vmul.f32 %v9683_v48, %v9683_v48  ;;  %v3939_v11 = vmul.f32 0.03125, %v9533_v50 }
 0x495   : > { %4363 = vadd.xlane.f32.xlu1 %v4218_v32  ;;  %v10865_v32 = vld [vmem:[#allocation70_spill] sm:$0xff] }
 0x496   : > { %v4033_v8 = vsub.f32 %v10865_v32, %v3934_v42  ;;  %10867 = vst [vmem:[#allocation70_spill] sm:$0xff] %v9689_v47  ;;  %v3937_v32 = vmul.f32 0.03125, %v9513_v16  ;;  %v4224_v16 = vmul.f32 %v9696_v44, %v9696_v44 }
 0x497   : > { %v9675_v24 = vpop.xlane.xlu1 %3836  ;;  %4365 = vadd.xlane.f32.xlu0 %v4219_v37  ;;  %v10868_v37 = vld [vmem:[#allocation69_spill] sm:$0xff] }
 0x498   : > { %v4266_v41 = vpop.xlane.xlu0 %4265  ;;  %v4034_v0 = vsub.f32 %v10868_v37, %v3935_v38  ;;  %10869 = vst [vmem:[#allocation69_spill] sm:$0xff] %v9696_v44  ;;  %v9704_v14 = vsel %vm3976_vm0, %v4033_v8, 0.0  ;;  %v3938_v38 = vmul.f32 0.03125, %v9515_v52  ;;  %v10873_v37 = vld [vmem:[#allocation71_spill] sm:$0xff] }
 0x499   : > { %v4457_v6 = vmul.f32 0.03125, %v4266_v41  ;;  %4367 = vadd.xlane.f32.xlu1 %v4220_v49  ;;  %v10870_v41 = vld [vmem:[#allocation72_spill] sm:$0xff]  ;;  %v4225_v8 = vmul.f32 %v9704_v14, %v9704_v14 }
 0x49a   : > { %v4035_v49 = vsub.f32 %v10870_v41, %v3936_v35  ;;  %10871 = vst [vmem:[#allocation72_spill] sm:$0xff] %v9704_v14  ;;  %v9718_v52 = vsel %vm3976_vm0, %v4034_v0, 0.0  ;;  %v3942_v14 = vmul.f32 0.03125, %v9555_v7  ;;  %v10876_v0 = vld [vmem:[#allocation73_spill] sm:$0xff] }
 0x49b   : > { %v4553_v56 = vadd.f32 1e-05, %v4457_v6  ;;  %v4268_v42 = vpop.xlane.xlu1 %4267  ;;  %4369 = vadd.xlane.f32.xlu0 %v4221_v60  ;;  %v4223_v6 = vmul.f32 %v9689_v47, %v9689_v47  ;;  %10872 = vst [vmem:[#allocation122_spill] sm:$0xff] %v9718_v52  ;;  %v4038_v47 = vsub.f32 %v10876_v0, %v3939_v11 }
 0x49c   : > { %v4458_v25 = vmul.f32 0.03125, %v4268_v42  ;;  %v9700_v3 = vpop.xlane.xlu0 %3838  ;;  %v3940_v42 = vmul.f32 0.03125, %v9535_v27  ;;  %v4226_v27 = vmul.f32 %v9718_v52, %v9718_v52 }
 0x49d   : > { %7541 = vrsqrt.f32 %v4553_v56  ;;  %4371 = vadd.xlane.f32.xlu1 %v4222_v15  ;;  %v4036_v56 = vsub.f32 %v10873_v37, %v3937_v32  ;;  %v10875_v15 = vld [vmem:[#allocation74_spill] sm:$0xff] }
 0x49e   : > { %v4554_v60 = vadd.f32 1e-05, %v4458_v25  ;;  %v9724_v25 = vsel %vm3976_vm0, %v4035_v49, 0.0  ;;  %v4037_v41 = vsub.f32 %v10875_v15, %v3938_v38  ;;  %v10879_v38 = vld [vmem:[#allocation75_spill] sm:$0xff]  ;;  %v9750_v15 = vsel %vm3976_vm0, %v4038_v47, 0.0 }
 0x49f   : > { %v9710_v35 = vpop.xlane.xlu1 %3840  ;;  %4373 = vadd.xlane.f32.xlu0 %v4223_v6  ;;  %10874 = vst [vmem:[#allocation71_spill] sm:$0xff] %v9724_v25  ;;  %v3941_v6 = vmul.f32 0.03125, %v9553_v26  ;;  %v4227_v26 = vmul.f32 %v9724_v25, %v9724_v25  ;;  %v9739_v7 = vsel %vm3976_vm0, %v4036_v56, 0.0  ;;  %v3944_v56 = vmul.f32 0.03125, %v9575_v61 }
 0x4a0   : > { %7543 = vrsqrt.f32 %v4554_v60  ;;  %v4270_v50 = vpop.xlane.xlu0 %4269  ;;  %v10877_v60 = vld [vmem:[#allocation76_spill] sm:$0xff]  ;;  %10878 = vst [vmem:[#allocation74_spill] sm:$0xff] %v9739_v7 }
 0x4a1   : > { %v4459_v44 = vmul.f32 0.03125, %v4270_v50  ;;  %4375 = vadd.xlane.f32.xlu1 %v4224_v16  ;;  %v4039_v37 = vsub.f32 %v10877_v60, %v3940_v42  ;;  %v4040_v11 = vsub.f32 %v10879_v38, %v3941_v6  ;;  %v3943_v42 = vmul.f32 0.03125, %v9573_v12  ;;  %10882 = vst [vmem:[#allocation76_spill] sm:$0xff] %v9750_v15  ;;  %v10883_v12 = vld [vmem:[#allocation89_spill] sm:$0xff] }
 0x4a2   : > { %v4230_v60 = vmul.f32 %v9750_v15, %v9750_v15  ;;  %v3947_v15 = vmul.f32 0.03125, %v9613_v45 }
 0x4a3   : > { %v4555_v48 = vadd.f32 1e-05, %v4459_v44  ;;  %v4272_v32 = vpop.xlane.xlu1 %4271  ;;  %4377 = vadd.xlane.f32.xlu0 %v4225_v8  ;;  %v10880_v44 = vld [vmem:[#allocation78_spill] sm:$0xff]  ;;  %v9745_v8 = vsel %vm3976_vm0, %v4037_v41, 0.0  ;;  %v4228_v41 = vmul.f32 %v9739_v7, %v9739_v7  ;;  %v9767_v61 = vsel %vm3976_vm0, %v4039_v37, 0.0 }
 0x4a4   : > { %v4460_v49 = vmul.f32 0.03125, %v4272_v32  ;;  %v9733_v31 = vpop.xlane.xlu0 %3842  ;;  %v4041_v16 = vsub.f32 %v10880_v44, %v3942_v14  ;;  %10881 = vst [vmem:[#allocation73_spill] sm:$0xff] %v9745_v8  ;;  %v9756_v14 = vld [vmem:[%s10509_s5] ss:$0 sm:$0xff]  ;;  %v4229_v47 = vmul.f32 %v9745_v8, %v9745_v8  ;;  %10884 = vst [vmem:[#allocation75_spill] sm:$0xff] %v9767_v61  ;;  %v10887_v44 = vld [vmem:[#allocation77_spill] sm:$0xff] }
 0x4a5   : > { %7545 = vrsqrt.f32 %v4555_v48  ;;  %4379 = vadd.xlane.f32.xlu1 %v4226_v27  ;;  %v3946_v37 = vmul.f32 0.03125, %v9595_v36  ;;  %v4231_v36 = vmul.f32 %v9767_v61, %v9767_v61 }
 0x4a6   : > { %v4556_v50 = vadd.f32 1e-05, %v4460_v49  ;;  %v9773_v49 = vsel %vm3976_vm0, %v4040_v11, 0.0  ;;  %v10888_v11 = vld [vmem:[#allocation80_spill] sm:$0xff] }
 0x4a7   : > { %v7542_v0 = vpop.eup %7541  ;;  %v9758_v48 = vpop.xlane.xlu1 %3844  ;;  %4381 = vadd.xlane.f32.xlu0 %v4227_v26  ;;  %10885 = vst [vmem:[#allocation78_spill] sm:$0xff] %v9773_v49  ;;  %v9777_v26 = vsel %vm3976_vm0, %v4041_v16, 0.0  ;;  %v10889_v16 = vld [vmem:[#allocation91_spill] sm:$0xff] }
 0x4a8   : > { %v4745_v6 = vmul.f32 %v7542_v0, %v10883_v12  ;;  %7547 = vrsqrt.f32 %v4556_v50  ;;  %v4274_v32 = vpop.xlane.xlu0 %4273  ;;  %10886 = vst [vmem:[#allocation89_spill] sm:$0xff] %v9777_v26  ;;  %v4042_v50 = vsub.f32 %v10887_v44, %v3943_v42  ;;  %v3945_v0 = vmul.f32 0.03125, %v9593_v28 }
 0x4a9   : > { %v4461_v27 = vmul.f32 0.03125, %v4274_v32  ;;  %4383 = vadd.xlane.f32.xlu1 %v4228_v41  ;;  %v9785_v41 = vld [vmem:[%s10510_s6] ss:$0 sm:$0xff]  ;;  %v4043_v32 = vsub.f32 %v10888_v11, %v3944_v56  ;;  %v4232_v44 = vmul.f32 %v9773_v49, %v9773_v49  ;;  %v4233_v45 = vmul.f32 %v9777_v26, %v9777_v26  ;;  %v10893_v49 = vld [vmem:[#allocation81_spill] sm:$0xff]  ;;  %v10900_v26 = vld [vmem:[#allocation86_spill] sm:$0xff] }
 0x4aa   : > { %v7544_v38 = vpop.eup %7543  ;;  %v4848_v12 = vmul.f32 %v9756_v14, %v4745_v6  ;;  %v4046_v52 = vsub.f32 %v10893_v49, %v3947_v15 }
 0x4ab   : > { %v4746_v8 = vmul.f32 %v7544_v38, %v10889_v16  ;;  %v4557_v7 = vadd.f32 1e-05, %v4461_v27  ;;  %v4276_v25 = vpop.xlane.xlu1 %4275  ;;  %4385 = vadd.xlane.f32.xlu0 %v4229_v47  ;;  %v10890_v27 = vld [vmem:[#allocation79_spill] sm:$0xff]  ;;  %v9805_v16 = vsel %vm3976_vm0, %v4042_v50, 0.0 }
 0x4ac   : > { %v4462_v42 = vmul.f32 0.03125, %v4276_v25  ;;  %v9791_v28 = vpop.xlane.xlu0 %3846  ;;  %v4951_v6 = vadd.f32 %v9785_v41, %v4848_v12  ;;  %v4044_v47 = vsub.f32 %v10890_v27, %v3945_v0  ;;  %v10891_v25 = vld [vmem:[#allocation82_spill] sm:$0xff]  ;;  %10892 = vst [vmem:[#allocation77_spill] sm:$0xff] %v9805_v16  ;;  %v3948_v12 = vmul.f32 0.03125, %v9615_v19  ;;  %v10895_v50 = vld [vmem:[#allocation95_spill] sm:$0xff] }
 0x4ad   : > { %v4849_v56 = vmul.f32 %v9756_v14, %v4746_v8  ;;  %7549 = vrsqrt.f32 %v4557_v7  ;;  %4387 = vadd.xlane.f32.xlu1 %v4230_v60  ;;  %v4045_v38 = vsub.f32 %v10891_v25, %v3946_v37  ;;  %v9814_v60 = vsel %vm3976_vm0, %v4043_v32, 0.0 }
 0x4ae   : > { %v4558_v11 = vadd.f32 1e-05, %v4462_v42  ;;  %10894 = vst [vmem:[#allocation80_spill] sm:$0xff] %v9814_v60  ;;  %v3949_v0 = vmul.f32 0.03125, %v9633_v4  ;;  %v3950_v37 = vmul.f32 0.03125, %v9635_v30  ;;  %v5047_v15 = vmax.f32 %v4951_v6, 0.0 }
 0x4af   : > { %v7546_v61 = vpop.eup %7545  ;;  %v4952_v7 = vadd.f32 %v9785_v41, %v4849_v56  ;;  %v9810_v8 = vpop.xlane.xlu1 %3848  ;;  %4389 = vadd.xlane.f32.xlu0 %v4231_v36  ;;  %v4234_v56 = vmul.f32 %v9805_v16, %v9805_v16  ;;  %v4235_v32 = vmul.f32 %v9814_v60, %v9814_v60  ;;  %v9826_v4 = vsel %vm3976_vm0, %v4044_v47, 0.0 }
 0x4b0   : > { %v4747_v42 = vmul.f32 %v7546_v61, %v10895_v50  ;;  %7551 = vrsqrt.f32 %v4558_v11  ;;  %v4278_v27 = vpop.xlane.xlu0 %4277  ;;  %v9830_v30 = vsel %vm3976_vm0, %v4045_v38, 0.0  ;;  %v10897_v61 = vld [vmem:[#allocation84_spill] sm:$0xff]  ;;  %v10898_v11 = vld [vmem:[#allocation97_spill] sm:$0xff]  ;;  %v4049_v60 = vsub.f32 %v10900_v26, %v3950_v37 }
 0x4b1   : > { %v5048_v49 = vmax.f32 %v4952_v7, 0.0  ;;  %v4463_v19 = vmul.f32 0.03125, %v4278_v27  ;;  %4391 = vadd.xlane.f32.xlu1 %v4232_v44  ;;  %10896 = vst [vmem:[#allocation91_spill] sm:$0xff] %v9830_v30  ;;  %v4047_v6 = vsub.f32 %v10897_v61, %v3948_v12  ;;  %v9840_v47 = vsel %vm3976_vm0, %v4046_v52, 0.0  ;;  %v10903_v61 = vld [vmem:[#allocation85_spill] sm:$0xff] }
 0x4b2   : > { %v7548_v36 = vpop.eup %7547  ;;  %v4850_v25 = vmul.f32 %v9756_v14, %v4747_v42  ;;  %v10899_v42 = vld [vmem:[#allocation83_spill] sm:$0xff]  ;;  %10901 = vst [vmem:[#allocation79_spill] sm:$0xff] %v9840_v47  ;;  %v3951_v38 = vmul.f32 0.03125, %v9654_v22  ;;  %v3952_v26 = vmul.f32 0.03125, %v9660_v46  ;;  %v4236_v37 = vmul.f32 %v9826_v4, %v9826_v4 }
 0x4b3   : > { %v6239_v44 = vpack.c.bf16 %v5048_v49, %v5047_v15  ;;  %v4748_v7 = vmul.f32 %v7548_v36, %v10898_v11  ;;  %v4559_v50 = vadd.f32 1e-05, %v4463_v19  ;;  %v4280_v27 = vpop.xlane.xlu1 %4279  ;;  %4393 = vadd.xlane.f32.xlu0 %v4233_v45  ;;  %v4048_v16 = vsub.f32 %v10899_v42, %v3949_v0 }
 0x4b4   : > { %v4464_v57 = vmul.f32 0.03125, %v4280_v27  ;;  %v9836_v33 = vpop.xlane.xlu0 %3850  ;;  %v4953_v12 = vadd.f32 %v9785_v41, %v4850_v25  ;;  %v4237_v49 = vmul.f32 %v9830_v30, %v9830_v30  ;;  %v4238_v19 = vmul.f32 %v9840_v47, %v9840_v47  ;;  %v10904_v27 = vld [vmem:[#allocation88_spill] sm:$0xff] }
 0x4b5   : > { %6240 = vst [vmem:[%s10511_s7] sm:$0xff] %v6239_v44   ;;  %v4851_v45 = vmul.f32 %v9756_v14, %v4748_v7  ;;  %7553 = vrsqrt.f32 %v4559_v50  ;;  %4395 = vadd.xlane.f32.xlu1 %v4234_v56  ;;  %v9860_v56 = vsel %vm3976_vm0, %v4047_v6, 0.0  ;;  %v9865_v25 = vsel %vm3976_vm0, %v4048_v16, 0.0 }
 0x4b6   : > { %v4560_v0 = vadd.f32 1e-05, %v4464_v57  ;;  %v10902_v57 = vld [vmem:[#allocation101_spill] sm:$0xff]  ;;  %v4050_v44 = vsub.f32 %v10903_v61, %v3951_v38  ;;  %v5049_v11 = vmax.f32 %v4953_v12, 0.0  ;;  %v4051_v42 = vsub.f32 %v10904_v27, %v3952_v26 }
 0x4b7   : > { %v7550_v52 = vpop.eup %7549  ;;  %v4954_v15 = vadd.f32 %v9785_v41, %v4851_v45  ;;  %v9852_v22 = vpop.xlane.xlu1 %3852  ;;  %4397 = vadd.xlane.f32.xlu0 %v4235_v32  ;;  %v9869_v32 = vsel %vm3976_vm0, %v4049_v60, 0.0  ;;  %v3953_v45 = vmul.f32 0.03125, %v9675_v24  ;;  %v10905_v60 = vld [vmem:[#allocation102_spill] sm:$0xff]  ;;  %v4239_v26 = vmul.f32 %v9860_v56, %v9860_v56 }
 0x4b8   : > { %v4749_v46 = vmul.f32 %v7550_v52, %v10902_v57  ;;  %7555 = vrsqrt.f32 %v4560_v0  ;;  %v4282_v36 = vpop.xlane.xlu0 %4281  ;;  %v3954_v0 = vmul.f32 0.03125, %v9700_v3  ;;  %v3955_v52 = vmul.f32 0.03125, %v9710_v35 }
 0x4b9   : > { %v5050_v7 = vmax.f32 %v4954_v15, 0.0  ;;  %v4465_v50 = vmul.f32 0.03125, %v4282_v36  ;;  %4399 = vadd.xlane.f32.xlu1 %v4236_v37  ;;  %v4240_v35 = vmul.f32 %v9865_v25, %v9865_v25  ;;  %v10906_v37 = vld [vmem:[#allocation87_spill] sm:$0xff]  ;;  %v4241_v36 = vmul.f32 %v9869_v32, %v9869_v32 }
 0x4ba   : > { %v7552_v6 = vpop.eup %7551  ;;  %v4852_v16 = vmul.f32 %v9756_v14, %v4749_v46  ;;  %v9894_v61 = vsel %vm3976_vm0, %v4050_v44, 0.0  ;;  %v9903_v27 = vsel %vm3976_vm0, %v4051_v42, 0.0  ;;  %v10909_v44 = vld [vmem:[#allocation104_spill] sm:$0xff] }
 0x4bb   : > { %v6244_v57 = vpack.c.bf16 %v5050_v7, %v5049_v11  ;;  %v4750_v47 = vmul.f32 %v7552_v6, %v10905_v60  ;;  %v4561_v30 = vadd.f32 1e-05, %v4465_v50  ;;  %v4284_v38 = vpop.xlane.xlu1 %4283  ;;  %4401 = vadd.xlane.f32.xlu0 %v4237_v49  ;;  %v4052_v49 = vsub.f32 %v10906_v37, %v3953_v45  ;;  %v10907_v7 = vld [vmem:[#allocation92_spill] sm:$0xff]  ;;  %v10908_v6 = vld [vmem:[#allocation90_spill] sm:$0xff] }
 0x4bc   : > { %v4466_v12 = vmul.f32 0.03125, %v4284_v38  ;;  %v9878_v15 = vpop.xlane.xlu0 %3854  ;;  %v4955_v3 = vadd.f32 %v9785_v41, %v4852_v16  ;;  %v4053_v50 = vsub.f32 %v10907_v7, %v3954_v0  ;;  %v3956_v45 = vmul.f32 0.03125, %v9733_v31  ;;  %v10912_v7 = vld [vmem:[#allocation94_spill] sm:$0xff] }
 0x4bd   : > { %6523 = vst [vmem:[%s10511_s7 + $0x8] sm:$0xff] %v6244_v57   ;;  %v4853_v24 = vmul.f32 %v9756_v14, %v4750_v47  ;;  %7557 = vrsqrt.f32 %v4561_v30  ;;  %4403 = vadd.xlane.f32.xlu1 %v4238_v19  ;;  %v4054_v47 = vsub.f32 %v10908_v6, %v3955_v52  ;;  %v3957_v16 = vmul.f32 0.03125, %v9758_v48 }
 0x4be   : > { %v4562_v46 = vadd.f32 1e-05, %v4466_v12  ;;  %v5051_v0 = vmax.f32 %v4955_v3, 0.0  ;;  %v3958_v52 = vmul.f32 0.03125, %v9791_v28  ;;  %v4242_v42 = vmul.f32 %v9894_v61, %v9894_v61  ;;  %v10910_v3 = vld [vmem:[#allocation105_spill] sm:$0xff] }
 0x4bf   : > { %v7554_v11 = vpop.eup %7553  ;;  %v4956_v30 = vadd.f32 %v9785_v41, %v4853_v24  ;;  %v9899_v19 = vpop.xlane.xlu1 %3856  ;;  %4405 = vadd.xlane.f32.xlu0 %v4239_v26  ;;  %v4243_v31 = vmul.f32 %v9903_v27, %v9903_v27  ;;  %v9916_v48 = vsel %vm3976_vm0, %v4052_v49, 0.0  ;;  %v4055_v6 = vsub.f32 %v10912_v7, %v3956_v45 }
 0x4c0   : > { %v4751_v57 = vmul.f32 %v7554_v11, %v10909_v44  ;;  %7559 = vrsqrt.f32 %v4562_v46  ;;  %v4286_v60 = vpop.xlane.xlu0 %4285  ;;  %v9927_v49 = vsel %vm3976_vm0, %v4054_v47, 0.0  ;;  %v3959_v45 = vmul.f32 0.03125, %v9810_v8 }
 0x4c1   : > { %v5052_v38 = vmax.f32 %v4956_v30, 0.0  ;;  %v4467_v12 = vmul.f32 0.03125, %v4286_v60  ;;  %4407 = vadd.xlane.f32.xlu1 %v4240_v35  ;;  %v9921_v35 = vsel %vm3976_vm0, %v4053_v50, 0.0  ;;  %v10913_v30 = vld [vmem:[#allocation93_spill] sm:$0xff]  ;;  %10914 = vst [vmem:[#allocation81_spill] sm:$0xff] %v9927_v49 }
 0x4c2   : > { %v7556_v24 = vpop.eup %7555  ;;  %v4854_v26 = vmul.f32 %v9756_v14, %v4751_v57  ;;  %10911 = vst [vmem:[#allocation82_spill] sm:$0xff] %v9921_v35  ;;  %v4056_v44 = vsub.f32 %v10913_v30, %v3957_v16  ;;  %v3960_v16 = vmul.f32 0.03125, %v9836_v33  ;;  %v9947_v33 = vsel %vm3976_vm0, %v4055_v6, 0.0 }
 0x4c3   : > { %v6249_v37 = vpack.c.bf16 %v5052_v38, %v5051_v0  ;;  %v4752_v46 = vmul.f32 %v7556_v24, %v10910_v3  ;;  %v4563_v11 = vadd.f32 1e-05, %v4467_v12  ;;  %v4288_v28 = vpop.xlane.xlu1 %4287  ;;  %4409 = vadd.xlane.f32.xlu0 %v4241_v36  ;;  %v10915_v0 = vld [vmem:[#allocation98_spill] sm:$0xff]  ;;  %v3961_v6 = vmul.f32 0.03125, %v9852_v22 }
 0x4c4   : > { %v4468_v57 = vmul.f32 0.03125, %v4288_v28  ;;  %v3859_v60 = vpop.xlane.xlu0 %3858  ;;  %v4057_v36 = vsub.f32 %v10915_v0, %v3958_v52  ;;  %v4957_v38 = vadd.f32 %v9785_v41, %v4854_v26  ;;  %v4245_v52 = vmul.f32 %v9921_v35, %v9921_v35  ;;  %v10917_v0 = vld [vmem:[#allocation96_spill] sm:$0xff] }
 0x4c5   : > { %6524 = vst [vmem:[%s10511_s7 + $0x10] sm:$0xff] %v6249_v37   ;;  %v4855_v50 = vmul.f32 %v9756_v14, %v4752_v46  ;;  %7561 = vrsqrt.f32 %v4563_v11  ;;  %4411 = vadd.xlane.f32.xlu1 %v4242_v42  ;;  %v4244_v37 = vmul.f32 %v9916_v48, %v9916_v48  ;;  %v4246_v26 = vmul.f32 %v9927_v49, %v9927_v49  ;;  %v10916_v42 = vld [vmem:[#allocation106_spill] sm:$0xff] }
 0x4c6   : > { %v4564_v12 = vadd.f32 1e-05, %v4468_v57  ;;  %v5053_v11 = vmax.f32 %v4957_v38, 0.0  ;;  %v9955_v30 = vsel %vm3976_vm0, %v4057_v36, 0.0  ;;  %v3962_v38 = vmul.f32 0.03125, %v9878_v15 }
 0x4c7   : > { %v7558_v24 = vpop.eup %7557  ;;  %v4958_v47 = vadd.f32 %v9785_v41, %v4855_v50  ;;  %v3861_v3 = vpop.xlane.xlu1 %3860  ;;  %4413 = vadd.xlane.f32.xlu0 %v4243_v31  ;;  %v9951_v31 = vsel %vm3976_vm0, %v4056_v44, 0.0  ;;  %v4058_v50 = vsub.f32 %v10917_v0, %v3959_v45  ;;  %v3963_v36 = vmul.f32 0.03125, %v9899_v19 }
 0x4c8   : > { %v4753_v46 = vmul.f32 %v7558_v24, %v10916_v42  ;;  %7563 = vrsqrt.f32 %v4564_v12  ;;  %v4290_v8 = vpop.xlane.xlu0 %4289  ;;  %v10918_v12 = vld [vmem:[#allocation100_spill] sm:$0xff]  ;;  %v4249_v19 = vmul.f32 %v9955_v30, %v9955_v30 }
 0x4c9   : > { %v5054_v28 = vmax.f32 %v4958_v47, 0.0  ;;  %v4469_v7 = vmul.f32 0.03125, %v4290_v8  ;;  %4415 = vadd.xlane.f32.xlu1 %v4244_v37  ;;  %v4059_v24 = vsub.f32 %v10918_v12, %v3960_v16  ;;  %v4248_v16 = vmul.f32 %v9951_v31, %v9951_v31 }
 0x4ca   : > { %v7560_v57 = vpop.eup %7559  ;;  %v4856_v42 = vmul.f32 %v9756_v14, %v4753_v46  ;;  %v10919_v46 = vld [vmem:[#allocation99_spill] sm:$0xff]  ;;  %v4062_v0 = vsub.f32 %v9127_v51, %v3963_v36 }
 0x4cb   : > { %v6254_v49 = vpack.c.bf16 %v5054_v28, %v5053_v11  ;;  %v4754_v44 = vmul.f32 %v7560_v57, %v9196_v39  ;;  %v4565_v47 = vadd.f32 1e-05, %v4469_v7  ;;  %v4292_v37 = vpop.xlane.xlu1 %4291  ;;  %4417 = vadd.xlane.f32.xlu0 %v4245_v52  ;;  %v4247_v39 = vmul.f32 %v9947_v33, %v9947_v33 }
 0x4cc   : > { %v4470_v8 = vmul.f32 0.03125, %v4292_v37  ;;  %v3863_v35 = vpop.xlane.xlu0 %3862  ;;  %v4959_v22 = vadd.f32 %v9785_v41, %v4856_v42  ;;  %v9977_v52 = vsel %vm3976_vm0, %v4058_v50, 0.0  ;;  %v4060_v11 = vsub.f32 %v10919_v46, %v3961_v6 }
 0x4cd   : > { %6525 = vst [vmem:[%s10511_s7 + $0x18] sm:$0xff] %v6254_v49   ;;  %v4857_v45 = vmul.f32 %v9756_v14, %v4754_v44  ;;  %7565 = vrsqrt.f32 %v4565_v47  ;;  %4419 = vadd.xlane.f32.xlu1 %v4246_v26  ;;  %v4061_v26 = vsub.f32 %v9136_v17, %v3962_v38  ;;  %v9984_v57 = vsel %vm3976_vm0, %v4059_v24, 0.0 }
 0x4ce   : > { %v4566_v15 = vadd.f32 1e-05, %v4470_v8  ;;  %v3964_v42 = vmul.f32 0.03125, %v3859_v60  ;;  %v5055_v44 = vmax.f32 %v4959_v22, 0.0  ;;  %v3965_v6 = vmul.f32 0.03125, %v3861_v3 }
 0x4cf   : > { %v7562_v49 = vpop.eup %7561  ;;  %v4960_v28 = vadd.f32 %v9785_v41, %v4857_v45  ;;  %v3865_v7 = vpop.xlane.xlu1 %3864  ;;  %4421 = vadd.xlane.f32.xlu0 %v4247_v39  ;;  %v4250_v38 = vmul.f32 %v9977_v52, %v9977_v52  ;;  %v4251_v24 = vmul.f32 %v9984_v57, %v9984_v57  ;;  %v9996_v3 = vsel %vm3976_vm0, %v4060_v11, 0.0 }
 0x4d0   : > { %v4755_v12 = vmul.f32 %v7562_v49, %v9218_v58  ;;  %7567 = vrsqrt.f32 %v4566_v15  ;;  %v4294_v50 = vpop.xlane.xlu0 %4293  ;;  %v10000_v22 = vsel %vm3976_vm0, %v4061_v26, 0.0  ;;  %v10004_v45 = vsel %vm3976_vm0, %v4062_v0, 0.0  ;;  %v10920_v49 = vld [vmem:[#allocation103_spill] sm:$0xff] }
 0x4d1   : > { %v5056_v47 = vmax.f32 %v4960_v28, 0.0  ;;  %v4471_v37 = vmul.f32 0.03125, %v4294_v50  ;;  %4423 = vadd.xlane.f32.xlu1 %v4248_v16  ;;  %v4063_v39 = vsub.f32 %v9148_v23, %v3964_v42  ;;  %v4064_v46 = vsub.f32 %v10920_v49, %v3965_v6  ;;  %v10921_v6 = vld [vmem:[#allocation108_spill] sm:$0xff] }
 0x4d2   : > { %v7564_v8 = vpop.eup %7563  ;;  %v4858_v17 = vmul.f32 %v9756_v14, %v4755_v12  ;;  %v3966_v11 = vmul.f32 0.03125, %v3863_v35  ;;  %v3967_v28 = vmul.f32 0.03125, %v3865_v7  ;;  %v4252_v50 = vmul.f32 %v9996_v3, %v9996_v3 }
 0x4d3   : > { %v6259_v51 = vpack.c.bf16 %v5056_v47, %v5055_v44  ;;  %v4756_v58 = vmul.f32 %v7564_v8, %v9228_v21  ;;  %v4567_v60 = vadd.f32 1e-05, %v4471_v37  ;;  %v4296_v36 = vpop.xlane.xlu1 %4295  ;;  %4425 = vadd.xlane.f32.xlu0 %v4249_v19  ;;  %v4253_v44 = vmul.f32 %v10000_v22, %v10000_v22 }
 0x4d4   : > { %v4472_v15 = vmul.f32 0.03125, %v4296_v36  ;;  %v3867_v16 = vpop.xlane.xlu0 %3866  ;;  %v4961_v21 = vadd.f32 %v9785_v41, %v4858_v17  ;;  %v10020_v47 = vsel %vm3976_vm0, %v4063_v39, 0.0  ;;  %v4254_v37 = vmul.f32 %v10004_v45, %v10004_v45 }
 0x4d5   : > { %6526 = vst [vmem:[%s10511_s7 + $0x20] sm:$0xff] %v6259_v51   ;;  %v4859_v19 = vmul.f32 %v9756_v14, %v4756_v58  ;;  %7569 = vrsqrt.f32 %v4567_v60  ;;  %4427 = vadd.xlane.f32.xlu1 %v4250_v38  ;;  %v3968_v0 = vmul.f32 0.03125, %v3867_v16  ;;  %v10027_v38 = vsel %vm3976_vm0, %v4064_v46, 0.0  ;;  %v10922_v16 = vld [vmem:[#allocation109_spill] sm:$0xff] }
 0x4d6   : > { %v4568_v26 = vadd.f32 1e-05, %v4472_v15  ;;  %v5057_v8 = vmax.f32 %v4961_v21, 0.0  ;;  %v4065_v60 = vsub.f32 %v9168_v20, %v3966_v11  ;;  %v4066_v36 = vsub.f32 %v9159_v10, %v3967_v28 }
 0x4d7   : > { %v7566_v12 = vpop.eup %7565  ;;  %v4962_v23 = vadd.f32 %v9785_v41, %v4859_v19  ;;  %v3869_v42 = vpop.xlane.xlu1 %3868  ;;  %4429 = vadd.xlane.f32.xlu0 %v4251_v24  ;;  %v4067_v39 = vsub.f32 %v9180_v43, %v3968_v0  ;;  %v4256_v0 = vmul.f32 %v10027_v38, %v10027_v38 }
 0x4d8   : > { %v4757_v35 = vmul.f32 %v7566_v12, %v10921_v6  ;;  %7571 = vrsqrt.f32 %v4568_v26  ;;  %v4298_v7 = vpop.xlane.xlu0 %4297  ;;  %v3969_v21 = vmul.f32 0.03125, %v3869_v42  ;;  %v10043_v11 = vsel %vm3976_vm0, %v4065_v60, 0.0 }
 0x4d9   : > { %v5058_v17 = vmax.f32 %v4962_v23, 0.0  ;;  %v4473_v24 = vmul.f32 0.03125, %v4298_v7  ;;  %4431 = vadd.xlane.f32.xlu1 %v4252_v50  ;;  %v4255_v23 = vmul.f32 %v10020_v47, %v10020_v47  ;;  %v10054_v6 = vsel %vm3976_vm0, %v4067_v39, 0.0 }
 0x4da   : > { %v7568_v51 = vpop.eup %7567  ;;  %v4860_v58 = vmul.f32 %v9756_v14, %v4757_v35  ;;  %v4068_v35 = vsub.f32 %v9177_v5, %v3969_v21  ;;  %v10924_v21 = vld [vmem:[#allocation111_spill] sm:$0xff] }
 0x4db   : > { %v6264_v15 = vpack.c.bf16 %v5058_v17, %v5057_v8  ;;  %v4758_v19 = vmul.f32 %v7568_v51, %v10922_v16  ;;  %v4569_v49 = vadd.f32 1e-05, %v4473_v24  ;;  %v4300_v26 = vpop.xlane.xlu1 %4299  ;;  %4433 = vadd.xlane.f32.xlu0 %v4253_v44  ;;  %v10050_v44 = vsel %vm3976_vm0, %v4066_v36, 0.0 }
 0x4dc   : > { %v4474_v46 = vmul.f32 0.03125, %v4300_v26  ;;  %v3871_v12 = vpop.xlane.xlu0 %3870  ;;  %v4963_v10 = vadd.f32 %v9785_v41, %v4860_v58  ;;  %v4257_v36 = vmul.f32 %v10043_v11, %v10043_v11  ;;  %v4258_v5 = vmul.f32 %v10050_v44, %v10050_v44 }
 0x4dd   : > { %6527 = vst [vmem:[%s10511_s7 + $0x28] sm:$0xff] %v6264_v15   ;;  %v4861_v20 = vmul.f32 %v9756_v14, %v4758_v19  ;;  %7573 = vrsqrt.f32 %v4569_v49  ;;  %v3970_v43 = vmul.f32 0.03125, %v3871_v12  ;;  %4435 = vadd.xlane.f32.xlu1 %v4254_v37  ;;  %v10923_v37 = vld [vmem:[#allocation110_spill] sm:$0xff]  ;;  %v10069_v12 = vsel %vm3976_vm0, %v4068_v35, 0.0 }
 0x4de   : > { %v4570_v28 = vadd.f32 1e-05, %v4474_v46  ;;  %v5059_v58 = vmax.f32 %v4963_v10, 0.0  ;;  %v4259_v46 = vmul.f32 %v10054_v6, %v10054_v6  ;;  %v10925_v10 = vld [vmem:[#allocation107_spill] sm:$0xff] }
 0x4df   : > { %v7570_v42 = vpop.eup %7569  ;;  %v4964_v50 = vadd.f32 %v9785_v41, %v4861_v20  ;;  %v3873_v7 = vpop.xlane.xlu1 %3872  ;;  %4437 = vadd.xlane.f32.xlu0 %v4255_v23  ;;  %v4069_v17 = vsub.f32 %v9201_v59, %v3970_v43 }
 0x4e0   : > { %v4759_v8 = vmul.f32 %v7570_v42, %v10923_v37  ;;  %7575 = vrsqrt.f32 %v4570_v28  ;;  %v3971_v24 = vmul.f32 0.03125, %v3873_v7  ;;  %v4302_v51 = vpop.xlane.xlu0 %4301 }
 0x4e1   : > { %v5060_v60 = vmax.f32 %v4964_v50, 0.0  ;;  %v4475_v15 = vmul.f32 0.03125, %v4302_v51  ;;  %4439 = vadd.xlane.f32.xlu1 %v4256_v0  ;;  %v10073_v23 = vsel %vm3976_vm0, %v4069_v17, 0.0 }
 0x4e2   : > { %v7572_v39 = vpop.eup %7571  ;;  %v4862_v16 = vmul.f32 %v9756_v14, %v4759_v8  ;;  %v4070_v20 = vsub.f32 %v10925_v10, %v3971_v24  ;;  %v4260_v24 = vmul.f32 %v10069_v12, %v10069_v12  ;;  %v4261_v51 = vmul.f32 %v10073_v23, %v10073_v23 }
 0x4e3   : > { %v6269_v19 = vpack.c.bf16 %v5060_v60, %v5059_v58  ;;  %v4760_v49 = vmul.f32 %v7572_v39, %v10924_v21  ;;  %v4571_v26 = vadd.f32 1e-05, %v4475_v15  ;;  %v4304_v59 = vpop.xlane.xlu1 %4303  ;;  %4441 = vadd.xlane.f32.xlu0 %v4257_v36  ;;  %v10926_v58 = vld [vmem:[#allocation112_spill] sm:$0xff] }
 0x4e4   : > { %v4476_v43 = vmul.f32 0.03125, %v4304_v59  ;;  %v3875_v28 = vpop.xlane.xlu0 %3874  ;;  %v4965_v0 = vadd.f32 %v9785_v41, %v4862_v16  ;;  %v10090_v15 = vsel %vm3976_vm0, %v4070_v20, 0.0 }
 0x4e5   : > { %6528 = vst [vmem:[%s10511_s7 + $0x30] sm:$0xff] %v6269_v19   ;;  %v4863_v42 = vmul.f32 %v9756_v14, %v4760_v49  ;;  %7577 = vrsqrt.f32 %v4571_v26  ;;  %v3972_v50 = vmul.f32 0.03125, %v3875_v28  ;;  %4443 = vadd.xlane.f32.xlu1 %v4258_v5  ;;  %v4262_v28 = vmul.f32 %v10090_v15, %v10090_v15 }
 0x4e6   : > { %v4572_v35 = vadd.f32 1e-05, %v4476_v43  ;;  %v5061_v16 = vmax.f32 %v4965_v0, 0.0 }
 0x4e7   : > { %v7574_v7 = vpop.eup %7573  ;;  %v4966_v37 = vadd.f32 %v9785_v41, %v4863_v42  ;;  %v4071_v8 = vsub.f32 %v9213_v2, %v3972_v50  ;;  %v3877_v17 = vpop.xlane.xlu1 %3876  ;;  %4445 = vadd.xlane.f32.xlu0 %v4259_v46  ;;  %v10927_v46 = vld [vmem:[#allocation113_spill] sm:$0xff] }
 0x4e8   : > { %v4761_v60 = vmul.f32 %v7574_v7, %v10926_v58  ;;  %7579 = vrsqrt.f32 %v4572_v35  ;;  %v3973_v36 = vmul.f32 0.03125, %v3877_v17  ;;  %v4306_v39 = vpop.xlane.xlu0 %4305 }
 0x4e9   : > { %v5062_v5 = vmax.f32 %v4966_v37, 0.0  ;;  %v10094_v2 = vsel %vm3976_vm0, %v4071_v8, 0.0  ;;  %v4477_v19 = vmul.f32 0.03125, %v4306_v39  ;;  %4447 = vadd.xlane.f32.xlu1 %v4260_v24 }
 0x4ea   : > { %v7576_v21 = vpop.eup %7575  ;;  %v4864_v49 = vmul.f32 %v9756_v14, %v4761_v60  ;;  %v4072_v26 = vsub.f32 %v9210_v1, %v3973_v36  ;;  %v4263_v35 = vmul.f32 %v10094_v2, %v10094_v2  ;;  %v10928_v60 = vld [vmem:[#allocation114_spill] sm:$0xff] }
 0x4eb   : > { %v6274_v59 = vpack.c.bf16 %v5062_v5, %v5061_v16  ;;  %v4762_v10 = vmul.f32 %v7576_v21, %v10927_v46  ;;  %v4573_v20 = vadd.f32 1e-05, %v4477_v19  ;;  %v4308_v43 = vpop.xlane.xlu1 %4307  ;;  %4449 = vadd.xlane.f32.xlu0 %v4261_v51 }
 0x4ec   : > { %v10103_v0 = vsel %vm3976_vm0, %v4072_v26, 0.0  ;;  %v4478_v42 = vmul.f32 0.03125, %v4308_v43  ;;  %v4310_v50 = vpop.xlane.xlu0 %4309  ;;  %v4967_v1 = vadd.f32 %v9785_v41, %v4864_v49 }
 0x4ed   : > { %6529 = vst [vmem:[%s10511_s7 + $0x38] sm:$0xff] %v6274_v59   ;;  %v4865_v7 = vmul.f32 %v9756_v14, %v4762_v10  ;;  %7581 = vrsqrt.f32 %v4573_v20  ;;  %v4479_v37 = vmul.f32 0.03125, %v4310_v50  ;;  %4451 = vadd.xlane.f32.xlu1 %v4262_v28  ;;  %v4264_v58 = vmul.f32 %v10103_v0, %v10103_v0 }
 0x4ee   : > { %v4574_v8 = vadd.f32 1e-05, %v4478_v42  ;;  %v5063_v5 = vmax.f32 %v4967_v1, 0.0 }
 0x4ef   : > { %v7578_v55 = vpop.eup %7577  ;;  %v4968_v17 = vadd.f32 %v9785_v41, %v4865_v7  ;;  %v4575_v24 = vadd.f32 1e-05, %v4479_v37  ;;  %v4312_v51 = vpop.xlane.xlu1 %4311  ;;  %4453 = vadd.xlane.f32.xlu0 %v4263_v35 }
 0x4f0   : > { %v4763_v36 = vmul.f32 %v7578_v55, %v10928_v60  ;;  %7583 = vrsqrt.f32 %v4574_v8  ;;  %v4480_v39 = vmul.f32 0.03125, %v4312_v51  ;;  %v4314_v16 = vpop.xlane.xlu0 %4313 }
 0x4f1   : > { %v5064_v19 = vmax.f32 %v4968_v17, 0.0  ;;  %7585 = vrsqrt.f32 %v4575_v24  ;;  %v4481_v21 = vmul.f32 0.03125, %v4314_v16  ;;  %4455 = vadd.xlane.f32.xlu1 %v4264_v58 }
 0x4f2   : > { %v7580_v49 = vpop.eup %7579  ;;  %v4866_v26 = vmul.f32 %v9756_v14, %v4763_v36  ;;  %v4576_v59 = vadd.f32 1e-05, %v4480_v39 }
 0x4f3   : > { %v6279_v46 = vpack.c.bf16 %v5064_v19, %v5063_v5  ;;  %v4764_v10 = vmul.f32 %v7580_v49, %v9332_v34  ;;  %v4577_v20 = vadd.f32 1e-05, %v4481_v21  ;;  %v4316_v43 = vpop.xlane.xlu1 %4315 }
 0x4f4   : > { %7587 = vrsqrt.f32 %v4576_v59  ;;  %v4482_v28 = vmul.f32 0.03125, %v4316_v43  ;;  %v4318_v42 = vpop.xlane.xlu0 %4317  ;;  %v4969_v50 = vadd.f32 %v9785_v41, %v4866_v26 }
 0x4f5   : > { %6530 = vst [vmem:[%s10511_s7 + $0x40] sm:$0xff] %v6279_v46   ;;  %v4867_v35 = vmul.f32 %v9756_v14, %v4764_v10  ;;  %7589 = vrsqrt.f32 %v4577_v20  ;;  %v4483_v1 = vmul.f32 0.03125, %v4318_v42 }
 0x4f6   : > { %v4578_v7 = vadd.f32 1e-05, %v4482_v28  ;;  %v5065_v58 = vmax.f32 %v4969_v50, 0.0 }
 0x4f7   : > { %v7582_v37 = vpop.eup %7581  ;;  %v4970_v8 = vadd.f32 %v9785_v41, %v4867_v35  ;;  %v4579_v34 = vadd.f32 1e-05, %v4483_v1  ;;  %v4320_v55 = vpop.xlane.xlu1 %4319 }
 0x4f8   : > { %v4765_v17 = vmul.f32 %v7582_v37, %v9351_v40  ;;  %7591 = vrsqrt.f32 %v4578_v7  ;;  %v4484_v24 = vmul.f32 0.03125, %v4320_v55  ;;  %v4322_v51 = vpop.xlane.xlu0 %4321 }
 0x4f9   : > { %v5066_v60 = vmax.f32 %v4970_v8, 0.0  ;;  %7593 = vrsqrt.f32 %v4579_v34  ;;  %v4485_v36 = vmul.f32 0.03125, %v4322_v51 }
 0x4fa   : > { %v7584_v39 = vpop.eup %7583  ;;  %v4868_v16 = vmul.f32 %v9756_v14, %v4765_v17  ;;  %v4580_v5 = vadd.f32 1e-05, %v4484_v24 }
 0x4fb   : > { %v7586_v19 = vpop.eup %7585  ;;  %v6284_v21 = vpack.c.bf16 %v5066_v60, %v5065_v58  ;;  %v4766_v49 = vmul.f32 %v7584_v39, %v9362_v54  ;;  %v4581_v26 = vadd.f32 1e-05, %v4485_v36  ;;  %v4324_v59 = vpop.xlane.xlu1 %4323 }
 0x4fc   : > { %v4971_v46 = vadd.f32 %v9785_v41, %v4868_v16  ;;  %v4767_v40 = vmul.f32 %v7586_v19, %v9371_v53  ;;  %7595 = vrsqrt.f32 %v4580_v5  ;;  %v4486_v10 = vmul.f32 0.03125, %v4324_v59  ;;  %v4326_v20 = vpop.xlane.xlu0 %4325 }
 0x4fd   : > { %6531 = vst [vmem:[%s10511_s7 + $0x48] sm:$0xff] %v6284_v21   ;;  %v4869_v43 = vmul.f32 %v9756_v14, %v4766_v49  ;;  %7597 = vrsqrt.f32 %v4581_v26  ;;  %v4487_v28 = vmul.f32 0.03125, %v4326_v20 }
 0x4fe   : > { %v7588_v42 = vpop.eup %7587  ;;  %v4870_v54 = vmul.f32 %v9756_v14, %v4767_v40  ;;  %v4582_v50 = vadd.f32 1e-05, %v4486_v10  ;;  %v5067_v1 = vmax.f32 %v4971_v46, 0.0 }
 0x4ff   : > { %v7590_v35 = vpop.eup %7589  ;;  %v4972_v7 = vadd.f32 %v9785_v41, %v4869_v43  ;;  %v4768_v53 = vmul.f32 %v7588_v42, %v9383_v9  ;;  %v4583_v37 = vadd.f32 1e-05, %v4487_v28  ;;  %v4328_v8 = vpop.xlane.xlu1 %4327 }
 0x500   : > { %v4973_v34 = vadd.f32 %v9785_v41, %v4870_v54  ;;  %v4769_v55 = vmul.f32 %v7590_v35, %v9391_v13  ;;  %7599 = vrsqrt.f32 %v4582_v50  ;;  %v4488_v17 = vmul.f32 0.03125, %v4328_v8  ;;  %v4330_v24 = vpop.xlane.xlu0 %4329 }
 0x501   : > { %v5068_v51 = vmax.f32 %v4972_v7, 0.0  ;;  %v4871_v58 = vmul.f32 %v9756_v14, %v4768_v53  ;;  %7601 = vrsqrt.f32 %v4583_v37  ;;  %v4489_v60 = vmul.f32 0.03125, %v4330_v24 }
 0x502   : > { %v7592_v36 = vpop.eup %7591  ;;  %v5069_v39 = vmax.f32 %v4973_v34, 0.0  ;;  %v4872_v16 = vmul.f32 %v9756_v14, %v4769_v55  ;;  %v4584_v5 = vadd.f32 1e-05, %v4488_v17 }
 0x503   : > { %v7594_v9 = vpop.eup %7593  ;;  %v6289_v19 = vpack.c.bf16 %v5068_v51, %v5067_v1  ;;  %v4974_v21 = vadd.f32 %v9785_v41, %v4871_v58  ;;  %v4770_v49 = vmul.f32 %v7592_v36, %v9403_v62  ;;  %v4585_v13 = vadd.f32 1e-05, %v4489_v60  ;;  %v4332_v26 = vpop.xlane.xlu1 %4331 }
 0x504   : > { %v4975_v59 = vadd.f32 %v9785_v41, %v4872_v16  ;;  %v4771_v46 = vmul.f32 %v7594_v9, %v9411_v29  ;;  %7603 = vrsqrt.f32 %v4584_v5  ;;  %v4490_v40 = vmul.f32 0.03125, %v4332_v26  ;;  %v4334_v10 = vpop.xlane.xlu0 %4333  ;;  %v10929_v9 = vld [vmem:[#allocation115_spill] sm:$0xff]  ;;  %v10930_v26 = vld [vmem:[#allocation116_spill] sm:$0xff] }
 0x505   : > { %6532 = vst [vmem:[%s10511_s7 + $0x50] sm:$0xff] %v6289_v19   ;;  %v5070_v20 = vmax.f32 %v4974_v21, 0.0  ;;  %v4873_v43 = vmul.f32 %v9756_v14, %v4770_v49  ;;  %7605 = vrsqrt.f32 %v4585_v13  ;;  %v4491_v28 = vmul.f32 0.03125, %v4334_v10 }
 0x506   : > { %v7596_v42 = vpop.eup %7595  ;;  %v5071_v62 = vmax.f32 %v4975_v59, 0.0  ;;  %v4874_v54 = vmul.f32 %v9756_v14, %v4771_v46  ;;  %v4586_v50 = vadd.f32 1e-05, %v4490_v40 }
 0x507   : > { %v7598_v35 = vpop.eup %7597  ;;  %v6294_v1 = vpack.c.bf16 %v5070_v20, %v5069_v39  ;;  %v4976_v29 = vadd.f32 %v9785_v41, %v4873_v43  ;;  %v4772_v7 = vmul.f32 %v7596_v42, %v9423_v18  ;;  %v4587_v53 = vadd.f32 1e-05, %v4491_v28  ;;  %v4336_v37 = vpop.xlane.xlu1 %4335 }
 0x508   : > { %v4977_v8 = vadd.f32 %v9785_v41, %v4874_v54  ;;  %v4773_v34 = vmul.f32 %v7598_v35, %v9431_v63  ;;  %7607 = vrsqrt.f32 %v4586_v50  ;;  %v4492_v55 = vmul.f32 0.03125, %v4336_v37  ;;  %v4338_v17 = vpop.xlane.xlu0 %4337 }
 0x509   : > { %6533 = vst [vmem:[%s10511_s7 + $0x58] sm:$0xff] %v6294_v1   ;;  %v5072_v24 = vmax.f32 %v4976_v29, 0.0  ;;  %v4875_v51 = vmul.f32 %v9756_v14, %v4772_v7  ;;  %7609 = vrsqrt.f32 %v4587_v53  ;;  %v4493_v58 = vmul.f32 0.03125, %v4338_v17  ;;  %v10931_v29 = vld [vmem:[#allocation117_spill] sm:$0xff] }
 0x50a   : > { %v7600_v60 = vpop.eup %7599  ;;  %v5073_v18 = vmax.f32 %v4977_v8, 0.0  ;;  %v4876_v36 = vmul.f32 %v9756_v14, %v4773_v34  ;;  %v4588_v39 = vadd.f32 1e-05, %v4492_v55  ;;  %v10932_v34 = vld [vmem:[#allocation118_spill] sm:$0xff] }
 0x50b   : > { %v7602_v16 = vpop.eup %7601  ;;  %v6299_v5 = vpack.c.bf16 %v5072_v24, %v5071_v62  ;;  %v4978_v63 = vadd.f32 %v9785_v41, %v4875_v51  ;;  %v4774_v19 = vmul.f32 %v7600_v60, %v10929_v9  ;;  %v4589_v21 = vadd.f32 1e-05, %v4493_v58  ;;  %v4340_v49 = vpop.xlane.xlu1 %4339  ;;  %v10177_v51 = vld [vmem:[%s10509_s5] ss:$0 sm:$0xff] }
 0x50c   : > { %v4979_v13 = vadd.f32 %v9785_v41, %v4876_v36  ;;  %v4775_v59 = vmul.f32 %v7602_v16, %v10930_v26  ;;  %7611 = vrsqrt.f32 %v4588_v39  ;;  %v4494_v46 = vmul.f32 0.03125, %v4340_v49  ;;  %v4342_v40 = vpop.xlane.xlu0 %4341 }
 0x50d   : > { %6534 = vst [vmem:[%s10511_s7 + $0x60] sm:$0xff] %v6299_v5   ;;  %v5074_v10 = vmax.f32 %v4978_v63, 0.0  ;;  %v4877_v20 = vmul.f32 %v9756_v14, %v4774_v19  ;;  %7613 = vrsqrt.f32 %v4589_v21  ;;  %v4495_v43 = vmul.f32 0.03125, %v4342_v40  ;;  %v10933_v19 = vld [vmem:[#allocation119_spill] sm:$0xff] }
 0x50e   : > { %v7604_v28 = vpop.eup %7603  ;;  %v5075_v42 = vmax.f32 %v4979_v13, 0.0  ;;  %v4878_v62 = vmul.f32 %v9756_v14, %v4775_v59  ;;  %v4590_v54 = vadd.f32 1e-05, %v4494_v46  ;;  %v10934_v59 = vld [vmem:[#allocation120_spill] sm:$0xff] }
 0x50f   : > { %v7606_v50 = vpop.eup %7605  ;;  %v6304_v35 = vpack.c.bf16 %v5074_v10, %v5073_v18  ;;  %v4980_v1 = vadd.f32 %v9785_v41, %v4877_v20  ;;  %v4776_v7 = vmul.f32 %v7604_v28, %v10931_v29  ;;  %v4591_v53 = vadd.f32 1e-05, %v4495_v43  ;;  %v4344_v37 = vpop.xlane.xlu1 %4343 }
 0x510   : > { %v4981_v8 = vadd.f32 %v9785_v41, %v4878_v62  ;;  %v4777_v55 = vmul.f32 %v7606_v50, %v10932_v34  ;;  %7615 = vrsqrt.f32 %v4590_v54  ;;  %v4496_v17 = vmul.f32 0.03125, %v4344_v37  ;;  %v4346_v24 = vpop.xlane.xlu0 %4345 }
 0x511   : > { %6535 = vst [vmem:[%s10511_s7 + $0x68] sm:$0xff] %v6304_v35   ;;  %v5076_v14 = vmax.f32 %v4980_v1, 0.0  ;;  %v4879_v58 = vmul.f32 %v10177_v51, %v4776_v7  ;;  %7617 = vrsqrt.f32 %v4591_v53  ;;  %v4497_v60 = vmul.f32 0.03125, %v4346_v24  ;;  %v10193_v1 = vld [vmem:[%s10510_s6] ss:$0 sm:$0xff]  ;;  %v10935_v7 = vld [vmem:[#allocation121_spill] sm:$0xff] }
 0x512   : > { %v7608_v18 = vpop.eup %7607  ;;  %v5077_v36 = vmax.f32 %v4981_v8, 0.0  ;;  %v4880_v39 = vmul.f32 %v10177_v51, %v4777_v55  ;;  %v4592_v16 = vadd.f32 1e-05, %v4496_v17  ;;  %v10936_v55 = vld [vmem:[#allocation52_spill] sm:$0xff] }
 0x513   : > { %v7610_v5 = vpop.eup %7609  ;;  %v6309_v63 = vpack.c.bf16 %v5076_v14, %v5075_v42  ;;  %v4982_v9 = vadd.f32 %v9785_v41, %v4879_v58  ;;  %v4778_v21 = vmul.f32 %v7608_v18, %v10933_v19  ;;  %v4593_v49 = vadd.f32 1e-05, %v4497_v60  ;;  %v4348_v13 = vpop.xlane.xlu1 %4347 }
 0x514   : > { %v4983_v26 = vadd.f32 %v9785_v41, %v4880_v39  ;;  %v4779_v46 = vmul.f32 %v7610_v5, %v10934_v59  ;;  %7619 = vrsqrt.f32 %v4592_v16  ;;  %v4498_v40 = vmul.f32 0.03125, %v4348_v13  ;;  %v4350_v10 = vpop.xlane.xlu0 %4349 }
 0x515   : > { %6536 = vst [vmem:[%s10511_s7 + $0x70] sm:$0xff] %v6309_v63   ;;  %v5078_v20 = vmax.f32 %v4982_v9, 0.0  ;;  %v4881_v43 = vmul.f32 %v10177_v51, %v4778_v21  ;;  %7621 = vrsqrt.f32 %v4593_v49  ;;  %v4499_v28 = vmul.f32 0.03125, %v4350_v10  ;;  %v10937_v21 = vld [vmem:[#allocation51_spill] sm:$0xff] }
 0x516   : > { %v7612_v42 = vpop.eup %7611  ;;  %v5079_v62 = vmax.f32 %v4983_v26, 0.0  ;;  %v4882_v54 = vmul.f32 %v10177_v51, %v4779_v46  ;;  %v4594_v50 = vadd.f32 1e-05, %v4498_v40  ;;  %v10938_v46 = vld [vmem:[#allocation54_spill] sm:$0xff] }
 0x517   : > { %v7614_v41 = vpop.eup %7613  ;;  %v6314_v35 = vpack.c.bf16 %v5078_v20, %v5077_v36  ;;  %v4984_v29 = vadd.f32 %v10193_v1, %v4881_v43  ;;  %v4780_v53 = vmul.f32 %v7612_v42, %v10935_v7  ;;  %v4595_v37 = vadd.f32 1e-05, %v4499_v28  ;;  %v4352_v8 = vpop.xlane.xlu1 %4351 }
 0x518   : > { %v4985_v34 = vadd.f32 %v10193_v1, %v4882_v54  ;;  %v4781_v17 = vmul.f32 %v7614_v41, %v10936_v55  ;;  %7623 = vrsqrt.f32 %v4594_v50  ;;  %v4500_v24 = vmul.f32 0.03125, %v4352_v8  ;;  %v4354_v14 = vpop.xlane.xlu0 %4353 }
 0x519   : > { %6537 = vst [vmem:[%s10511_s7 + $0x78] sm:$0xff] %v6314_v35   ;;  %v5080_v58 = vmax.f32 %v4984_v29, 0.0  ;;  %v4883_v60 = vmul.f32 %v10177_v51, %v4780_v53  ;;  %7625 = vrsqrt.f32 %v4595_v37  ;;  %v4501_v18 = vmul.f32 0.03125, %v4354_v14  ;;  %v10939_v53 = vld [vmem:[#allocation53_spill] sm:$0xff] }
 0x51a   : > { %v7616_v36 = vpop.eup %7615  ;;  %v5081_v39 = vmax.f32 %v4985_v34, 0.0  ;;  %v4884_v16 = vmul.f32 %v10177_v51, %v4781_v17  ;;  %v4596_v5 = vadd.f32 1e-05, %v4500_v24  ;;  %v10940_v17 = vld [vmem:[#allocation56_spill] sm:$0xff] }
 0x51b   : > { %v7618_v63 = vpop.eup %7617  ;;  %v6319_v9 = vpack.c.bf16 %v5080_v58, %v5079_v62  ;;  %v4986_v19 = vadd.f32 %v10193_v1, %v4883_v60  ;;  %v4782_v49 = vmul.f32 %v7616_v36, %v10937_v21  ;;  %v4597_v13 = vadd.f32 1e-05, %v4501_v18  ;;  %v4356_v26 = vpop.xlane.xlu1 %4355 }
 0x51c   : > { %v4987_v59 = vadd.f32 %v10193_v1, %v4884_v16  ;;  %v4783_v40 = vmul.f32 %v7618_v63, %v10938_v46  ;;  %7627 = vrsqrt.f32 %v4596_v5  ;;  %v4502_v10 = vmul.f32 0.03125, %v4356_v26  ;;  %v4358_v20 = vpop.xlane.xlu0 %4357 }
 0x51d   : > { %6538 = vst [vmem:[%s10511_s7 + $0x80] sm:$0xff] %v6319_v9   ;;  %v5082_v43 = vmax.f32 %v4986_v19, 0.0  ;;  %v4885_v28 = vmul.f32 %v10177_v51, %v4782_v49  ;;  %7629 = vrsqrt.f32 %v4597_v13  ;;  %v4503_v42 = vmul.f32 0.03125, %v4358_v20  ;;  %v10941_v49 = vld [vmem:[#allocation55_spill] sm:$0xff] }
 0x51e   : > { %v7620_v62 = vpop.eup %7619  ;;  %v5083_v54 = vmax.f32 %v4987_v59, 0.0  ;;  %v4886_v50 = vmul.f32 %v10177_v51, %v4783_v40  ;;  %v4598_v41 = vadd.f32 1e-05, %v4502_v10  ;;  %v10942_v40 = vld [vmem:[#allocation58_spill] sm:$0xff] }
 0x51f   : > { %v7622_v35 = vpop.eup %7621  ;;  %v6324_v29 = vpack.c.bf16 %v5082_v43, %v5081_v39  ;;  %v4988_v7 = vadd.f32 %v10193_v1, %v4885_v28  ;;  %v4784_v37 = vmul.f32 %v7620_v62, %v10939_v53  ;;  %v4599_v8 = vadd.f32 1e-05, %v4503_v42  ;;  %v4360_v34 = vpop.xlane.xlu1 %4359 }
 0x520   : > { %v4989_v55 = vadd.f32 %v10193_v1, %v4886_v50  ;;  %v4785_v24 = vmul.f32 %v7622_v35, %v10940_v17  ;;  %7631 = vrsqrt.f32 %v4598_v41  ;;  %v4504_v14 = vmul.f32 0.03125, %v4360_v34  ;;  %v4362_v58 = vpop.xlane.xlu0 %4361 }
 0x521   : > { %6539 = vst [vmem:[%s10511_s7 + $0x88] sm:$0xff] %v6324_v29   ;;  %v5084_v60 = vmax.f32 %v4988_v7, 0.0  ;;  %v4887_v18 = vmul.f32 %v10177_v51, %v4784_v37  ;;  %7633 = vrsqrt.f32 %v4599_v8  ;;  %v4505_v36 = vmul.f32 0.03125, %v4362_v58  ;;  %v10943_v37 = vld [vmem:[#allocation57_spill] sm:$0xff] }
 0x522   : > { %v7624_v39 = vpop.eup %7623  ;;  %v5085_v16 = vmax.f32 %v4989_v55, 0.0  ;;  %v4888_v5 = vmul.f32 %v10177_v51, %v4785_v24  ;;  %v4600_v63 = vadd.f32 1e-05, %v4504_v14  ;;  %v10944_v24 = vld [vmem:[#allocation60_spill] sm:$0xff] }
 0x523   : > { %v7626_v9 = vpop.eup %7625  ;;  %v6329_v19 = vpack.c.bf16 %v5084_v60, %v5083_v54  ;;  %v4990_v21 = vadd.f32 %v10193_v1, %v4887_v18  ;;  %v4786_v13 = vmul.f32 %v7624_v39, %v10941_v49  ;;  %v4601_v26 = vadd.f32 1e-05, %v4505_v36  ;;  %v4364_v59 = vpop.xlane.xlu1 %4363 }
 0x524   : > { %v4991_v46 = vadd.f32 %v10193_v1, %v4888_v5  ;;  %v4787_v10 = vmul.f32 %v7626_v9, %v10942_v40  ;;  %7635 = vrsqrt.f32 %v4600_v63  ;;  %v4506_v20 = vmul.f32 0.03125, %v4364_v59  ;;  %v4366_v43 = vpop.xlane.xlu0 %4365 }
 0x525   : > { %6540 = vst [vmem:[%s10511_s7 + $0x90] sm:$0xff] %v6329_v19   ;;  %v5086_v28 = vmax.f32 %v4990_v21, 0.0  ;;  %v4889_v42 = vmul.f32 %v10177_v51, %v4786_v13  ;;  %7637 = vrsqrt.f32 %v4601_v26  ;;  %v4507_v62 = vmul.f32 0.03125, %v4366_v43  ;;  %v10945_v13 = vld [vmem:[#allocation59_spill] sm:$0xff] }
 0x526   : > { %v7628_v54 = vpop.eup %7627  ;;  %v5087_v50 = vmax.f32 %v4991_v46, 0.0  ;;  %v4890_v41 = vmul.f32 %v10177_v51, %v4787_v10  ;;  %v4602_v35 = vadd.f32 1e-05, %v4506_v20  ;;  %v10946_v10 = vld [vmem:[#allocation62_spill] sm:$0xff] }
 0x527   : > { %v7630_v29 = vpop.eup %7629  ;;  %v6334_v7 = vpack.c.bf16 %v5086_v28, %v5085_v16  ;;  %v4992_v53 = vadd.f32 %v10193_v1, %v4889_v42  ;;  %v4788_v8 = vmul.f32 %v7628_v54, %v10943_v37  ;;  %v4603_v34 = vadd.f32 1e-05, %v4507_v62  ;;  %v4368_v55 = vpop.xlane.xlu1 %4367 }
 0x528   : > { %v4993_v17 = vadd.f32 %v10193_v1, %v4890_v41  ;;  %v4789_v14 = vmul.f32 %v7630_v29, %v10944_v24  ;;  %7639 = vrsqrt.f32 %v4602_v35  ;;  %v4508_v58 = vmul.f32 0.03125, %v4368_v55  ;;  %v4370_v60 = vpop.xlane.xlu0 %4369 }
 0x529   : > { %6541 = vst [vmem:[%s10511_s7 + $0x98] sm:$0xff] %v6334_v7   ;;  %v5088_v18 = vmax.f32 %v4992_v53, 0.0  ;;  %v4891_v36 = vmul.f32 %v10177_v51, %v4788_v8  ;;  %7641 = vrsqrt.f32 %v4603_v34  ;;  %v4509_v39 = vmul.f32 0.03125, %v4370_v60  ;;  %v10947_v8 = vld [vmem:[#allocation61_spill] sm:$0xff] }
 0x52a   : > { %v7632_v16 = vpop.eup %7631  ;;  %v5089_v5 = vmax.f32 %v4993_v17, 0.0  ;;  %v4892_v63 = vmul.f32 %v10177_v51, %v4789_v14  ;;  %v4604_v9 = vadd.f32 1e-05, %v4508_v58  ;;  %v10948_v14 = vld [vmem:[#allocation64_spill] sm:$0xff] }
 0x52b   : > { %v7634_v19 = vpop.eup %7633  ;;  %v6339_v21 = vpack.c.bf16 %v5088_v18, %v5087_v50  ;;  %v4994_v49 = vadd.f32 %v10193_v1, %v4891_v36  ;;  %v4790_v26 = vmul.f32 %v7632_v16, %v10945_v13  ;;  %v4605_v59 = vadd.f32 1e-05, %v4509_v39  ;;  %v4372_v46 = vpop.xlane.xlu1 %4371 }
 0x52c   : > { %v4995_v40 = vadd.f32 %v10193_v1, %v4892_v63  ;;  %v4791_v20 = vmul.f32 %v7634_v19, %v10946_v10  ;;  %7643 = vrsqrt.f32 %v4604_v9  ;;  %v4510_v43 = vmul.f32 0.03125, %v4372_v46  ;;  %v4374_v28 = vpop.xlane.xlu0 %4373 }
 0x52d   : > { %6542 = vst [vmem:[%s10511_s7 + $0xa0] sm:$0xff] %v6339_v21   ;;  %v5090_v42 = vmax.f32 %v4994_v49, 0.0  ;;  %v4893_v62 = vmul.f32 %v10177_v51, %v4790_v26  ;;  %7645 = vrsqrt.f32 %v4605_v59  ;;  %v4511_v54 = vmul.f32 0.03125, %v4374_v28  ;;  %v10949_v26 = vld [vmem:[#allocation63_spill] sm:$0xff] }
 0x52e   : > { %v7636_v50 = vpop.eup %7635  ;;  %v5091_v41 = vmax.f32 %v4995_v40, 0.0  ;;  %v4894_v35 = vmul.f32 %v10177_v51, %v4791_v20  ;;  %v4606_v29 = vadd.f32 1e-05, %v4510_v43  ;;  %v10950_v20 = vld [vmem:[#allocation66_spill] sm:$0xff] }
 0x52f   : > { %v7638_v7 = vpop.eup %7637  ;;  %v6344_v53 = vpack.c.bf16 %v5090_v42, %v5089_v5  ;;  %v4996_v37 = vadd.f32 %v10193_v1, %v4893_v62  ;;  %v4792_v34 = vmul.f32 %v7636_v50, %v10947_v8  ;;  %v4607_v55 = vadd.f32 1e-05, %v4511_v54  ;;  %v4376_v17 = vpop.xlane.xlu1 %4375 }
 0x530   : > { %v4997_v24 = vadd.f32 %v10193_v1, %v4894_v35  ;;  %v4793_v58 = vmul.f32 %v7638_v7, %v10948_v14  ;;  %7647 = vrsqrt.f32 %v4606_v29  ;;  %v4512_v60 = vmul.f32 0.03125, %v4376_v17  ;;  %v4378_v18 = vpop.xlane.xlu0 %4377 }
 0x531   : > { %6543 = vst [vmem:[%s10511_s7 + $0xa8] sm:$0xff] %v6344_v53   ;;  %v5092_v36 = vmax.f32 %v4996_v37, 0.0  ;;  %v4895_v39 = vmul.f32 %v10177_v51, %v4792_v34  ;;  %7649 = vrsqrt.f32 %v4607_v55  ;;  %v4513_v16 = vmul.f32 0.03125, %v4378_v18  ;;  %v10951_v34 = vld [vmem:[#allocation65_spill] sm:$0xff] }
 0x532   : > { %v7640_v5 = vpop.eup %7639  ;;  %v5093_v63 = vmax.f32 %v4997_v24, 0.0  ;;  %v4896_v9 = vmul.f32 %v10177_v51, %v4793_v58  ;;  %v4608_v19 = vadd.f32 1e-05, %v4512_v60  ;;  %v10952_v58 = vld [vmem:[#allocation68_spill] sm:$0xff] }
 0x533   : > { %v7642_v21 = vpop.eup %7641  ;;  %v6349_v49 = vpack.c.bf16 %v5092_v36, %v5091_v41  ;;  %v4998_v13 = vadd.f32 %v10193_v1, %v4895_v39  ;;  %v4794_v59 = vmul.f32 %v7640_v5, %v10949_v26  ;;  %v4609_v46 = vadd.f32 1e-05, %v4513_v16  ;;  %v4380_v40 = vpop.xlane.xlu1 %4379 }
 0x534   : > { %v4999_v10 = vadd.f32 %v10193_v1, %v4896_v9  ;;  %v4795_v43 = vmul.f32 %v7642_v21, %v10950_v20  ;;  %7651 = vrsqrt.f32 %v4608_v19  ;;  %v4514_v28 = vmul.f32 0.03125, %v4380_v40  ;;  %v4382_v42 = vpop.xlane.xlu0 %4381 }
 0x535   : > { %6544 = vst [vmem:[%s10511_s7 + $0xb0] sm:$0xff] %v6349_v49   ;;  %v5094_v62 = vmax.f32 %v4998_v13, 0.0  ;;  %v4897_v54 = vmul.f32 %v10177_v51, %v4794_v59  ;;  %7653 = vrsqrt.f32 %v4609_v46  ;;  %v4515_v50 = vmul.f32 0.03125, %v4382_v42  ;;  %v10953_v59 = vld [vmem:[#allocation67_spill] sm:$0xff] }
 0x536   : > { %v7644_v41 = vpop.eup %7643  ;;  %v5095_v35 = vmax.f32 %v4999_v10, 0.0  ;;  %v4898_v29 = vmul.f32 %v10177_v51, %v4795_v43  ;;  %v4610_v7 = vadd.f32 1e-05, %v4514_v28  ;;  %v10954_v43 = vld [vmem:[#allocation70_spill] sm:$0xff] }
 0x537   : > { %v7646_v53 = vpop.eup %7645  ;;  %v6354_v37 = vpack.c.bf16 %v5094_v62, %v5093_v63  ;;  %v5000_v8 = vadd.f32 %v10193_v1, %v4897_v54  ;;  %v4796_v55 = vmul.f32 %v7644_v41, %v10951_v34  ;;  %v4611_v17 = vadd.f32 1e-05, %v4515_v50  ;;  %v4384_v24 = vpop.xlane.xlu1 %4383 }
 0x538   : > { %v5001_v14 = vadd.f32 %v10193_v1, %v4898_v29  ;;  %v4797_v60 = vmul.f32 %v7646_v53, %v10952_v58  ;;  %7655 = vrsqrt.f32 %v4610_v7  ;;  %v4516_v18 = vmul.f32 0.03125, %v4384_v24  ;;  %v4386_v36 = vpop.xlane.xlu0 %4385 }
 0x539   : > { %6545 = vst [vmem:[%s10511_s7 + $0xb8] sm:$0xff] %v6354_v37   ;;  %v5096_v39 = vmax.f32 %v5000_v8, 0.0  ;;  %v4899_v16 = vmul.f32 %v10177_v51, %v4796_v55  ;;  %7657 = vrsqrt.f32 %v4611_v17  ;;  %v4517_v5 = vmul.f32 0.03125, %v4386_v36  ;;  %v10955_v55 = vld [vmem:[#allocation69_spill] sm:$0xff] }
 0x53a   : > { %v7648_v63 = vpop.eup %7647  ;;  %v5097_v9 = vmax.f32 %v5001_v14, 0.0  ;;  %v4900_v19 = vmul.f32 %v10177_v51, %v4797_v60  ;;  %v4612_v21 = vadd.f32 1e-05, %v4516_v18  ;;  %v10956_v60 = vld [vmem:[#allocation72_spill] sm:$0xff] }
 0x53b   : > { %v7650_v49 = vpop.eup %7649  ;;  %v6359_v13 = vpack.c.bf16 %v5096_v39, %v5095_v35  ;;  %v5002_v26 = vadd.f32 %v10193_v1, %v4899_v16  ;;  %v4798_v46 = vmul.f32 %v7648_v63, %v10953_v59  ;;  %v4613_v40 = vadd.f32 1e-05, %v4517_v5  ;;  %v4388_v10 = vpop.xlane.xlu1 %4387 }
 0x53c   : > { %v5003_v20 = vadd.f32 %v10193_v1, %v4900_v19  ;;  %v4799_v28 = vmul.f32 %v7650_v49, %v10954_v43  ;;  %7659 = vrsqrt.f32 %v4612_v21  ;;  %v4518_v42 = vmul.f32 0.03125, %v4388_v10  ;;  %v4390_v62 = vpop.xlane.xlu0 %4389 }
 0x53d   : > { %6546 = vst [vmem:[%s10511_s7 + $0xc0] sm:$0xff] %v6359_v13   ;;  %v5098_v54 = vmax.f32 %v5002_v26, 0.0  ;;  %v4901_v50 = vmul.f32 %v10177_v51, %v4798_v46  ;;  %7661 = vrsqrt.f32 %v4613_v40  ;;  %v4519_v41 = vmul.f32 0.03125, %v4390_v62  ;;  %v10957_v46 = vld [vmem:[#allocation122_spill] sm:$0xff] }
 0x53e   : > { %v7652_v35 = vpop.eup %7651  ;;  %v5099_v29 = vmax.f32 %v5003_v20, 0.0  ;;  %v4902_v7 = vmul.f32 %v10177_v51, %v4799_v28  ;;  %v4614_v53 = vadd.f32 1e-05, %v4518_v42  ;;  %v10958_v28 = vld [vmem:[#allocation71_spill] sm:$0xff] }
 0x53f   : > { %v7654_v37 = vpop.eup %7653  ;;  %v6364_v8 = vpack.c.bf16 %v5098_v54, %v5097_v9  ;;  %v5004_v34 = vadd.f32 %v10193_v1, %v4901_v50  ;;  %v4800_v17 = vmul.f32 %v7652_v35, %v10955_v55  ;;  %v4615_v24 = vadd.f32 1e-05, %v4519_v41  ;;  %v4392_v14 = vpop.xlane.xlu1 %4391 }
 0x540   : > { %v5005_v58 = vadd.f32 %v10193_v1, %v4902_v7  ;;  %v4801_v18 = vmul.f32 %v7654_v37, %v10956_v60  ;;  %7663 = vrsqrt.f32 %v4614_v53  ;;  %v4520_v36 = vmul.f32 0.03125, %v4392_v14  ;;  %v4394_v39 = vpop.xlane.xlu0 %4393 }
 0x541   : > { %6547 = vst [vmem:[%s10511_s7 + $0xc8] sm:$0xff] %v6364_v8   ;;  %v5100_v16 = vmax.f32 %v5004_v34, 0.0  ;;  %v4903_v5 = vmul.f32 %v10177_v51, %v4800_v17  ;;  %7665 = vrsqrt.f32 %v4615_v24  ;;  %v4521_v63 = vmul.f32 0.03125, %v4394_v39  ;;  %v10959_v17 = vld [vmem:[#allocation74_spill] sm:$0xff] }
 0x542   : > { %v7656_v9 = vpop.eup %7655  ;;  %v5101_v19 = vmax.f32 %v5005_v58, 0.0  ;;  %v4904_v21 = vmul.f32 %v10177_v51, %v4801_v18  ;;  %v4616_v49 = vadd.f32 1e-05, %v4520_v36  ;;  %v10960_v18 = vld [vmem:[#allocation73_spill] sm:$0xff] }
 0x543   : > { %v7658_v13 = vpop.eup %7657  ;;  %v6369_v26 = vpack.c.bf16 %v5100_v16, %v5099_v29  ;;  %v5006_v59 = vadd.f32 %v10193_v1, %v4903_v5  ;;  %v4802_v40 = vmul.f32 %v7656_v9, %v10957_v46  ;;  %v4617_v10 = vadd.f32 1e-05, %v4521_v63  ;;  %v4396_v20 = vpop.xlane.xlu1 %4395 }
 0x544   : > { %v5007_v43 = vadd.f32 %v10193_v1, %v4904_v21  ;;  %v4803_v42 = vmul.f32 %v7658_v13, %v10958_v28  ;;  %7667 = vrsqrt.f32 %v4616_v49  ;;  %v4522_v62 = vmul.f32 0.03125, %v4396_v20  ;;  %v4398_v54 = vpop.xlane.xlu0 %4397 }
 0x545   : > { %6548 = vst [vmem:[%s10511_s7 + $0xd0] sm:$0xff] %v6369_v26   ;;  %v5102_v50 = vmax.f32 %v5006_v59, 0.0  ;;  %v4905_v41 = vmul.f32 %v10177_v51, %v4802_v40  ;;  %7669 = vrsqrt.f32 %v4617_v10  ;;  %v4523_v35 = vmul.f32 0.03125, %v4398_v54  ;;  %v10961_v40 = vld [vmem:[#allocation76_spill] sm:$0xff] }
 0x546   : > { %v7660_v29 = vpop.eup %7659  ;;  %v5103_v7 = vmax.f32 %v5007_v43, 0.0  ;;  %v4906_v53 = vmul.f32 %v10177_v51, %v4803_v42  ;;  %v4618_v37 = vadd.f32 1e-05, %v4522_v62  ;;  %v10962_v42 = vld [vmem:[#allocation75_spill] sm:$0xff] }
 0x547   : > { %v7662_v8 = vpop.eup %7661  ;;  %v6374_v34 = vpack.c.bf16 %v5102_v50, %v5101_v19  ;;  %v5008_v55 = vadd.f32 %v10193_v1, %v4905_v41  ;;  %v4804_v24 = vmul.f32 %v7660_v29, %v10959_v17  ;;  %v4619_v14 = vadd.f32 1e-05, %v4523_v35  ;;  %v4400_v58 = vpop.xlane.xlu1 %4399 }
 0x548   : > { %v5009_v60 = vadd.f32 %v10193_v1, %v4906_v53  ;;  %v4805_v36 = vmul.f32 %v7662_v8, %v10960_v18  ;;  %7671 = vrsqrt.f32 %v4618_v37  ;;  %v4524_v39 = vmul.f32 0.03125, %v4400_v58  ;;  %v4402_v16 = vpop.xlane.xlu0 %4401 }
 0x549   : > { %6549 = vst [vmem:[%s10511_s7 + $0xd8] sm:$0xff] %v6374_v34   ;;  %v5104_v5 = vmax.f32 %v5008_v55, 0.0  ;;  %v4907_v63 = vmul.f32 %v10177_v51, %v4804_v24  ;;  %7673 = vrsqrt.f32 %v4619_v14  ;;  %v4525_v9 = vmul.f32 0.03125, %v4402_v16  ;;  %v10963_v24 = vld [vmem:[#allocation78_spill] sm:$0xff] }
 0x54a   : > { %v7664_v19 = vpop.eup %7663  ;;  %v5105_v21 = vmax.f32 %v5009_v60, 0.0  ;;  %v4908_v49 = vmul.f32 %v10177_v51, %v4805_v36  ;;  %v4620_v13 = vadd.f32 1e-05, %v4524_v39  ;;  %v10964_v36 = vld [vmem:[#allocation89_spill] sm:$0xff] }
 0x54b   : > { %v7666_v26 = vpop.eup %7665  ;;  %v6379_v59 = vpack.c.bf16 %v5104_v5, %v5103_v7  ;;  %v5010_v46 = vadd.f32 %v10193_v1, %v4907_v63  ;;  %v4806_v10 = vmul.f32 %v7664_v19, %v10961_v40  ;;  %v4621_v20 = vadd.f32 1e-05, %v4525_v9  ;;  %v4404_v43 = vpop.xlane.xlu1 %4403 }
 0x54c   : > { %v5011_v28 = vadd.f32 %v10193_v1, %v4908_v49  ;;  %v4807_v62 = vmul.f32 %v7666_v26, %v10962_v42  ;;  %7675 = vrsqrt.f32 %v4620_v13  ;;  %v4526_v54 = vmul.f32 0.03125, %v4404_v43  ;;  %v4406_v50 = vpop.xlane.xlu0 %4405 }
 0x54d   : > { %6550 = vst [vmem:[%s10511_s7 + $0xe0] sm:$0xff] %v6379_v59   ;;  %v5106_v41 = vmax.f32 %v5010_v46, 0.0  ;;  %v4909_v35 = vmul.f32 %v10177_v51, %v4806_v10  ;;  %7677 = vrsqrt.f32 %v4621_v20  ;;  %v4527_v29 = vmul.f32 0.03125, %v4406_v50  ;;  %v10965_v10 = vld [vmem:[#allocation77_spill] sm:$0xff] }
 0x54e   : > { %v7668_v7 = vpop.eup %7667  ;;  %v5107_v53 = vmax.f32 %v5011_v28, 0.0  ;;  %v4910_v37 = vmul.f32 %v10177_v51, %v4807_v62  ;;  %v4622_v8 = vadd.f32 1e-05, %v4526_v54  ;;  %v10966_v62 = vld [vmem:[#allocation80_spill] sm:$0xff] }
 0x54f   : > { %v7670_v34 = vpop.eup %7669  ;;  %v6384_v55 = vpack.c.bf16 %v5106_v41, %v5105_v21  ;;  %v5012_v17 = vadd.f32 %v10193_v1, %v4909_v35  ;;  %v4808_v14 = vmul.f32 %v7668_v7, %v10963_v24  ;;  %v4623_v58 = vadd.f32 1e-05, %v4527_v29  ;;  %v4408_v60 = vpop.xlane.xlu1 %4407 }
 0x550   : > { %v5013_v18 = vadd.f32 %v10193_v1, %v4910_v37  ;;  %v4809_v39 = vmul.f32 %v7670_v34, %v10964_v36  ;;  %7679 = vrsqrt.f32 %v4622_v8  ;;  %v4528_v16 = vmul.f32 0.03125, %v4408_v60  ;;  %v4410_v5 = vpop.xlane.xlu0 %4409  ;;  %v10967_v36 = vld [vmem:[#allocation91_spill] sm:$0xff] }
 0x551   : > { %6551 = vst [vmem:[%s10511_s7 + $0xe8] sm:$0xff] %v6384_v55   ;;  %v5108_v63 = vmax.f32 %v5012_v17, 0.0  ;;  %v4911_v9 = vmul.f32 %v10177_v51, %v4808_v14  ;;  %7681 = vrsqrt.f32 %v4623_v58  ;;  %v4529_v19 = vmul.f32 0.03125, %v4410_v5 }
 0x552   : > { %v7672_v21 = vpop.eup %7671  ;;  %v5109_v49 = vmax.f32 %v5013_v18, 0.0  ;;  %v4912_v13 = vmul.f32 %v10177_v51, %v4809_v39  ;;  %v4624_v26 = vadd.f32 1e-05, %v4528_v16 }
 0x553   : > { %v7674_v59 = vpop.eup %7673  ;;  %v6389_v46 = vpack.c.bf16 %v5108_v63, %v5107_v53  ;;  %v5014_v40 = vadd.f32 %v10193_v1, %v4911_v9  ;;  %v4810_v20 = vmul.f32 %v7672_v21, %v10965_v10  ;;  %v4625_v43 = vadd.f32 1e-05, %v4529_v19  ;;  %v4412_v28 = vpop.xlane.xlu1 %4411 }
 0x554   : > { %v5015_v42 = vadd.f32 %v10193_v1, %v4912_v13  ;;  %v4811_v54 = vmul.f32 %v7674_v59, %v10966_v62  ;;  %7683 = vrsqrt.f32 %v4624_v26  ;;  %v4530_v50 = vmul.f32 0.03125, %v4412_v28  ;;  %v4414_v41 = vpop.xlane.xlu0 %4413 }
 0x555   : > { %6552 = vst [vmem:[%s10511_s7 + $0xf0] sm:$0xff] %v6389_v46   ;;  %v5110_v35 = vmax.f32 %v5014_v40, 0.0  ;;  %v4913_v29 = vmul.f32 %v10177_v51, %v4810_v20  ;;  %7685 = vrsqrt.f32 %v4625_v43  ;;  %v4531_v7 = vmul.f32 0.03125, %v4414_v41  ;;  %v10968_v40 = vld [vmem:[#allocation79_spill] sm:$0xff] }
 0x556   : > { %v7676_v53 = vpop.eup %7675  ;;  %v5111_v37 = vmax.f32 %v5015_v42, 0.0  ;;  %v4914_v8 = vmul.f32 %v10177_v51, %v4811_v54  ;;  %v4626_v34 = vadd.f32 1e-05, %v4530_v50 }
 0x557   : > { %v7678_v55 = vpop.eup %7677  ;;  %v6394_v17 = vpack.c.bf16 %v5110_v35, %v5109_v49  ;;  %v5016_v24 = vadd.f32 %v10193_v1, %v4913_v29  ;;  %v4812_v14 = vmul.f32 %v7676_v53, %v9826_v4  ;;  %v4627_v58 = vadd.f32 1e-05, %v4531_v7  ;;  %v4416_v60 = vpop.xlane.xlu1 %4415 }
 0x558   : > { %v5017_v18 = vadd.f32 %v10193_v1, %v4914_v8  ;;  %v4813_v39 = vmul.f32 %v7678_v55, %v10967_v36  ;;  %7687 = vrsqrt.f32 %v4626_v34  ;;  %v4532_v16 = vmul.f32 0.03125, %v4416_v60  ;;  %v4418_v5 = vpop.xlane.xlu0 %4417 }
 0x559   : > { %6553 = vst [vmem:[%s10511_s7 + $0xf8] sm:$0xff] %v6394_v17   ;;  %v5112_v63 = vmax.f32 %v5016_v24, 0.0  ;;  %v4915_v9 = vmul.f32 %v10177_v51, %v4812_v14  ;;  %7689 = vrsqrt.f32 %v4627_v58  ;;  %v4533_v19 = vmul.f32 0.03125, %v4418_v5 }
 0x55a   : > { %v7680_v21 = vpop.eup %7679  ;;  %v5113_v4 = vmax.f32 %v5017_v18, 0.0  ;;  %v4916_v49 = vmul.f32 %v10177_v51, %v4813_v39  ;;  %v4628_v13 = vadd.f32 1e-05, %v4532_v16 }
 0x55b   : > { %v7682_v26 = vpop.eup %7681  ;;  %v6399_v59 = vpack.c.bf16 %v5112_v63, %v5111_v37  ;;  %v5018_v46 = vadd.f32 %v10193_v1, %v4915_v9  ;;  %v4814_v10 = vmul.f32 %v7680_v21, %v10968_v40  ;;  %v4629_v20 = vadd.f32 1e-05, %v4533_v19  ;;  %v4420_v43 = vpop.xlane.xlu1 %4419 }
 0x55c   : > { %v5019_v28 = vadd.f32 %v10193_v1, %v4916_v49  ;;  %v4815_v42 = vmul.f32 %v7682_v26, %v9860_v56  ;;  %7691 = vrsqrt.f32 %v4628_v13  ;;  %v4534_v62 = vmul.f32 0.03125, %v4420_v43  ;;  %v4422_v54 = vpop.xlane.xlu0 %4421 }
 0x55d   : > { %6554 = vst [vmem:[%s10511_s7 + $0x100] sm:$0xff] %v6399_v59   ;;  %v5114_v50 = vmax.f32 %v5018_v46, 0.0  ;;  %v4917_v41 = vmul.f32 %v10177_v51, %v4814_v10  ;;  %7693 = vrsqrt.f32 %v4629_v20  ;;  %v4535_v35 = vmul.f32 0.03125, %v4422_v54 }
 0x55e   : > { %v7684_v29 = vpop.eup %7683  ;;  %v5115_v7 = vmax.f32 %v5019_v28, 0.0  ;;  %v4918_v53 = vmul.f32 %v10177_v51, %v4815_v42  ;;  %v4630_v37 = vadd.f32 1e-05, %v4534_v62 }
 0x55f   : > { %v7686_v8 = vpop.eup %7685  ;;  %v6404_v34 = vpack.c.bf16 %v5114_v50, %v5113_v4  ;;  %v5020_v56 = vadd.f32 %v10193_v1, %v4917_v41  ;;  %v4816_v55 = vmul.f32 %v7684_v29, %v9865_v25  ;;  %v4631_v17 = vadd.f32 1e-05, %v4535_v35  ;;  %v4424_v24 = vpop.xlane.xlu1 %4423 }
 0x560   : > { %v5021_v14 = vadd.f32 %v10193_v1, %v4918_v53  ;;  %v4817_v58 = vmul.f32 %v7686_v8, %v9869_v32  ;;  %7695 = vrsqrt.f32 %v4630_v37  ;;  %v4536_v60 = vmul.f32 0.03125, %v4424_v24  ;;  %v4426_v18 = vpop.xlane.xlu0 %4425  ;;  %v10969_v53 = vld [vmem:[#allocation82_spill] sm:$0xff] }
 0x561   : > { %6555 = vst [vmem:[%s10511_s7 + $0x108] sm:$0xff] %v6404_v34   ;;  %v5116_v36 = vmax.f32 %v5020_v56, 0.0  ;;  %v4919_v39 = vmul.f32 %v10177_v51, %v4816_v55  ;;  %7697 = vrsqrt.f32 %v4631_v17  ;;  %v4537_v16 = vmul.f32 0.03125, %v4426_v18 }
 0x562   : > { %v7688_v5 = vpop.eup %7687  ;;  %v5117_v25 = vmax.f32 %v5021_v14, 0.0  ;;  %v4920_v63 = vmul.f32 %v10177_v51, %v4817_v58  ;;  %v4632_v9 = vadd.f32 1e-05, %v4536_v60 }
 0x563   : > { %v7690_v19 = vpop.eup %7689  ;;  %v6409_v21 = vpack.c.bf16 %v5116_v36, %v5115_v7  ;;  %v5022_v32 = vadd.f32 %v10193_v1, %v4919_v39  ;;  %v4818_v4 = vmul.f32 %v7688_v5, %v9894_v61  ;;  %v4633_v49 = vadd.f32 1e-05, %v4537_v16  ;;  %v4428_v13 = vpop.xlane.xlu1 %4427  ;;  %v10970_v39 = vld [vmem:[#allocation81_spill] sm:$0xff] }
 0x564   : > { %v5023_v26 = vadd.f32 %v10193_v1, %v4920_v63  ;;  %v4819_v59 = vmul.f32 %v7690_v19, %v9903_v27  ;;  %7699 = vrsqrt.f32 %v4632_v9  ;;  %v4538_v46 = vmul.f32 0.03125, %v4428_v13  ;;  %v4430_v40 = vpop.xlane.xlu0 %4429 }
 0x565   : > { %6556 = vst [vmem:[%s10511_s7 + $0x110] sm:$0xff] %v6409_v21   ;;  %v5118_v10 = vmax.f32 %v5022_v32, 0.0  ;;  %v4921_v20 = vmul.f32 %v10177_v51, %v4818_v4  ;;  %7701 = vrsqrt.f32 %v4633_v49  ;;  %v4539_v43 = vmul.f32 0.03125, %v4430_v40 }
 0x566   : > { %v7692_v28 = vpop.eup %7691  ;;  %v5119_v61 = vmax.f32 %v5023_v26, 0.0  ;;  %v4922_v42 = vmul.f32 %v10177_v51, %v4819_v59  ;;  %v4634_v62 = vadd.f32 1e-05, %v4538_v46 }
 0x567   : > { %v7694_v54 = vpop.eup %7693  ;;  %v6414_v50 = vpack.c.bf16 %v5118_v10, %v5117_v25  ;;  %v5024_v27 = vadd.f32 %v10193_v1, %v4921_v20  ;;  %v4820_v41 = vmul.f32 %v7692_v28, %v9916_v48  ;;  %v4635_v35 = vadd.f32 1e-05, %v4539_v43  ;;  %v4432_v29 = vpop.xlane.xlu1 %4431 }
 0x568   : > { %v5025_v7 = vadd.f32 %v10193_v1, %v4922_v42  ;;  %v4821_v37 = vmul.f32 %v7694_v54, %v10969_v53  ;;  %7703 = vrsqrt.f32 %v4634_v62  ;;  %v4540_v8 = vmul.f32 0.03125, %v4432_v29  ;;  %v4434_v34 = vpop.xlane.xlu0 %4433 }
 0x569   : > { %6557 = vst [vmem:[%s10511_s7 + $0x118] sm:$0xff] %v6414_v50   ;;  %v5120_v56 = vmax.f32 %v5024_v27, 0.0  ;;  %v4923_v55 = vmul.f32 %v10177_v51, %v4820_v41  ;;  %7705 = vrsqrt.f32 %v4635_v35  ;;  %v4541_v17 = vmul.f32 0.03125, %v4434_v34 }
 0x56a   : > { %v7696_v24 = vpop.eup %7695  ;;  %v5121_v48 = vmax.f32 %v5025_v7, 0.0  ;;  %v4924_v14 = vmul.f32 %v10177_v51, %v4821_v37  ;;  %v4636_v58 = vadd.f32 1e-05, %v4540_v8 }
 0x56b   : > { %v7698_v60 = vpop.eup %7697  ;;  %v6419_v18 = vpack.c.bf16 %v5120_v56, %v5119_v61  ;;  %v5026_v36 = vadd.f32 %v10193_v1, %v4923_v55  ;;  %v4822_v16 = vmul.f32 %v7696_v24, %v10970_v39  ;;  %v4637_v5 = vadd.f32 1e-05, %v4541_v17  ;;  %v4436_v25 = vpop.xlane.xlu1 %4435 }
 0x56c   : > { %v5027_v63 = vadd.f32 %v10193_v1, %v4924_v14  ;;  %v4823_v9 = vmul.f32 %v7698_v60, %v9947_v33  ;;  %7707 = vrsqrt.f32 %v4636_v58  ;;  %v4542_v19 = vmul.f32 0.03125, %v4436_v25  ;;  %v4438_v21 = vpop.xlane.xlu0 %4437 }
 0x56d   : > { %6558 = vst [vmem:[%s10511_s7 + $0x120] sm:$0xff] %v6419_v18   ;;  %v5122_v32 = vmax.f32 %v5026_v36, 0.0  ;;  %v4925_v4 = vmul.f32 %v10177_v51, %v4822_v16  ;;  %7709 = vrsqrt.f32 %v4637_v5  ;;  %v4543_v49 = vmul.f32 0.03125, %v4438_v21 }
 0x56e   : > { %v7700_v13 = vpop.eup %7699  ;;  %v5123_v26 = vmax.f32 %v5027_v63, 0.0  ;;  %v4926_v59 = vmul.f32 %v10177_v51, %v4823_v9  ;;  %v4638_v46 = vadd.f32 1e-05, %v4542_v19 }
 0x56f   : > { %v7702_v40 = vpop.eup %7701  ;;  %v6424_v10 = vpack.c.bf16 %v5122_v32, %v5121_v48  ;;  %v5028_v33 = vadd.f32 %v10193_v1, %v4925_v4  ;;  %v4824_v20 = vmul.f32 %v7700_v13, %v9951_v31  ;;  %v4639_v43 = vadd.f32 1e-05, %v4543_v49  ;;  %v4440_v28 = vpop.xlane.xlu1 %4439  ;;  %v10421_v49 = vld [vmem:[%s10509_s5] ss:$0 sm:$0xff] }
 0x570   : > { %v5029_v61 = vadd.f32 %v10193_v1, %v4926_v59  ;;  %v4825_v42 = vmul.f32 %v7702_v40, %v9955_v30  ;;  %7711 = vrsqrt.f32 %v4638_v46  ;;  %v4544_v62 = vmul.f32 0.03125, %v4440_v28  ;;  %v4442_v54 = vpop.xlane.xlu0 %4441 }
 0x571   : > { %6559 = vst [vmem:[%s10511_s7 + $0x128] sm:$0xff] %v6424_v10   ;;  %v5124_v50 = vmax.f32 %v5028_v33, 0.0  ;;  %v4927_v27 = vmul.f32 %v10177_v51, %v4824_v20  ;;  %7713 = vrsqrt.f32 %v4639_v43  ;;  %v4545_v41 = vmul.f32 0.03125, %v4442_v54 }
 0x572   : > { %v7704_v35 = vpop.eup %7703  ;;  %v5125_v31 = vmax.f32 %v5029_v61, 0.0  ;;  %v4928_v29 = vmul.f32 %v10177_v51, %v4825_v42  ;;  %v4640_v7 = vadd.f32 1e-05, %v4544_v62 }
 0x573   : > { %v7706_v53 = vpop.eup %7705  ;;  %v6429_v37 = vpack.c.bf16 %v5124_v50, %v5123_v26  ;;  %v5030_v30 = vadd.f32 %v10193_v1, %v4927_v27  ;;  %v4826_v8 = vmul.f32 %v7704_v35, %v9977_v52  ;;  %v4641_v34 = vadd.f32 1e-05, %v4545_v41  ;;  %v4444_v56 = vpop.xlane.xlu1 %4443 }
 0x574   : > { %v5031_v55 = vadd.f32 %v10193_v1, %v4928_v29  ;;  %v4827_v17 = vmul.f32 %v7706_v53, %v9984_v57  ;;  %7715 = vrsqrt.f32 %v4640_v7  ;;  %v4546_v24 = vmul.f32 0.03125, %v4444_v56  ;;  %v4446_v48 = vpop.xlane.xlu0 %4445 }
 0x575   : > { %6560 = vst [vmem:[%s10511_s7 + $0x130] sm:$0xff] %v6429_v37   ;;  %v5126_v14 = vmax.f32 %v5030_v30, 0.0  ;;  %v4929_v58 = vmul.f32 %v10177_v51, %v4826_v8  ;;  %7717 = vrsqrt.f32 %v4641_v34  ;;  %v4547_v60 = vmul.f32 0.03125, %v4446_v48 }
 0x576   : > { %v7708_v18 = vpop.eup %7707  ;;  %v5127_v52 = vmax.f32 %v5031_v55, 0.0  ;;  %v4930_v36 = vmul.f32 %v10177_v51, %v4827_v17  ;;  %v4642_v39 = vadd.f32 1e-05, %v4546_v24 }
 0x577   : > { %v7710_v16 = vpop.eup %7709  ;;  %v6434_v5 = vpack.c.bf16 %v5126_v14, %v5125_v31  ;;  %v5032_v57 = vadd.f32 %v10193_v1, %v4929_v58  ;;  %v4828_v25 = vmul.f32 %v7708_v18, %v9996_v3  ;;  %v4643_v63 = vadd.f32 1e-05, %v4547_v60  ;;  %v4448_v9 = vpop.xlane.xlu1 %4447 }
 0x578   : > { %v5033_v19 = vadd.f32 %v10193_v1, %v4930_v36  ;;  %v4829_v21 = vmul.f32 %v7710_v16, %v10000_v22  ;;  %7719 = vrsqrt.f32 %v4642_v39  ;;  %v4548_v32 = vmul.f32 0.03125, %v4448_v9  ;;  %v4450_v4 = vpop.xlane.xlu0 %4449 }
 0x579   : > { %6561 = vst [vmem:[%s10511_s7 + $0x138] sm:$0xff] %v6434_v5   ;;  %v5128_v51 = vmax.f32 %v5032_v57, 0.0  ;;  %v4931_v3 = vmul.f32 %v10421_v49, %v4828_v25  ;;  %7721 = vrsqrt.f32 %v4643_v63  ;;  %v4549_v13 = vmul.f32 0.03125, %v4450_v4 }
 0x57a   : > { %v7712_v26 = vpop.eup %7711  ;;  %v5129_v59 = vmax.f32 %v5033_v19, 0.0  ;;  %v4932_v22 = vmul.f32 %v10421_v49, %v4829_v21  ;;  %v4644_v46 = vadd.f32 1e-05, %v4548_v32 }
 0x57b   : > { %v7714_v40 = vpop.eup %7713  ;;  %v6439_v10 = vpack.c.bf16 %v5128_v51, %v5127_v52  ;;  %v5034_v33 = vadd.f32 %v10193_v1, %v4931_v3  ;;  %v4830_v20 = vmul.f32 %v7712_v26, %v10004_v45  ;;  %v4645_v43 = vadd.f32 1e-05, %v4549_v13  ;;  %v4452_v28 = vpop.xlane.xlu1 %4451 }
 0x57c   : > { %v5035_v61 = vadd.f32 %v10193_v1, %v4932_v22  ;;  %v4831_v42 = vmul.f32 %v7714_v40, %v10020_v47  ;;  %7723 = vrsqrt.f32 %v4644_v46  ;;  %v4550_v62 = vmul.f32 0.03125, %v4452_v28  ;;  %v4454_v54 = vpop.xlane.xlu0 %4453  ;;  %v10437_v47 = vld [vmem:[%s10510_s6] ss:$0 sm:$0xff] }
 0x57d   : > { %6562 = vst [vmem:[%s10511_s7 + $0x140] sm:$0xff] %v6439_v10   ;;  %v5130_v50 = vmax.f32 %v5034_v33, 0.0  ;;  %v4933_v27 = vmul.f32 %v10421_v49, %v4830_v20  ;;  %7725 = vrsqrt.f32 %v4645_v43  ;;  %v4551_v41 = vmul.f32 0.03125, %v4454_v54 }
 0x57e   : > { %v7716_v35 = vpop.eup %7715  ;;  %v4934_v45 = vmul.f32 %v10421_v49, %v4831_v42  ;;  %v4646_v31 = vadd.f32 1e-05, %v4550_v62  ;;  %v5131_v8 = vmax.f32 %v5035_v61, 0.0 }
 0x57f   : > { %v7718_v29 = vpop.eup %7717  ;;  %v6444_v1 = vpack.c.bf16 %v5130_v50, %v5129_v59  ;;  %v5036_v7 = vadd.f32 %v10437_v47, %v4933_v27  ;;  %v4832_v53 = vmul.f32 %v7716_v35, %v10027_v38  ;;  %v4647_v37 = vadd.f32 1e-05, %v4551_v41  ;;  %v4456_v30 = vpop.xlane.xlu1 %4455 }
 0x580   : > { %v4833_v34 = vmul.f32 %v7718_v29, %v10043_v11  ;;  %7727 = vrsqrt.f32 %v4646_v31  ;;  %v4552_v56 = vmul.f32 0.03125, %v4456_v30  ;;  %v5037_v17 = vadd.f32 %v10437_v47, %v4934_v45 }
 0x581   : > { %6563 = vst [vmem:[%s10511_s7 + $0x148] sm:$0xff] %v6444_v1   ;;  %v5132_v55 = vmax.f32 %v5036_v7, 0.0  ;;  %v4935_v24 = vmul.f32 %v10421_v49, %v4832_v53  ;;  %7729 = vrsqrt.f32 %v4647_v37 }
 0x582   : > { %v7720_v48 = vpop.eup %7719  ;;  %v4936_v38 = vmul.f32 %v10421_v49, %v4833_v34  ;;  %v4648_v14 = vadd.f32 1e-05, %v4552_v56  ;;  %v5133_v36 = vmax.f32 %v5037_v17, 0.0 }
 0x583   : > { %v7722_v58 = vpop.eup %7721  ;;  %v6449_v60 = vpack.c.bf16 %v5132_v55, %v5131_v8  ;;  %v5038_v11 = vadd.f32 %v10437_v47, %v4935_v24  ;;  %v4834_v18 = vmul.f32 %v7720_v48, %v10050_v44 }
 0x584   : > { %v4835_v52 = vmul.f32 %v7722_v58, %v10054_v6  ;;  %7731 = vrsqrt.f32 %v4648_v14  ;;  %v5039_v16 = vadd.f32 %v10437_v47, %v4936_v38 }
 0x585   : > { %6564 = vst [vmem:[%s10511_s7 + $0x150] sm:$0xff] %v6449_v60   ;;  %v5134_v39 = vmax.f32 %v5038_v11, 0.0  ;;  %v4937_v5 = vmul.f32 %v10421_v49, %v4834_v18 }
 0x586   : > { %v7724_v57 = vpop.eup %7723  ;;  %v4938_v25 = vmul.f32 %v10421_v49, %v4835_v52  ;;  %v5135_v21 = vmax.f32 %v5039_v16, 0.0 }
 0x587   : > { %v7726_v63 = vpop.eup %7725  ;;  %v6454_v9 = vpack.c.bf16 %v5134_v39, %v5133_v36  ;;  %v5040_v44 = vadd.f32 %v10437_v47, %v4937_v5  ;;  %v4836_v6 = vmul.f32 %v7724_v57, %v10069_v12 }
 0x588   : > { %v4837_v19 = vmul.f32 %v7726_v63, %v10073_v23  ;;  %v5041_v4 = vadd.f32 %v10437_v47, %v4938_v25 }
 0x589   : > { %6565 = vst [vmem:[%s10511_s7 + $0x158] sm:$0xff] %v6454_v9   ;;  %v5136_v32 = vmax.f32 %v5040_v44, 0.0  ;;  %v4939_v51 = vmul.f32 %v10421_v49, %v4836_v6 }
 0x58a   : > { %v7728_v3 = vpop.eup %7727  ;;  %v4940_v13 = vmul.f32 %v10421_v49, %v4837_v19  ;;  %v5137_v46 = vmax.f32 %v5041_v4, 0.0 }
 0x58b   : > { %v7730_v26 = vpop.eup %7729  ;;  %v6459_v59 = vpack.c.bf16 %v5136_v32, %v5135_v21  ;;  %v5042_v22 = vadd.f32 %v10437_v47, %v4939_v51  ;;  %v4838_v12 = vmul.f32 %v7728_v3, %v10090_v15 }
 0x58c   : > { %v4839_v23 = vmul.f32 %v7730_v26, %v10094_v2  ;;  %v5043_v10 = vadd.f32 %v10437_v47, %v4940_v13 }
 0x58d   : > { %6566 = vst [vmem:[%s10511_s7 + $0x160] sm:$0xff] %v6459_v59   ;;  %v5138_v40 = vmax.f32 %v5042_v22, 0.0  ;;  %v4941_v33 = vmul.f32 %v10421_v49, %v4838_v12 }
 0x58e   : > { %v7732_v20 = vpop.eup %7731  ;;  %v4942_v43 = vmul.f32 %v10421_v49, %v4839_v23  ;;  %v5139_v2 = vmax.f32 %v5043_v10, 0.0 }
 0x58f   : > { %v6464_v28 = vpack.c.bf16 %v5138_v40, %v5137_v46  ;;  %v5044_v61 = vadd.f32 %v10437_v47, %v4941_v33  ;;  %v4840_v15 = vmul.f32 %v7732_v20, %v10103_v0 }
 0x590   : > { %v5045_v62 = vadd.f32 %v10437_v47, %v4942_v43 }
 0x591   : > { %6567 = vst [vmem:[%s10511_s7 + $0x168] sm:$0xff] %v6464_v28   ;;  %v5140_v42 = vmax.f32 %v5044_v61, 0.0  ;;  %v4943_v54 = vmul.f32 %v10421_v49, %v4840_v15 }
 0x592   : > { %v5141_v41 = vmax.f32 %v5045_v62, 0.0 }
 0x593   : > { %v6469_v50 = vpack.c.bf16 %v5140_v42, %v5139_v2  ;;  %v5046_v27 = vadd.f32 %v10437_v47, %v4943_v54 }
 0x595   : > { %6568 = vst [vmem:[%s10511_s7 + $0x170] sm:$0xff] %v6469_v50   ;;  %v5142_v35 = vmax.f32 %v5046_v27, 0.0 }
 0x597   : > { %v6474_v0 = vpack.c.bf16 %v5142_v35, %v5141_v41 }
 0x599   : > { %6569 = vst [vmem:[%s10511_s7 + $0x178] sm:$0xff] %v6474_v0  }
 0x59a PF: > { %s17_s28 = sadd.s32 1, %s7775_s28   ;;  %s10971_s24 = smov %s7763_s25 }
 0x59b   : > { %p14_p13 = scmp.ge.s32.totalorder %s17_s28, 5   ;;  %s10972_s25 = smov %s7853_s9 }
 0x59c   : > { %s10973_s26 = smov %s7771_s27  ;;  %s10974_s27 = smov %s10976_s29 }
 0x59d   :  { %16 = sbr.rel (!%p14_p13) target bundleno = 3 (0x3), region = 139 }

</bundles_post_ra>
